<compile_context>
chip_gen: v6e
topology: v6e:2x2x1
jax: 0.10.0
libtpu: 0.0.40
codegen_flags: <defaults>
</compile_context>

<pallas_src>
import functools

import jax
import jax.numpy as jnp
from jax.experimental import pallas as pl
from jax.experimental.pallas import tpu as pltpu


def _round_up(n, m):
    return ((n + m - 1) // m) * m


def _cdiv(a, b):
    return -(-a // b)


# ----------------------------------------------------------------------------
# Pallas kernels
# ----------------------------------------------------------------------------
def _matmul_bias_act_kernel(x_ref, w_ref, b_ref, o_ref, *, act):
    """o = act(x @ w + b).  x:(tm,K) bf16, w:(K,N) bf16, b:(1,N) f32."""
    acc = jnp.dot(x_ref[...], w_ref[...], preferred_element_type=jnp.float32)
    acc = acc + b_ref[...]
    if act == "relu":
        acc = jnp.maximum(acc, 0.0)
    elif act == "sigmoid":
        acc = jax.nn.sigmoid(acc)
    o_ref[...] = acc.astype(o_ref.dtype)


def _mlp_kernel(x_ref, w1_ref, b1_ref, w2_ref, b2_ref, o_ref):
    """Fused Linear+ReLU+Linear+ReLU; the hidden layer stays on-chip."""
    h = jnp.dot(x_ref[...], w1_ref[...], preferred_element_type=jnp.float32)
    h = jnp.maximum(h + b1_ref[...], 0.0)
    h = jnp.dot(h.astype(w2_ref.dtype), w2_ref[...],
                preferred_element_type=jnp.float32)
    h = jnp.maximum(h + b2_ref[...], 0.0)
    o_ref[...] = h.astype(o_ref.dtype)


# ----------------------------------------------------------------------------
# pallas_call wrappers
# ----------------------------------------------------------------------------
_MAX_TM = 1152  # max rows per M-tile (multiple of 8); all layers stay << VMEM


def _pick_tile(M):
    n = _cdiv(M, _MAX_TM)
    tm = _round_up(_cdiv(M, n), 8)
    grid_m = _cdiv(M, tm)
    return tm, grid_m, tm * grid_m


def fused_matmul(x, w, b, act, out_dtype=jnp.bfloat16):
    """act(x @ w + b).  x:(M,K), w:(Kp,Np) bf16 pre-padded, b:(1,Np) f32."""
    M, K = x.shape
    Kp, Np = w.shape
    tm, grid_m, Mp = _pick_tile(M)
    xp = jnp.zeros((Mp, Kp), jnp.bfloat16).at[:M, :K].set(x.astype(jnp.bfloat16))
    out = pl.pallas_call(
        functools.partial(_matmul_bias_act_kernel, act=act),
        out_shape=jax.ShapeDtypeStruct((Mp, Np), out_dtype),
        grid_spec=pltpu.PrefetchScalarGridSpec(
            num_scalar_prefetch=0,
            grid=(grid_m,),
            in_specs=[
                pl.BlockSpec((tm, Kp), lambda i: (i, 0)),
                pl.BlockSpec((Kp, Np), lambda i: (0, 0)),
                pl.BlockSpec((1, Np), lambda i: (0, 0)),
            ],
            out_specs=pl.BlockSpec((tm, Np), lambda i: (i, 0)),
        ),
        compiler_params=pltpu.CompilerParams(dimension_semantics=("parallel",)),
    )(xp, w, b)
    return out[:M]


def fused_batched_matmul(x, w, b, act, out_dtype=jnp.bfloat16):
    """act(x[g] @ w[g] + b) for the 4 sub-pixel parities in one pallas_call.

    x:(G,M,K), w:(G,Kp,Np) bf16 pre-padded, b:(1,Np) f32 (shared)."""
    G, M, K = x.shape
    _, Kp, Np = w.shape
    tm, grid_m, Mp = _pick_tile(M)
    xp = jnp.zeros((G, Mp, Kp), jnp.bfloat16).at[:, :M, :K].set(
        x.astype(jnp.bfloat16))
    out = pl.pallas_call(
        functools.partial(_matmul_bias_act_kernel, act=act),
        out_shape=jax.ShapeDtypeStruct((G, Mp, Np), out_dtype),
        grid_spec=pltpu.PrefetchScalarGridSpec(
            num_scalar_prefetch=0,
            grid=(G, grid_m),
            in_specs=[
                pl.BlockSpec((None, tm, Kp), lambda g, i: (g, i, 0)),
                pl.BlockSpec((None, Kp, Np), lambda g, i: (g, 0, 0)),
                pl.BlockSpec((1, Np), lambda g, i: (0, 0)),
            ],
            out_specs=pl.BlockSpec((None, tm, Np), lambda g, i: (g, i, 0)),
        ),
        compiler_params=pltpu.CompilerParams(
            dimension_semantics=("parallel", "parallel")),
    )(xp, w, b)
    return out[:, :M]


def fused_mlp(x, w1, b1, w2, b2, out_dtype=jnp.bfloat16):
    """ReLU(ReLU(x@w1+b1)@w2+b2) in a single pallas_call (M = batch is tiny)."""
    B, K = x.shape
    K1p, N1 = w1.shape
    N2p = w2.shape[1]
    Mp = _round_up(max(B, 8), 8)
    xp = jnp.zeros((Mp, K1p), jnp.bfloat16).at[:B, :K].set(x.astype(jnp.bfloat16))
    out = pl.pallas_call(
        _mlp_kernel,
        out_shape=jax.ShapeDtypeStruct((Mp, N2p), out_dtype),
        grid_spec=pltpu.PrefetchScalarGridSpec(
            num_scalar_prefetch=0,
            grid=(1,),
            in_specs=[
                pl.BlockSpec((Mp, K1p), lambda i: (0, 0)),
                pl.BlockSpec((K1p, N1), lambda i: (0, 0)),
                pl.BlockSpec((1, N1), lambda i: (0, 0)),
                pl.BlockSpec((N1, N2p), lambda i: (0, 0)),
                pl.BlockSpec((1, N2p), lambda i: (0, 0)),
            ],
            out_specs=pl.BlockSpec((Mp, N2p), lambda i: (0, 0)),
        ),
    )(xp, w1, b1, w2, b2)
    return out[:B]


# ----------------------------------------------------------------------------
# Conv layers (NHWC; patch extraction is thin JAX glue, math is in Pallas)
# ----------------------------------------------------------------------------
def conv3x3(x, wm, bm, cout, act):
    """PyTorch Conv2d(k=3, s=1, p=1) in NHWC via im2col + fused matmul."""
    B, H, W, C = x.shape
    xp = jnp.pad(x, ((0, 0), (1, 1), (1, 1), (0, 0)))
    cols = [xp[:, di:di + H, dj:dj + W, :] for di in range(3) for dj in range(3)]
    patches = jnp.concatenate(cols, axis=-1).reshape(B * H * W, 9 * C)
    y = fused_matmul(patches, wm, bm, act)
    return y[:, :cout].reshape(B, H, W, cout)


def conv_transpose4x4(x, wm, bm, cout, act, out_dtype=jnp.bfloat16):
    """PyTorch ConvTranspose2d(k=4, s=2, p=1) via sub-pixel decomposition:
    output parity (rh, rw) is a stride-1 2x2 conv using weight taps
    kh = 3-rh-2d, kw = 3-rw-2e; the 4 parities interleave into the 2x grid."""
    B, H, W, C = x.shape
    xp = jnp.pad(x, ((0, 0), (1, 1), (1, 1), (0, 0)))
    pats = []
    for rh in range(2):
        for rw in range(2):
            cols = [xp[:, rh + d:rh + d + H, rw + e:rw + e + W, :]
                    for d in range(2) for e in range(2)]
            pats.append(jnp.concatenate(cols, axis=-1).reshape(B * H * W, 4 * C))
    patches = jnp.stack(pats, axis=0)                       # (4, B*H*W, 4*C)
    y = fused_batched_matmul(patches, wm, bm, act, out_dtype=out_dtype)
    y = y[:, :, :cout].reshape(2, 2, B, H, W, cout)          # (rh, rw, b, h, w, c)
    y = y.transpose(2, 3, 0, 4, 1, 5).reshape(B, 2 * H, 2 * W, cout)
    return y


# ----------------------------------------------------------------------------
# One-time parameter preparation (reshape / flip / pad / bf16 cast)
# ----------------------------------------------------------------------------
def prepare_params(p):
    bf16 = jnp.bfloat16

    def pad_mat(w, Kp, Np):
        K, N = w.shape
        return jnp.zeros((Kp, Np), jnp.float32).at[:K, :N].set(w).astype(bf16)

    def pad_bias(b, Np):
        return jnp.zeros((1, Np), jnp.float32).at[0, :b.shape[0]].set(b)

    # fused MLP: fc1 (4->512), fc2 (512->1120); fc2 columns permuted so the
    # output reshapes directly to NHWC (B, 7, 10, 16).
    perm = (jnp.arange(16)[None, None, :] * 70
            + jnp.arange(7)[:, None, None] * 10
            + jnp.arange(10)[None, :, None]).reshape(-1)
    w1 = pad_mat(p["fc1_w"].T, 128, 512)
    b1 = pad_bias(p["fc1_b"], 512)
    w2 = pad_mat(p["fc2_w"].T[:, perm], 512, 1152)
    b2 = pad_bias(p["fc2_b"][perm], 1152)

    def prep_conv(w, b):                     # Conv2d weight (Cout, Cin, 3, 3)
        Cout, Cin, kh, kw = w.shape
        K = kh * kw * Cin
        wm = w.transpose(2, 3, 1, 0).reshape(K, Cout)   # [(di*kw+dj)*Cin+ci, co]
        Kp, Np = _round_up(K, 128), _round_up(Cout, 128)
        return pad_mat(wm, Kp, Np), pad_bias(b, Np), Cout

    def prep_convT(w, b):                    # ConvTranspose2d weight (Cin, Cout, 4, 4)
        Cin, Cout = w.shape[0], w.shape[1]
        K = 4 * Cin
        Kp, Np = _round_up(K, 128), _round_up(Cout, 128)
        wm = jnp.zeros((4, Kp, Np), jnp.float32)
        for rh in range(2):
            for rw in range(2):
                g = 2 * rh + rw
                for d in range(2):
                    for e in range(2):
                        tap = w[:, :, 3 - rh - 2 * d, 3 - rw - 2 * e]  # (Cin, Cout)
                        k0 = (2 * d + e) * Cin
                        wm = wm.at[g, k0:k0 + Cin, :Cout].set(tap)
        return wm.astype(bf16), pad_bias(b, Np), Cout

    return {
        "mlp": (w1, b1, w2, b2),
        "ct1": prep_convT(p["ct1_w"], p["ct1_b"]),
        "c1": prep_conv(p["c1_w"], p["c1_b"]),
        "ct2": prep_convT(p["ct2_w"], p["ct2_b"]),
        "c2": prep_conv(p["c2_w"], p["c2_b"]),
        "ct3": prep_convT(p["ct3_w"], p["ct3_b"]),
    }


# ----------------------------------------------------------------------------
# Conv_decoder forward (NHWC internally, NCHW at the boundary)
# ----------------------------------------------------------------------------
def conv_decoder_forward(x, pp):
    B = x.shape[0]
    # ff_layers: Linear(4,512)+ReLU, Linear(512, 7*10*16)+ReLU  (one kernel)
    h = fused_mlp(x, *pp["mlp"])[:, :7 * 10 * 16]
    # view(-1, 16, 7, 10) -> NHWC (fc2 columns were pre-permuted)
    h = h.reshape(B, 7, 10, 16)
    h = conv_transpose4x4(h, *pp["ct1"], act="relu")            # (B, 14, 20, 64)
    h = conv3x3(h, *pp["c1"], act="relu")                       # (B, 14, 20, 64)
    h = conv_transpose4x4(h, *pp["ct2"], act="relu")            # (B, 28, 40, 16)
    h = conv3x3(h, *pp["c2"], act="relu")                       # (B, 28, 40, 16)
    # nn.Dropout(p=0.15): identity at inference (eval mode)
    h = conv_transpose4x4(h, *pp["ct3"], act="sigmoid",
                          out_dtype=jnp.float32)                # (B, 56, 80, 1)
    return h.transpose(0, 3, 1, 2)                              # (B, 1, 56, 80)


def init_params(key):
    ks = jax.random.split(key, 7)
    s = 0.05

    def n(k, shape):
        return (s * jax.random.normal(k, shape)).astype(jnp.float32)

    return {
        "fc1_w": n(ks[0], (512, 4)),       "fc1_b": jnp.zeros((512,), jnp.float32),
        "fc2_w": n(ks[1], (1120, 512)),    "fc2_b": jnp.zeros((1120,), jnp.float32),
        "ct1_w": n(ks[2], (16, 64, 4, 4)), "ct1_b": jnp.zeros((64,), jnp.float32),
        "c1_w":  n(ks[3], (64, 64, 3, 3)), "c1_b":  jnp.zeros((64,), jnp.float32),
        "ct2_w": n(ks[4], (64, 16, 4, 4)), "ct2_b": jnp.zeros((16,), jnp.float32),
        "c2_w":  n(ks[5], (16, 16, 3, 3)), "c2_b":  jnp.zeros((16,), jnp.float32),
        "ct3_w": n(ks[6], (16, 1, 4, 4)),  "ct3_b": jnp.zeros((1,), jnp.float32),
    }


if __name__ == "__main__":
    key = jax.random.PRNGKey(0)
    pkey, xkey = jax.random.split(key)
    params = init_params(pkey)
    prepared = prepare_params(params)   # one-time weight relayout / padding

    batch = 2
    x = jax.random.normal(xkey, (batch, 4), dtype=jnp.float32)

    fwd = jax.jit(lambda inp: conv_decoder_forward(inp, prepared))
    out = jax.block_until_ready(fwd(x))

    assert out.shape == (batch, 1, 56, 80), out.shape
    assert bool(jnp.all(jnp.isfinite(out)))
    assert bool(jnp.all((out >= 0.0) & (out <= 1.0)))  # sigmoid output range
    print("KERNEL_OK")
</pallas_src>

<mosaic_0001>
module attributes {stable_mosaic.version = 11 : i64} {
  func.func @_mlp_kernel(%arg0: i32, %arg1: memref<8x128xbf16, #tpu.memory_space<vmem>>, %arg2: memref<128x512xbf16, #tpu.memory_space<vmem>>, %arg3: memref<1x512xf32, #tpu.memory_space<vmem>>, %arg4: memref<512x1152xbf16, #tpu.memory_space<vmem>>, %arg5: memref<1x1152xf32, #tpu.memory_space<vmem>>, %arg6: memref<8x1152xbf16, #tpu.memory_space<vmem>>) attributes {dimension_semantics = [#tpu.dimension_semantics<arbitrary>], iteration_bounds = array<i64: 1>, scalar_prefetch = 0 : i64, scratch_operands = 0 : i64, tpu.core_type = #tpu.core_type<tc>, window_params = [{pipeline_mode = #tpu.pipeline_mode<synchronous>, transform_indices = @transform_0, window_bounds = array<i64: 8, 128>}, {pipeline_mode = #tpu.pipeline_mode<synchronous>, transform_indices = @transform_1, window_bounds = array<i64: 128, 512>}, {pipeline_mode = #tpu.pipeline_mode<synchronous>, transform_indices = @transform_2, window_bounds = array<i64: 1, 512>}, {pipeline_mode = #tpu.pipeline_mode<synchronous>, transform_indices = @transform_3, window_bounds = array<i64: 512, 1152>}, {pipeline_mode = #tpu.pipeline_mode<synchronous>, transform_indices = @transform_4, window_bounds = array<i64: 1, 1152>}, {pipeline_mode = #tpu.pipeline_mode<synchronous>, transform_indices = @transform_5, window_bounds = array<i64: 8, 1152>}]} {
    %c0 = arith.constant 0 : index
    %c0_0 = arith.constant 0 : index
    %0 = vector.load %arg1[%c0, %c0_0] : memref<8x128xbf16, #tpu.memory_space<vmem>>, vector<8x128xbf16>
    %c0_1 = arith.constant 0 : index
    %c0_2 = arith.constant 0 : index
    %1 = vector.load %arg2[%c0_1, %c0_2] : memref<128x512xbf16, #tpu.memory_space<vmem>>, vector<128x512xbf16>
    %cst = arith.constant dense<0.000000e+00> : vector<8x512xf32>
    %2 = tpu.matmul %0, %1, %cst {dimension_numbers = #tpu.dot_dimension_numbers<[1], [0], [0], [1], [0, 0, 1, 1], [], []>} : vector<8x128xbf16>, vector<128x512xbf16>, vector<8x512xf32> -> vector<8x512xf32>
    %c0_3 = arith.constant 0 : index
    %c0_4 = arith.constant 0 : index
    %3 = vector.load %arg3[%c0_3, %c0_4] : memref<1x512xf32, #tpu.memory_space<vmem>>, vector<1x512xf32>
    %4 = vector.broadcast %3 : vector<1x512xf32> to vector<8x512xf32>
    %5 = arith.addf %2, %4 : vector<8x512xf32>
    %cst_5 = arith.constant 0.000000e+00 : f32
    %6 = vector.broadcast %cst_5 : f32 to vector<8x512xf32>
    %7 = arith.maximumf %5, %6 : vector<8x512xf32>
    %8 = arith.truncf %7 : vector<8x512xf32> to vector<8x512xbf16>
    %c0_6 = arith.constant 0 : index
    %c0_7 = arith.constant 0 : index
    %9 = vector.load %arg4[%c0_6, %c0_7] : memref<512x1152xbf16, #tpu.memory_space<vmem>>, vector<512x1152xbf16>
    %cst_8 = arith.constant dense<0.000000e+00> : vector<8x1152xf32>
    %10 = tpu.matmul %8, %9, %cst_8 {dimension_numbers = #tpu.dot_dimension_numbers<[1], [0], [0], [1], [0, 0, 1, 1], [], []>} : vector<8x512xbf16>, vector<512x1152xbf16>, vector<8x1152xf32> -> vector<8x1152xf32>
    %c0_9 = arith.constant 0 : index
    %c0_10 = arith.constant 0 : index
    %11 = vector.load %arg5[%c0_9, %c0_10] : memref<1x1152xf32, #tpu.memory_space<vmem>>, vector<1x1152xf32>
    %12 = vector.broadcast %11 : vector<1x1152xf32> to vector<8x1152xf32>
    %13 = arith.addf %10, %12 : vector<8x1152xf32>
    %cst_11 = arith.constant 0.000000e+00 : f32
    %14 = vector.broadcast %cst_11 : f32 to vector<8x1152xf32>
    %15 = arith.maximumf %13, %14 : vector<8x1152xf32>
    %16 = arith.truncf %15 : vector<8x1152xf32> to vector<8x1152xbf16>
    %c0_12 = arith.constant 0 : index
    %c0_13 = arith.constant 0 : index
    %17 = vector.load %arg6[%c0_12, %c0_13] : memref<8x1152xbf16, #tpu.memory_space<vmem>>, vector<8x1152xbf16>
    tpu.vector_store %arg6[%c0_12, %c0_13], %16 {strides = array<i32>} : memref<8x1152xbf16, #tpu.memory_space<vmem>>, vector<8x1152xbf16>,
    return
  }
  func.func @transform_0(%arg0: i32) -> (i32, i32) {
    %c0_i32 = arith.constant 0 : i32
    %c0_i32_0 = arith.constant 0 : i32
    %c0_i32_1 = arith.constant 0 : i32
    return %c0_i32, %c0_i32_0 : i32, i32
  }
  func.func @transform_1(%arg0: i32) -> (i32, i32) {
    %c0_i32 = arith.constant 0 : i32
    %c0_i32_0 = arith.constant 0 : i32
    %c0_i32_1 = arith.constant 0 : i32
    return %c0_i32, %c0_i32_0 : i32, i32
  }
  func.func @transform_2(%arg0: i32) -> (i32, i32) {
    %c0_i32 = arith.constant 0 : i32
    %c0_i32_0 = arith.constant 0 : i32
    %c0_i32_1 = arith.constant 0 : i32
    return %c0_i32, %c0_i32_0 : i32, i32
  }
  func.func @transform_3(%arg0: i32) -> (i32, i32) {
    %c0_i32 = arith.constant 0 : i32
    %c0_i32_0 = arith.constant 0 : i32
    %c0_i32_1 = arith.constant 0 : i32
    return %c0_i32, %c0_i32_0 : i32, i32
  }
  func.func @transform_4(%arg0: i32) -> (i32, i32) {
    %c0_i32 = arith.constant 0 : i32
    %c0_i32_0 = arith.constant 0 : i32
    %c0_i32_1 = arith.constant 0 : i32
    return %c0_i32, %c0_i32_0 : i32, i32
  }
  func.func @transform_5(%arg0: i32) -> (i32, i32) {
    %c0_i32 = arith.constant 0 : i32
    %c0_i32_0 = arith.constant 0 : i32
    %c0_i32_1 = arith.constant 0 : i32
    return %c0_i32, %c0_i32_0 : i32, i32
  }
}

module attributes {stable_mosaic.version = 11 : i64} {
  func.func @_matmul_bias_act_kernel(%arg0: i32, %arg1: i32, %arg2: memref<1x144x128xbf16, #tpu.memory_space<vmem>>, %arg3: memref<1x128x128xbf16, #tpu.memory_space<vmem>>, %arg4: memref<1x128xf32, #tpu.memory_space<vmem>>, %arg5: memref<1x144x128xbf16, #tpu.memory_space<vmem>>) attributes {dimension_semantics = [#tpu.dimension_semantics<parallel>, #tpu.dimension_semantics<parallel>], iteration_bounds = array<i64: 4, 1>, scalar_prefetch = 0 : i64, scratch_operands = 0 : i64, tpu.core_type = #tpu.core_type<tc>, window_params = [{transform_indices = @transform_0, window_bounds = array<i64: 1, 144, 128>}, {transform_indices = @transform_1, window_bounds = array<i64: 1, 128, 128>}, {pipeline_mode = #tpu.pipeline_mode<synchronous>, transform_indices = @transform_2, window_bounds = array<i64: 1, 128>}, {transform_indices = @transform_3, window_bounds = array<i64: 1, 144, 128>}]} {
    %c0 = arith.constant 0 : index
    %c0_0 = arith.constant 0 : index
    %c0_1 = arith.constant 0 : index
    %0 = vector.load %arg2[%c0, %c0_0, %c0_1] : memref<1x144x128xbf16, #tpu.memory_space<vmem>>, vector<1x144x128xbf16>
    %1 = vector.shape_cast %0 : vector<1x144x128xbf16> to vector<144x128xbf16>
    %c0_2 = arith.constant 0 : index
    %c0_3 = arith.constant 0 : index
    %c0_4 = arith.constant 0 : index
    %2 = vector.load %arg3[%c0_2, %c0_3, %c0_4] : memref<1x128x128xbf16, #tpu.memory_space<vmem>>, vector<1x128x128xbf16>
    %3 = vector.shape_cast %2 : vector<1x128x128xbf16> to vector<128x128xbf16>
    %cst = arith.constant dense<0.000000e+00> : vector<144x128xf32>
    %4 = tpu.matmul %1, %3, %cst {dimension_numbers = #tpu.dot_dimension_numbers<[1], [0], [0], [1], [0, 0, 1, 1], [], []>} : vector<144x128xbf16>, vector<128x128xbf16>, vector<144x128xf32> -> vector<144x128xf32>
    %c0_5 = arith.constant 0 : index
    %c0_6 = arith.constant 0 : index
    %5 = vector.load %arg4[%c0_5, %c0_6] : memref<1x128xf32, #tpu.memory_space<vmem>>, vector<1x128xf32>
    %6 = vector.broadcast %5 : vector<1x128xf32> to vector<144x128xf32>
    %7 = arith.addf %4, %6 : vector<144x128xf32>
    %cst_7 = arith.constant 0.000000e+00 : f32
    %8 = vector.broadcast %cst_7 : f32 to vector<144x128xf32>
    %9 = arith.maximumf %7, %8 : vector<144x128xf32>
    %10 = arith.truncf %9 : vector<144x128xf32> to vector<144x128xbf16>
    %c0_8 = arith.constant 0 : index
    %c0_9 = arith.constant 0 : index
    %c0_10 = arith.constant 0 : index
    %11 = vector.load %arg5[%c0_8, %c0_9, %c0_10] : memref<1x144x128xbf16, #tpu.memory_space<vmem>>, vector<1x144x128xbf16>
    %12 = vector.shape_cast %11 : vector<1x144x128xbf16> to vector<144x128xbf16>
    %13 = vector.shape_cast %10 : vector<144x128xbf16> to vector<1x144x128xbf16>
    tpu.vector_store %arg5[%c0_8, %c0_9, %c0_10], %13 {strides = array<i32>} : memref<1x144x128xbf16, #tpu.memory_space<vmem>>, vector<1x144x128xbf16>,
    return
  }
  func.func @transform_0(%arg0: i32, %arg1: i32) -> (i32, i32, i32) {
    %c0_i32 = arith.constant 0 : i32
    %c0_i32_0 = arith.constant 0 : i32
    return %arg0, %arg1, %c0_i32 : i32, i32, i32
  }
  func.func @transform_1(%arg0: i32, %arg1: i32) -> (i32, i32, i32) {
    %c0_i32 = arith.constant 0 : i32
    %c0_i32_0 = arith.constant 0 : i32
    %c0_i32_1 = arith.constant 0 : i32
    return %arg0, %c0_i32, %c0_i32_0 : i32, i32, i32
  }
  func.func @transform_2(%arg0: i32, %arg1: i32) -> (i32, i32) {
    %c0_i32 = arith.constant 0 : i32
    %c0_i32_0 = arith.constant 0 : i32
    %c0_i32_1 = arith.constant 0 : i32
    return %c0_i32, %c0_i32_0 : i32, i32
  }
  func.func @transform_3(%arg0: i32, %arg1: i32) -> (i32, i32, i32) {
    %c0_i32 = arith.constant 0 : i32
    %c0_i32_0 = arith.constant 0 : i32
    return %arg0, %arg1, %c0_i32 : i32, i32, i32
  }
}

module attributes {stable_mosaic.version = 11 : i64} {
  func.func @_matmul_bias_act_kernel(%arg0: i32, %arg1: memref<560x640xbf16, #tpu.memory_space<vmem>>, %arg2: memref<640x128xbf16, #tpu.memory_space<vmem>>, %arg3: memref<1x128xf32, #tpu.memory_space<vmem>>, %arg4: memref<560x128xbf16, #tpu.memory_space<vmem>>) attributes {dimension_semantics = [#tpu.dimension_semantics<parallel>], iteration_bounds = array<i64: 1>, scalar_prefetch = 0 : i64, scratch_operands = 0 : i64, tpu.core_type = #tpu.core_type<tc>, window_params = [{transform_indices = @transform_0, window_bounds = array<i64: 560, 640>}, {pipeline_mode = #tpu.pipeline_mode<synchronous>, transform_indices = @transform_1, window_bounds = array<i64: 640, 128>}, {pipeline_mode = #tpu.pipeline_mode<synchronous>, transform_indices = @transform_2, window_bounds = array<i64: 1, 128>}, {transform_indices = @transform_3, window_bounds = array<i64: 560, 128>}]} {
    %c0 = arith.constant 0 : index
    %c0_0 = arith.constant 0 : index
    %0 = vector.load %arg1[%c0, %c0_0] : memref<560x640xbf16, #tpu.memory_space<vmem>>, vector<560x640xbf16>
    %c0_1 = arith.constant 0 : index
    %c0_2 = arith.constant 0 : index
    %1 = vector.load %arg2[%c0_1, %c0_2] : memref<640x128xbf16, #tpu.memory_space<vmem>>, vector<640x128xbf16>
    %cst = arith.constant dense<0.000000e+00> : vector<560x128xf32>
    %2 = tpu.matmul %0, %1, %cst {dimension_numbers = #tpu.dot_dimension_numbers<[1], [0], [0], [1], [0, 0, 1, 1], [], []>} : vector<560x640xbf16>, vector<640x128xbf16>, vector<560x128xf32> -> vector<560x128xf32>
    %c0_3 = arith.constant 0 : index
    %c0_4 = arith.constant 0 : index
    %3 = vector.load %arg3[%c0_3, %c0_4] : memref<1x128xf32, #tpu.memory_space<vmem>>, vector<1x128xf32>
    %4 = vector.broadcast %3 : vector<1x128xf32> to vector<560x128xf32>
    %5 = arith.addf %2, %4 : vector<560x128xf32>
    %cst_5 = arith.constant 0.000000e+00 : f32
    %6 = vector.broadcast %cst_5 : f32 to vector<560x128xf32>
    %7 = arith.maximumf %5, %6 : vector<560x128xf32>
    %8 = arith.truncf %7 : vector<560x128xf32> to vector<560x128xbf16>
    %c0_6 = arith.constant 0 : index
    %c0_7 = arith.constant 0 : index
    %9 = vector.load %arg4[%c0_6, %c0_7] : memref<560x128xbf16, #tpu.memory_space<vmem>>, vector<560x128xbf16>
    tpu.vector_store %arg4[%c0_6, %c0_7], %8 {strides = array<i32>} : memref<560x128xbf16, #tpu.memory_space<vmem>>, vector<560x128xbf16>,
    return
  }
  func.func @transform_0(%arg0: i32) -> (i32, i32) {
    %c0_i32 = arith.constant 0 : i32
    %c0_i32_0 = arith.constant 0 : i32
    return %arg0, %c0_i32 : i32, i32
  }
  func.func @transform_1(%arg0: i32) -> (i32, i32) {
    %c0_i32 = arith.constant 0 : i32
    %c0_i32_0 = arith.constant 0 : i32
    %c0_i32_1 = arith.constant 0 : i32
    return %c0_i32, %c0_i32_0 : i32, i32
  }
  func.func @transform_2(%arg0: i32) -> (i32, i32) {
    %c0_i32 = arith.constant 0 : i32
    %c0_i32_0 = arith.constant 0 : i32
    %c0_i32_1 = arith.constant 0 : i32
    return %c0_i32, %c0_i32_0 : i32, i32
  }
  func.func @transform_3(%arg0: i32) -> (i32, i32) {
    %c0_i32 = arith.constant 0 : i32
    %c0_i32_0 = arith.constant 0 : i32
    return %arg0, %c0_i32 : i32, i32
  }
}

module attributes {stable_mosaic.version = 11 : i64} {
  func.func @_matmul_bias_act_kernel(%arg0: i32, %arg1: i32, %arg2: memref<1x560x256xbf16, #tpu.memory_space<vmem>>, %arg3: memref<1x256x128xbf16, #tpu.memory_space<vmem>>, %arg4: memref<1x128xf32, #tpu.memory_space<vmem>>, %arg5: memref<1x560x128xbf16, #tpu.memory_space<vmem>>) attributes {dimension_semantics = [#tpu.dimension_semantics<parallel>, #tpu.dimension_semantics<parallel>], iteration_bounds = array<i64: 4, 1>, scalar_prefetch = 0 : i64, scratch_operands = 0 : i64, tpu.core_type = #tpu.core_type<tc>, window_params = [{transform_indices = @transform_0, window_bounds = array<i64: 1, 560, 256>}, {transform_indices = @transform_1, window_bounds = array<i64: 1, 256, 128>}, {pipeline_mode = #tpu.pipeline_mode<synchronous>, transform_indices = @transform_2, window_bounds = array<i64: 1, 128>}, {transform_indices = @transform_3, window_bounds = array<i64: 1, 560, 128>}]} {
    %c0 = arith.constant 0 : index
    %c0_0 = arith.constant 0 : index
    %c0_1 = arith.constant 0 : index
    %0 = vector.load %arg2[%c0, %c0_0, %c0_1] : memref<1x560x256xbf16, #tpu.memory_space<vmem>>, vector<1x560x256xbf16>
    %1 = vector.shape_cast %0 : vector<1x560x256xbf16> to vector<560x256xbf16>
    %c0_2 = arith.constant 0 : index
    %c0_3 = arith.constant 0 : index
    %c0_4 = arith.constant 0 : index
    %2 = vector.load %arg3[%c0_2, %c0_3, %c0_4] : memref<1x256x128xbf16, #tpu.memory_space<vmem>>, vector<1x256x128xbf16>
    %3 = vector.shape_cast %2 : vector<1x256x128xbf16> to vector<256x128xbf16>
    %cst = arith.constant dense<0.000000e+00> : vector<560x128xf32>
    %4 = tpu.matmul %1, %3, %cst {dimension_numbers = #tpu.dot_dimension_numbers<[1], [0], [0], [1], [0, 0, 1, 1], [], []>} : vector<560x256xbf16>, vector<256x128xbf16>, vector<560x128xf32> -> vector<560x128xf32>
    %c0_5 = arith.constant 0 : index
    %c0_6 = arith.constant 0 : index
    %5 = vector.load %arg4[%c0_5, %c0_6] : memref<1x128xf32, #tpu.memory_space<vmem>>, vector<1x128xf32>
    %6 = vector.broadcast %5 : vector<1x128xf32> to vector<560x128xf32>
    %7 = arith.addf %4, %6 : vector<560x128xf32>
    %cst_7 = arith.constant 0.000000e+00 : f32
    %8 = vector.broadcast %cst_7 : f32 to vector<560x128xf32>
    %9 = arith.maximumf %7, %8 : vector<560x128xf32>
    %10 = arith.truncf %9 : vector<560x128xf32> to vector<560x128xbf16>
    %c0_8 = arith.constant 0 : index
    %c0_9 = arith.constant 0 : index
    %c0_10 = arith.constant 0 : index
    %11 = vector.load %arg5[%c0_8, %c0_9, %c0_10] : memref<1x560x128xbf16, #tpu.memory_space<vmem>>, vector<1x560x128xbf16>
    %12 = vector.shape_cast %11 : vector<1x560x128xbf16> to vector<560x128xbf16>
    %13 = vector.shape_cast %10 : vector<560x128xbf16> to vector<1x560x128xbf16>
    tpu.vector_store %arg5[%c0_8, %c0_9, %c0_10], %13 {strides = array<i32>} : memref<1x560x128xbf16, #tpu.memory_space<vmem>>, vector<1x560x128xbf16>,
    return
  }
  func.func @transform_0(%arg0: i32, %arg1: i32) -> (i32, i32, i32) {
    %c0_i32 = arith.constant 0 : i32
    %c0_i32_0 = arith.constant 0 : i32
    return %arg0, %arg1, %c0_i32 : i32, i32, i32
  }
  func.func @transform_1(%arg0: i32, %arg1: i32) -> (i32, i32, i32) {
    %c0_i32 = arith.constant 0 : i32
    %c0_i32_0 = arith.constant 0 : i32
    %c0_i32_1 = arith.constant 0 : i32
    return %arg0, %c0_i32, %c0_i32_0 : i32, i32, i32
  }
  func.func @transform_2(%arg0: i32, %arg1: i32) -> (i32, i32) {
    %c0_i32 = arith.constant 0 : i32
    %c0_i32_0 = arith.constant 0 : i32
    %c0_i32_1 = arith.constant 0 : i32
    return %c0_i32, %c0_i32_0 : i32, i32
  }
  func.func @transform_3(%arg0: i32, %arg1: i32) -> (i32, i32, i32) {
    %c0_i32 = arith.constant 0 : i32
    %c0_i32_0 = arith.constant 0 : i32
    return %arg0, %arg1, %c0_i32 : i32, i32, i32
  }
}

module attributes {stable_mosaic.version = 11 : i64} {
  func.func @_matmul_bias_act_kernel(%arg0: i32, %arg1: memref<1120x256xbf16, #tpu.memory_space<vmem>>, %arg2: memref<256x128xbf16, #tpu.memory_space<vmem>>, %arg3: memref<1x128xf32, #tpu.memory_space<vmem>>, %arg4: memref<1120x128xbf16, #tpu.memory_space<vmem>>) attributes {dimension_semantics = [#tpu.dimension_semantics<parallel>], iteration_bounds = array<i64: 2>, scalar_prefetch = 0 : i64, scratch_operands = 0 : i64, tpu.core_type = #tpu.core_type<tc>, window_params = [{transform_indices = @transform_0, window_bounds = array<i64: 1120, 256>}, {pipeline_mode = #tpu.pipeline_mode<synchronous>, transform_indices = @transform_1, window_bounds = array<i64: 256, 128>}, {pipeline_mode = #tpu.pipeline_mode<synchronous>, transform_indices = @transform_2, window_bounds = array<i64: 1, 128>}, {transform_indices = @transform_3, window_bounds = array<i64: 1120, 128>}]} {
    %c0 = arith.constant 0 : index
    %c0_0 = arith.constant 0 : index
    %0 = vector.load %arg1[%c0, %c0_0] : memref<1120x256xbf16, #tpu.memory_space<vmem>>, vector<1120x256xbf16>
    %c0_1 = arith.constant 0 : index
    %c0_2 = arith.constant 0 : index
    %1 = vector.load %arg2[%c0_1, %c0_2] : memref<256x128xbf16, #tpu.memory_space<vmem>>, vector<256x128xbf16>
    %cst = arith.constant dense<0.000000e+00> : vector<1120x128xf32>
    %2 = tpu.matmul %0, %1, %cst {dimension_numbers = #tpu.dot_dimension_numbers<[1], [0], [0], [1], [0, 0, 1, 1], [], []>} : vector<1120x256xbf16>, vector<256x128xbf16>, vector<1120x128xf32> -> vector<1120x128xf32>
    %c0_3 = arith.constant 0 : index
    %c0_4 = arith.constant 0 : index
    %3 = vector.load %arg3[%c0_3, %c0_4] : memref<1x128xf32, #tpu.memory_space<vmem>>, vector<1x128xf32>
    %4 = vector.broadcast %3 : vector<1x128xf32> to vector<1120x128xf32>
    %5 = arith.addf %2, %4 : vector<1120x128xf32>
    %cst_5 = arith.constant 0.000000e+00 : f32
    %6 = vector.broadcast %cst_5 : f32 to vector<1120x128xf32>
    %7 = arith.maximumf %5, %6 : vector<1120x128xf32>
    %8 = arith.truncf %7 : vector<1120x128xf32> to vector<1120x128xbf16>
    %c0_6 = arith.constant 0 : index
    %c0_7 = arith.constant 0 : index
    %9 = vector.load %arg4[%c0_6, %c0_7] : memref<1120x128xbf16, #tpu.memory_space<vmem>>, vector<1120x128xbf16>
    tpu.vector_store %arg4[%c0_6, %c0_7], %8 {strides = array<i32>} : memref<1120x128xbf16, #tpu.memory_space<vmem>>, vector<1120x128xbf16>,
    return
  }
  func.func @transform_0(%arg0: i32) -> (i32, i32) {
    %c0_i32 = arith.constant 0 : i32
    %c0_i32_0 = arith.constant 0 : i32
    return %arg0, %c0_i32 : i32, i32
  }
  func.func @transform_1(%arg0: i32) -> (i32, i32) {
    %c0_i32 = arith.constant 0 : i32
    %c0_i32_0 = arith.constant 0 : i32
    %c0_i32_1 = arith.constant 0 : i32
    return %c0_i32, %c0_i32_0 : i32, i32
  }
  func.func @transform_2(%arg0: i32) -> (i32, i32) {
    %c0_i32 = arith.constant 0 : i32
    %c0_i32_0 = arith.constant 0 : i32
    %c0_i32_1 = arith.constant 0 : i32
    return %c0_i32, %c0_i32_0 : i32, i32
  }
  func.func @transform_3(%arg0: i32) -> (i32, i32) {
    %c0_i32 = arith.constant 0 : i32
    %c0_i32_0 = arith.constant 0 : i32
    return %arg0, %c0_i32 : i32, i32
  }
}

module attributes {stable_mosaic.version = 11 : i64} {
  func.func @_matmul_bias_act_kernel(%arg0: i32, %arg1: i32, %arg2: memref<1x1120x128xbf16, #tpu.memory_space<vmem>>, %arg3: memref<1x128x128xbf16, #tpu.memory_space<vmem>>, %arg4: memref<1x128xf32, #tpu.memory_space<vmem>>, %arg5: memref<1x1120x128xf32, #tpu.memory_space<vmem>>) attributes {dimension_semantics = [#tpu.dimension_semantics<parallel>, #tpu.dimension_semantics<parallel>], iteration_bounds = array<i64: 4, 2>, scalar_prefetch = 0 : i64, scratch_operands = 0 : i64, tpu.core_type = #tpu.core_type<tc>, window_params = [{transform_indices = @transform_0, window_bounds = array<i64: 1, 1120, 128>}, {transform_indices = @transform_1, window_bounds = array<i64: 1, 128, 128>}, {pipeline_mode = #tpu.pipeline_mode<synchronous>, transform_indices = @transform_2, window_bounds = array<i64: 1, 128>}, {transform_indices = @transform_3, window_bounds = array<i64: 1, 1120, 128>}]} {
    %c0 = arith.constant 0 : index
    %c0_0 = arith.constant 0 : index
    %c0_1 = arith.constant 0 : index
    %0 = vector.load %arg2[%c0, %c0_0, %c0_1] : memref<1x1120x128xbf16, #tpu.memory_space<vmem>>, vector<1x1120x128xbf16>
    %1 = vector.shape_cast %0 : vector<1x1120x128xbf16> to vector<1120x128xbf16>
    %c0_2 = arith.constant 0 : index
    %c0_3 = arith.constant 0 : index
    %c0_4 = arith.constant 0 : index
    %2 = vector.load %arg3[%c0_2, %c0_3, %c0_4] : memref<1x128x128xbf16, #tpu.memory_space<vmem>>, vector<1x128x128xbf16>
    %3 = vector.shape_cast %2 : vector<1x128x128xbf16> to vector<128x128xbf16>
    %cst = arith.constant dense<0.000000e+00> : vector<1120x128xf32>
    %4 = tpu.matmul %1, %3, %cst {dimension_numbers = #tpu.dot_dimension_numbers<[1], [0], [0], [1], [0, 0, 1, 1], [], []>} : vector<1120x128xbf16>, vector<128x128xbf16>, vector<1120x128xf32> -> vector<1120x128xf32>
    %c0_5 = arith.constant 0 : index
    %c0_6 = arith.constant 0 : index
    %5 = vector.load %arg4[%c0_5, %c0_6] : memref<1x128xf32, #tpu.memory_space<vmem>>, vector<1x128xf32>
    %6 = vector.broadcast %5 : vector<1x128xf32> to vector<1120x128xf32>
    %7 = arith.addf %4, %6 : vector<1120x128xf32>
    %8 = arith.negf %7 : vector<1120x128xf32>
    %9 = math.exp %8 : vector<1120x128xf32>
    %cst_7 = arith.constant 1.000000e+00 : f32
    %10 = vector.broadcast %cst_7 : f32 to vector<1120x128xf32>
    %11 = arith.addf %10, %9 : vector<1120x128xf32>
    %12 = arith.divf %10, %11 : vector<1120x128xf32>
    %c0_8 = arith.constant 0 : index
    %c0_9 = arith.constant 0 : index
    %c0_10 = arith.constant 0 : index
    %13 = vector.load %arg5[%c0_8, %c0_9, %c0_10] : memref<1x1120x128xf32, #tpu.memory_space<vmem>>, vector<1x1120x128xf32>
    %14 = vector.shape_cast %13 : vector<1x1120x128xf32> to vector<1120x128xf32>
    %15 = vector.shape_cast %12 : vector<1120x128xf32> to vector<1x1120x128xf32>
    tpu.vector_store %arg5[%c0_8, %c0_9, %c0_10], %15 {strides = array<i32>} : memref<1x1120x128xf32, #tpu.memory_space<vmem>>, vector<1x1120x128xf32>,
    return
  }
  func.func @transform_0(%arg0: i32, %arg1: i32) -> (i32, i32, i32) {
    %c0_i32 = arith.constant 0 : i32
    %c0_i32_0 = arith.constant 0 : i32
    return %arg0, %arg1, %c0_i32 : i32, i32, i32
  }
  func.func @transform_1(%arg0: i32, %arg1: i32) -> (i32, i32, i32) {
    %c0_i32 = arith.constant 0 : i32
    %c0_i32_0 = arith.constant 0 : i32
    %c0_i32_1 = arith.constant 0 : i32
    return %arg0, %c0_i32, %c0_i32_0 : i32, i32, i32
  }
  func.func @transform_2(%arg0: i32, %arg1: i32) -> (i32, i32) {
    %c0_i32 = arith.constant 0 : i32
    %c0_i32_0 = arith.constant 0 : i32
    %c0_i32_1 = arith.constant 0 : i32
    return %c0_i32, %c0_i32_0 : i32, i32
  }
  func.func @transform_3(%arg0: i32, %arg1: i32) -> (i32, i32, i32) {
    %c0_i32 = arith.constant 0 : i32
    %c0_i32_0 = arith.constant 0 : i32
    return %arg0, %arg1, %c0_i32 : i32, i32, i32
  }
}

</mosaic_0001>

<bundles_post_ra>
// kernel: _lambda_.7
= control target key start
LH: loop header
LB: loop body
LE: loop exit
PB: predicated region body
PF: predicated region fallthrough
CT: control target
= control target key end

     0   :  { %s980_s12 = smov 0   ;;  %s982_s13 = smov 0   ;;  %s1113_s0 = inlined_call_operand.vmem [shape: bf16[4,144,128], index: 0, kind: input, shape index: {}]   ;;  %s1114_s1 = inlined_call_operand.vmem [shape: bf16[4,128,128], index: 1, kind: input, shape index: {}]   ;;  %s1115_s2 = inlined_call_operand.vmem [shape: f32[1,128], index: 2, kind: input, shape index: {}]   ;;  %s1116_s3 = inlined_call_operand.vmem [shape: bf16[4,144,128], index: 3, kind: output, shape index: {}]  }
   0x1   :  { %s984_s14 = smov 0  }
   0x2 LB: > { %s25_s15 = sadd.s32 1, %s952_s13  ;;  %p690_p0 = scmp.ge.s32.totalorder %s956_s14, 1  ;;  %s956_s14 = sphi %s984_s14, %s13_s14   ;;  %s952_s13 = sphi %s982_s13, %s1118_s13   ;;  %s948_s12 = sphi %s980_s12, %s1117_s12  }
   0x3   : > { %p27_p1 = scmp.ge.s32.totalorder %s25_s15, 4  ;;  %p168_p2 = scmp.lt.s32.totalorder %s956_s14, 5 }
   0x5   : > { %s1120_s15 = smov (%p27_p1, %s25_s15), 0  ;;  %p169_p3 = pnand %p690_p0, %p168_p2 }
   0x6   : > { %p206_p4 = scmp.lt.s32.totalorder (!%p169_p3), %s948_s12, 3 }
   0x7   : > { %172 = sbr.rel (%p169_p3) target bundleno = 283 (0x11b), region = 32 }
   0xc   : > { %v958_v0 = vmov 0.0   ;;  %s1122_s12 = smov (!%p206_p4, %s948_s12), 3  ;;  %vm959_vm0 = vmmov 0   ;;  %v1068_v18 = vld [vmem:[%s1115_s2] ss:$0 sm:$0xff] }
   0xd   : > { %822 = vmatprep.subr.bf16.mxu0 %v958_v0  ;;  %874 = vmatprep.subr.bf16.mxu1 %v958_v0  ;;  %s733_s16 = sshll.u32 %s1122_s12, 6  ;;  %s890_s20 = smul.u32 72, %s1122_s12 }
   0xe   : > { %838 = vmatprep.mubr.msk.bf16.mxu0 %vm959_vm0, %v958_v0  ;;  %858 = vmatprep.mubr.msk.bf16.mxu1 %vm959_vm0, %v958_v0  ;;  %s1010_s19 = scalar_lea.vmem %s1114_s1, %s733_s16 }
   0xf   : > { %v917_v1 = vld [vmem:[%s1010_s19 + $0x38] sm:$0xff]   ;;  %v918_v2 = vld [vmem:[%s1010_s19 + $0x30] sm:$0xff]   ;;  %v919_v3 = vld [vmem:[%s1010_s19 + $0x28] sm:$0xff]   ;;  %s1023_s23 = scalar_lea.vmem %s1113_s0, %s890_s20  ;;  %s1079_s28 = scalar_lea.vmem %s1116_s3, %s890_s20 }
  0x10   : > { %823 = vmatpush3.bf16.msra.mxu0 %v917_v1  ;;  %882 = vmatpush3.bf16.msra.mxu1 %v917_v1  ;;  %v920_v4 = vld [vmem:[%s1010_s19 + $0x20] sm:$0xff]   ;;  %v921_v5 = vld [vmem:[%s1010_s19 + $0x18] sm:$0xff]   ;;  %v922_v6 = vld [vmem:[%s1010_s19 + $0x10] sm:$0xff]  }
  0x11   : > { %824 = vmatprep.subr.bf16.mxu0 %v958_v0  ;;  %875 = vmatprep.subr.bf16.mxu1 %v958_v0  ;;  %v923_v7 = vld [vmem:[%s1010_s19 + $0x8] sm:$0xff]   ;;  %v924_v8 = vld [vmem:[%s1010_s19] sm:$0xff]   ;;  %v928_v12 = vld [vmem:[%s1023_s23 + $0x30] sm:$0xff]  }
  0x12   : > { %v925_v9 = vld [vmem:[%s1023_s23] sm:$0xff]   ;;  %v926_v10 = vld [vmem:[%s1023_s23 + $0x28] sm:$0xff]   ;;  %v929_v13 = vld [vmem:[%s1023_s23 + $0x10] sm:$0xff]  }
  0x13   : > { %v927_v11 = vld [vmem:[%s1023_s23 + $0x8] sm:$0xff]   ;;  %v930_v14 = vld [vmem:[%s1023_s23 + $0x38] sm:$0xff]   ;;  %v932_v16 = vld [vmem:[%s1023_s23 + $0x40] sm:$0xff]  }
  0x14   : > { %825 = vmatpush3.bf16.msra.mxu0 %v918_v2  ;;  %883 = vmatpush3.bf16.msra.mxu1 %v918_v2  ;;  %v931_v15 = vld [vmem:[%s1023_s23 + $0x18] sm:$0xff]   ;;  %v933_v17 = vld [vmem:[%s1023_s23 + $0x20] sm:$0xff]  }
  0x15   : > { %826 = vmatprep.subr.bf16.mxu0 %v958_v0  ;;  %876 = vmatprep.subr.bf16.mxu1 %v958_v0 }
  0x18   : > { %827 = vmatpush3.bf16.msra.mxu0 %v919_v3  ;;  %884 = vmatpush3.bf16.msra.mxu1 %v919_v3 }
  0x19   : > { %828 = vmatprep.subr.bf16.mxu0 %v958_v0  ;;  %877 = vmatprep.subr.bf16.mxu1 %v958_v0 }
  0x1c   : > { %829 = vmatpush3.bf16.msra.mxu0 %v920_v4  ;;  %885 = vmatpush3.bf16.msra.mxu1 %v920_v4 }
  0x1d   : > { %830 = vmatprep.subr.bf16.mxu0 %v958_v0  ;;  %878 = vmatprep.subr.bf16.mxu1 %v958_v0 }
  0x20   : > { %831 = vmatpush3.bf16.msra.mxu0 %v921_v5  ;;  %886 = vmatpush3.bf16.msra.mxu1 %v921_v5 }
  0x21   : > { %832 = vmatprep.subr.bf16.mxu0 %v958_v0  ;;  %879 = vmatprep.subr.bf16.mxu1 %v958_v0 }
  0x24   : > { %833 = vmatpush3.bf16.msra.mxu0 %v922_v6  ;;  %887 = vmatpush3.bf16.msra.mxu1 %v922_v6 }
  0x25   : > { %834 = vmatprep.subr.bf16.mxu0 %v958_v0  ;;  %880 = vmatprep.subr.bf16.mxu1 %v958_v0 }
  0x28   : > { %835 = vmatpush3.bf16.msra.mxu0 %v923_v7  ;;  %888 = vmatpush3.bf16.msra.mxu1 %v923_v7 }
  0x29   : > { %836 = vmatprep.subr.bf16.mxu0 %v958_v0  ;;  %881 = vmatprep.subr.bf16.mxu1 %v958_v0 }
  0x2c   : > { %837 = vmatpush3.bf16.msra.mxu0 %v924_v8  ;;  %889 = vmatpush3.bf16.msra.mxu1 %v924_v8 }
  0x2f   : > { %839 = vmatmul.mubr.bf16.vlgmr.msra.gmra.mxu0 %v925_v9  ;;  %859 = vmatmul.mubr.bf16.vlgmr.msra.gmra.mxu1 %v926_v10 }
  0x30   : > { %842 = vmatprep.mubr.msk.bf16.mxu0 %vm959_vm0, %v958_v0  ;;  %862 = vmatprep.mubr.msk.bf16.mxu1 %vm959_vm0, %v958_v0 }
  0x37   : > { %843 = vmatmul.mubr.bf16.gmra.mxu0 %v927_v11  ;;  %863 = vmatmul.mubr.bf16.gmra.mxu1 %v928_v12 }
  0x38   : > { %846 = vmatprep.mubr.msk.bf16.mxu0 %vm959_vm0, %v958_v0  ;;  %866 = vmatprep.mubr.msk.bf16.mxu1 %vm959_vm0, %v958_v0 }
  0x3f   : > { %847 = vmatmul.mubr.bf16.gmra.mxu0 %v929_v13  ;;  %867 = vmatmul.mubr.bf16.gmra.mxu1 %v930_v14 }
  0x40   : > { %850 = vmatprep.mubr.msk.bf16.mxu0 %vm959_vm0, %v958_v0  ;;  %870 = vmatprep.mubr.msk.bf16.mxu1 %vm959_vm0, %v958_v0 }
  0x47   : > { %851 = vmatmul.mubr.bf16.gmra.mxu0 %v931_v15  ;;  %871 = vmatmul.mubr.bf16.gmra.mxu1 %v932_v16 }
  0x48   : > { %854 = vmatprep.mubr.msk.bf16.mxu0 %vm959_vm0, %v958_v0 }
  0x4f   : > { %855 = vmatmul.mubr.bf16.gmra.mxu0 %v933_v17 }
  0xef   : > { %v408_v19 = vpop.f32.mrf.mxu0  ;;  %v448_v20 = vpop.f32.mrf.mxu1 }
  0xf0   : > { %v449_v21 = vadd.f32 %v1068_v18, %v448_v20  ;;  %v409_v24 = vadd.f32 %v1068_v18, %v408_v19 }
  0xf1   : > { %v840_v22 = vpop.f32.mrf.mxu0  ;;  %v860_v23 = vpop.f32.mrf.mxu1 }
  0xf2   : > { %v489_v27 = vmax.f32 %v449_v21, 0.0  ;;  %v479_v32 = vmax.f32 %v409_v24, 0.0 }
  0xf3   : > { %v411_v25 = vpop.f32.mrf.mxu0  ;;  %v451_v26 = vpop.f32.mrf.mxu1 }
  0xf4   : > { %v412_v28 = vadd.f32 %v1068_v18, %v411_v25  ;;  %v452_v29 = vadd.f32 %v1068_v18, %v451_v26 }
  0xf5   : > { %v841_v30 = vpop.f32.mrf.mxu0  ;;  %v861_v31 = vpop.f32.mrf.mxu1 }
  0xf6   : > { %v480_v33 = vmax.f32 %v412_v28, 0.0  ;;  %v490_v34 = vmax.f32 %v452_v29, 0.0 }
  0xf7   : > { %v416_v35 = vpop.f32.mrf.mxu0  ;;  %v456_v36 = vpop.f32.mrf.mxu1 }
  0xf8   : > { %v755_v37 = vpack.c.bf16 %v480_v33, %v479_v32  ;;  %v780_v38 = vpack.c.bf16 %v490_v34, %v489_v27  ;;  %v457_v39 = vadd.f32 %v1068_v18, %v456_v36  ;;  %v417_v42 = vadd.f32 %v1068_v18, %v416_v35 }
  0xf9   : > { %v844_v40 = vpop.f32.mrf.mxu0  ;;  %v864_v41 = vpop.f32.mrf.mxu1 }
  0xfa   : > { %756 = vst [vmem:[%s1079_s28] sm:$0xff] %v755_v37   ;;  %801 = vst [vmem:[%s1079_s28 + $0x28] sm:$0xff] %v780_v38   ;;  %v491_v45 = vmax.f32 %v457_v39, 0.0  ;;  %v481_v50 = vmax.f32 %v417_v42, 0.0 }
  0xfb   : > { %v419_v43 = vpop.f32.mrf.mxu0  ;;  %v459_v44 = vpop.f32.mrf.mxu1 }
  0xfc   : > { %v420_v46 = vadd.f32 %v1068_v18, %v419_v43  ;;  %v460_v47 = vadd.f32 %v1068_v18, %v459_v44 }
  0xfd   : > { %v845_v48 = vpop.f32.mrf.mxu0  ;;  %v865_v49 = vpop.f32.mrf.mxu1 }
  0xfe   : > { %v482_v51 = vmax.f32 %v420_v46, 0.0  ;;  %v492_v52 = vmax.f32 %v460_v47, 0.0 }
  0xff   : > { %v424_v53 = vpop.f32.mrf.mxu0  ;;  %v464_v54 = vpop.f32.mrf.mxu1 }
 0x100   : > { %v760_v55 = vpack.c.bf16 %v482_v51, %v481_v50  ;;  %v785_v56 = vpack.c.bf16 %v492_v52, %v491_v45  ;;  %v465_v57 = vadd.f32 %v1068_v18, %v464_v54  ;;  %v425_v60 = vadd.f32 %v1068_v18, %v424_v53 }
 0x101   : > { %v848_v58 = vpop.f32.mrf.mxu0  ;;  %v868_v59 = vpop.f32.mrf.mxu1 }
 0x102   : > { %797 = vst [vmem:[%s1079_s28 + $0x8] sm:$0xff] %v760_v55   ;;  %802 = vst [vmem:[%s1079_s28 + $0x30] sm:$0xff] %v785_v56   ;;  %v493_v63 = vmax.f32 %v465_v57, 0.0  ;;  %v483_v4 = vmax.f32 %v425_v60, 0.0 }
 0x103   : > { %v427_v61 = vpop.f32.mrf.mxu0  ;;  %v467_v62 = vpop.f32.mrf.mxu1 }
 0x104   : > { %v428_v0 = vadd.f32 %v1068_v18, %v427_v61  ;;  %v468_v1 = vadd.f32 %v1068_v18, %v467_v62 }
 0x105   : > { %v849_v2 = vpop.f32.mrf.mxu0  ;;  %v869_v3 = vpop.f32.mrf.mxu1 }
 0x106   : > { %v484_v5 = vmax.f32 %v428_v0, 0.0  ;;  %v494_v6 = vmax.f32 %v468_v1, 0.0 }
 0x107   : > { %v432_v7 = vpop.f32.mrf.mxu0  ;;  %v472_v8 = vpop.f32.mrf.mxu1 }
 0x108   : > { %v765_v9 = vpack.c.bf16 %v484_v5, %v483_v4  ;;  %v790_v10 = vpack.c.bf16 %v494_v6, %v493_v63  ;;  %v473_v11 = vadd.f32 %v1068_v18, %v472_v8  ;;  %v433_v14 = vadd.f32 %v1068_v18, %v432_v7 }
 0x109   : > { %v852_v12 = vpop.f32.mrf.mxu0  ;;  %v872_v13 = vpop.f32.mrf.mxu1 }
 0x10a   : > { %798 = vst [vmem:[%s1079_s28 + $0x10] sm:$0xff] %v765_v9   ;;  %803 = vst [vmem:[%s1079_s28 + $0x38] sm:$0xff] %v790_v10   ;;  %v495_v17 = vmax.f32 %v473_v11, 0.0  ;;  %v485_v23 = vmax.f32 %v433_v14, 0.0 }
 0x10b   : > { %v435_v15 = vpop.f32.mrf.mxu0  ;;  %v475_v16 = vpop.f32.mrf.mxu1 }
 0x10c   : > { %v436_v19 = vadd.f32 %v1068_v18, %v435_v15  ;;  %v476_v20 = vadd.f32 %v1068_v18, %v475_v16 }
 0x10d   : > { %v853_v21 = vpop.f32.mrf.mxu0  ;;  %v873_v22 = vpop.f32.mrf.mxu1 }
 0x10e   : > { %v486_v24 = vmax.f32 %v436_v19, 0.0  ;;  %v496_v25 = vmax.f32 %v476_v20, 0.0 }
 0x10f   : > { %v440_v26 = vpop.f32.mrf.mxu0 }
 0x110   : > { %v770_v27 = vpack.c.bf16 %v486_v24, %v485_v23  ;;  %v795_v28 = vpack.c.bf16 %v496_v25, %v495_v17  ;;  %v441_v30 = vadd.f32 %v1068_v18, %v440_v26 }
 0x111   : > { %v856_v29 = vpop.f32.mrf.mxu0 }
 0x112   : > { %799 = vst [vmem:[%s1079_s28 + $0x18] sm:$0xff] %v770_v27   ;;  %804 = vst [vmem:[%s1079_s28 + $0x40] sm:$0xff] %v795_v28   ;;  %v487_v34 = vmax.f32 %v441_v30, 0.0 }
 0x113   : > { %v443_v31 = vpop.f32.mrf.mxu0 }
 0x114   : > { %v444_v32 = vadd.f32 %v1068_v18, %v443_v31 }
 0x115   : > { %v857_v33 = vpop.f32.mrf.mxu0 }
 0x116   : > { %v488_v35 = vmax.f32 %v444_v32, 0.0 }
 0x118   : > { %v775_v36 = vpack.c.bf16 %v488_v35, %v487_v34 }
 0x11a   : > { %800 = vst [vmem:[%s1079_s28 + $0x20] sm:$0xff] %v775_v36  }
 0x11b PF: > { %s13_s14 = sadd.s32 1, %s956_s14   ;;  %s1117_s12 = smov %s952_s13 }
 0x11c   : > { %p10_p5 = scmp.ge.s32.totalorder %s13_s14, 6   ;;  %s1118_s13 = smov %s1120_s15 }
 0x11e   :  { %12 = sbr.rel (!%p10_p5) target bundleno = 2 (0x2), region = 65 }

// kernel: _lambda_.6
= control target key start
LH: loop header
LB: loop body
LE: loop exit
PB: predicated region body
PF: predicated region fallthrough
CT: control target
= control target key end

     0   :  { %10 = vsyncpa [#allocation3], 0  ;;  %s3684_s0 = inlined_call_operand.vmem [shape: bf16[8,128], index: 0, kind: input, shape index: {}]   ;;  %s3685_s1 = inlined_call_operand.hbm [shape: bf16[128,512], index: 1, kind: input, shape index: {}]   ;;  %s3686_s2 = inlined_call_operand.vmem [shape: f32[1,512], index: 2, kind: input, shape index: {}]   ;;  %s3687_s3 = inlined_call_operand.hbm [shape: bf16[512,1152], index: 3, kind: input, shape index: {}]   ;;  %s3688_s4 = inlined_call_operand.vmem [shape: f32[1,1152], index: 4, kind: input, shape index: {}]   ;;  %s3689_s5 = inlined_call_operand.vmem [shape: bf16[8,1152], index: 5, kind: output, shape index: {}]  }
   0x1   :  { %11 = vsyncpa [#allocation5], 0  ;;  %s3550_s18 = smov [#allocation2]  }
   0x2   :  { %s19_s19 = sshll.u32 %s3550_s18, 4  ;;  %s20_s19 = int_to_ptr.vmem [resolvable:$true] %s19_s19 }
   0x3   :  { %s3514_s20 = scalar_lea.vmem %s20_s19, 4096  ;;  %p3519_p1 = scmp.lt.s32.totalorder %s20_s19, %s20_s19 }
   0x4   :  { %p3515_p0 = scmp.ne.s32.totalorder %s20_s19, %s3514_s20  ;;  %p3520_p2 = scmp.lt.s32.totalorder %s3514_s20, %s3514_s20 }
   0x6   :  { %p3521_p3 = por %p3520_p2, %p3519_p1 }
   0x8   :  { %p3522_p4 = pnand %p3521_p3, %p3515_p0 }
   0xa   :  { %3525 = shalt.err (!%p3522_p4)
}
   0xb   :  { %s3551_s21 = smov 256   ;;  %s3552_s22 = smov 16  }
   0xc   :  { %25 = dma.hbm_to_vmem [thread:$0]  %s3685_s1, 4096, %s20_s19, [#allocation3], %s3551_s21, %s3551_s21, %s3552_s22  }
   0xd   :  { %s3553_s25 = smov [#allocation4]  }
   0xe   :  { %s33_s26 = sshll.u32 %s3553_s25, 4  ;;  %s34_s26 = int_to_ptr.vmem [resolvable:$true] %s33_s26 }
   0xf   :  { %s3534_s27 = scalar_lea.vmem %s34_s26, 36864  ;;  %p3539_p6 = scmp.lt.s32.totalorder %s34_s26, %s34_s26 }
  0x10   :  { %p3535_p5 = scmp.ne.s32.totalorder %s34_s26, %s3534_s27  ;;  %p3540_p7 = scmp.lt.s32.totalorder %s3534_s27, %s3534_s27 }
  0x12   :  { %p3541_p8 = por %p3540_p7, %p3539_p6 }
  0x14   :  { %p3542_p9 = pnand %p3541_p8, %p3535_p5 }
  0x16   :  { %3545 = shalt.err (!%p3542_p9)
}
  0x17   :  { %s3554_s28 = smov 576   ;;  %s3555_s29 = smov 36  }
  0x18   :  { %39 = dma.hbm_to_vmem [thread:$0]  %s3687_s3, 36864, %s34_s26, [#allocation5], %s3554_s28, %s3554_s28, %s3555_s29  }
  0x19   :  { %3546 = dma.done.wait [#allocation3], 4096  }
  0x1a   :  { %3547 = vsyncadd [#allocation3], 4294963200 }
  0x1b   :  { %3548 = dma.done.wait [#allocation5], 36864  }
  0x1c   :  { %3549 = vsyncadd [#allocation5], 4294930432  ;;  %v3556_v0 = vmov 0   ;;  %v3042_v1 = vld [vmem:[#allocation2 + $0xe4] ss:$16 sps:$4 sm:$0xff]  }
  0x1d   :  { %296 = vmatprep.mubr.bf16.mxu0 %v3556_v0  ;;  %337 = vmatprep.mubr.bf16.mxu1 %v3556_v0  ;;  %v3044_v2 = vld [vmem:[#allocation2 + $0xec] ss:$16 sps:$4 sm:$0xff]   ;;  %v3046_v3 = vld [vmem:[#allocation2 + $0xe0] ss:$16 sps:$4 sm:$0xff]   ;;  %v3047_v4 = vld [vmem:[#allocation2 + $0xe8] ss:$16 sps:$4 sm:$0xff]  }
  0x1e   :  { %264 = vmatprep.subr.bf16.mxu0 %v3042_v1  ;;  %305 = vmatprep.subr.bf16.mxu1 %v3044_v2  ;;  %v3048_v5 = vld [vmem:[#allocation2 + $0xc4] ss:$16 sps:$4 sm:$0xff]   ;;  %v3050_v6 = vld [vmem:[#allocation2 + $0xcc] ss:$16 sps:$4 sm:$0xff]   ;;  %v3052_v7 = vld [vmem:[#allocation2 + $0xc0] ss:$16 sps:$4 sm:$0xff]  }
  0x1f   :  { %265 = vmatpush1.bf16.msra.mxu0 %v3046_v3  ;;  %306 = vmatpush1.bf16.msra.mxu1 %v3047_v4  ;;  %v3053_v8 = vld [vmem:[#allocation2 + $0xc8] ss:$16 sps:$4 sm:$0xff]   ;;  %v3054_v9 = vld [vmem:[#allocation2 + $0xa4] ss:$16 sps:$4 sm:$0xff]   ;;  %v3056_v10 = vld [vmem:[#allocation2 + $0xac] ss:$16 sps:$4 sm:$0xff]  }
  0x20   :  { %266 = vmatprep.subr.bf16.mxu0 %v3048_v5  ;;  %307 = vmatprep.subr.bf16.mxu1 %v3050_v6  ;;  %v3058_v11 = vld [vmem:[#allocation2 + $0xa0] ss:$16 sps:$4 sm:$0xff]   ;;  %v3059_v12 = vld [vmem:[#allocation2 + $0xa8] ss:$16 sps:$4 sm:$0xff]   ;;  %v3060_v13 = vld [vmem:[#allocation2 + $0x84] ss:$16 sps:$4 sm:$0xff]  }
  0x21   :  { %v3062_v14 = vld [vmem:[#allocation2 + $0x8c] ss:$16 sps:$4 sm:$0xff]   ;;  %v3064_v15 = vld [vmem:[#allocation2 + $0x80] ss:$16 sps:$4 sm:$0xff]   ;;  %v3065_v16 = vld [vmem:[#allocation2 + $0x88] ss:$16 sps:$4 sm:$0xff]  }
  0x22   :  { %v3066_v17 = vld [vmem:[#allocation2 + $0x64] ss:$16 sps:$4 sm:$0xff]   ;;  %v3068_v18 = vld [vmem:[#allocation2 + $0x6c] ss:$16 sps:$4 sm:$0xff]   ;;  %v3070_v19 = vld [vmem:[#allocation2 + $0x60] ss:$16 sps:$4 sm:$0xff]  }
  0x23   :  { %267 = vmatpush1.bf16.msra.mxu0 %v3052_v7  ;;  %308 = vmatpush1.bf16.msra.mxu1 %v3053_v8  ;;  %v3071_v20 = vld [vmem:[#allocation2 + $0x68] ss:$16 sps:$4 sm:$0xff]   ;;  %v3072_v21 = vld [vmem:[#allocation2 + $0x44] ss:$16 sps:$4 sm:$0xff]   ;;  %v3074_v22 = vld [vmem:[#allocation2 + $0x4c] ss:$16 sps:$4 sm:$0xff]  }
  0x24   :  { %268 = vmatprep.subr.bf16.mxu0 %v3054_v9  ;;  %309 = vmatprep.subr.bf16.mxu1 %v3056_v10  ;;  %v3076_v23 = vld [vmem:[#allocation2 + $0x40] ss:$16 sps:$4 sm:$0xff]   ;;  %v3077_v24 = vld [vmem:[#allocation2 + $0x48] ss:$16 sps:$4 sm:$0xff]   ;;  %v3078_v25 = vld [vmem:[#allocation2 + $0x24] ss:$16 sps:$4 sm:$0xff]  }
  0x25   :  { %v3080_v26 = vld [vmem:[#allocation2 + $0x2c] ss:$16 sps:$4 sm:$0xff]   ;;  %v3082_v27 = vld [vmem:[#allocation2 + $0x20] ss:$16 sps:$4 sm:$0xff]   ;;  %v3083_v28 = vld [vmem:[#allocation2 + $0x28] ss:$16 sps:$4 sm:$0xff]  }
  0x26   :  { %v3084_v29 = vld [vmem:[#allocation2 + $0x4] ss:$16 sps:$4 sm:$0xff]   ;;  %v3086_v30 = vld [vmem:[#allocation2 + $0xc] ss:$16 sps:$4 sm:$0xff]   ;;  %v3088_v31 = vld [vmem:[#allocation2] ss:$16 sps:$4 sm:$0xff]  }
  0x27   :  { %269 = vmatpush1.bf16.msra.mxu0 %v3058_v11  ;;  %310 = vmatpush1.bf16.msra.mxu1 %v3059_v12  ;;  %v3089_v32 = vld [vmem:[#allocation2 + $0x8] ss:$16 sps:$4 sm:$0xff]   ;;  %v3092_v33 = vld [vmem:[#allocation4 + $0x1fc] ss:$36 sps:$4 sm:$0xff]   ;;  %v3096_v40 = vld [vmem:[#allocation4 + $0x1b0] ss:$36 sps:$4 sm:$0xff]  }
  0x28   :  { %270 = vmatprep.subr.bf16.mxu0 %v3060_v13  ;;  %311 = vmatprep.subr.bf16.mxu1 %v3062_v14  ;;  %v3095_v34 = vld [vmem:[#allocation4 + $0x67c] ss:$36 sps:$4 sm:$0xff]   ;;  %v3098_v38 = vld [vmem:[#allocation4 + $0x1b4] ss:$36 sps:$4 sm:$0xff]   ;;  %v3104_v42 = vld [vmem:[#allocation4 + $0x16c] ss:$36 sps:$4 sm:$0xff]  }
  0x29   :  { %v49_v35 = vld [vmem:[%s3684_s0] sm:$0xf]  ;;  %v3090_v36 = vld [vmem:[#allocation4 + $0x1f8] ss:$36 sps:$4 sm:$0xff]   ;;  %v3099_v41 = vld [vmem:[#allocation4 + $0x630] ss:$36 sps:$4 sm:$0xff]  }
  0x2a   :  { %v3093_v37 = vld [vmem:[#allocation4 + $0x678] ss:$36 sps:$4 sm:$0xff]   ;;  %v3107_v43 = vld [vmem:[#allocation4 + $0x5ec] ss:$36 sps:$4 sm:$0xff]   ;;  %v3110_v46 = vld [vmem:[#allocation4 + $0x124] ss:$36 sps:$4 sm:$0xff]  }
  0x2b   :  { %271 = vmatpush1.bf16.msra.mxu0 %v3064_v15  ;;  %312 = vmatpush1.bf16.msra.mxu1 %v3065_v16  ;;  %v3101_v39 = vld [vmem:[#allocation4 + $0x634] ss:$36 sps:$4 sm:$0xff]   ;;  %v3102_v44 = vld [vmem:[#allocation4 + $0x168] ss:$36 sps:$4 sm:$0xff]   ;;  %v3108_v48 = vld [vmem:[#allocation4 + $0x120] ss:$36 sps:$4 sm:$0xff]  }
  0x2c   :  { %272 = vmatprep.subr.bf16.mxu0 %v3066_v17  ;;  %313 = vmatprep.subr.bf16.mxu1 %v3068_v18  ;;  %v3105_v45 = vld [vmem:[#allocation4 + $0x5e8] ss:$36 sps:$4 sm:$0xff]   ;;  %v3111_v49 = vld [vmem:[#allocation4 + $0x5a0] ss:$36 sps:$4 sm:$0xff]   ;;  %v3114_v52 = vld [vmem:[#allocation4 + $0xd8] ss:$36 sps:$4 sm:$0xff]  }
  0x2d   :  { %v3113_v47 = vld [vmem:[#allocation4 + $0x5a4] ss:$36 sps:$4 sm:$0xff]   ;;  %v3116_v50 = vld [vmem:[#allocation4 + $0xdc] ss:$36 sps:$4 sm:$0xff]   ;;  %v3122_v54 = vld [vmem:[#allocation4 + $0x94] ss:$36 sps:$4 sm:$0xff]  }
  0x2e   :  { %v3119_v51 = vld [vmem:[#allocation4 + $0x55c] ss:$36 sps:$4 sm:$0xff]   ;;  %v3125_v55 = vld [vmem:[#allocation4 + $0x514] ss:$36 sps:$4 sm:$0xff]   ;;  %v3128_v58 = vld [vmem:[#allocation4 + $0x4c] ss:$36 sps:$4 sm:$0xff]  }
  0x2f   :  { %273 = vmatpush1.bf16.msra.mxu0 %v3070_v19  ;;  %314 = vmatpush1.bf16.msra.mxu1 %v3071_v20  ;;  %v3117_v53 = vld [vmem:[#allocation4 + $0x558] ss:$36 sps:$4 sm:$0xff]   ;;  %v3120_v56 = vld [vmem:[#allocation4 + $0x90] ss:$36 sps:$4 sm:$0xff]   ;;  %v3126_v60 = vld [vmem:[#allocation4 + $0x48] ss:$36 sps:$4 sm:$0xff]  }
  0x30   :  { %274 = vmatprep.subr.bf16.mxu0 %v3072_v21  ;;  %315 = vmatprep.subr.bf16.mxu1 %v3074_v22  ;;  %v3123_v57 = vld [vmem:[#allocation4 + $0x510] ss:$36 sps:$4 sm:$0xff]   ;;  %v3129_v61 = vld [vmem:[#allocation4 + $0x4c8] ss:$36 sps:$4 sm:$0xff]   ;;  %v3132_v0 = vld [vmem:[#allocation4] ss:$36 sps:$4 sm:$0xff]  }
  0x31   :  { %v3131_v59 = vld [vmem:[#allocation4 + $0x4cc] ss:$36 sps:$4 sm:$0xff]   ;;  %v3134_v62 = vld [vmem:[#allocation4 + $0x4] ss:$36 sps:$4 sm:$0xff]   ;;  %v3140_v2 = vld [vmem:[#allocation4 + $0x43c] ss:$36 sps:$4 sm:$0xff]  }
  0x32   :  { %v3137_v63 = vld [vmem:[#allocation4 + $0x484] ss:$36 sps:$4 sm:$0xff]   ;;  %v3143_v3 = vld [vmem:[#allocation4 + $0x8bc] ss:$36 sps:$4 sm:$0xff]   ;;  %v3146_v6 = vld [vmem:[#allocation4 + $0x3f4] ss:$36 sps:$4 sm:$0xff]  }
  0x33   :  { %275 = vmatpush1.bf16.msra.mxu0 %v3076_v23  ;;  %316 = vmatpush1.bf16.msra.mxu1 %v3077_v24  ;;  %v3135_v1 = vld [vmem:[#allocation4 + $0x480] ss:$36 sps:$4 sm:$0xff]   ;;  %v3138_v4 = vld [vmem:[#allocation4 + $0x438] ss:$36 sps:$4 sm:$0xff]   ;;  %v3144_v8 = vld [vmem:[#allocation4 + $0x3f0] ss:$36 sps:$4 sm:$0xff]  }
  0x34   :  { %276 = vmatprep.subr.bf16.mxu0 %v3078_v25  ;;  %317 = vmatprep.subr.bf16.mxu1 %v3080_v26  ;;  %v3141_v5 = vld [vmem:[#allocation4 + $0x8b8] ss:$36 sps:$4 sm:$0xff]   ;;  %v3147_v9 = vld [vmem:[#allocation4 + $0x870] ss:$36 sps:$4 sm:$0xff]   ;;  %v3150_v12 = vld [vmem:[#allocation4 + $0x3a8] ss:$36 sps:$4 sm:$0xff]  }
  0x35   :  { %v3149_v7 = vld [vmem:[#allocation4 + $0x874] ss:$36 sps:$4 sm:$0xff]   ;;  %v3152_v10 = vld [vmem:[#allocation4 + $0x3ac] ss:$36 sps:$4 sm:$0xff]   ;;  %v3158_v14 = vld [vmem:[#allocation4 + $0x364] ss:$36 sps:$4 sm:$0xff]  }
  0x36   :  { %v3155_v11 = vld [vmem:[#allocation4 + $0x82c] ss:$36 sps:$4 sm:$0xff]   ;;  %v3161_v15 = vld [vmem:[#allocation4 + $0x7e4] ss:$36 sps:$4 sm:$0xff]   ;;  %v3164_v18 = vld [vmem:[#allocation4 + $0x31c] ss:$36 sps:$4 sm:$0xff]  }
  0x37   :  { %277 = vmatpush1.bf16.msra.mxu0 %v3082_v27  ;;  %318 = vmatpush1.bf16.msra.mxu1 %v3083_v28  ;;  %v3153_v13 = vld [vmem:[#allocation4 + $0x828] ss:$36 sps:$4 sm:$0xff]   ;;  %v3156_v16 = vld [vmem:[#allocation4 + $0x360] ss:$36 sps:$4 sm:$0xff]   ;;  %v3162_v20 = vld [vmem:[#allocation4 + $0x318] ss:$36 sps:$4 sm:$0xff]  }
  0x38   :  { %278 = vmatprep.subr.bf16.mxu0 %v3084_v29  ;;  %319 = vmatprep.subr.bf16.mxu1 %v3086_v30  ;;  %v3159_v17 = vld [vmem:[#allocation4 + $0x7e0] ss:$36 sps:$4 sm:$0xff]   ;;  %v3165_v21 = vld [vmem:[#allocation4 + $0x798] ss:$36 sps:$4 sm:$0xff]   ;;  %v3168_v24 = vld [vmem:[#allocation4 + $0x2d0] ss:$36 sps:$4 sm:$0xff]  }
  0x39   :  { %v3167_v19 = vld [vmem:[#allocation4 + $0x79c] ss:$36 sps:$4 sm:$0xff]   ;;  %v3170_v22 = vld [vmem:[#allocation4 + $0x2d4] ss:$36 sps:$4 sm:$0xff]   ;;  %v3176_v26 = vld [vmem:[#allocation4 + $0x28c] ss:$36 sps:$4 sm:$0xff]  }
  0x3a   :  { %v3173_v23 = vld [vmem:[#allocation4 + $0x754] ss:$36 sps:$4 sm:$0xff]   ;;  %v3179_v27 = vld [vmem:[#allocation4 + $0x70c] ss:$36 sps:$4 sm:$0xff]   ;;  %v3182_v30 = vld [vmem:[#allocation4 + $0x244] ss:$36 sps:$4 sm:$0xff]  }
  0x3b   :  { %279 = vmatpush1.bf16.msra.mxu0 %v3088_v31  ;;  %320 = vmatpush1.bf16.msra.mxu1 %v3089_v32  ;;  %v3171_v25 = vld [vmem:[#allocation4 + $0x750] ss:$36 sps:$4 sm:$0xff]   ;;  %v3174_v28 = vld [vmem:[#allocation4 + $0x288] ss:$36 sps:$4 sm:$0xff]   ;;  %v3180_v32 = vld [vmem:[#allocation4 + $0x240] ss:$36 sps:$4 sm:$0xff]  }
  0x3c   :  { %2195 = vmatprep.subr.bf16.mxu0 %v3092_v33  ;;  %2236 = vmatprep.subr.bf16.mxu1 %v3095_v34  ;;  %v3177_v29 = vld [vmem:[#allocation4 + $0x708] ss:$36 sps:$4 sm:$0xff]   ;;  %v3183_v33 = vld [vmem:[#allocation4 + $0x6c0] ss:$36 sps:$4 sm:$0xff]  }
  0x3d   :  { %v3185_v31 = vld [vmem:[#allocation4 + $0x6c4] ss:$36 sps:$4 sm:$0xff]  }
  0x3e   :  { %297 = vmatmul.mubr.bf16.vlgmr.msra.gmra.mxu0 %v49_v35  ;;  %338 = vmatmul.mubr.bf16.vlgmr.msra.gmra.mxu1 %v49_v35  ;;  %v3188_v34 = vld [vmem:[#allocation4 + $0x204] ss:$36 sps:$4 sm:$0xff]  }
  0x3f   :  { %2196 = vmatpush1.bf16.msra.mxu0 %v3090_v36  ;;  %2237 = vmatpush1.bf16.msra.mxu1 %v3093_v37  ;;  %v3191_v35 = vld [vmem:[#allocation4 + $0x684] ss:$36 sps:$4 sm:$0xff]   ;;  %v84_v36 = vlaneseq }
  0x40   :  { %2197 = vmatprep.subr.bf16.mxu0 %v3098_v38  ;;  %2238 = vmatprep.subr.bf16.mxu1 %v3101_v39 }
  0x41   :  { %v3596_v37 = vshrl.u32 %v84_v36, 7  ;;  %v3237_v36 = vld [vmem:[#allocation4 + $0x8c0] ss:$36 sps:$4 sm:$0xff]  }
  0x43   :  { %2198 = vmatpush1.bf16.msra.mxu0 %v3096_v40  ;;  %2239 = vmatpush1.bf16.msra.mxu1 %v3099_v41  ;;  %v86_v38 = vsub.s32 0, %v3596_v37  ;;  %v94_v39 = vsub.s32 2, %v3596_v37  ;;  %v82_v40 = vld [vmem:[%s3686_s2] sm:$0xf]  ;;  %v90_v41 = vsub.s32 1, %v3596_v37 }
  0x44   :  { %2199 = vmatprep.subr.bf16.mxu0 %v3104_v42  ;;  %2240 = vmatprep.subr.bf16.mxu1 %v3107_v43  ;;  %v98_v42 = vsub.s32 3, %v3596_v37 }
  0x45   :  { %v87_v43 = vrot.slane %v82_v40, %v86_v38 }
  0x47   :  { %2200 = vmatpush1.bf16.msra.mxu0 %v3102_v44  ;;  %2241 = vmatpush1.bf16.msra.mxu1 %v3105_v45  ;;  %v95_v44 = vrot.slane %v82_v40, %v94_v39  ;;  %v91_v45 = vrot.slane %v82_v40, %v90_v41 }
  0x48   :  { %2201 = vmatprep.subr.bf16.mxu0 %v3110_v46  ;;  %2242 = vmatprep.subr.bf16.mxu1 %v3113_v47  ;;  %v99_v46 = vrot.slane %v82_v40, %v98_v42  ;;  %v3242_v40 = vld [vmem:[#allocation4 + $0x3fc] ss:$36 sps:$4 sm:$0xff]  }
  0x4b   :  { %2202 = vmatpush1.bf16.msra.mxu0 %v3108_v48  ;;  %2243 = vmatpush1.bf16.msra.mxu1 %v3111_v49 }
  0x4c   :  { %2203 = vmatprep.subr.bf16.mxu0 %v3116_v50  ;;  %2244 = vmatprep.subr.bf16.mxu1 %v3119_v51 }
  0x4f   :  { %2204 = vmatpush1.bf16.msra.mxu0 %v3114_v52  ;;  %2245 = vmatpush1.bf16.msra.mxu1 %v3117_v53 }
  0x50   :  { %2205 = vmatprep.subr.bf16.mxu0 %v3122_v54  ;;  %2246 = vmatprep.subr.bf16.mxu1 %v3125_v55 }
  0x53   :  { %2206 = vmatpush1.bf16.msra.mxu0 %v3120_v56  ;;  %2247 = vmatpush1.bf16.msra.mxu1 %v3123_v57 }
  0x54   :  { %2207 = vmatprep.subr.bf16.mxu0 %v3128_v58  ;;  %2248 = vmatprep.subr.bf16.mxu1 %v3131_v59 }
  0x57   :  { %2208 = vmatpush1.bf16.msra.mxu0 %v3126_v60  ;;  %2249 = vmatpush1.bf16.msra.mxu1 %v3129_v61 }
  0x58   :  { %2209 = vmatprep.subr.bf16.mxu0 %v3134_v62  ;;  %2250 = vmatprep.subr.bf16.mxu1 %v3137_v63 }
  0x5b   :  { %2210 = vmatpush1.bf16.msra.mxu0 %v3132_v0  ;;  %2251 = vmatpush1.bf16.msra.mxu1 %v3135_v1 }
  0x5c   :  { %2211 = vmatprep.subr.bf16.mxu0 %v3140_v2  ;;  %2252 = vmatprep.subr.bf16.mxu1 %v3143_v3  ;;  %v3186_v2 = vld [vmem:[#allocation4 + $0x200] ss:$36 sps:$4 sm:$0xff]  }
  0x5d   :  { %v3189_v3 = vld [vmem:[#allocation4 + $0x680] ss:$36 sps:$4 sm:$0xff]  }
  0x5f   :  { %2212 = vmatpush2.bf16.msra.mxu0 %v3138_v4  ;;  %2253 = vmatpush2.bf16.msra.mxu1 %v3141_v5  ;;  %v3194_v5 = vld [vmem:[#allocation4 + $0x1bc] ss:$36 sps:$4 sm:$0xff]  }
  0x60   :  { %2213 = vmatprep.subr.bf16.mxu0 %v3146_v6  ;;  %2254 = vmatprep.subr.bf16.mxu1 %v3149_v7  ;;  %v3197_v6 = vld [vmem:[#allocation4 + $0x63c] ss:$36 sps:$4 sm:$0xff]  }
  0x61   :  { %v3192_v7 = vld [vmem:[#allocation4 + $0x1b8] ss:$36 sps:$4 sm:$0xff]  }
  0x63   :  { %2214 = vmatpush2.bf16.msra.mxu0 %v3144_v8  ;;  %2255 = vmatpush2.bf16.msra.mxu1 %v3147_v9  ;;  %v3195_v8 = vld [vmem:[#allocation4 + $0x638] ss:$36 sps:$4 sm:$0xff]  }
  0x64   :  { %2215 = vmatprep.subr.bf16.mxu0 %v3152_v10  ;;  %2256 = vmatprep.subr.bf16.mxu1 %v3155_v11  ;;  %v3200_v9 = vld [vmem:[#allocation4 + $0x174] ss:$36 sps:$4 sm:$0xff]  }
  0x65   :  { %v3203_v10 = vld [vmem:[#allocation4 + $0x5f4] ss:$36 sps:$4 sm:$0xff]  }
  0x66   :  { %v3198_v11 = vld [vmem:[#allocation4 + $0x170] ss:$36 sps:$4 sm:$0xff]  }
  0x67   :  { %2216 = vmatpush2.bf16.msra.mxu0 %v3150_v12  ;;  %2257 = vmatpush2.bf16.msra.mxu1 %v3153_v13  ;;  %v3201_v12 = vld [vmem:[#allocation4 + $0x5f0] ss:$36 sps:$4 sm:$0xff]  }
  0x68   :  { %2217 = vmatprep.subr.bf16.mxu0 %v3158_v14  ;;  %2258 = vmatprep.subr.bf16.mxu1 %v3161_v15  ;;  %v3206_v13 = vld [vmem:[#allocation4 + $0x12c] ss:$36 sps:$4 sm:$0xff]  }
  0x69   :  { %v3209_v14 = vld [vmem:[#allocation4 + $0x5ac] ss:$36 sps:$4 sm:$0xff]  }
  0x6a   :  { %v3204_v15 = vld [vmem:[#allocation4 + $0x128] ss:$36 sps:$4 sm:$0xff]  }
  0x6b   :  { %2218 = vmatpush2.bf16.msra.mxu0 %v3156_v16  ;;  %2259 = vmatpush2.bf16.msra.mxu1 %v3159_v17  ;;  %v3207_v16 = vld [vmem:[#allocation4 + $0x5a8] ss:$36 sps:$4 sm:$0xff]  }
  0x6c   :  { %2219 = vmatprep.subr.bf16.mxu0 %v3164_v18  ;;  %2260 = vmatprep.subr.bf16.mxu1 %v3167_v19  ;;  %v3212_v17 = vld [vmem:[#allocation4 + $0xe4] ss:$36 sps:$4 sm:$0xff]  }
  0x6d   :  { %v3215_v18 = vld [vmem:[#allocation4 + $0x564] ss:$36 sps:$4 sm:$0xff]  }
  0x6e   :  { %v3210_v19 = vld [vmem:[#allocation4 + $0xe0] ss:$36 sps:$4 sm:$0xff]  }
  0x6f   :  { %2220 = vmatpush2.bf16.msra.mxu0 %v3162_v20  ;;  %2261 = vmatpush2.bf16.msra.mxu1 %v3165_v21  ;;  %v3213_v20 = vld [vmem:[#allocation4 + $0x560] ss:$36 sps:$4 sm:$0xff]  }
  0x70   :  { %2221 = vmatprep.subr.bf16.mxu0 %v3170_v22  ;;  %2262 = vmatprep.subr.bf16.mxu1 %v3173_v23  ;;  %v3218_v21 = vld [vmem:[#allocation4 + $0x9c] ss:$36 sps:$4 sm:$0xff]  }
  0x71   :  { %v3221_v22 = vld [vmem:[#allocation4 + $0x51c] ss:$36 sps:$4 sm:$0xff]  }
  0x72   :  { %v3216_v23 = vld [vmem:[#allocation4 + $0x98] ss:$36 sps:$4 sm:$0xff]  }
  0x73   :  { %2222 = vmatpush2.bf16.msra.mxu0 %v3168_v24  ;;  %2263 = vmatpush2.bf16.msra.mxu1 %v3171_v25  ;;  %v3219_v24 = vld [vmem:[#allocation4 + $0x518] ss:$36 sps:$4 sm:$0xff]  }
  0x74   :  { %2223 = vmatprep.subr.bf16.mxu0 %v3176_v26  ;;  %2264 = vmatprep.subr.bf16.mxu1 %v3179_v27  ;;  %v3224_v25 = vld [vmem:[#allocation4 + $0x54] ss:$36 sps:$4 sm:$0xff]  }
  0x75   :  { %v3227_v26 = vld [vmem:[#allocation4 + $0x4d4] ss:$36 sps:$4 sm:$0xff]  }
  0x76   :  { %v3222_v27 = vld [vmem:[#allocation4 + $0x50] ss:$36 sps:$4 sm:$0xff]  }
  0x77   :  { %2224 = vmatpush2.bf16.msra.mxu0 %v3174_v28  ;;  %2265 = vmatpush2.bf16.msra.mxu1 %v3177_v29  ;;  %v3225_v28 = vld [vmem:[#allocation4 + $0x4d0] ss:$36 sps:$4 sm:$0xff]  }
  0x78   :  { %2225 = vmatprep.subr.bf16.mxu0 %v3182_v30  ;;  %2266 = vmatprep.subr.bf16.mxu1 %v3185_v31  ;;  %v3230_v29 = vld [vmem:[#allocation4 + $0xc] ss:$36 sps:$4 sm:$0xff]  }
  0x79   :  { %v3233_v30 = vld [vmem:[#allocation4 + $0x48c] ss:$36 sps:$4 sm:$0xff]  }
  0x7a   :  { %v3228_v31 = vld [vmem:[#allocation4 + $0x8] ss:$36 sps:$4 sm:$0xff]  }
  0x7b   :  { %2226 = vmatpush2.bf16.msra.mxu0 %v3180_v32  ;;  %2267 = vmatpush2.bf16.msra.mxu1 %v3183_v33  ;;  %v3231_v32 = vld [vmem:[#allocation4 + $0x488] ss:$36 sps:$4 sm:$0xff]  }
  0x7c   :  { %2277 = vmatprep.subr.bf16.mxu0 %v3188_v34  ;;  %2318 = vmatprep.subr.bf16.mxu1 %v3191_v35  ;;  %v3236_v33 = vld [vmem:[#allocation4 + $0x444] ss:$36 sps:$4 sm:$0xff]  }
  0x7d   :  { %v3239_v34 = vld [vmem:[#allocation4 + $0x8c4] ss:$36 sps:$4 sm:$0xff]  }
  0x7e   :  { %v3234_v35 = vld [vmem:[#allocation4 + $0x440] ss:$36 sps:$4 sm:$0xff]  }
  0xfe   :  { %v298_v47 = vpop.f32.mrf.mxu0  ;;  %v339_v48 = vpop.f32.mrf.mxu1 }
  0xff   :  { %v299_v49 = vadd.f32 %v298_v47, %v87_v43  ;;  %v340_v50 = vadd.f32 %v339_v48, %v95_v44  ;;  %v3245_v43 = vld [vmem:[#allocation4 + $0x87c] ss:$36 sps:$4 sm:$0xff]   ;;  %v3251_v47 = vld [vmem:[#allocation4 + $0x834] ss:$36 sps:$4 sm:$0xff]  }
 0x100   :  { %v300_v51 = vpop.f32.mrf.mxu0  ;;  %v341_v52 = vpop.f32.mrf.mxu1  ;;  %v3240_v44 = vld [vmem:[#allocation4 + $0x3f8] ss:$36 sps:$4 sm:$0xff]   ;;  %v3246_v48 = vld [vmem:[#allocation4 + $0x3b0] ss:$36 sps:$4 sm:$0xff]  }
 0x101   :  { %v348_v53 = vmax.f32 %v340_v50, 0.0  ;;  %v301_v54 = vadd.f32 %v300_v51, %v91_v45  ;;  %v342_v55 = vadd.f32 %v341_v52, %v99_v46  ;;  %v346_v56 = vmax.f32 %v299_v49, 0.0  ;;  %v3243_v45 = vld [vmem:[#allocation4 + $0x878] ss:$36 sps:$4 sm:$0xff]   ;;  %v3249_v49 = vld [vmem:[#allocation4 + $0x830] ss:$36 sps:$4 sm:$0xff]  }
 0x102   :  { %v302_v57 = vpop.f32.mrf.mxu0  ;;  %v343_v58 = vpop.f32.mrf.mxu1  ;;  %v3248_v46 = vld [vmem:[#allocation4 + $0x3b4] ss:$36 sps:$4 sm:$0xff]   ;;  %v3254_v50 = vld [vmem:[#allocation4 + $0x36c] ss:$36 sps:$4 sm:$0xff]  }
 0x103   :  { %v347_v59 = vmax.f32 %v301_v54, 0.0  ;;  %v349_v60 = vmax.f32 %v342_v55, 0.0  ;;  %v3613_v61 = vpack.c.bf16 %v348_v53, %v348_v53  ;;  %v3619_v4 = vpack.c.bf16 %v346_v56, %v346_v56  ;;  %v3257_v51 = vld [vmem:[#allocation4 + $0x7ec] ss:$36 sps:$4 sm:$0xff]   ;;  %v3260_v54 = vld [vmem:[#allocation4 + $0x324] ss:$36 sps:$4 sm:$0xff]  }
 0x104   :  { %v303_v62 = vpop.f32.mrf.mxu0  ;;  %v344_v63 = vpop.f32.mrf.mxu1  ;;  %v3252_v52 = vld [vmem:[#allocation4 + $0x368] ss:$36 sps:$4 sm:$0xff]   ;;  %v3258_v56 = vld [vmem:[#allocation4 + $0x320] ss:$36 sps:$4 sm:$0xff]  }
 0x105   :  { %v3615_v0 = vpack.c.bf16 %v347_v59, %v347_v59  ;;  %v3617_v1 = vpack.c.bf16 %v349_v60, %v349_v60  ;;  %v3255_v53 = vld [vmem:[#allocation4 + $0x7e8] ss:$36 sps:$4 sm:$0xff]   ;;  %v3261_v57 = vld [vmem:[#allocation4 + $0x7a0] ss:$36 sps:$4 sm:$0xff]   ;;  %v3264_v60 = vld [vmem:[#allocation4 + $0x2d8] ss:$36 sps:$4 sm:$0xff]  }
 0x106   :  { %v3263_v55 = vld [vmem:[#allocation4 + $0x7a4] ss:$36 sps:$4 sm:$0xff]   ;;  %v3266_v58 = vld [vmem:[#allocation4 + $0x2dc] ss:$36 sps:$4 sm:$0xff]   ;;  %v3272_v63 = vld [vmem:[#allocation4 + $0x294] ss:$36 sps:$4 sm:$0xff]  }
 0x107   :  { %2227 = vmatprep.mubr.bf16.mxu0 %v3615_v0  ;;  %2268 = vmatprep.mubr.bf16.mxu1 %v3617_v1  ;;  %v3269_v59 = vld [vmem:[#allocation4 + $0x75c] ss:$36 sps:$4 sm:$0xff]  }
 0x108   :  { %2228 = vmatmul.mubr.bf16.vlgmr.msra.gmra.mxu0 %v3619_v4  ;;  %2269 = vmatmul.mubr.bf16.vlgmr.msra.gmra.mxu1 %v3613_v61  ;;  %v3267_v62 = vld [vmem:[#allocation4 + $0x758] ss:$36 sps:$4 sm:$0xff]  }
 0x109   :  { %2278 = vmatpush1.bf16.msra.mxu0 %v3186_v2  ;;  %2319 = vmatpush1.bf16.msra.mxu1 %v3189_v3  ;;  %v3275_v2 = vld [vmem:[#allocation4 + $0x714] ss:$36 sps:$4 sm:$0xff]  }
 0x10a   :  { %2309 = vmatprep.mubr.bf16.mxu0 %v3615_v0  ;;  %2350 = vmatprep.mubr.bf16.mxu1 %v3617_v1  ;;  %v3270_v3 = vld [vmem:[#allocation4 + $0x290] ss:$36 sps:$4 sm:$0xff]  }
 0x10b   :  { %2279 = vmatprep.subr.bf16.mxu0 %v3194_v5  ;;  %2320 = vmatprep.subr.bf16.mxu1 %v3197_v6  ;;  %v3273_v5 = vld [vmem:[#allocation4 + $0x710] ss:$36 sps:$4 sm:$0xff]  }
 0x10c   :  { %v3278_v6 = vld [vmem:[#allocation4 + $0x24c] ss:$36 sps:$4 sm:$0xff]  }
 0x10d   :  { %2280 = vmatpush1.bf16.msra.mxu0 %v3192_v7  ;;  %2321 = vmatpush1.bf16.msra.mxu1 %v3195_v8  ;;  %v3281_v7 = vld [vmem:[#allocation4 + $0x6cc] ss:$36 sps:$4 sm:$0xff]  }
 0x10e   :  { %2281 = vmatprep.subr.bf16.mxu0 %v3200_v9  ;;  %2322 = vmatprep.subr.bf16.mxu1 %v3203_v10  ;;  %v3276_v8 = vld [vmem:[#allocation4 + $0x248] ss:$36 sps:$4 sm:$0xff]  }
 0x10f   :  { %v3279_v9 = vld [vmem:[#allocation4 + $0x6c8] ss:$36 sps:$4 sm:$0xff]  }
 0x110   :  { %v3284_v10 = vld [vmem:[#allocation4 + $0x20c] ss:$36 sps:$4 sm:$0xff]  }
 0x111   :  { %2282 = vmatpush1.bf16.msra.mxu0 %v3198_v11  ;;  %2323 = vmatpush1.bf16.msra.mxu1 %v3201_v12  ;;  %v3287_v11 = vld [vmem:[#allocation4 + $0x68c] ss:$36 sps:$4 sm:$0xff]  }
 0x112   :  { %2283 = vmatprep.subr.bf16.mxu0 %v3206_v13  ;;  %2324 = vmatprep.subr.bf16.mxu1 %v3209_v14  ;;  %v3282_v12 = vld [vmem:[#allocation4 + $0x208] ss:$36 sps:$4 sm:$0xff]  }
 0x113   :  { %v3285_v13 = vld [vmem:[#allocation4 + $0x688] ss:$36 sps:$4 sm:$0xff]  }
 0x114   :  { %v3290_v14 = vld [vmem:[#allocation4 + $0x1c4] ss:$36 sps:$4 sm:$0xff]  }
 0x115   :  { %2284 = vmatpush1.bf16.msra.mxu0 %v3204_v15  ;;  %2325 = vmatpush1.bf16.msra.mxu1 %v3207_v16  ;;  %v3293_v15 = vld [vmem:[#allocation4 + $0x644] ss:$36 sps:$4 sm:$0xff]  }
 0x116   :  { %2285 = vmatprep.subr.bf16.mxu0 %v3212_v17  ;;  %2326 = vmatprep.subr.bf16.mxu1 %v3215_v18  ;;  %v3288_v16 = vld [vmem:[#allocation4 + $0x1c0] ss:$36 sps:$4 sm:$0xff]  }
 0x117   :  { %v3291_v17 = vld [vmem:[#allocation4 + $0x640] ss:$36 sps:$4 sm:$0xff]  }
 0x118   :  { %v3296_v18 = vld [vmem:[#allocation4 + $0x17c] ss:$36 sps:$4 sm:$0xff]  }
 0x119   :  { %2286 = vmatpush1.bf16.msra.mxu0 %v3210_v19  ;;  %2327 = vmatpush1.bf16.msra.mxu1 %v3213_v20  ;;  %v3299_v19 = vld [vmem:[#allocation4 + $0x5fc] ss:$36 sps:$4 sm:$0xff]  }
 0x11a   :  { %2287 = vmatprep.subr.bf16.mxu0 %v3218_v21  ;;  %2328 = vmatprep.subr.bf16.mxu1 %v3221_v22  ;;  %v3294_v20 = vld [vmem:[#allocation4 + $0x178] ss:$36 sps:$4 sm:$0xff]  }
 0x11b   :  { %v3297_v21 = vld [vmem:[#allocation4 + $0x5f8] ss:$36 sps:$4 sm:$0xff]  }
 0x11c   :  { %v3302_v22 = vld [vmem:[#allocation4 + $0x134] ss:$36 sps:$4 sm:$0xff]  }
 0x11d   :  { %2288 = vmatpush1.bf16.msra.mxu0 %v3216_v23  ;;  %2329 = vmatpush1.bf16.msra.mxu1 %v3219_v24  ;;  %v3305_v23 = vld [vmem:[#allocation4 + $0x5b4] ss:$36 sps:$4 sm:$0xff]  }
 0x11e   :  { %2289 = vmatprep.subr.bf16.mxu0 %v3224_v25  ;;  %2330 = vmatprep.subr.bf16.mxu1 %v3227_v26  ;;  %v3300_v24 = vld [vmem:[#allocation4 + $0x130] ss:$36 sps:$4 sm:$0xff]  }
 0x11f   :  { %v3303_v25 = vld [vmem:[#allocation4 + $0x5b0] ss:$36 sps:$4 sm:$0xff]  }
 0x120   :  { %v3308_v26 = vld [vmem:[#allocation4 + $0xec] ss:$36 sps:$4 sm:$0xff]  }
 0x121   :  { %2290 = vmatpush1.bf16.msra.mxu0 %v3222_v27  ;;  %2331 = vmatpush1.bf16.msra.mxu1 %v3225_v28  ;;  %v3311_v27 = vld [vmem:[#allocation4 + $0x56c] ss:$36 sps:$4 sm:$0xff]  }
 0x122   :  { %2291 = vmatprep.subr.bf16.mxu0 %v3230_v29  ;;  %2332 = vmatprep.subr.bf16.mxu1 %v3233_v30  ;;  %v3306_v28 = vld [vmem:[#allocation4 + $0xe8] ss:$36 sps:$4 sm:$0xff]  }
 0x123   :  { %v3309_v29 = vld [vmem:[#allocation4 + $0x568] ss:$36 sps:$4 sm:$0xff]  }
 0x124   :  { %v3314_v30 = vld [vmem:[#allocation4 + $0xa4] ss:$36 sps:$4 sm:$0xff]  }
 0x125   :  { %2292 = vmatpush1.bf16.msra.mxu0 %v3228_v31  ;;  %2333 = vmatpush1.bf16.msra.mxu1 %v3231_v32  ;;  %v3317_v31 = vld [vmem:[#allocation4 + $0x524] ss:$36 sps:$4 sm:$0xff]  }
 0x126   :  { %2293 = vmatprep.subr.bf16.mxu0 %v3236_v33  ;;  %2334 = vmatprep.subr.bf16.mxu1 %v3239_v34  ;;  %v3312_v32 = vld [vmem:[#allocation4 + $0xa0] ss:$36 sps:$4 sm:$0xff]  }
 0x127   :  { %v3315_v33 = vld [vmem:[#allocation4 + $0x520] ss:$36 sps:$4 sm:$0xff]  }
 0x128   :  { %v3320_v34 = vld [vmem:[#allocation4 + $0x5c] ss:$36 sps:$4 sm:$0xff]  }
 0x129   :  { %2294 = vmatpush2.bf16.msra.mxu0 %v3234_v35  ;;  %2335 = vmatpush2.bf16.msra.mxu1 %v3237_v36  ;;  %v3323_v35 = vld [vmem:[#allocation4 + $0x4dc] ss:$36 sps:$4 sm:$0xff]  }
 0x12a   :  { %2295 = vmatprep.subr.bf16.mxu0 %v3242_v40  ;;  %2336 = vmatprep.subr.bf16.mxu1 %v3245_v43  ;;  %v3318_v36 = vld [vmem:[#allocation4 + $0x58] ss:$36 sps:$4 sm:$0xff]  }
 0x12b   :  { %v3321_v40 = vld [vmem:[#allocation4 + $0x4d8] ss:$36 sps:$4 sm:$0xff]  }
 0x12c   :  { %v3326_v43 = vld [vmem:[#allocation4 + $0x14] ss:$36 sps:$4 sm:$0xff]  }
 0x12d   :  { %2296 = vmatpush2.bf16.msra.mxu0 %v3240_v44  ;;  %2337 = vmatpush2.bf16.msra.mxu1 %v3243_v45  ;;  %v3329_v44 = vld [vmem:[#allocation4 + $0x494] ss:$36 sps:$4 sm:$0xff]  }
 0x12e   :  { %2297 = vmatprep.subr.bf16.mxu0 %v3248_v46  ;;  %2338 = vmatprep.subr.bf16.mxu1 %v3251_v47  ;;  %v3324_v45 = vld [vmem:[#allocation4 + $0x10] ss:$36 sps:$4 sm:$0xff]  }
 0x12f   :  { %v3327_v46 = vld [vmem:[#allocation4 + $0x490] ss:$36 sps:$4 sm:$0xff]  }
 0x130   :  { %v3332_v47 = vld [vmem:[#allocation4 + $0x44c] ss:$36 sps:$4 sm:$0xff]  }
 0x131   :  { %2298 = vmatpush2.bf16.msra.mxu0 %v3246_v48  ;;  %2339 = vmatpush2.bf16.msra.mxu1 %v3249_v49  ;;  %v3335_v48 = vld [vmem:[#allocation4 + $0x8cc] ss:$36 sps:$4 sm:$0xff]  }
 0x132   :  { %2299 = vmatprep.subr.bf16.mxu0 %v3254_v50  ;;  %2340 = vmatprep.subr.bf16.mxu1 %v3257_v51  ;;  %v3330_v49 = vld [vmem:[#allocation4 + $0x448] ss:$36 sps:$4 sm:$0xff]  }
 0x133   :  { %v3333_v50 = vld [vmem:[#allocation4 + $0x8c8] ss:$36 sps:$4 sm:$0xff]  }
 0x134   :  { %v3338_v51 = vld [vmem:[#allocation4 + $0x404] ss:$36 sps:$4 sm:$0xff]  }
 0x135   :  { %2300 = vmatpush2.bf16.msra.mxu0 %v3252_v52  ;;  %2341 = vmatpush2.bf16.msra.mxu1 %v3255_v53  ;;  %v3341_v52 = vld [vmem:[#allocation4 + $0x884] ss:$36 sps:$4 sm:$0xff]  }
 0x136   :  { %2301 = vmatprep.subr.bf16.mxu0 %v3260_v54  ;;  %2342 = vmatprep.subr.bf16.mxu1 %v3263_v55  ;;  %v3336_v53 = vld [vmem:[#allocation4 + $0x400] ss:$36 sps:$4 sm:$0xff]  }
 0x137   :  { %v3339_v54 = vld [vmem:[#allocation4 + $0x880] ss:$36 sps:$4 sm:$0xff]  }
 0x138   :  { %v3344_v55 = vld [vmem:[#allocation4 + $0x3bc] ss:$36 sps:$4 sm:$0xff]  }
 0x139   :  { %2302 = vmatpush2.bf16.msra.mxu0 %v3258_v56  ;;  %2343 = vmatpush2.bf16.msra.mxu1 %v3261_v57  ;;  %v3347_v56 = vld [vmem:[#allocation4 + $0x83c] ss:$36 sps:$4 sm:$0xff]  }
 0x13a   :  { %2303 = vmatprep.subr.bf16.mxu0 %v3266_v58  ;;  %2344 = vmatprep.subr.bf16.mxu1 %v3269_v59  ;;  %v3342_v57 = vld [vmem:[#allocation4 + $0x3b8] ss:$36 sps:$4 sm:$0xff]  }
 0x13b   :  { %v3345_v58 = vld [vmem:[#allocation4 + $0x838] ss:$36 sps:$4 sm:$0xff]  }
 0x13c   :  { %v3350_v59 = vld [vmem:[#allocation4 + $0x374] ss:$36 sps:$4 sm:$0xff]  }
 0x13d   :  { %2304 = vmatpush2.bf16.msra.mxu0 %v3264_v60  ;;  %2345 = vmatpush2.bf16.msra.mxu1 %v3267_v62  ;;  %v3353_v60 = vld [vmem:[#allocation4 + $0x7f4] ss:$36 sps:$4 sm:$0xff]  }
 0x13e   :  { %2305 = vmatprep.subr.bf16.mxu0 %v3272_v63  ;;  %2346 = vmatprep.subr.bf16.mxu1 %v3275_v2  ;;  %v3348_v62 = vld [vmem:[#allocation4 + $0x370] ss:$36 sps:$4 sm:$0xff]  }
 0x13f   :  { %v3351_v63 = vld [vmem:[#allocation4 + $0x7f0] ss:$36 sps:$4 sm:$0xff]  }
 0x140   :  { %v3356_v2 = vld [vmem:[#allocation4 + $0x32c] ss:$36 sps:$4 sm:$0xff]  }
 0x141   :  { %2306 = vmatpush2.bf16.msra.mxu0 %v3270_v3  ;;  %2347 = vmatpush2.bf16.msra.mxu1 %v3273_v5  ;;  %v3359_v3 = vld [vmem:[#allocation4 + $0x7ac] ss:$36 sps:$4 sm:$0xff]  }
 0x142   :  { %2307 = vmatprep.subr.bf16.mxu0 %v3278_v6  ;;  %2348 = vmatprep.subr.bf16.mxu1 %v3281_v7  ;;  %v3354_v5 = vld [vmem:[#allocation4 + $0x328] ss:$36 sps:$4 sm:$0xff]  }
 0x143   :  { %v3357_v6 = vld [vmem:[#allocation4 + $0x7a8] ss:$36 sps:$4 sm:$0xff]  }
 0x144   :  { %v3362_v7 = vld [vmem:[#allocation4 + $0x2e4] ss:$36 sps:$4 sm:$0xff]  }
 0x145   :  { %2308 = vmatpush2.bf16.msra.mxu0 %v3276_v8  ;;  %2349 = vmatpush2.bf16.msra.mxu1 %v3279_v9  ;;  %v3365_v8 = vld [vmem:[#allocation4 + $0x764] ss:$36 sps:$4 sm:$0xff]  }
 0x146   :  { %2359 = vmatprep.subr.bf16.mxu0 %v3284_v10  ;;  %2400 = vmatprep.subr.bf16.mxu1 %v3287_v11  ;;  %v3360_v9 = vld [vmem:[#allocation4 + $0x2e0] ss:$36 sps:$4 sm:$0xff]  }
 0x147   :  { %v3363_v10 = vld [vmem:[#allocation4 + $0x760] ss:$36 sps:$4 sm:$0xff]  }
 0x148   :  { %2310 = vmatmul.mubr.bf16.vlgmr.msra.gmra.mxu0 %v3619_v4  ;;  %2351 = vmatmul.mubr.bf16.vlgmr.msra.gmra.mxu1 %v3613_v61  ;;  %v3368_v11 = vld [vmem:[#allocation4 + $0x29c] ss:$36 sps:$4 sm:$0xff]  }
 0x149   :  { %2360 = vmatpush1.bf16.msra.mxu0 %v3282_v12  ;;  %2391 = vmatprep.mubr.bf16.mxu0 %v3615_v0  ;;  %v3371_v12 = vld [vmem:[#allocation4 + $0x71c] ss:$36 sps:$4 sm:$0xff]  }
 0x14a   :  { %2401 = vmatpush1.bf16.msra.mxu1 %v3285_v13  ;;  %2432 = vmatprep.mubr.bf16.mxu1 %v3617_v1  ;;  %v3366_v13 = vld [vmem:[#allocation4 + $0x298] ss:$36 sps:$4 sm:$0xff]  }
 0x14b   :  { %2361 = vmatprep.subr.bf16.mxu0 %v3290_v14  ;;  %2402 = vmatprep.subr.bf16.mxu1 %v3293_v15  ;;  %v3369_v14 = vld [vmem:[#allocation4 + $0x718] ss:$36 sps:$4 sm:$0xff]  }
 0x14c   :  { %v3374_v15 = vld [vmem:[#allocation4 + $0x254] ss:$36 sps:$4 sm:$0xff]  }
 0x14d   :  { %2362 = vmatpush1.bf16.msra.mxu0 %v3288_v16  ;;  %v3377_v16 = vld [vmem:[#allocation4 + $0x6d4] ss:$36 sps:$4 sm:$0xff]  }
 0x14e   :  { %2403 = vmatpush1.bf16.msra.mxu1 %v3291_v17  ;;  %2363 = vmatprep.subr.bf16.mxu0 %v3296_v18  ;;  %v3372_v17 = vld [vmem:[#allocation4 + $0x250] ss:$36 sps:$4 sm:$0xff]  }
 0x14f   :  { %2404 = vmatprep.subr.bf16.mxu1 %v3299_v19  ;;  %v3375_v18 = vld [vmem:[#allocation4 + $0x6d0] ss:$36 sps:$4 sm:$0xff]  }
 0x150   :  { %v3380_v19 = vld [vmem:[#allocation4 + $0x214] ss:$36 sps:$4 sm:$0xff]  }
 0x151   :  { %2364 = vmatpush1.bf16.msra.mxu0 %v3294_v20  ;;  %v3383_v20 = vld [vmem:[#allocation4 + $0x694] ss:$36 sps:$4 sm:$0xff]  }
 0x152   :  { %2405 = vmatpush1.bf16.msra.mxu1 %v3297_v21  ;;  %2365 = vmatprep.subr.bf16.mxu0 %v3302_v22  ;;  %v3378_v21 = vld [vmem:[#allocation4 + $0x210] ss:$36 sps:$4 sm:$0xff]  }
 0x153   :  { %2406 = vmatprep.subr.bf16.mxu1 %v3305_v23  ;;  %v3381_v22 = vld [vmem:[#allocation4 + $0x690] ss:$36 sps:$4 sm:$0xff]  }
 0x154   :  { %v3386_v23 = vld [vmem:[#allocation4 + $0x1cc] ss:$36 sps:$4 sm:$0xff]  }
 0x155   :  { %2366 = vmatpush1.bf16.msra.mxu0 %v3300_v24  ;;  %v3389_v24 = vld [vmem:[#allocation4 + $0x64c] ss:$36 sps:$4 sm:$0xff]  }
 0x156   :  { %2407 = vmatpush1.bf16.msra.mxu1 %v3303_v25  ;;  %2367 = vmatprep.subr.bf16.mxu0 %v3308_v26  ;;  %v3384_v25 = vld [vmem:[#allocation4 + $0x1c8] ss:$36 sps:$4 sm:$0xff]  }
 0x157   :  { %2408 = vmatprep.subr.bf16.mxu1 %v3311_v27  ;;  %v3387_v26 = vld [vmem:[#allocation4 + $0x648] ss:$36 sps:$4 sm:$0xff]  }
 0x158   :  { %v3392_v27 = vld [vmem:[#allocation4 + $0x184] ss:$36 sps:$4 sm:$0xff]  }
 0x159   :  { %2368 = vmatpush1.bf16.msra.mxu0 %v3306_v28  ;;  %v3395_v28 = vld [vmem:[#allocation4 + $0x604] ss:$36 sps:$4 sm:$0xff]  }
 0x15a   :  { %2409 = vmatpush1.bf16.msra.mxu1 %v3309_v29  ;;  %2369 = vmatprep.subr.bf16.mxu0 %v3314_v30  ;;  %v3390_v29 = vld [vmem:[#allocation4 + $0x180] ss:$36 sps:$4 sm:$0xff]  }
 0x15b   :  { %2410 = vmatprep.subr.bf16.mxu1 %v3317_v31  ;;  %v3393_v30 = vld [vmem:[#allocation4 + $0x600] ss:$36 sps:$4 sm:$0xff]  }
 0x15c   :  { %v3398_v31 = vld [vmem:[#allocation4 + $0x13c] ss:$36 sps:$4 sm:$0xff]  }
 0x15d   :  { %2370 = vmatpush1.bf16.msra.mxu0 %v3312_v32  ;;  %v3401_v32 = vld [vmem:[#allocation4 + $0x5bc] ss:$36 sps:$4 sm:$0xff]  }
 0x15e   :  { %2411 = vmatpush1.bf16.msra.mxu1 %v3315_v33  ;;  %2371 = vmatprep.subr.bf16.mxu0 %v3320_v34  ;;  %v3396_v33 = vld [vmem:[#allocation4 + $0x138] ss:$36 sps:$4 sm:$0xff]  }
 0x15f   :  { %2412 = vmatprep.subr.bf16.mxu1 %v3323_v35  ;;  %v3399_v34 = vld [vmem:[#allocation4 + $0x5b8] ss:$36 sps:$4 sm:$0xff]  }
 0x160   :  { %v3404_v35 = vld [vmem:[#allocation4 + $0xf4] ss:$36 sps:$4 sm:$0xff]  }
 0x161   :  { %2372 = vmatpush1.bf16.msra.mxu0 %v3318_v36  ;;  %v3407_v36 = vld [vmem:[#allocation4 + $0x574] ss:$36 sps:$4 sm:$0xff]  }
 0x162   :  { %2413 = vmatpush1.bf16.msra.mxu1 %v3321_v40  ;;  %2373 = vmatprep.subr.bf16.mxu0 %v3326_v43  ;;  %v3402_v40 = vld [vmem:[#allocation4 + $0xf0] ss:$36 sps:$4 sm:$0xff]  }
 0x163   :  { %2414 = vmatprep.subr.bf16.mxu1 %v3329_v44  ;;  %v3405_v43 = vld [vmem:[#allocation4 + $0x570] ss:$36 sps:$4 sm:$0xff]  }
 0x164   :  { %v3410_v44 = vld [vmem:[#allocation4 + $0xac] ss:$36 sps:$4 sm:$0xff]  }
 0x165   :  { %2374 = vmatpush1.bf16.msra.mxu0 %v3324_v45  ;;  %v3413_v45 = vld [vmem:[#allocation4 + $0x52c] ss:$36 sps:$4 sm:$0xff]  }
 0x166   :  { %2415 = vmatpush1.bf16.msra.mxu1 %v3327_v46  ;;  %2375 = vmatprep.subr.bf16.mxu0 %v3332_v47  ;;  %v3408_v46 = vld [vmem:[#allocation4 + $0xa8] ss:$36 sps:$4 sm:$0xff]  }
 0x167   :  { %2416 = vmatprep.subr.bf16.mxu1 %v3335_v48  ;;  %v3411_v47 = vld [vmem:[#allocation4 + $0x528] ss:$36 sps:$4 sm:$0xff]  }
 0x168   :  { %v3416_v48 = vld [vmem:[#allocation4 + $0x64] ss:$36 sps:$4 sm:$0xff]  }
 0x169   :  { %2376 = vmatpush2.bf16.msra.mxu0 %v3330_v49  ;;  %v3419_v49 = vld [vmem:[#allocation4 + $0x4e4] ss:$36 sps:$4 sm:$0xff]  }
 0x16a   :  { %2417 = vmatpush2.bf16.msra.mxu1 %v3333_v50  ;;  %2377 = vmatprep.subr.bf16.mxu0 %v3338_v51  ;;  %v3414_v50 = vld [vmem:[#allocation4 + $0x60] ss:$36 sps:$4 sm:$0xff]  }
 0x16b   :  { %2418 = vmatprep.subr.bf16.mxu1 %v3341_v52  ;;  %v3417_v51 = vld [vmem:[#allocation4 + $0x4e0] ss:$36 sps:$4 sm:$0xff]  }
 0x16c   :  { %v3422_v52 = vld [vmem:[#allocation4 + $0x1c] ss:$36 sps:$4 sm:$0xff]  }
 0x16d   :  { %2378 = vmatpush2.bf16.msra.mxu0 %v3336_v53  ;;  %v3425_v53 = vld [vmem:[#allocation4 + $0x49c] ss:$36 sps:$4 sm:$0xff]  }
 0x16e   :  { %2419 = vmatpush2.bf16.msra.mxu1 %v3339_v54  ;;  %2379 = vmatprep.subr.bf16.mxu0 %v3344_v55  ;;  %v3420_v54 = vld [vmem:[#allocation4 + $0x18] ss:$36 sps:$4 sm:$0xff]  }
 0x16f   :  { %2420 = vmatprep.subr.bf16.mxu1 %v3347_v56  ;;  %v3423_v55 = vld [vmem:[#allocation4 + $0x498] ss:$36 sps:$4 sm:$0xff]  }
 0x170   :  { %v3428_v56 = vld [vmem:[#allocation4 + $0x454] ss:$36 sps:$4 sm:$0xff]  }
 0x171   :  { %2380 = vmatpush2.bf16.msra.mxu0 %v3342_v57  ;;  %v3431_v57 = vld [vmem:[#allocation4 + $0x8d4] ss:$36 sps:$4 sm:$0xff]  }
 0x172   :  { %2421 = vmatpush2.bf16.msra.mxu1 %v3345_v58  ;;  %2381 = vmatprep.subr.bf16.mxu0 %v3350_v59  ;;  %v3426_v58 = vld [vmem:[#allocation4 + $0x450] ss:$36 sps:$4 sm:$0xff]  }
 0x173   :  { %2422 = vmatprep.subr.bf16.mxu1 %v3353_v60  ;;  %v3429_v59 = vld [vmem:[#allocation4 + $0x8d0] ss:$36 sps:$4 sm:$0xff]  }
 0x174   :  { %v3434_v60 = vld [vmem:[#allocation4 + $0x40c] ss:$36 sps:$4 sm:$0xff]  }
 0x175   :  { %2382 = vmatpush2.bf16.msra.mxu0 %v3348_v62  ;;  %v3437_v62 = vld [vmem:[#allocation4 + $0x88c] ss:$36 sps:$4 sm:$0xff]  }
 0x176   :  { %2423 = vmatpush2.bf16.msra.mxu1 %v3351_v63  ;;  %2383 = vmatprep.subr.bf16.mxu0 %v3356_v2  ;;  %v3432_v63 = vld [vmem:[#allocation4 + $0x408] ss:$36 sps:$4 sm:$0xff]  }
 0x177   :  { %2424 = vmatprep.subr.bf16.mxu1 %v3359_v3  ;;  %v3435_v2 = vld [vmem:[#allocation4 + $0x888] ss:$36 sps:$4 sm:$0xff]  }
 0x178   :  { %v3440_v3 = vld [vmem:[#allocation4 + $0x3c4] ss:$36 sps:$4 sm:$0xff]  }
 0x179   :  { %2384 = vmatpush2.bf16.msra.mxu0 %v3354_v5  ;;  %v3443_v5 = vld [vmem:[#allocation4 + $0x844] ss:$36 sps:$4 sm:$0xff]  }
 0x17a   :  { %2425 = vmatpush2.bf16.msra.mxu1 %v3357_v6  ;;  %2385 = vmatprep.subr.bf16.mxu0 %v3362_v7  ;;  %v3438_v6 = vld [vmem:[#allocation4 + $0x3c0] ss:$36 sps:$4 sm:$0xff]  }
 0x17b   :  { %2426 = vmatprep.subr.bf16.mxu1 %v3365_v8  ;;  %v3441_v7 = vld [vmem:[#allocation4 + $0x840] ss:$36 sps:$4 sm:$0xff]  }
 0x17c   :  { %v3446_v8 = vld [vmem:[#allocation4 + $0x37c] ss:$36 sps:$4 sm:$0xff]  }
 0x17d   :  { %2386 = vmatpush2.bf16.msra.mxu0 %v3360_v9  ;;  %v3449_v9 = vld [vmem:[#allocation4 + $0x7fc] ss:$36 sps:$4 sm:$0xff]  }
 0x17e   :  { %2427 = vmatpush2.bf16.msra.mxu1 %v3363_v10  ;;  %2387 = vmatprep.subr.bf16.mxu0 %v3368_v11  ;;  %v3444_v10 = vld [vmem:[#allocation4 + $0x378] ss:$36 sps:$4 sm:$0xff]  }
 0x17f   :  { %2428 = vmatprep.subr.bf16.mxu1 %v3371_v12  ;;  %v3447_v11 = vld [vmem:[#allocation4 + $0x7f8] ss:$36 sps:$4 sm:$0xff]  }
 0x180   :  { %v3452_v12 = vld [vmem:[#allocation4 + $0x334] ss:$36 sps:$4 sm:$0xff]  }
 0x181   :  { %2388 = vmatpush2.bf16.msra.mxu0 %v3366_v13  ;;  %v3455_v13 = vld [vmem:[#allocation4 + $0x7b4] ss:$36 sps:$4 sm:$0xff]  }
 0x182   :  { %2429 = vmatpush2.bf16.msra.mxu1 %v3369_v14  ;;  %2389 = vmatprep.subr.bf16.mxu0 %v3374_v15  ;;  %v3450_v14 = vld [vmem:[#allocation4 + $0x330] ss:$36 sps:$4 sm:$0xff]  }
 0x183   :  { %2430 = vmatprep.subr.bf16.mxu1 %v3377_v16  ;;  %v3453_v15 = vld [vmem:[#allocation4 + $0x7b0] ss:$36 sps:$4 sm:$0xff]  }
 0x184   :  { %v3458_v16 = vld [vmem:[#allocation4 + $0x2ec] ss:$36 sps:$4 sm:$0xff]  }
 0x185   :  { %2390 = vmatpush2.bf16.msra.mxu0 %v3372_v17  ;;  %v3461_v17 = vld [vmem:[#allocation4 + $0x76c] ss:$36 sps:$4 sm:$0xff]  }
 0x186   :  { %2431 = vmatpush2.bf16.msra.mxu1 %v3375_v18  ;;  %2441 = vmatprep.subr.bf16.mxu0 %v3380_v19  ;;  %v3456_v18 = vld [vmem:[#allocation4 + $0x2e8] ss:$36 sps:$4 sm:$0xff]  }
 0x187   :  { %2482 = vmatprep.subr.bf16.mxu1 %v3383_v20  ;;  %v3459_v19 = vld [vmem:[#allocation4 + $0x768] ss:$36 sps:$4 sm:$0xff]  }
 0x188   :  { %2392 = vmatmul.mubr.bf16.vlgmr.msra.gmra.mxu0 %v3619_v4  ;;  %v3464_v20 = vld [vmem:[#allocation4 + $0x2a4] ss:$36 sps:$4 sm:$0xff]  }
 0x189   :  { %2433 = vmatmul.mubr.bf16.vlgmr.msra.gmra.mxu1 %v3613_v61  ;;  %2442 = vmatpush1.bf16.msra.mxu0 %v3378_v21  ;;  %v3467_v21 = vld [vmem:[#allocation4 + $0x724] ss:$36 sps:$4 sm:$0xff]  }
 0x18a   :  { %2473 = vmatprep.mubr.bf16.mxu0 %v3615_v0  ;;  %2483 = vmatpush1.bf16.msra.mxu1 %v3381_v22  ;;  %v3462_v22 = vld [vmem:[#allocation4 + $0x2a0] ss:$36 sps:$4 sm:$0xff]  }
 0x18b   :  { %2514 = vmatprep.mubr.bf16.mxu1 %v3617_v1  ;;  %2443 = vmatprep.subr.bf16.mxu0 %v3386_v23  ;;  %v3465_v23 = vld [vmem:[#allocation4 + $0x720] ss:$36 sps:$4 sm:$0xff]  }
 0x18c   :  { %2484 = vmatprep.subr.bf16.mxu1 %v3389_v24  ;;  %v3470_v24 = vld [vmem:[#allocation4 + $0x25c] ss:$36 sps:$4 sm:$0xff]  }
 0x18d   :  { %2444 = vmatpush1.bf16.msra.mxu0 %v3384_v25  ;;  %v3473_v25 = vld [vmem:[#allocation4 + $0x6dc] ss:$36 sps:$4 sm:$0xff]  }
 0x18e   :  { %2485 = vmatpush1.bf16.msra.mxu1 %v3387_v26  ;;  %2445 = vmatprep.subr.bf16.mxu0 %v3392_v27  ;;  %v3468_v26 = vld [vmem:[#allocation4 + $0x258] ss:$36 sps:$4 sm:$0xff]  }
 0x18f   :  { %2486 = vmatprep.subr.bf16.mxu1 %v3395_v28  ;;  %v3471_v27 = vld [vmem:[#allocation4 + $0x6d8] ss:$36 sps:$4 sm:$0xff]  }
 0x190   :  { %v3474_v28 = vld [vmem:[#allocation4 + $0x458] ss:$36 sps:$4 sm:$0xff]  }
 0x191   :  { %2446 = vmatpush1.bf16.msra.mxu0 %v3390_v29  ;;  %v3638_v29 = vld [vmem:[%s3688_s4] sm:$0xff] }
 0x192   :  { %2487 = vmatpush1.bf16.msra.mxu1 %v3393_v30  ;;  %2447 = vmatprep.subr.bf16.mxu0 %v3398_v31  ;;  %v3475_v30 = vld [vmem:[#allocation4 + $0x8d8] ss:$36 sps:$4 sm:$0xff]   ;;  %v681_v31 = vrot.slane %v3638_v29, %v86_v38  ;;  %v3480_v38 = vld [vmem:[#allocation4 + $0x1d0] ss:$36 sps:$4 sm:$0xff]  }
 0x193   :  { %2488 = vmatprep.subr.bf16.mxu1 %v3401_v32  ;;  %v3476_v32 = vld [vmem:[#allocation4 + $0x218] ss:$36 sps:$4 sm:$0xff]  }
 0x195   :  { %2448 = vmatpush1.bf16.msra.mxu0 %v3396_v33  ;;  %v3477_v33 = vld [vmem:[#allocation4 + $0x698] ss:$36 sps:$4 sm:$0xff]  }
 0x196   :  { %2489 = vmatpush1.bf16.msra.mxu1 %v3399_v34  ;;  %2449 = vmatprep.subr.bf16.mxu0 %v3404_v35  ;;  %v685_v34 = vrot.slane %v3638_v29, %v90_v41  ;;  %v3478_v35 = vld [vmem:[#allocation4 + $0x410] ss:$36 sps:$4 sm:$0xff]  }
 0x197   :  { %2490 = vmatprep.subr.bf16.mxu1 %v3407_v36 }
 0x199   :  { %2450 = vmatpush1.bf16.msra.mxu0 %v3402_v40 }
 0x19a   :  { %2491 = vmatpush1.bf16.msra.mxu1 %v3405_v43  ;;  %2451 = vmatprep.subr.bf16.mxu0 %v3410_v44  ;;  %v3479_v43 = vld [vmem:[#allocation4 + $0x890] ss:$36 sps:$4 sm:$0xff]  }
 0x19b   :  { %2492 = vmatprep.subr.bf16.mxu1 %v3413_v45 }
 0x19d   :  { %2452 = vmatpush1.bf16.msra.mxu0 %v3408_v46 }
 0x19e   :  { %2493 = vmatpush1.bf16.msra.mxu1 %v3411_v47  ;;  %2453 = vmatprep.subr.bf16.mxu0 %v3416_v48  ;;  %v3481_v47 = vld [vmem:[#allocation4 + $0x650] ss:$36 sps:$4 sm:$0xff]   ;;  %v3482_v48 = vld [vmem:[#allocation4 + $0x3c8] ss:$36 sps:$4 sm:$0xff]  }
 0x19f   :  { %2494 = vmatprep.subr.bf16.mxu1 %v3419_v49 }
 0x1a1   :  { %2454 = vmatpush1.bf16.msra.mxu0 %v3414_v50  ;;  %v3483_v50 = vld [vmem:[#allocation4 + $0x848] ss:$36 sps:$4 sm:$0xff]  }
 0x1a2   :  { %2495 = vmatpush1.bf16.msra.mxu1 %v3417_v51  ;;  %2455 = vmatprep.subr.bf16.mxu0 %v3422_v52 }
 0x1a3   :  { %2496 = vmatprep.subr.bf16.mxu1 %v3425_v53 }
 0x1a5   :  { %2456 = vmatpush1.bf16.msra.mxu0 %v3420_v54  ;;  %v3484_v54 = vld [vmem:[#allocation4 + $0x188] ss:$36 sps:$4 sm:$0xff]  }
 0x1a6   :  { %2497 = vmatpush1.bf16.msra.mxu1 %v3423_v55  ;;  %2457 = vmatprep.subr.bf16.mxu0 %v3428_v56  ;;  %v3485_v56 = vld [vmem:[#allocation4 + $0x608] ss:$36 sps:$4 sm:$0xff]  }
 0x1a7   :  { %2498 = vmatprep.subr.bf16.mxu1 %v3431_v57  ;;  %v3486_v57 = vld [vmem:[#allocation4 + $0x380] ss:$36 sps:$4 sm:$0xff]  }
 0x1a9   :  { %2458 = vmatpush2.bf16.msra.mxu0 %v3426_v58 }
 0x1aa   :  { %2499 = vmatpush2.bf16.msra.mxu1 %v3429_v59  ;;  %2459 = vmatprep.subr.bf16.mxu0 %v3434_v60  ;;  %v3487_v60 = vld [vmem:[#allocation4 + $0x800] ss:$36 sps:$4 sm:$0xff]  }
 0x1ab   :  { %2500 = vmatprep.subr.bf16.mxu1 %v3437_v62  ;;  %v3488_v62 = vld [vmem:[#allocation4 + $0x140] ss:$36 sps:$4 sm:$0xff]  }
 0x1ad   :  { %2460 = vmatpush2.bf16.msra.mxu0 %v3432_v63  ;;  %v3489_v63 = vld [vmem:[#allocation4 + $0x5c0] ss:$36 sps:$4 sm:$0xff]  }
 0x1ae   :  { %2501 = vmatpush2.bf16.msra.mxu1 %v3435_v2  ;;  %2461 = vmatprep.subr.bf16.mxu0 %v3440_v3  ;;  %v3490_v2 = vld [vmem:[#allocation4 + $0x338] ss:$36 sps:$4 sm:$0xff]  }
 0x1af   :  { %2502 = vmatprep.subr.bf16.mxu1 %v3443_v5  ;;  %v3491_v3 = vld [vmem:[#allocation4 + $0x7b8] ss:$36 sps:$4 sm:$0xff]  }
 0x1b0   :  { %v3492_v5 = vld [vmem:[#allocation4 + $0xf8] ss:$36 sps:$4 sm:$0xff]  }
 0x1b1   :  { %2462 = vmatpush2.bf16.msra.mxu0 %v3438_v6  ;;  %v3493_v6 = vld [vmem:[#allocation4 + $0x578] ss:$36 sps:$4 sm:$0xff]  }
 0x1b2   :  { %2503 = vmatpush2.bf16.msra.mxu1 %v3441_v7  ;;  %2463 = vmatprep.subr.bf16.mxu0 %v3446_v8  ;;  %v3494_v7 = vld [vmem:[#allocation4 + $0x2f0] ss:$36 sps:$4 sm:$0xff]  }
 0x1b3   :  { %2504 = vmatprep.subr.bf16.mxu1 %v3449_v9  ;;  %v3495_v8 = vld [vmem:[#allocation4 + $0x770] ss:$36 sps:$4 sm:$0xff]  }
 0x1b4   :  { %v3496_v9 = vld [vmem:[#allocation4 + $0xb0] ss:$36 sps:$4 sm:$0xff]  }
 0x1b5   :  { %2464 = vmatpush2.bf16.msra.mxu0 %v3444_v10  ;;  %v3497_v10 = vld [vmem:[#allocation4 + $0x530] ss:$36 sps:$4 sm:$0xff]  }
 0x1b6   :  { %2505 = vmatpush2.bf16.msra.mxu1 %v3447_v11  ;;  %2465 = vmatprep.subr.bf16.mxu0 %v3452_v12  ;;  %v3498_v11 = vld [vmem:[#allocation4 + $0x2a8] ss:$36 sps:$4 sm:$0xff]  }
 0x1b7   :  { %2506 = vmatprep.subr.bf16.mxu1 %v3455_v13  ;;  %v3499_v12 = vld [vmem:[#allocation4 + $0x728] ss:$36 sps:$4 sm:$0xff]  }
 0x1b8   :  { %v3500_v13 = vld [vmem:[#allocation4 + $0x68] ss:$36 sps:$4 sm:$0xff]  }
 0x1b9   :  { %2466 = vmatpush2.bf16.msra.mxu0 %v3450_v14  ;;  %v3501_v14 = vld [vmem:[#allocation4 + $0x4e8] ss:$36 sps:$4 sm:$0xff]  }
 0x1ba   :  { %2507 = vmatpush2.bf16.msra.mxu1 %v3453_v15  ;;  %2467 = vmatprep.subr.bf16.mxu0 %v3458_v16  ;;  %v3502_v15 = vld [vmem:[#allocation4 + $0x260] ss:$36 sps:$4 sm:$0xff]  }
 0x1bb   :  { %2508 = vmatprep.subr.bf16.mxu1 %v3461_v17  ;;  %v3503_v16 = vld [vmem:[#allocation4 + $0x6e0] ss:$36 sps:$4 sm:$0xff]  }
 0x1bc   :  { %v3504_v17 = vld [vmem:[#allocation4 + $0x20] ss:$36 sps:$4 sm:$0xff]  }
 0x1bd   :  { %2468 = vmatpush2.bf16.msra.mxu0 %v3456_v18  ;;  %v3505_v18 = vld [vmem:[#allocation4 + $0x4a0] ss:$36 sps:$4 sm:$0xff]  }
 0x1be   :  { %2509 = vmatpush2.bf16.msra.mxu1 %v3459_v19  ;;  %2469 = vmatprep.subr.bf16.mxu0 %v3464_v20  ;;  %v689_v19 = vrot.slane %v3638_v29, %v94_v39  ;;  %v693_v20 = vrot.slane %v3638_v29, %v98_v42  ;;  %v696_v39 = vsub.s32 4, %v3596_v37  ;;  %v700_v42 = vsub.s32 5, %v3596_v37 }
 0x1bf   :  { %2510 = vmatprep.subr.bf16.mxu1 %v3467_v21 }
 0x1c1   :  { %2470 = vmatpush2.bf16.msra.mxu0 %v3462_v22 }
 0x1c2   :  { %2511 = vmatpush2.bf16.msra.mxu1 %v3465_v23  ;;  %2471 = vmatprep.subr.bf16.mxu0 %v3470_v24 }
 0x1c3   :  { %2512 = vmatprep.subr.bf16.mxu1 %v3473_v25 }
 0x1c5   :  { %2472 = vmatpush2.bf16.msra.mxu0 %v3468_v26 }
 0x1c6   :  { %2513 = vmatpush2.bf16.msra.mxu1 %v3471_v27  ;;  %2991 = vmatprep.subr.bf16.mxu0 %v3474_v28 }
 0x1c7   :  { %3013 = vmatprep.subr.bf16.mxu1 %v3475_v30 }
 0x1c8   :  { %2474 = vmatmul.mubr.bf16.vlgmr.msra.gmra.mxu0 %v3619_v4  ;;  %v2229_v36 = vpop.f32.mrf.mxu0  ;;  %v2270_v40 = vpop.f32.mrf.mxu1 }
 0x1c9   :  { %2515 = vmatmul.mubr.bf16.vlgmr.msra.gmra.mxu1 %v3613_v61  ;;  %v2230_v44 = vadd.f32 %v2229_v36, %v681_v31  ;;  %2992 = vmatpush3.bf16.msra.mxu0 %v3476_v32  ;;  %v701_v36 = vrot.slane %v3638_v29, %v700_v42 }
 0x1ca   :  { %2555 = vmatprep.mubr.bf16.mxu0 %v3615_v0  ;;  %3014 = vmatpush3.bf16.msra.mxu1 %v3477_v33  ;;  %v2231_v45 = vpop.f32.mrf.mxu0  ;;  %v2272_v46 = vpop.f32.mrf.mxu1 }
 0x1cb   :  { %v2271_v49 = vadd.f32 %v2270_v40, %v2230_v44  ;;  %2595 = vmatprep.mubr.bf16.mxu1 %v3617_v1  ;;  %v2232_v41 = vadd.f32 %v2231_v45, %v685_v34  ;;  %2993 = vmatprep.subr.bf16.mxu0 %v3478_v35  ;;  %v697_v35 = vrot.slane %v3638_v29, %v696_v39 }
 0x1cc   :  { %3015 = vmatprep.subr.bf16.mxu1 %v3479_v43  ;;  %v2233_v51 = vpop.f32.mrf.mxu0  ;;  %v2274_v52 = vpop.f32.mrf.mxu1 }
 0x1cd   :  { %v2273_v53 = vadd.f32 %v2272_v46, %v2232_v41  ;;  %2994 = vmatpush3.bf16.msra.mxu0 %v3480_v38  ;;  %v2603_v58 = vmax.f32 %v2271_v49, 0.0 }
 0x1ce   :  { %3016 = vmatpush3.bf16.msra.mxu1 %v3481_v47  ;;  %v2234_v55 = vpop.f32.mrf.mxu0  ;;  %v2275_v0 = vpop.f32.mrf.mxu1  ;;  %2995 = vmatprep.subr.bf16.mxu0 %v3482_v48 }
 0x1cf   :  { %v2604_v59 = vmax.f32 %v2273_v53, 0.0  ;;  %3017 = vmatprep.subr.bf16.mxu1 %v3483_v50  ;;  %v704_v55 = vsub.s32 6, %v3596_v37  ;;  %v708_v0 = vsub.s32 7, %v3596_v37 }
 0x1d1   :  { %v2986_v1 = vpack.c.bf16 %v2604_v59, %v2603_v58  ;;  %2996 = vmatpush3.bf16.msra.mxu0 %v3484_v54 }
 0x1d2   :  { %3018 = vmatpush3.bf16.msra.mxu1 %v3485_v56  ;;  %2997 = vmatprep.subr.bf16.mxu0 %v3486_v57  ;;  %v705_v56 = vrot.slane %v3638_v29, %v704_v55  ;;  %v709_v57 = vrot.slane %v3638_v29, %v708_v0 }
 0x1d3   :  { %2649 = vst [vmem:[%s3689_s5] sm:$0xff] %v2986_v1  ;;  %3019 = vmatprep.subr.bf16.mxu1 %v3487_v60 }
 0x1d5   :  { %2998 = vmatpush3.bf16.msra.mxu0 %v3488_v62 }
 0x1d6   :  { %3020 = vmatpush3.bf16.msra.mxu1 %v3489_v63  ;;  %2999 = vmatprep.subr.bf16.mxu0 %v3490_v2 }
 0x1d7   :  { %3021 = vmatprep.subr.bf16.mxu1 %v3491_v3 }
 0x1d9   :  { %3000 = vmatpush3.bf16.msra.mxu0 %v3492_v5 }
 0x1da   :  { %3022 = vmatpush3.bf16.msra.mxu1 %v3493_v6  ;;  %3001 = vmatprep.subr.bf16.mxu0 %v3494_v7 }
 0x1db   :  { %3023 = vmatprep.subr.bf16.mxu1 %v3495_v8 }
 0x1dd   :  { %3002 = vmatpush3.bf16.msra.mxu0 %v3496_v9 }
 0x1de   :  { %3024 = vmatpush3.bf16.msra.mxu1 %v3497_v10  ;;  %3003 = vmatprep.subr.bf16.mxu0 %v3498_v11 }
 0x1df   :  { %3025 = vmatprep.subr.bf16.mxu1 %v3499_v12  ;;  %v2692_v12 = vld [vmem:[%s3688_s4 + $0x8] ss:$0 sm:$0xff] }
 0x1e1   :  { %3004 = vmatpush3.bf16.msra.mxu0 %v3500_v13 }
 0x1e2   :  { %3026 = vmatpush3.bf16.msra.mxu1 %v3501_v14  ;;  %3005 = vmatprep.subr.bf16.mxu0 %v3502_v15 }
 0x1e3   :  { %3027 = vmatprep.subr.bf16.mxu1 %v3503_v16 }
 0x1e5   :  { %3006 = vmatpush3.bf16.msra.mxu0 %v3504_v17 }
 0x1e6   :  { %3028 = vmatpush3.bf16.msra.mxu1 %v3505_v18 }
 0x1e8   :  { %2556 = vmatmul.mubr.bf16.vlgmr.msra.gmra.mxu0 %v3619_v4 }
 0x1e9   :  { %2596 = vmatmul.mubr.bf16.vlgmr.msra.gmra.mxu1 %v3613_v61 }
 0x208   :  { %v2311_v21 = vpop.f32.mrf.mxu0  ;;  %v2352_v22 = vpop.f32.mrf.mxu1 }
 0x209   :  { %v2312_v23 = vadd.f32 %v2311_v21, %v689_v19 }
 0x20a   :  { %v2313_v24 = vpop.f32.mrf.mxu0  ;;  %v2354_v25 = vpop.f32.mrf.mxu1 }
 0x20b   :  { %v2353_v26 = vadd.f32 %v2352_v22, %v2312_v23  ;;  %v2314_v27 = vadd.f32 %v2313_v24, %v693_v20 }
 0x20c   :  { %v2315_v28 = vpop.f32.mrf.mxu0  ;;  %v2356_v30 = vpop.f32.mrf.mxu1 }
 0x20d   :  { %v2355_v4 = vadd.f32 %v2354_v25, %v2314_v27  ;;  %v2605_v32 = vmax.f32 %v2353_v26, 0.0 }
 0x20e   :  { %v2316_v31 = vpop.f32.mrf.mxu0  ;;  %v2357_v61 = vpop.f32.mrf.mxu1 }
 0x20f   :  { %v2606_v33 = vmax.f32 %v2355_v4, 0.0 }
 0x211   :  { %v2987_v34 = vpack.c.bf16 %v2606_v33, %v2605_v32 }
 0x213   :  { %2650 = vst [vmem:[%s3689_s5 + $0x8] sm:$0xff] %v2987_v34 }
 0x248   :  { %v2393_v40 = vpop.f32.mrf.mxu0 }
 0x249   :  { %v2394_v43 = vadd.f32 %v2393_v40, %v697_v35  ;;  %v2434_v44 = vpop.f32.mrf.mxu1 }
 0x24a   :  { %v2395_v38 = vpop.f32.mrf.mxu0 }
 0x24b   :  { %v2435_v45 = vadd.f32 %v2434_v44, %v2394_v43  ;;  %v2396_v46 = vadd.f32 %v2395_v38, %v701_v36  ;;  %v2436_v47 = vpop.f32.mrf.mxu1 }
 0x24c   :  { %v2397_v48 = vpop.f32.mrf.mxu0 }
 0x24d   :  { %v2437_v49 = vadd.f32 %v2436_v47, %v2396_v46  ;;  %v2438_v41 = vpop.f32.mrf.mxu1  ;;  %v2607_v51 = vmax.f32 %v2435_v45, 0.0 }
 0x24e   :  { %v2398_v50 = vpop.f32.mrf.mxu0 }
 0x24f   :  { %v2608_v52 = vmax.f32 %v2437_v49, 0.0  ;;  %v2439_v53 = vpop.f32.mrf.mxu1 }
 0x251   :  { %v2988_v54 = vpack.c.bf16 %v2608_v52, %v2607_v51 }
 0x253   :  { %2651 = vst [vmem:[%s3689_s5 + $0x10] sm:$0xff] %v2988_v54 }
 0x288   :  { %v2475_v58 = vpop.f32.mrf.mxu0 }
 0x289   :  { %v2476_v59 = vadd.f32 %v2475_v58, %v705_v56  ;;  %v2516_v60 = vpop.f32.mrf.mxu1 }
 0x28a   :  { %v2477_v1 = vpop.f32.mrf.mxu0 }
 0x28b   :  { %v2517_v62 = vadd.f32 %v2516_v60, %v2476_v59  ;;  %v2478_v63 = vadd.f32 %v2477_v1, %v709_v57  ;;  %v2518_v2 = vpop.f32.mrf.mxu1 }
 0x28c   :  { %v2479_v3 = vpop.f32.mrf.mxu0 }
 0x28d   :  { %v2519_v5 = vadd.f32 %v2518_v2, %v2478_v63  ;;  %v2520_v6 = vpop.f32.mrf.mxu1  ;;  %v2609_v8 = vmax.f32 %v2517_v62, 0.0 }
 0x28e   :  { %v2480_v7 = vpop.f32.mrf.mxu0 }
 0x28f   :  { %v2610_v9 = vmax.f32 %v2519_v5, 0.0  ;;  %v2521_v10 = vpop.f32.mrf.mxu1 }
 0x291   :  { %v2989_v11 = vpack.c.bf16 %v2610_v9, %v2609_v8 }
 0x293   :  { %2652 = vst [vmem:[%s3689_s5 + $0x18] sm:$0xff] %v2989_v11 }
 0x2a8   :  { %v3007_v37 = vpop.f32.mrf.mxu0 }
 0x2a9   :  { %v3029_v29 = vpop.f32.mrf.mxu1 }
 0x2aa   :  { %v3008_v13 = vpop.f32.mrf.mxu0 }
 0x2ab   :  { %v3009_v14 = vadd.f32 %v3008_v13, %v3007_v37  ;;  %v3030_v15 = vpop.f32.mrf.mxu1 }
 0x2ac   :  { %v3010_v16 = vpop.f32.mrf.mxu0  ;;  %v3031_v18 = vadd.f32 %v3030_v15, %v3029_v29 }
 0x2ad   :  { %v2558_v17 = vadd.f32 %v3009_v14, %v2692_v12  ;;  %v3032_v19 = vpop.f32.mrf.mxu1 }
 0x2ae   :  { %v3011_v20 = vpop.f32.mrf.mxu0 }
 0x2af   :  { %v2598_v21 = vadd.f32 %v3031_v18, %v2558_v17  ;;  %v3033_v22 = vpop.f32.mrf.mxu1 }
 0x2b1   :  { %v2611_v23 = vmax.f32 %v2598_v21, 0.0 }
 0x2b3   :  { %v2990_v24 = vpack.c.bf16 %v2611_v23, %v2611_v23 }
 0x2b5   :  { %2653 = vst [vmem:[%s3689_s5 + $0x20] sm:$0xf] %v2990_v24 }
 0x2b6   :  { %2658 = vsyncpa [#allocation3], 1 }
 0x2b7   :  { %2659 = vsyncpa [#allocation5], 1 }

// kernel: _lambda_.8
= control target key start
LH: loop header
LB: loop body
LE: loop exit
PB: predicated region body
PF: predicated region fallthrough
CT: control target
= control target key end

     0   :  { %v3910_v0 = vmov 0   ;;  %v5103_v24 = vmov 0.0   ;;  %vm3912_vm0 = vmmov 0   ;;  %s5099_s1 = inlined_call_operand.vmem [shape: bf16[640,128], index: 1, kind: input, shape index: {}]   ;;  %s5100_s0 = inlined_call_operand.vmem [shape: bf16[560,640], index: 0, kind: input, shape index: {}]   ;;  %s5101_s2 = inlined_call_operand.vmem [shape: f32[1,128], index: 2, kind: input, shape index: {}]   ;;  %s5102_s3 = inlined_call_operand.vmem [shape: bf16[560,128], index: 3, kind: output, shape index: {}]  }
   0x1   :  { %1462 = vmatprep.subr.bf16.mxu0 %v3910_v0  ;;  %3589 = vmatprep.subr.bf16.mxu1 %v3910_v0  ;;  %v3624_v1 = vld [vmem:[%s5099_s1 + $0x38] sm:$0xff]   ;;  %v3625_v2 = vld [vmem:[%s5099_s1 + $0x30] sm:$0xff]   ;;  %v3626_v3 = vld [vmem:[%s5099_s1 + $0x28] sm:$0xff]  }
   0x2   :  { %1463 = vmatpush1.bf16.msra.mxu0 %v3624_v1  ;;  %3605 = vmatpush1.bf16.msra.mxu1 %v3624_v1  ;;  %v3627_v4 = vld [vmem:[%s5099_s1 + $0x20] sm:$0xff]   ;;  %v3628_v5 = vld [vmem:[%s5099_s1 + $0x18] sm:$0xff]   ;;  %v3629_v7 = vld [vmem:[%s5099_s1 + $0x10] sm:$0xff]  }
   0x3   :  { %1464 = vmatprep.subr.bf16.mxu0 %v3910_v0  ;;  %3590 = vmatprep.subr.bf16.mxu1 %v3910_v0  ;;  %v3642_v6 = vld [vmem:[%s5100_s0 + $0x4] ss:$20 sps:$4 sm:$0xff]   ;;  %v3645_v8 = vld [vmem:[%s5100_s0 + $0x2d4] ss:$20 sps:$4 sm:$0xff]   ;;  %v3647_v22 = vld [vmem:[%s5100_s0 + $0x2c] ss:$20 sps:$4 sm:$0xff]  }
   0x4   :  { %1494 = vmatprep.mubr.bf16.mxu0 %v3642_v6  ;;  %1638 = vmatprep.mubr.bf16.mxu1 %v3645_v8  ;;  %v3630_v9 = vld [vmem:[%s5099_s1 + $0x8] sm:$0xff]   ;;  %v3631_v10 = vld [vmem:[%s5099_s1] sm:$0xff]   ;;  %v3632_v11 = vld [vmem:[%s5099_s1 + $0x78] sm:$0xff]  }
   0x5   :  { %v3633_v12 = vld [vmem:[%s5099_s1 + $0x70] sm:$0xff]   ;;  %v3634_v13 = vld [vmem:[%s5099_s1 + $0x68] sm:$0xff]   ;;  %v3635_v14 = vld [vmem:[%s5099_s1 + $0x60] sm:$0xff]  }
   0x6   :  { %1465 = vmatpush1.bf16.msra.mxu0 %v3625_v2  ;;  %3606 = vmatpush1.bf16.msra.mxu1 %v3625_v2  ;;  %v3636_v15 = vld [vmem:[%s5099_s1 + $0x58] sm:$0xff]   ;;  %v3637_v16 = vld [vmem:[%s5099_s1 + $0x50] sm:$0xff]   ;;  %v3638_v17 = vld [vmem:[%s5099_s1 + $0x48] sm:$0xff]  }
   0x7   :  { %1466 = vmatprep.subr.bf16.mxu0 %v3910_v0  ;;  %3591 = vmatprep.subr.bf16.mxu1 %v3910_v0  ;;  %v3639_v18 = vld [vmem:[%s5099_s1 + $0x40] sm:$0xff]   ;;  %v3646_v21 = vld [vmem:[%s5099_s1 + $0x138] sm:$0xff]   ;;  %v3661_v26 = vld [vmem:[%s5099_s1 + $0x130] sm:$0xff]  }
   0x8   :  { %v3640_v19 = vld [vmem:[%s5100_s0] ss:$20 sps:$4 sm:$0xff]   ;;  %v3643_v20 = vld [vmem:[%s5100_s0 + $0x2d0] ss:$20 sps:$4 sm:$0xff]   ;;  %v3651_v25 = vld [vmem:[%s5099_s1 + $0xb8] sm:$0xff]  }
   0x9   :  { %v3649_v23 = vld [vmem:[%s5100_s0 + $0x2fc] ss:$20 sps:$4 sm:$0xff]   ;;  %v3653_v29 = vld [vmem:[%s5100_s0 + $0x2f8] ss:$20 sps:$4 sm:$0xff]   ;;  %v3654_v30 = vld [vmem:[%s5100_s0 + $0x54] ss:$20 sps:$4 sm:$0xff]  }
   0xa   :  { %1467 = vmatpush1.bf16.msra.mxu0 %v3626_v3  ;;  %3607 = vmatpush1.bf16.msra.mxu1 %v3626_v3  ;;  %v3652_v27 = vld [vmem:[%s5100_s0 + $0x28] ss:$20 sps:$4 sm:$0xff]   ;;  %v3660_v28 = vld [vmem:[%s5099_s1 + $0xb0] sm:$0xff]   ;;  %v3656_v31 = vld [vmem:[%s5100_s0 + $0x324] ss:$20 sps:$4 sm:$0xff]  }
   0xb   :  { %1468 = vmatprep.subr.bf16.mxu0 %v3910_v0  ;;  %3592 = vmatprep.subr.bf16.mxu1 %v3910_v0  ;;  %v3668_v32 = vld [vmem:[%s5099_s1 + $0xa8] sm:$0xff]   ;;  %v3658_v34 = vld [vmem:[%s5100_s0 + $0x50] ss:$20 sps:$4 sm:$0xff]   ;;  %v3659_v37 = vld [vmem:[%s5100_s0 + $0x320] ss:$20 sps:$4 sm:$0xff]  }
   0xc   :  { %v3676_v33 = vld [vmem:[%s5099_s1 + $0x128] sm:$0xff]   ;;  %v3675_v35 = vld [vmem:[%s5099_s1 + $0xa0] sm:$0xff]   ;;  %v3662_v38 = vld [vmem:[%s5100_s0 + $0x7c] ss:$20 sps:$4 sm:$0xff]  }
   0xd   :  { %v3695_v36 = vld [vmem:[%s5099_s1 + $0x120] sm:$0xff]   ;;  %v3683_v40 = vld [vmem:[%s5099_s1 + $0x98] sm:$0xff]   ;;  %v3690_v43 = vld [vmem:[%s5099_s1 + $0x90] sm:$0xff]  }
   0xe   :  { %1469 = vmatpush1.bf16.msra.mxu0 %v3627_v4  ;;  %3608 = vmatpush1.bf16.msra.mxu1 %v3627_v4  ;;  %v3664_v39 = vld [vmem:[%s5100_s0 + $0x34c] ss:$20 sps:$4 sm:$0xff]   ;;  %v3712_v41 = vld [vmem:[%s5099_s1 + $0x118] sm:$0xff]   ;;  %v3727_v44 = vld [vmem:[%s5099_s1 + $0x110] sm:$0xff]  }
   0xf   :  { %1470 = vmatprep.subr.bf16.mxu0 %v3910_v0  ;;  %3593 = vmatprep.subr.bf16.mxu1 %v3910_v0  ;;  %v3666_v42 = vld [vmem:[%s5100_s0 + $0x78] ss:$20 sps:$4 sm:$0xff]   ;;  %v3667_v45 = vld [vmem:[%s5100_s0 + $0x348] ss:$20 sps:$4 sm:$0xff]   ;;  %v3673_v50 = vld [vmem:[%s5100_s0 + $0xa0] ss:$20 sps:$4 sm:$0xff]  }
  0x10   :  { %v3669_v46 = vld [vmem:[%s5100_s0 + $0xa4] ss:$20 sps:$4 sm:$0xff]   ;;  %v3671_v47 = vld [vmem:[%s5100_s0 + $0x374] ss:$20 sps:$4 sm:$0xff]   ;;  %v3677_v54 = vld [vmem:[%s5100_s0 + $0xcc] ss:$20 sps:$4 sm:$0xff]  }
  0x11   :  { %v3698_v48 = vld [vmem:[%s5099_s1 + $0x88] sm:$0xff]   ;;  %v3705_v51 = vld [vmem:[%s5099_s1 + $0x80] sm:$0xff]   ;;  %v3679_v55 = vld [vmem:[%s5100_s0 + $0x39c] ss:$20 sps:$4 sm:$0xff]  }
  0x12   :  { %1471 = vmatpush1.bf16.msra.mxu0 %v3628_v5  ;;  %3609 = vmatpush1.bf16.msra.mxu1 %v3628_v5  ;;  %v3743_v49 = vld [vmem:[%s5099_s1 + $0x108] sm:$0xff]   ;;  %v3762_v52 = vld [vmem:[%s5099_s1 + $0x100] sm:$0xff]   ;;  %v3713_v56 = vld [vmem:[%s5099_s1 + $0xf8] sm:$0xff]  }
  0x13   :  { %1472 = vmatprep.subr.bf16.mxu0 %v3910_v0  ;;  %3594 = vmatprep.subr.bf16.mxu1 %v3910_v0  ;;  %v3674_v53 = vld [vmem:[%s5100_s0 + $0x370] ss:$20 sps:$4 sm:$0xff]   ;;  %v3681_v58 = vld [vmem:[%s5100_s0 + $0xc8] ss:$20 sps:$4 sm:$0xff]   ;;  %v3682_v59 = vld [vmem:[%s5100_s0 + $0x398] ss:$20 sps:$4 sm:$0xff]  }
  0x14   :  { %v3720_v57 = vld [vmem:[%s5099_s1 + $0xf0] sm:$0xff]   ;;  %v3686_v61 = vld [vmem:[%s5100_s0 + $0x3c4] ss:$20 sps:$4 sm:$0xff]   ;;  %v3728_v62 = vld [vmem:[%s5099_s1 + $0xe8] sm:$0xff]  }
  0x15   :  { %v3684_v60 = vld [vmem:[%s5100_s0 + $0xf4] ss:$20 sps:$4 sm:$0xff]   ;;  %v3735_v63 = vld [vmem:[%s5099_s1 + $0xe0] sm:$0xff]   ;;  %v3691_v3 = vld [vmem:[%s5100_s0 + $0x11c] ss:$20 sps:$4 sm:$0xff]  }
  0x16   :  { %1473 = vmatpush1.bf16.msra.mxu0 %v3629_v7  ;;  %3610 = vmatpush1.bf16.msra.mxu1 %v3629_v7  ;;  %v3688_v1 = vld [vmem:[%s5100_s0 + $0xf0] ss:$20 sps:$4 sm:$0xff]   ;;  %v3689_v2 = vld [vmem:[%s5100_s0 + $0x3c0] ss:$20 sps:$4 sm:$0xff]   ;;  %v3742_v5 = vld [vmem:[%s5099_s1 + $0xd8] sm:$0xff]  }
  0x17   :  { %1474 = vmatprep.subr.bf16.mxu0 %v3910_v0  ;;  %3595 = vmatprep.subr.bf16.mxu1 %v3910_v0  ;;  %v3693_v4 = vld [vmem:[%s5100_s0 + $0x3ec] ss:$20 sps:$4 sm:$0xff]   ;;  %v3750_v6 = vld [vmem:[%s5099_s1 + $0xd0] sm:$0xff]   ;;  %v3697_v8 = vld [vmem:[%s5100_s0 + $0x3e8] ss:$20 sps:$4 sm:$0xff]  }
  0x18   :  { %v3696_v7 = vld [vmem:[%s5100_s0 + $0x118] ss:$20 sps:$4 sm:$0xff]  }
  0x1a   :  { %1475 = vmatpush1.bf16.msra.mxu0 %v3630_v9  ;;  %3611 = vmatpush1.bf16.msra.mxu1 %v3630_v9  ;;  %v3699_v9 = vld [vmem:[%s5100_s0 + $0x144] ss:$20 sps:$4 sm:$0xff]  }
  0x1b   :  { %1476 = vmatprep.subr.bf16.mxu0 %v3910_v0  ;;  %3596 = vmatprep.subr.bf16.mxu1 %v3910_v0 }
  0x1e   :  { %1477 = vmatpush1.bf16.msra.mxu0 %v3631_v10  ;;  %3612 = vmatpush1.bf16.msra.mxu1 %v3631_v10  ;;  %v3701_v10 = vld [vmem:[%s5100_s0 + $0x414] ss:$20 sps:$4 sm:$0xff]  }
  0x1f   :  { %1478 = vmatprep.subr.bf16.mxu0 %v3910_v0  ;;  %3597 = vmatprep.subr.bf16.mxu1 %v3910_v0 }
  0x22   :  { %1479 = vmatpush2.bf16.msra.mxu0 %v3632_v11  ;;  %3613 = vmatpush2.bf16.msra.mxu1 %v3632_v11  ;;  %v3757_v11 = vld [vmem:[%s5099_s1 + $0xc8] sm:$0xff]  }
  0x23   :  { %1480 = vmatprep.subr.bf16.mxu0 %v3910_v0  ;;  %3598 = vmatprep.subr.bf16.mxu1 %v3910_v0 }
  0x26   :  { %1481 = vmatpush2.bf16.msra.mxu0 %v3633_v12  ;;  %3614 = vmatpush2.bf16.msra.mxu1 %v3633_v12  ;;  %v3703_v12 = vld [vmem:[%s5100_s0 + $0x140] ss:$20 sps:$4 sm:$0xff]  }
  0x27   :  { %1482 = vmatprep.subr.bf16.mxu0 %v3910_v0  ;;  %3599 = vmatprep.subr.bf16.mxu1 %v3910_v0 }
  0x2a   :  { %1483 = vmatpush2.bf16.msra.mxu0 %v3634_v13  ;;  %3615 = vmatpush2.bf16.msra.mxu1 %v3634_v13  ;;  %v3704_v13 = vld [vmem:[%s5100_s0 + $0x410] ss:$20 sps:$4 sm:$0xff]  }
  0x2b   :  { %1484 = vmatprep.subr.bf16.mxu0 %v3910_v0  ;;  %3600 = vmatprep.subr.bf16.mxu1 %v3910_v0 }
  0x2e   :  { %1485 = vmatpush2.bf16.msra.mxu0 %v3635_v14  ;;  %3616 = vmatpush2.bf16.msra.mxu1 %v3635_v14  ;;  %v3765_v14 = vld [vmem:[%s5099_s1 + $0xc0] sm:$0xff]  }
  0x2f   :  { %1486 = vmatprep.subr.bf16.mxu0 %v3910_v0  ;;  %3601 = vmatprep.subr.bf16.mxu1 %v3910_v0 }
  0x32   :  { %1487 = vmatpush2.bf16.msra.mxu0 %v3636_v15  ;;  %3617 = vmatpush2.bf16.msra.mxu1 %v3636_v15  ;;  %v3706_v15 = vld [vmem:[%s5100_s0 + $0x16c] ss:$20 sps:$4 sm:$0xff]  }
  0x33   :  { %1488 = vmatprep.subr.bf16.mxu0 %v3910_v0  ;;  %3602 = vmatprep.subr.bf16.mxu1 %v3910_v0 }
  0x36   :  { %1489 = vmatpush2.bf16.msra.mxu0 %v3637_v16  ;;  %3618 = vmatpush2.bf16.msra.mxu1 %v3637_v16  ;;  %v3708_v16 = vld [vmem:[%s5100_s0 + $0x43c] ss:$20 sps:$4 sm:$0xff]  }
  0x37   :  { %1490 = vmatprep.subr.bf16.mxu0 %v3910_v0  ;;  %3603 = vmatprep.subr.bf16.mxu1 %v3910_v0 }
  0x3a   :  { %1491 = vmatpush2.bf16.msra.mxu0 %v3638_v17  ;;  %3619 = vmatpush2.bf16.msra.mxu1 %v3638_v17  ;;  %v3710_v17 = vld [vmem:[%s5100_s0 + $0x168] ss:$20 sps:$4 sm:$0xff]  }
  0x3b   :  { %1492 = vmatprep.subr.bf16.mxu0 %v3910_v0  ;;  %3604 = vmatprep.subr.bf16.mxu1 %v3910_v0 }
  0x3e   :  { %1493 = vmatpush2.bf16.msra.mxu0 %v3639_v18  ;;  %3620 = vmatpush2.bf16.msra.mxu1 %v3639_v18  ;;  %v3711_v18 = vld [vmem:[%s5100_s0 + $0x438] ss:$20 sps:$4 sm:$0xff]  }
  0x3f   :  { %3433 = vmatprep.subr.bf16.mxu0 %v5103_v24  ;;  %1775 = vmatprep.subr.bf16.mxu1 %v3910_v0 }
  0x41   :  { %1495 = vmatmul.mubr.bf16.vlgmr.msra.gmra.mxu0 %v3640_v19  ;;  %1639 = vmatmul.mubr.bf16.vlgmr.msra.gmra.mxu1 %v3643_v20  ;;  %v3714_v19 = vld [vmem:[%s5100_s0 + $0x194] ss:$20 sps:$4 sm:$0xff]   ;;  %v3718_v20 = vld [vmem:[%s5100_s0 + $0x190] ss:$20 sps:$4 sm:$0xff]  }
  0x42   :  { %3434 = vmatpush3.bf16.msra.mxu0 %v3646_v21  ;;  %1502 = vmatprep.mubr.bf16.mxu0 %v3647_v22  ;;  %v3719_v21 = vld [vmem:[%s5100_s0 + $0x460] ss:$20 sps:$4 sm:$0xff]   ;;  %v3721_v22 = vld [vmem:[%s5100_s0 + $0x1bc] ss:$20 sps:$4 sm:$0xff]  }
  0x43   :  { %1646 = vmatprep.mubr.bf16.mxu1 %v3649_v23  ;;  %1776 = vmatpush1.bf16.msra.mxu1 %v3651_v25  ;;  %v3723_v23 = vld [vmem:[%s5100_s0 + $0x48c] ss:$20 sps:$4 sm:$0xff]  }
  0x44   :  { %1777 = vmatprep.subr.bf16.mxu1 %v3910_v0  ;;  %3435 = vmatprep.subr.bf16.mxu0 %v5103_v24  ;;  %v3725_v25 = vld [vmem:[%s5100_s0 + $0x1b8] ss:$20 sps:$4 sm:$0xff]  }
  0x46   :  { %3436 = vmatpush3.bf16.msra.mxu0 %v3661_v26  ;;  %v3726_v26 = vld [vmem:[%s5100_s0 + $0x488] ss:$20 sps:$4 sm:$0xff]  }
  0x47   :  { %1778 = vmatpush1.bf16.msra.mxu1 %v3660_v28  ;;  %3437 = vmatprep.subr.bf16.mxu0 %v5103_v24  ;;  %v3731_v28 = vld [vmem:[%s5100_s0 + $0x4b4] ss:$20 sps:$4 sm:$0xff]  }
  0x48   :  { %1779 = vmatprep.subr.bf16.mxu1 %v3910_v0 }
  0x49   :  { %1503 = vmatmul.mubr.bf16.gmra.mxu0 %v3652_v27  ;;  %1647 = vmatmul.mubr.bf16.gmra.mxu1 %v3653_v29  ;;  %v3729_v27 = vld [vmem:[%s5100_s0 + $0x1e4] ss:$20 sps:$4 sm:$0xff]   ;;  %v3733_v29 = vld [vmem:[%s5100_s0 + $0x1e0] ss:$20 sps:$4 sm:$0xff]  }
  0x4a   :  { %1510 = vmatprep.mubr.bf16.mxu0 %v3654_v30  ;;  %1654 = vmatprep.mubr.bf16.mxu1 %v3656_v31  ;;  %v3734_v30 = vld [vmem:[%s5100_s0 + $0x4b0] ss:$20 sps:$4 sm:$0xff]   ;;  %v3736_v31 = vld [vmem:[%s5100_s0 + $0x20c] ss:$20 sps:$4 sm:$0xff]  }
  0x4b   :  { %1780 = vmatpush1.bf16.msra.mxu1 %v3668_v32  ;;  %3438 = vmatpush3.bf16.msra.mxu0 %v3676_v33  ;;  %v3738_v32 = vld [vmem:[%s5100_s0 + $0x4dc] ss:$20 sps:$4 sm:$0xff]  }
  0x4c   :  { %1781 = vmatprep.subr.bf16.mxu1 %v3910_v0  ;;  %3439 = vmatprep.subr.bf16.mxu0 %v5103_v24  ;;  %v3740_v33 = vld [vmem:[%s5100_s0 + $0x208] ss:$20 sps:$4 sm:$0xff]  }
  0x4f   :  { %1782 = vmatpush1.bf16.msra.mxu1 %v3675_v35  ;;  %3440 = vmatpush3.bf16.msra.mxu0 %v3695_v36  ;;  %v3744_v35 = vld [vmem:[%s5100_s0 + $0x234] ss:$20 sps:$4 sm:$0xff]   ;;  %v3746_v36 = vld [vmem:[%s5100_s0 + $0x504] ss:$20 sps:$4 sm:$0xff]  }
  0x50   :  { %1783 = vmatprep.subr.bf16.mxu1 %v3910_v0  ;;  %3441 = vmatprep.subr.bf16.mxu0 %v5103_v24 }
  0x51   :  { %1511 = vmatmul.mubr.bf16.gmra.mxu0 %v3658_v34  ;;  %1655 = vmatmul.mubr.bf16.gmra.mxu1 %v3659_v37  ;;  %v3741_v34 = vld [vmem:[%s5100_s0 + $0x4d8] ss:$20 sps:$4 sm:$0xff]   ;;  %v3748_v37 = vld [vmem:[%s5100_s0 + $0x230] ss:$20 sps:$4 sm:$0xff]  }
  0x52   :  { %1518 = vmatprep.mubr.bf16.mxu0 %v3662_v38  ;;  %1662 = vmatprep.mubr.bf16.mxu1 %v3664_v39  ;;  %v3749_v38 = vld [vmem:[%s5100_s0 + $0x500] ss:$20 sps:$4 sm:$0xff]   ;;  %v3751_v39 = vld [vmem:[%s5100_s0 + $0x25c] ss:$20 sps:$4 sm:$0xff]  }
  0x53   :  { %1784 = vmatpush1.bf16.msra.mxu1 %v3683_v40  ;;  %3442 = vmatpush3.bf16.msra.mxu0 %v3712_v41  ;;  %v3753_v40 = vld [vmem:[%s5100_s0 + $0x52c] ss:$20 sps:$4 sm:$0xff]  }
  0x54   :  { %1785 = vmatprep.subr.bf16.mxu1 %v3910_v0  ;;  %3443 = vmatprep.subr.bf16.mxu0 %v5103_v24  ;;  %v3755_v41 = vld [vmem:[%s5100_s0 + $0x258] ss:$20 sps:$4 sm:$0xff]  }
  0x57   :  { %1786 = vmatpush1.bf16.msra.mxu1 %v3690_v43  ;;  %3444 = vmatpush3.bf16.msra.mxu0 %v3727_v44  ;;  %v3758_v43 = vld [vmem:[%s5100_s0 + $0x284] ss:$20 sps:$4 sm:$0xff]   ;;  %v3760_v44 = vld [vmem:[%s5100_s0 + $0x554] ss:$20 sps:$4 sm:$0xff]  }
  0x58   :  { %1787 = vmatprep.subr.bf16.mxu1 %v3910_v0  ;;  %3445 = vmatprep.subr.bf16.mxu0 %v5103_v24 }
  0x59   :  { %1519 = vmatmul.mubr.bf16.gmra.mxu0 %v3666_v42  ;;  %1663 = vmatmul.mubr.bf16.gmra.mxu1 %v3667_v45  ;;  %v3756_v42 = vld [vmem:[%s5100_s0 + $0x528] ss:$20 sps:$4 sm:$0xff]   ;;  %v3763_v45 = vld [vmem:[%s5100_s0 + $0x280] ss:$20 sps:$4 sm:$0xff]  }
  0x5a   :  { %1526 = vmatprep.mubr.bf16.mxu0 %v3669_v46  ;;  %1670 = vmatprep.mubr.bf16.mxu1 %v3671_v47  ;;  %v3764_v46 = vld [vmem:[%s5100_s0 + $0x550] ss:$20 sps:$4 sm:$0xff]   ;;  %v3766_v47 = vld [vmem:[%s5100_s0 + $0x2ac] ss:$20 sps:$4 sm:$0xff]  }
  0x5b   :  { %1788 = vmatpush1.bf16.msra.mxu1 %v3698_v48  ;;  %3446 = vmatpush3.bf16.msra.mxu0 %v3743_v49  ;;  %v3770_v48 = vld [vmem:[%s5100_s0 + $0xc] ss:$20 sps:$4 sm:$0xff]   ;;  %v3768_v49 = vld [vmem:[%s5100_s0 + $0x8] ss:$20 sps:$4 sm:$0xff]  }
  0x5c   :  { %1789 = vmatprep.subr.bf16.mxu1 %v3910_v0  ;;  %3447 = vmatprep.subr.bf16.mxu0 %v5103_v24 }
  0x5f   :  { %1790 = vmatpush1.bf16.msra.mxu1 %v3705_v51  ;;  %3448 = vmatpush3.bf16.msra.mxu0 %v3762_v52  ;;  %v3772_v51 = vld [vmem:[%s5100_s0 + $0x34] ss:$20 sps:$4 sm:$0xff]   ;;  %v3774_v52 = vld [vmem:[%s5100_s0 + $0x30] ss:$20 sps:$4 sm:$0xff]  }
  0x60   :  { %1791 = vmatprep.subr.bf16.mxu1 %v3910_v0 }
  0x61   :  { %1527 = vmatmul.mubr.bf16.gmra.mxu0 %v3673_v50  ;;  %1671 = vmatmul.mubr.bf16.gmra.mxu1 %v3674_v53  ;;  %v3771_v50 = vld [vmem:[%s5100_s0 + $0x2a8] ss:$20 sps:$4 sm:$0xff]   ;;  %v3775_v53 = vld [vmem:[%s5100_s0 + $0x10] ss:$20 sps:$4 sm:$0xff]  }
  0x62   :  { %1534 = vmatprep.mubr.bf16.mxu0 %v3677_v54  ;;  %1678 = vmatprep.mubr.bf16.mxu1 %v3679_v55  ;;  %v3776_v54 = vld [vmem:[%s5100_s0 + $0x5c] ss:$20 sps:$4 sm:$0xff]   ;;  %v3778_v55 = vld [vmem:[%s5100_s0 + $0x58] ss:$20 sps:$4 sm:$0xff]  }
  0x63   :  { %1792 = vmatpush2.bf16.msra.mxu1 %v3713_v56  ;;  %v3779_v56 = vld [vmem:[%s5100_s0 + $0x38] ss:$20 sps:$4 sm:$0xff]  }
  0x64   :  { %1793 = vmatprep.subr.bf16.mxu1 %v3910_v0 }
  0x67   :  { %1794 = vmatpush2.bf16.msra.mxu1 %v3720_v57  ;;  %v3780_v57 = vld [vmem:[%s5100_s0 + $0x84] ss:$20 sps:$4 sm:$0xff]  }
  0x68   :  { %1795 = vmatprep.subr.bf16.mxu1 %v3910_v0 }
  0x69   :  { %1535 = vmatmul.mubr.bf16.gmra.mxu0 %v3681_v58  ;;  %1679 = vmatmul.mubr.bf16.gmra.mxu1 %v3682_v59  ;;  %v3782_v58 = vld [vmem:[%s5100_s0 + $0x80] ss:$20 sps:$4 sm:$0xff]  }
  0x6a   :  { %1542 = vmatprep.mubr.bf16.mxu0 %v3684_v60  ;;  %1686 = vmatprep.mubr.bf16.mxu1 %v3686_v61  ;;  %v3783_v59 = vld [vmem:[%s5100_s0 + $0x60] ss:$20 sps:$4 sm:$0xff]   ;;  %v3786_v61 = vld [vmem:[%s5100_s0 + $0xa8] ss:$20 sps:$4 sm:$0xff]  }
  0x6b   :  { %1796 = vmatpush2.bf16.msra.mxu1 %v3728_v62  ;;  %v3784_v60 = vld [vmem:[%s5100_s0 + $0xac] ss:$20 sps:$4 sm:$0xff]   ;;  %v3787_v62 = vld [vmem:[%s5100_s0 + $0x88] ss:$20 sps:$4 sm:$0xff]  }
  0x6c   :  { %1797 = vmatprep.subr.bf16.mxu1 %v3910_v0 }
  0x6f   :  { %1798 = vmatpush2.bf16.msra.mxu1 %v3735_v63  ;;  %v3788_v63 = vld [vmem:[%s5100_s0 + $0xd4] ss:$20 sps:$4 sm:$0xff]  }
  0x70   :  { %1799 = vmatprep.subr.bf16.mxu1 %v3910_v0 }
  0x71   :  { %1543 = vmatmul.mubr.bf16.gmra.mxu0 %v3688_v1  ;;  %1687 = vmatmul.mubr.bf16.gmra.mxu1 %v3689_v2  ;;  %v3790_v1 = vld [vmem:[%s5100_s0 + $0xd0] ss:$20 sps:$4 sm:$0xff]  }
  0x72   :  { %1550 = vmatprep.mubr.bf16.mxu0 %v3691_v3  ;;  %1694 = vmatprep.mubr.bf16.mxu1 %v3693_v4  ;;  %v3791_v2 = vld [vmem:[%s5100_s0 + $0xb0] ss:$20 sps:$4 sm:$0xff]   ;;  %v3794_v4 = vld [vmem:[%s5100_s0 + $0xf8] ss:$20 sps:$4 sm:$0xff]  }
  0x73   :  { %1800 = vmatpush2.bf16.msra.mxu1 %v3742_v5  ;;  %v3792_v3 = vld [vmem:[%s5100_s0 + $0xfc] ss:$20 sps:$4 sm:$0xff]   ;;  %v3795_v5 = vld [vmem:[%s5100_s0 + $0xd8] ss:$20 sps:$4 sm:$0xff]  }
  0x74   :  { %1801 = vmatprep.subr.bf16.mxu1 %v3910_v0 }
  0x77   :  { %1802 = vmatpush2.bf16.msra.mxu1 %v3750_v6  ;;  %v3796_v6 = vld [vmem:[%s5100_s0 + $0x124] ss:$20 sps:$4 sm:$0xff]  }
  0x78   :  { %1803 = vmatprep.subr.bf16.mxu1 %v3910_v0 }
  0x79   :  { %1551 = vmatmul.mubr.bf16.gmra.mxu0 %v3696_v7  ;;  %1695 = vmatmul.mubr.bf16.gmra.mxu1 %v3697_v8  ;;  %v3798_v7 = vld [vmem:[%s5100_s0 + $0x120] ss:$20 sps:$4 sm:$0xff]  }
  0x7a   :  { %1558 = vmatprep.mubr.bf16.mxu0 %v3699_v9  ;;  %1702 = vmatprep.mubr.bf16.mxu1 %v3701_v10  ;;  %v3799_v8 = vld [vmem:[%s5100_s0 + $0x100] ss:$20 sps:$4 sm:$0xff]  }
  0x7b   :  { %1804 = vmatpush2.bf16.msra.mxu1 %v3757_v11  ;;  %v3800_v9 = vld [vmem:[%s5100_s0 + $0x14c] ss:$20 sps:$4 sm:$0xff]  }
  0x7c   :  { %1805 = vmatprep.subr.bf16.mxu1 %v3910_v0  ;;  %v3716_v0 = vld [vmem:[%s5100_s0 + $0x464] ss:$20 sps:$4 sm:$0xff]  }
  0x7f   :  { %1806 = vmatpush2.bf16.msra.mxu1 %v3765_v14 }
  0x81   :  { %1559 = vmatmul.mubr.bf16.gmra.mxu0 %v3703_v12  ;;  %1703 = vmatmul.mubr.bf16.gmra.mxu1 %v3704_v13 }
  0x82   :  { %1566 = vmatprep.mubr.bf16.mxu0 %v3706_v15  ;;  %1710 = vmatprep.mubr.bf16.mxu1 %v3708_v16  ;;  %v3802_v16 = vld [vmem:[%s5100_s0 + $0x148] ss:$20 sps:$4 sm:$0xff]  }
  0x89   :  { %1567 = vmatmul.mubr.bf16.gmra.mxu0 %v3710_v17  ;;  %1711 = vmatmul.mubr.bf16.gmra.mxu1 %v3711_v18  ;;  %v3803_v17 = vld [vmem:[%s5100_s0 + $0x128] ss:$20 sps:$4 sm:$0xff]  }
  0x8a   :  { %1574 = vmatprep.mubr.bf16.mxu0 %v3714_v19  ;;  %1718 = vmatprep.mubr.bf16.mxu1 %v3716_v0  ;;  %v3804_v18 = vld [vmem:[%s5100_s0 + $0x174] ss:$20 sps:$4 sm:$0xff]  }
  0x91   :  { %1575 = vmatmul.mubr.bf16.gmra.mxu0 %v3718_v20  ;;  %1719 = vmatmul.mubr.bf16.gmra.mxu1 %v3719_v21 }
  0x92   :  { %1582 = vmatprep.mubr.bf16.mxu0 %v3721_v22  ;;  %1726 = vmatprep.mubr.bf16.mxu1 %v3723_v23 }
  0x99   :  { %1583 = vmatmul.mubr.bf16.gmra.mxu0 %v3725_v25  ;;  %1727 = vmatmul.mubr.bf16.gmra.mxu1 %v3726_v26 }
  0x9a   :  { %1590 = vmatprep.mubr.bf16.mxu0 %v3729_v27  ;;  %1734 = vmatprep.mubr.bf16.mxu1 %v3731_v28  ;;  %v3806_v27 = vld [vmem:[%s5100_s0 + $0x170] ss:$20 sps:$4 sm:$0xff]  }
  0x9b   :  { %v3807_v28 = vld [vmem:[%s5100_s0 + $0x150] ss:$20 sps:$4 sm:$0xff]  }
  0xa1   :  { %1591 = vmatmul.mubr.bf16.gmra.mxu0 %v3733_v29  ;;  %1735 = vmatmul.mubr.bf16.gmra.mxu1 %v3734_v30  ;;  %v3808_v29 = vld [vmem:[%s5100_s0 + $0x19c] ss:$20 sps:$4 sm:$0xff]  }
  0xa2   :  { %1598 = vmatprep.mubr.bf16.mxu0 %v3736_v31  ;;  %1742 = vmatprep.mubr.bf16.mxu1 %v3738_v32 }
  0xa9   :  { %1599 = vmatmul.mubr.bf16.gmra.mxu0 %v3740_v33  ;;  %1743 = vmatmul.mubr.bf16.gmra.mxu1 %v3741_v34 }
  0xaa   :  { %1606 = vmatprep.mubr.bf16.mxu0 %v3744_v35  ;;  %1750 = vmatprep.mubr.bf16.mxu1 %v3746_v36 }
  0xb1   :  { %1607 = vmatmul.mubr.bf16.gmra.mxu0 %v3748_v37  ;;  %1751 = vmatmul.mubr.bf16.gmra.mxu1 %v3749_v38  ;;  %v3810_v38 = vld [vmem:[%s5100_s0 + $0x198] ss:$20 sps:$4 sm:$0xff]  }
  0xb2   :  { %1614 = vmatprep.mubr.bf16.mxu0 %v3751_v39  ;;  %1758 = vmatprep.mubr.bf16.mxu1 %v3753_v40  ;;  %v3811_v39 = vld [vmem:[%s5100_s0 + $0x178] ss:$20 sps:$4 sm:$0xff]  }
  0xb3   :  { %v3814_v40 = vld [vmem:[%s5100_s0 + $0x1c4] ss:$20 sps:$4 sm:$0xff]  }
  0xb9   :  { %1615 = vmatmul.mubr.bf16.gmra.mxu0 %v3755_v41  ;;  %1759 = vmatmul.mubr.bf16.gmra.mxu1 %v3756_v42 }
  0xba   :  { %1622 = vmatprep.mubr.bf16.mxu0 %v3758_v43  ;;  %1766 = vmatprep.mubr.bf16.mxu1 %v3760_v44 }
  0xc1   :  { %1623 = vmatmul.mubr.bf16.gmra.mxu0 %v3763_v45  ;;  %1767 = vmatmul.mubr.bf16.gmra.mxu1 %v3764_v46 }
  0xc2   :  { %1630 = vmatprep.mubr.bf16.mxu0 %v3766_v47  ;;  %1807 = vmatprep.mubr.bf16.mxu1 %v3770_v48 }
  0xc9   :  { %1631 = vmatmul.mubr.bf16.gmra.mxu0 %v3771_v50  ;;  %1808 = vmatmul.mubr.bf16.vlgmr.msra.gmra.mxu1 %v3768_v49  ;;  %v3812_v49 = vld [vmem:[%s5100_s0 + $0x1c0] ss:$20 sps:$4 sm:$0xff]  }
  0xca   :  { %1815 = vmatprep.mubr.bf16.mxu1 %v3772_v51  ;;  %3449 = vmatprep.mubr.msk.bf16.mxu0 %vm3912_vm0, %v5103_v24  ;;  %v3815_v50 = vld [vmem:[%s5100_s0 + $0x1a0] ss:$20 sps:$4 sm:$0xff]  }
  0xcb   :  { %v3818_v51 = vld [vmem:[%s5100_s0 + $0x1ec] ss:$20 sps:$4 sm:$0xff]  }
  0xd1   :  { %1816 = vmatmul.mubr.bf16.gmra.mxu1 %v3774_v52  ;;  %3450 = vmatmul.mubr.bf16.vlgmr.msra.gmra.mxu0 %v3775_v53 }
  0xd2   :  { %1823 = vmatprep.mubr.bf16.mxu1 %v3776_v54  ;;  %3453 = vmatprep.mubr.msk.bf16.mxu0 %vm3912_vm0, %v5103_v24 }
  0xd9   :  { %1824 = vmatmul.mubr.bf16.gmra.mxu1 %v3778_v55  ;;  %3454 = vmatmul.mubr.bf16.gmra.mxu0 %v3779_v56 }
  0xda   :  { %1831 = vmatprep.mubr.bf16.mxu1 %v3780_v57  ;;  %3457 = vmatprep.mubr.msk.bf16.mxu0 %vm3912_vm0, %v5103_v24 }
  0xe1   :  { %1832 = vmatmul.mubr.bf16.gmra.mxu1 %v3782_v58  ;;  %3458 = vmatmul.mubr.bf16.gmra.mxu0 %v3783_v59 }
  0xe2   :  { %1839 = vmatprep.mubr.bf16.mxu1 %v3784_v60  ;;  %3461 = vmatprep.mubr.msk.bf16.mxu0 %vm3912_vm0, %v5103_v24  ;;  %v3816_v60 = vld [vmem:[%s5100_s0 + $0x1e8] ss:$20 sps:$4 sm:$0xff]  }
  0xe9   :  { %1840 = vmatmul.mubr.bf16.gmra.mxu1 %v3786_v61  ;;  %3462 = vmatmul.mubr.bf16.gmra.mxu0 %v3787_v62  ;;  %v3819_v61 = vld [vmem:[%s5100_s0 + $0x1c8] ss:$20 sps:$4 sm:$0xff]  }
  0xea   :  { %1847 = vmatprep.mubr.bf16.mxu1 %v3788_v63  ;;  %3465 = vmatprep.mubr.msk.bf16.mxu0 %vm3912_vm0, %v5103_v24  ;;  %v3822_v62 = vld [vmem:[%s5100_s0 + $0x214] ss:$20 sps:$4 sm:$0xff]  }
  0xf1   :  { %1848 = vmatmul.mubr.bf16.gmra.mxu1 %v3790_v1  ;;  %3466 = vmatmul.mubr.bf16.gmra.mxu0 %v3791_v2 }
  0xf2   :  { %1855 = vmatprep.mubr.bf16.mxu1 %v3792_v3  ;;  %3469 = vmatprep.mubr.msk.bf16.mxu0 %vm3912_vm0, %v5103_v24 }
  0xf9   :  { %1856 = vmatmul.mubr.bf16.gmra.mxu1 %v3794_v4  ;;  %3470 = vmatmul.mubr.bf16.gmra.mxu0 %v3795_v5 }
  0xfa   :  { %1863 = vmatprep.mubr.bf16.mxu1 %v3796_v6  ;;  %3473 = vmatprep.mubr.msk.bf16.mxu0 %vm3912_vm0, %v5103_v24 }
 0x101   :  { %v4405_v10 = vpop.f32.mrf.mxu0  ;;  %v4407_v11 = vpop.f32.mrf.mxu1  ;;  %1864 = vmatmul.mubr.bf16.gmra.mxu1 %v3798_v7  ;;  %3474 = vmatmul.mubr.bf16.gmra.mxu0 %v3799_v8  ;;  %v3820_v8 = vld [vmem:[%s5100_s0 + $0x210] ss:$20 sps:$4 sm:$0xff]  }
 0x102   :  { %1871 = vmatprep.mubr.bf16.mxu1 %v3800_v9  ;;  %3477 = vmatprep.mubr.msk.bf16.mxu0 %vm3912_vm0, %v5103_v24  ;;  %v3823_v9 = vld [vmem:[%s5100_s0 + $0x1f0] ss:$20 sps:$4 sm:$0xff]  }
 0x103   :  { %v1498_v12 = vpop.f32.mrf.mxu0  ;;  %v1642_v13 = vpop.f32.mrf.mxu1 }
 0x104   :  { %v3826_v12 = vld [vmem:[%s5100_s0 + $0x23c] ss:$20 sps:$4 sm:$0xff]  }
 0x105   :  { %v4411_v14 = vpop.f32.mrf.mxu0  ;;  %v4413_v15 = vpop.f32.mrf.mxu1 }
 0x107   :  { %v1501_v19 = vpop.f32.mrf.mxu0  ;;  %v1645_v0 = vpop.f32.mrf.mxu1 }
 0x109   :  { %v4424_v20 = vpop.f32.mrf.mxu0  ;;  %v4426_v21 = vpop.f32.mrf.mxu1  ;;  %1872 = vmatmul.mubr.bf16.gmra.mxu1 %v3802_v16  ;;  %3478 = vmatmul.mubr.bf16.gmra.mxu0 %v3803_v17 }
 0x10a   :  { %1879 = vmatprep.mubr.bf16.mxu1 %v3804_v18  ;;  %3481 = vmatprep.mubr.msk.bf16.mxu0 %vm3912_vm0, %v5103_v24 }
 0x10b   :  { %v1506_v22 = vpop.f32.mrf.mxu0  ;;  %v1650_v23 = vpop.f32.mrf.mxu1 }
 0x10d   :  { %v4430_v25 = vpop.f32.mrf.mxu0  ;;  %v4432_v26 = vpop.f32.mrf.mxu1 }
 0x10f   :  { %v1509_v30 = vpop.f32.mrf.mxu0  ;;  %v1653_v31 = vpop.f32.mrf.mxu1 }
 0x111   :  { %v4443_v32 = vpop.f32.mrf.mxu0  ;;  %v4445_v33 = vpop.f32.mrf.mxu1  ;;  %1880 = vmatmul.mubr.bf16.gmra.mxu1 %v3806_v27  ;;  %3482 = vmatmul.mubr.bf16.gmra.mxu0 %v3807_v28  ;;  %v3824_v27 = vld [vmem:[%s5100_s0 + $0x238] ss:$20 sps:$4 sm:$0xff]  }
 0x112   :  { %1887 = vmatprep.mubr.bf16.mxu1 %v3808_v29  ;;  %3485 = vmatprep.mubr.msk.bf16.mxu0 %vm3912_vm0, %v5103_v24  ;;  %v3827_v28 = vld [vmem:[%s5100_s0 + $0x218] ss:$20 sps:$4 sm:$0xff]  }
 0x113   :  { %v1514_v34 = vpop.f32.mrf.mxu0  ;;  %v1658_v35 = vpop.f32.mrf.mxu1  ;;  %v3830_v29 = vld [vmem:[%s5100_s0 + $0x264] ss:$20 sps:$4 sm:$0xff]  }
 0x115   :  { %v4449_v36 = vpop.f32.mrf.mxu0  ;;  %v4451_v37 = vpop.f32.mrf.mxu1 }
 0x117   :  { %v1517_v41 = vpop.f32.mrf.mxu0  ;;  %v1661_v42 = vpop.f32.mrf.mxu1 }
 0x118   :  { %v3828_v42 = vld [vmem:[%s5100_s0 + $0x260] ss:$20 sps:$4 sm:$0xff]  }
 0x119   :  { %v4462_v43 = vpop.f32.mrf.mxu0  ;;  %v4464_v44 = vpop.f32.mrf.mxu1  ;;  %1888 = vmatmul.mubr.bf16.gmra.mxu1 %v3810_v38  ;;  %3486 = vmatmul.mubr.bf16.gmra.mxu0 %v3811_v39 }
 0x11a   :  { %1895 = vmatprep.mubr.bf16.mxu1 %v3814_v40  ;;  %3489 = vmatprep.mubr.msk.bf16.mxu0 %vm3912_vm0, %v5103_v24 }
 0x11b   :  { %v1522_v45 = vpop.f32.mrf.mxu0  ;;  %v1666_v46 = vpop.f32.mrf.mxu1 }
 0x11c   :  { %v3831_v45 = vld [vmem:[%s5100_s0 + $0x240] ss:$20 sps:$4 sm:$0xff]  }
 0x11d   :  { %v4468_v47 = vpop.f32.mrf.mxu0  ;;  %v4470_v48 = vpop.f32.mrf.mxu1  ;;  %v3834_v46 = vld [vmem:[%s5100_s0 + $0x28c] ss:$20 sps:$4 sm:$0xff]  }
 0x11f   :  { %v1525_v52 = vpop.f32.mrf.mxu0  ;;  %v1669_v53 = vpop.f32.mrf.mxu1 }
 0x121   :  { %v4481_v54 = vpop.f32.mrf.mxu0  ;;  %v4483_v55 = vpop.f32.mrf.mxu1  ;;  %1896 = vmatmul.mubr.bf16.gmra.mxu1 %v3812_v49  ;;  %3490 = vmatmul.mubr.bf16.gmra.mxu0 %v3815_v50 }
 0x122   :  { %1903 = vmatprep.mubr.bf16.mxu1 %v3818_v51  ;;  %3493 = vmatprep.mubr.msk.bf16.mxu0 %vm3912_vm0, %v5103_v24 }
 0x123   :  { %v1530_v56 = vpop.f32.mrf.mxu0  ;;  %v1674_v57 = vpop.f32.mrf.mxu1 }
 0x125   :  { %v4487_v58 = vpop.f32.mrf.mxu0  ;;  %v4489_v59 = vpop.f32.mrf.mxu1 }
 0x127   :  { %v1533_v63 = vpop.f32.mrf.mxu0  ;;  %v1677_v1 = vpop.f32.mrf.mxu1 }
 0x128   :  { %v3838_v63 = vld [vmem:[%s5100_s0 + $0x2b4] ss:$20 sps:$4 sm:$0xff]  }
 0x129   :  { %v4500_v2 = vpop.f32.mrf.mxu0  ;;  %v4502_v3 = vpop.f32.mrf.mxu1  ;;  %1904 = vmatmul.mubr.bf16.gmra.mxu1 %v3816_v60  ;;  %3494 = vmatmul.mubr.bf16.gmra.mxu0 %v3819_v61  ;;  %v3832_v61 = vld [vmem:[%s5100_s0 + $0x288] ss:$20 sps:$4 sm:$0xff]  }
 0x12a   :  { %5105 = vst [vmem:[#allocation2_spill] sm:$0xff] %v4502_v3  ;;  %1911 = vmatprep.mubr.bf16.mxu1 %v3822_v62  ;;  %3497 = vmatprep.mubr.msk.bf16.mxu0 %vm3912_vm0, %v5103_v24  ;;  %v3835_v62 = vld [vmem:[%s5100_s0 + $0x268] ss:$20 sps:$4 sm:$0xff]  }
 0x12b   :  { %v1538_v4 = vpop.f32.mrf.mxu0  ;;  %v1682_v5 = vpop.f32.mrf.mxu1 }
 0x12d   :  { %v4506_v6 = vpop.f32.mrf.mxu0  ;;  %v4508_v7 = vpop.f32.mrf.mxu1 }
 0x12e   :  { %5106 = vst [vmem:[#allocation3_spill] sm:$0xff] %v4508_v7 }
 0x12f   :  { %v1541_v13 = vpop.f32.mrf.mxu0  ;;  %v1685_v16 = vpop.f32.mrf.mxu1 }
 0x131   :  { %v4519_v17 = vpop.f32.mrf.mxu0  ;;  %v4521_v18 = vpop.f32.mrf.mxu1  ;;  %1912 = vmatmul.mubr.bf16.gmra.mxu1 %v3820_v8  ;;  %3498 = vmatmul.mubr.bf16.gmra.mxu0 %v3823_v9 }
 0x132   :  { %5107 = vst [vmem:[#allocation4_spill] sm:$0xff] %v4521_v18  ;;  %1919 = vmatprep.mubr.bf16.mxu1 %v3826_v12  ;;  %3501 = vmatprep.mubr.msk.bf16.mxu0 %vm3912_vm0, %v5103_v24 }
 0x133   :  { %v1546_v19 = vpop.f32.mrf.mxu0  ;;  %v1690_v0 = vpop.f32.mrf.mxu1 }
 0x134   :  { %v3836_v19 = vld [vmem:[%s5100_s0 + $0x2b0] ss:$20 sps:$4 sm:$0xff]  }
 0x135   :  { %v4525_v22 = vpop.f32.mrf.mxu0  ;;  %v4527_v23 = vpop.f32.mrf.mxu1  ;;  %v3839_v0 = vld [vmem:[%s5100_s0 + $0x290] ss:$20 sps:$4 sm:$0xff]  }
 0x136   :  { %5108 = vst [vmem:[#allocation5_spill] sm:$0xff] %v4527_v23 }
 0x137   :  { %v1549_v30 = vpop.f32.mrf.mxu0  ;;  %v1693_v31 = vpop.f32.mrf.mxu1 }
 0x139   :  { %v4538_v34 = vpop.f32.mrf.mxu0  ;;  %v4540_v35 = vpop.f32.mrf.mxu1  ;;  %1920 = vmatmul.mubr.bf16.gmra.mxu1 %v3824_v27  ;;  %3502 = vmatmul.mubr.bf16.gmra.mxu0 %v3827_v28  ;;  %v3842_v27 = vld [vmem:[%s5100_s0 + $0x2dc] ss:$20 sps:$4 sm:$0xff]  }
 0x13a   :  { %5109 = vst [vmem:[#allocation6_spill] sm:$0xff] %v4540_v35  ;;  %1927 = vmatprep.mubr.bf16.mxu1 %v3830_v29  ;;  %3505 = vmatprep.mubr.msk.bf16.mxu0 %vm3912_vm0, %v5103_v24  ;;  %v5129_v35 = vmov 0.0  }
 0x13b   :  { %v1554_v38 = vpop.f32.mrf.mxu0  ;;  %v1698_v39 = vpop.f32.mrf.mxu1 }
 0x13d   :  { %v4544_v40 = vpop.f32.mrf.mxu0  ;;  %v4546_v41 = vpop.f32.mrf.mxu1 }
 0x13e   :  { %5110 = vst [vmem:[#allocation7_spill] sm:$0xff] %v4546_v41 }
 0x13f   :  { %v1557_v49 = vpop.f32.mrf.mxu0  ;;  %v1701_v50 = vpop.f32.mrf.mxu1 }
 0x140   :  { %v3843_v49 = vld [vmem:[%s5100_s0 + $0x2b8] ss:$20 sps:$4 sm:$0xff]  }
 0x141   :  { %v4557_v51 = vpop.f32.mrf.mxu0  ;;  %v4559_v52 = vpop.f32.mrf.mxu1  ;;  %1928 = vmatmul.mubr.bf16.gmra.mxu1 %v3828_v42  ;;  %3506 = vmatmul.mubr.bf16.gmra.mxu0 %v3831_v45  ;;  %v3846_v50 = vld [vmem:[%s5100_s0 + $0x304] ss:$20 sps:$4 sm:$0xff]  }
 0x142   :  { %5111 = vst [vmem:[#allocation8_spill] sm:$0xff] %v4559_v52  ;;  %1935 = vmatprep.mubr.bf16.mxu1 %v3834_v46  ;;  %3509 = vmatprep.mubr.msk.bf16.mxu0 %vm3912_vm0, %v5103_v24  ;;  %v3840_v46 = vld [vmem:[%s5100_s0 + $0x2d8] ss:$20 sps:$4 sm:$0xff]  }
 0x143   :  { %v1562_v53 = vpop.f32.mrf.mxu0  ;;  %v1706_v56 = vpop.f32.mrf.mxu1 }
 0x145   :  { %v4563_v57 = vpop.f32.mrf.mxu0  ;;  %v4565_v60 = vpop.f32.mrf.mxu1 }
 0x146   :  { %5112 = vst [vmem:[#allocation9_spill] sm:$0xff] %v4565_v60 }
 0x147   :  { %v1565_v1 = vpop.f32.mrf.mxu0  ;;  %v1709_v4 = vpop.f32.mrf.mxu1 }
 0x149   :  { %v4576_v5 = vpop.f32.mrf.mxu0  ;;  %v4578_v8 = vpop.f32.mrf.mxu1  ;;  %1936 = vmatmul.mubr.bf16.gmra.mxu1 %v3832_v61  ;;  %3510 = vmatmul.mubr.bf16.gmra.mxu0 %v3835_v62 }
 0x14a   :  { %5113 = vst [vmem:[#allocation10_spill] sm:$0xff] %v4578_v8  ;;  %1943 = vmatprep.mubr.bf16.mxu1 %v3838_v63  ;;  %3513 = vmatprep.mubr.msk.bf16.mxu0 %vm3912_vm0, %v5103_v24 }
 0x14b   :  { %v1570_v9 = vpop.f32.mrf.mxu0  ;;  %v1714_v12 = vpop.f32.mrf.mxu1 }
 0x14c   :  { %v3844_v12 = vld [vmem:[%s5100_s0 + $0x300] ss:$20 sps:$4 sm:$0xff]  }
 0x14d   :  { %v4582_v13 = vpop.f32.mrf.mxu0  ;;  %v4584_v16 = vpop.f32.mrf.mxu1 }
 0x14e   :  { %5114 = vst [vmem:[#allocation11_spill] sm:$0xff] %v4584_v16  ;;  %v4735_v16 = vld [vmem:[%s5101_s2] ss:$0 sm:$0xff] }
 0x14f   :  { %v1573_v28 = vpop.f32.mrf.mxu0  ;;  %v1717_v29 = vpop.f32.mrf.mxu1  ;;  %v1500_v52 = vadd.f32 %v4735_v16, %v4411_v14 }
 0x151   :  { %v4595_v30 = vpop.f32.mrf.mxu0  ;;  %v4597_v31 = vpop.f32.mrf.mxu1  ;;  %1944 = vmatmul.mubr.bf16.gmra.mxu1 %v3836_v19  ;;  %3514 = vmatmul.mubr.bf16.gmra.mxu0 %v3839_v0  ;;  %v3847_v19 = vld [vmem:[%s5100_s0 + $0x2e0] ss:$20 sps:$4 sm:$0xff]  }
 0x152   :  { %5115 = vst [vmem:[#allocation12_spill] sm:$0xff] %v4597_v31  ;;  %1951 = vmatprep.mubr.bf16.mxu1 %v3842_v27  ;;  %3517 = vmatprep.mubr.msk.bf16.mxu0 %vm3912_vm0, %v5103_v24  ;;  %v3850_v0 = vld [vmem:[%s5100_s0 + $0x32c] ss:$20 sps:$4 sm:$0xff]  }
 0x153   :  { %v1578_v38 = vpop.f32.mrf.mxu0  ;;  %v1722_v39 = vpop.f32.mrf.mxu1 }
 0x155   :  { %v4601_v42 = vpop.f32.mrf.mxu0  ;;  %v4603_v45 = vpop.f32.mrf.mxu1 }
 0x156   :  { %5116 = vst [vmem:[#allocation13_spill] sm:$0xff] %v4603_v45 }
 0x157   :  { %v1581_v53 = vpop.f32.mrf.mxu0  ;;  %v1725_v56 = vpop.f32.mrf.mxu1 }
 0x158   :  { %v3848_v53 = vld [vmem:[%s5100_s0 + $0x328] ss:$20 sps:$4 sm:$0xff]  }
 0x159   :  { %v4614_v61 = vpop.f32.mrf.mxu0  ;;  %v4616_v62 = vpop.f32.mrf.mxu1  ;;  %1952 = vmatmul.mubr.bf16.gmra.mxu1 %v3840_v46  ;;  %3518 = vmatmul.mubr.bf16.gmra.mxu0 %v3843_v49  ;;  %v3851_v56 = vld [vmem:[%s5100_s0 + $0x308] ss:$20 sps:$4 sm:$0xff]  }
 0x15a   :  { %5117 = vst [vmem:[#allocation14_spill] sm:$0xff] %v4616_v62  ;;  %1959 = vmatprep.mubr.bf16.mxu1 %v3846_v50  ;;  %3521 = vmatprep.mubr.msk.bf16.mxu0 %vm3912_vm0, %v5103_v24 }
 0x15b   :  { %v1586_v63 = vpop.f32.mrf.mxu0  ;;  %v1730_v1 = vpop.f32.mrf.mxu1 }
 0x15c   :  { %v3854_v63 = vld [vmem:[%s5100_s0 + $0x354] ss:$20 sps:$4 sm:$0xff]  }
 0x15d   :  { %v4620_v4 = vpop.f32.mrf.mxu0  ;;  %v4622_v9 = vpop.f32.mrf.mxu1 }
 0x15e   :  { %5118 = vst [vmem:[#allocation15_spill] sm:$0xff] %v4622_v9 }
 0x15f   :  { %v1589_v27 = vpop.f32.mrf.mxu0  ;;  %v1733_v28 = vpop.f32.mrf.mxu1 }
 0x161   :  { %v4633_v29 = vpop.f32.mrf.mxu0  ;;  %v4635_v38 = vpop.f32.mrf.mxu1  ;;  %1960 = vmatmul.mubr.bf16.gmra.mxu1 %v3844_v12  ;;  %3522 = vmatmul.mubr.bf16.gmra.mxu0 %v3847_v19 }
 0x162   :  { %5119 = vst [vmem:[#allocation16_spill] sm:$0xff] %v4635_v38  ;;  %1967 = vmatprep.mubr.bf16.mxu1 %v3850_v0  ;;  %3525 = vmatprep.mubr.msk.bf16.mxu0 %vm3912_vm0, %v5103_v24 }
 0x163   :  { %v1594_v39 = vpop.f32.mrf.mxu0  ;;  %v1738_v46 = vpop.f32.mrf.mxu1 }
 0x165   :  { %v4639_v49 = vpop.f32.mrf.mxu0  ;;  %v4641_v50 = vpop.f32.mrf.mxu1 }
 0x166   :  { %5120 = vst [vmem:[#allocation17_spill] sm:$0xff] %v4641_v50 }
 0x167   :  { %v1597_v1 = vpop.f32.mrf.mxu0  ;;  %v1741_v12 = vpop.f32.mrf.mxu1 }
 0x168   :  { %v3852_v1 = vld [vmem:[%s5100_s0 + $0x350] ss:$20 sps:$4 sm:$0xff]  }
 0x169   :  { %v4652_v19 = vpop.f32.mrf.mxu0  ;;  %v4654_v0 = vpop.f32.mrf.mxu1  ;;  %1968 = vmatmul.mubr.bf16.gmra.mxu1 %v3848_v53  ;;  %3526 = vmatmul.mubr.bf16.gmra.mxu0 %v3851_v56  ;;  %v3855_v12 = vld [vmem:[%s5100_s0 + $0x330] ss:$20 sps:$4 sm:$0xff]  }
 0x16a   :  { %5121 = vst [vmem:[#allocation18_spill] sm:$0xff] %v4654_v0  ;;  %1975 = vmatprep.mubr.bf16.mxu1 %v3854_v63  ;;  %3529 = vmatprep.mubr.msk.bf16.mxu0 %vm3912_vm0, %v5103_v24  ;;  %v3858_v53 = vld [vmem:[%s5100_s0 + $0x37c] ss:$20 sps:$4 sm:$0xff]  }
 0x16b   :  { %v1602_v27 = vpop.f32.mrf.mxu0  ;;  %v1746_v28 = vpop.f32.mrf.mxu1 }
 0x16d   :  { %v4658_v39 = vpop.f32.mrf.mxu0  ;;  %v4660_v46 = vpop.f32.mrf.mxu1 }
 0x16e   :  { %5122 = vst [vmem:[#allocation19_spill] sm:$0xff] %v4660_v46 }
 0x16f   :  { %v1605_v56 = vpop.f32.mrf.mxu0  ;;  %v1749_v63 = vpop.f32.mrf.mxu1 }
 0x170   :  { %v3856_v56 = vld [vmem:[%s5100_s0 + $0x378] ss:$20 sps:$4 sm:$0xff]  }
 0x171   :  { %v4671_v27 = vpop.f32.mrf.mxu0  ;;  %v4673_v28 = vpop.f32.mrf.mxu1  ;;  %1976 = vmatmul.mubr.bf16.gmra.mxu1 %v3852_v1  ;;  %3530 = vmatmul.mubr.bf16.gmra.mxu0 %v3855_v12  ;;  %v3859_v63 = vld [vmem:[%s5100_s0 + $0x358] ss:$20 sps:$4 sm:$0xff]  }
 0x172   :  { %5123 = vst [vmem:[#allocation20_spill] sm:$0xff] %v4673_v28  ;;  %1983 = vmatprep.mubr.bf16.mxu1 %v3858_v53  ;;  %3533 = vmatprep.mubr.msk.bf16.mxu0 %vm3912_vm0, %v5103_v24  ;;  %v3862_v1 = vld [vmem:[%s5100_s0 + $0x3a4] ss:$20 sps:$4 sm:$0xff]  }
 0x173   :  { %v1610_v46 = vpop.f32.mrf.mxu0  ;;  %v1754_v0 = vpop.f32.mrf.mxu1 }
 0x175   :  { %v4677_v50 = vpop.f32.mrf.mxu0  ;;  %v4679_v38 = vpop.f32.mrf.mxu1 }
 0x176   :  { %5124 = vst [vmem:[#allocation21_spill] sm:$0xff] %v4679_v38 }
 0x177   :  { %v1613_v12 = vpop.f32.mrf.mxu0  ;;  %v1757_v53 = vpop.f32.mrf.mxu1 }
 0x178   :  { %v3860_v12 = vld [vmem:[%s5100_s0 + $0x3a0] ss:$20 sps:$4 sm:$0xff]  }
 0x179   :  { %v4690_v46 = vpop.f32.mrf.mxu0  ;;  %v4692_v0 = vpop.f32.mrf.mxu1  ;;  %1984 = vmatmul.mubr.bf16.gmra.mxu1 %v3856_v56  ;;  %3534 = vmatmul.mubr.bf16.gmra.mxu0 %v3859_v63  ;;  %v3863_v53 = vld [vmem:[%s5100_s0 + $0x380] ss:$20 sps:$4 sm:$0xff]  }
 0x17a   :  { %5125 = vst [vmem:[#allocation22_spill] sm:$0xff] %v4692_v0  ;;  %1991 = vmatprep.mubr.bf16.mxu1 %v3862_v1  ;;  %3537 = vmatprep.mubr.msk.bf16.mxu0 %vm3912_vm0, %v5103_v24  ;;  %v3866_v56 = vld [vmem:[%s5100_s0 + $0x3cc] ss:$20 sps:$4 sm:$0xff]  }
 0x17b   :  { %v1618_v38 = vpop.f32.mrf.mxu0  ;;  %v1762_v28 = vpop.f32.mrf.mxu1 }
 0x17d   :  { %v4696_v9 = vpop.f32.mrf.mxu0  ;;  %v4698_v62 = vpop.f32.mrf.mxu1 }
 0x17e   :  { %5126 = vst [vmem:[#allocation23_spill] sm:$0xff] %v4698_v62 }
 0x17f   :  { %v1621_v63 = vpop.f32.mrf.mxu0  ;;  %v1765_v1 = vpop.f32.mrf.mxu1 }
 0x180   :  { %v3864_v63 = vld [vmem:[%s5100_s0 + $0x3c8] ss:$20 sps:$4 sm:$0xff]  }
 0x181   :  { %v4709_v38 = vpop.f32.mrf.mxu0  ;;  %v4711_v28 = vpop.f32.mrf.mxu1  ;;  %1992 = vmatmul.mubr.bf16.gmra.mxu1 %v3860_v12  ;;  %3538 = vmatmul.mubr.bf16.gmra.mxu0 %v3863_v53  ;;  %v3867_v1 = vld [vmem:[%s5100_s0 + $0x3a8] ss:$20 sps:$4 sm:$0xff]  }
 0x182   :  { %5127 = vst [vmem:[#allocation24_spill] sm:$0xff] %v4711_v28  ;;  %1999 = vmatprep.mubr.bf16.mxu1 %v3866_v56  ;;  %3541 = vmatprep.mubr.msk.bf16.mxu0 %vm3912_vm0, %v5103_v24  ;;  %v3870_v12 = vld [vmem:[%s5100_s0 + $0x3f4] ss:$20 sps:$4 sm:$0xff]  }
 0x183   :  { %v1626_v62 = vpop.f32.mrf.mxu0  ;;  %v1770_v0 = vpop.f32.mrf.mxu1 }
 0x185   :  { %v4715_v45 = vpop.f32.mrf.mxu0  ;;  %v4717_v31 = vpop.f32.mrf.mxu1 }
 0x186   :  { %5128 = vst [vmem:[#allocation25_spill] sm:$0xff] %v4717_v31 }
 0x187   :  { %v1629_v53 = vpop.f32.mrf.mxu0  ;;  %v1773_v56 = vpop.f32.mrf.mxu1 }
 0x188   :  { %v3868_v56 = vld [vmem:[%s5100_s0 + $0x3f0] ss:$20 sps:$4 sm:$0xff]  }
 0x189   :  { %v4728_v62 = vpop.f32.mrf.mxu0  ;;  %v1809_v0 = vpop.f32.mrf.mxu1  ;;  %2000 = vmatmul.mubr.bf16.gmra.mxu1 %v3864_v63  ;;  %3542 = vmatmul.mubr.bf16.gmra.mxu0 %v3867_v1  ;;  %v3871_v63 = vld [vmem:[%s5100_s0 + $0x3d0] ss:$20 sps:$4 sm:$0xff]  }
 0x18a   :  { %2007 = vmatprep.mubr.bf16.mxu1 %v3870_v12  ;;  %3545 = vmatprep.mubr.msk.bf16.mxu0 %vm3912_vm0, %v5103_v24  ;;  %v1497_v12 = vadd.f32 %v4735_v16, %v4405_v10  ;;  %v3872_v10 = vld [vmem:[%s5100_s0 + $0x418] ss:$20 sps:$4 sm:$0xff]  }
 0x18b   :  { %v1634_v31 = vpop.f32.mrf.mxu0  ;;  %v1811_v28 = vpop.f32.mrf.mxu1 }
 0x18c   :  { %v3874_v31 = vld [vmem:[%s5100_s0 + $0x41c] ss:$20 sps:$4 sm:$0xff]   ;;  %v1810_v41 = vadd.f32 %v1809_v0, %v1497_v12  ;;  %v3878_v0 = vld [vmem:[%s5100_s0 + $0x444] ss:$20 sps:$4 sm:$0xff]  }
 0x18d   :  { %v4737_v8 = vpop.f32.mrf.mxu0  ;;  %v1812_v53 = vpop.f32.mrf.mxu1 }
 0x18e   :  { %v1813_v7 = vadd.f32 %v1812_v53, %v1500_v52 }
 0x18f   :  { %v1637_v28 = vpop.f32.mrf.mxu0  ;;  %v1814_v1 = vpop.f32.mrf.mxu1 }
 0x191   :  { %v1817_v24 = vpop.f32.mrf.mxu1  ;;  %2008 = vmatmul.mubr.bf16.gmra.mxu1 %v3868_v56  ;;  %v2122_v60 = vpop.f32.mrf.mxu0  ;;  %3546 = vmatmul.mubr.bf16.gmra.mxu0 %v3871_v63  ;;  %v3875_v56 = vld [vmem:[%s5100_s0 + $0x3f8] ss:$20 sps:$4 sm:$0xff]  }
 0x192   :  { %2015 = vmatprep.mubr.bf16.mxu1 %v3874_v31  ;;  %3549 = vmatprep.mubr.msk.bf16.mxu0 %vm3912_vm0, %v5129_v35  ;;  %v2123_v28 = vadd.f32 %v2122_v60, %v1810_v41  ;;  %v1508_v31 = vadd.f32 %v4735_v16, %v4430_v25  ;;  %v3876_v25 = vld [vmem:[%s5100_s0 + $0x440] ss:$20 sps:$4 sm:$0xff]  }
 0x193   :  { %v1819_v23 = vpop.f32.mrf.mxu1  ;;  %v3451_v18 = vpop.f32.mrf.mxu0 }
 0x194   :  { %v1505_v18 = vadd.f32 %v4735_v16, %v4424_v20  ;;  %v2401_v41 = vmax.f32 %v2123_v28, 0.0 }
 0x195   :  { %v1820_v1 = vpop.f32.mrf.mxu1  ;;  %v2125_v3 = vpop.f32.mrf.mxu0 }
 0x196   :  { %v2126_v14 = vadd.f32 %v2125_v3, %v1813_v7  ;;  %v1818_v12 = vadd.f32 %v1817_v24, %v1505_v18  ;;  %v3879_v24 = vld [vmem:[%s5100_s0 + $0x420] ss:$20 sps:$4 sm:$0xff]   ;;  %v1513_v18 = vadd.f32 %v4735_v16, %v4443_v32 }
 0x197   :  { %v1822_v63 = vpop.f32.mrf.mxu1  ;;  %v3452_v23 = vpop.f32.mrf.mxu0 }
 0x198   :  { %v2402_v52 = vmax.f32 %v2126_v14, 0.0  ;;  %v1821_v23 = vadd.f32 %v1820_v1, %v1508_v31  ;;  %v3882_v1 = vld [vmem:[%s5100_s0 + $0x46c] ss:$20 sps:$4 sm:$0xff]  }
 0x199   :  { %v1825_v60 = vpop.f32.mrf.mxu1  ;;  %2016 = vmatmul.mubr.bf16.gmra.mxu1 %v3872_v10  ;;  %v2130_v53 = vpop.f32.mrf.mxu0  ;;  %3550 = vmatmul.mubr.bf16.gmra.mxu0 %v3875_v56 }
 0x19a   :  { %v3184_v3 = vpack.c.bf16 %v2402_v52, %v2401_v41  ;;  %2023 = vmatprep.mubr.bf16.mxu1 %v3878_v0  ;;  %3553 = vmatprep.mubr.msk.bf16.mxu0 %vm3912_vm0, %v5129_v35  ;;  %v2131_v20 = vadd.f32 %v2130_v53, %v1818_v12  ;;  %v1516_v12 = vadd.f32 %v4735_v16, %v4449_v36  ;;  %v3880_v36 = vld [vmem:[%s5100_s0 + $0x468] ss:$20 sps:$4 sm:$0xff]  }
 0x19b   :  { %v1827_v7 = vpop.f32.mrf.mxu1  ;;  %v3455_v63 = vpop.f32.mrf.mxu0 }
 0x19c   :  { %3185 = vst [vmem:[%s5102_s3] sm:$0xff] %v3184_v3   ;;  %v2403_v41 = vmax.f32 %v2131_v20, 0.0  ;;  %v1826_v3 = vadd.f32 %v1825_v60, %v1513_v18  ;;  %v3883_v60 = vld [vmem:[%s5100_s0 + $0x448] ss:$20 sps:$4 sm:$0xff]  }
 0x19d   :  { %v1828_v28 = vpop.f32.mrf.mxu1  ;;  %v2133_v10 = vpop.f32.mrf.mxu0 }
 0x19e   :  { %v2134_v56 = vadd.f32 %v2133_v10, %v1821_v23  ;;  %v1829_v10 = vadd.f32 %v1828_v28, %v1516_v12  ;;  %v3886_v28 = vld [vmem:[%s5100_s0 + $0x494] ss:$20 sps:$4 sm:$0xff]  }
 0x19f   :  { %v1830_v14 = vpop.f32.mrf.mxu1  ;;  %v3456_v0 = vpop.f32.mrf.mxu0 }
 0x1a0   :  { %v2404_v52 = vmax.f32 %v2134_v56, 0.0  ;;  %v1521_v14 = vadd.f32 %v4735_v16, %v4462_v43 }
 0x1a1   :  { %v1833_v53 = vpop.f32.mrf.mxu1  ;;  %2024 = vmatmul.mubr.bf16.gmra.mxu1 %v3876_v25  ;;  %v2138_v31 = vpop.f32.mrf.mxu0  ;;  %3554 = vmatmul.mubr.bf16.gmra.mxu0 %v3879_v24 }
 0x1a2   :  { %v3189_v7 = vpack.c.bf16 %v2404_v52, %v2403_v41  ;;  %2031 = vmatprep.mubr.bf16.mxu1 %v3882_v1  ;;  %3557 = vmatprep.mubr.msk.bf16.mxu0 %vm3912_vm0, %v5129_v35  ;;  %v2139_v32 = vadd.f32 %v2138_v31, %v1826_v3  ;;  %v1524_v31 = vadd.f32 %v4735_v16, %v4468_v47  ;;  %v3884_v47 = vld [vmem:[%s5100_s0 + $0x490] ss:$20 sps:$4 sm:$0xff]  }
 0x1a3   :  { %v1835_v63 = vpop.f32.mrf.mxu1  ;;  %v3459_v23 = vpop.f32.mrf.mxu0  ;;  %v1834_v12 = vadd.f32 %v1833_v53, %v1521_v14  ;;  %v3887_v53 = vld [vmem:[%s5100_s0 + $0x470] ss:$20 sps:$4 sm:$0xff]  }
 0x1a4   :  { %3356 = vst [vmem:[%s5102_s3 + $0x8] sm:$0xff] %v3189_v7   ;;  %v2405_v0 = vmax.f32 %v2139_v32, 0.0 }
 0x1a5   :  { %v1836_v20 = vpop.f32.mrf.mxu1  ;;  %v2141_v25 = vpop.f32.mrf.mxu0 }
 0x1a6   :  { %v2142_v24 = vadd.f32 %v2141_v25, %v1829_v10  ;;  %v1837_v23 = vadd.f32 %v1836_v20, %v1524_v31  ;;  %v3890_v20 = vld [vmem:[%s5100_s0 + $0x4bc] ss:$20 sps:$4 sm:$0xff]  }
 0x1a7   :  { %v1838_v56 = vpop.f32.mrf.mxu1  ;;  %v3460_v1 = vpop.f32.mrf.mxu0 }
 0x1a8   :  { %v2406_v18 = vmax.f32 %v2142_v24, 0.0  ;;  %v1529_v24 = vadd.f32 %v4735_v16, %v4481_v54 }
 0x1a9   :  { %v1841_v41 = vpop.f32.mrf.mxu1  ;;  %2032 = vmatmul.mubr.bf16.gmra.mxu1 %v3880_v36  ;;  %v2146_v52 = vpop.f32.mrf.mxu0  ;;  %3558 = vmatmul.mubr.bf16.gmra.mxu0 %v3883_v60 }
 0x1aa   :  { %v3194_v3 = vpack.c.bf16 %v2406_v18, %v2405_v0  ;;  %2039 = vmatprep.mubr.bf16.mxu1 %v3886_v28  ;;  %3561 = vmatprep.mubr.msk.bf16.mxu0 %vm3912_vm0, %v5129_v35  ;;  %v2147_v43 = vadd.f32 %v2146_v52, %v1834_v12  ;;  %v1532_v0 = vadd.f32 %v4735_v16, %v4487_v58  ;;  %v3888_v58 = vld [vmem:[%s5100_s0 + $0x4b8] ss:$20 sps:$4 sm:$0xff]  }
 0x1ab   :  { %v1843_v7 = vpop.f32.mrf.mxu1  ;;  %v3463_v63 = vpop.f32.mrf.mxu0  ;;  %v1842_v18 = vadd.f32 %v1841_v41, %v1529_v24  ;;  %v3891_v41 = vld [vmem:[%s5100_s0 + $0x498] ss:$20 sps:$4 sm:$0xff]  }
 0x1ac   :  { %3357 = vst [vmem:[%s5102_s3 + $0x10] sm:$0xff] %v3194_v3   ;;  %v2407_v28 = vmax.f32 %v2147_v43, 0.0  ;;  %v3894_v43 = vld [vmem:[%s5100_s0 + $0x4e4] ss:$20 sps:$4 sm:$0xff]  }
 0x1ad   :  { %v1844_v10 = vpop.f32.mrf.mxu1  ;;  %v2149_v32 = vpop.f32.mrf.mxu0 }
 0x1ae   :  { %v2150_v25 = vadd.f32 %v2149_v32, %v1837_v23  ;;  %v1845_v3 = vadd.f32 %v1844_v10, %v1532_v0 }
 0x1af   :  { %v1846_v36 = vpop.f32.mrf.mxu1  ;;  %v3464_v60 = vpop.f32.mrf.mxu0 }
 0x1b0   :  { %v2408_v56 = vmax.f32 %v2150_v25, 0.0  ;;  %v1540_v60 = vadd.f32 %v4735_v16, %v4506_v6  ;;  %v3892_v6 = vld [vmem:[%s5100_s0 + $0x4e0] ss:$20 sps:$4 sm:$0xff]  }
 0x1b1   :  { %v1849_v1 = vpop.f32.mrf.mxu1  ;;  %2040 = vmatmul.mubr.bf16.gmra.mxu1 %v3884_v47  ;;  %v2154_v14 = vpop.f32.mrf.mxu0  ;;  %3562 = vmatmul.mubr.bf16.gmra.mxu0 %v3887_v53  ;;  %v1537_v47 = vadd.f32 %v4735_v16, %v4500_v2 }
 0x1b2   :  { %v3199_v52 = vpack.c.bf16 %v2408_v56, %v2407_v28  ;;  %2047 = vmatprep.mubr.bf16.mxu1 %v3890_v20  ;;  %3565 = vmatprep.mubr.msk.bf16.mxu0 %vm3912_vm0, %v5129_v35  ;;  %v2155_v54 = vadd.f32 %v2154_v14, %v1842_v18 }
 0x1b3   :  { %v1851_v31 = vpop.f32.mrf.mxu1  ;;  %v3467_v12 = vpop.f32.mrf.mxu0  ;;  %v1850_v24 = vadd.f32 %v1849_v1, %v1537_v47  ;;  %v3895_v1 = vld [vmem:[%s5100_s0 + $0x4c0] ss:$20 sps:$4 sm:$0xff]  }
 0x1b4   :  { %3358 = vst [vmem:[%s5102_s3 + $0x18] sm:$0xff] %v3199_v52   ;;  %v2409_v53 = vmax.f32 %v2155_v54, 0.0  ;;  %v3898_v12 = vld [vmem:[%s5100_s0 + $0x50c] ss:$20 sps:$4 sm:$0xff]  }
 0x1b5   :  { %v1852_v7 = vpop.f32.mrf.mxu1  ;;  %v2157_v63 = vpop.f32.mrf.mxu0 }
 0x1b6   :  { %v2158_v23 = vadd.f32 %v2157_v63, %v1845_v3  ;;  %v1853_v0 = vadd.f32 %v1852_v7, %v1540_v60  ;;  %v1545_v7 = vadd.f32 %v4735_v16, %v4519_v17 }
 0x1b7   :  { %v1854_v10 = vpop.f32.mrf.mxu1  ;;  %v3468_v32 = vpop.f32.mrf.mxu0 }
 0x1b8   :  { %v2410_v25 = vmax.f32 %v2158_v23, 0.0 }
 0x1b9   :  { %v1857_v20 = vpop.f32.mrf.mxu1  ;;  %2048 = vmatmul.mubr.bf16.gmra.mxu1 %v3888_v58  ;;  %v2162_v36 = vpop.f32.mrf.mxu0  ;;  %3566 = vmatmul.mubr.bf16.gmra.mxu0 %v3891_v41 }
 0x1ba   :  { %v3204_v28 = vpack.c.bf16 %v2410_v25, %v2409_v53  ;;  %2055 = vmatprep.mubr.bf16.mxu1 %v3894_v43  ;;  %3569 = vmatprep.mubr.msk.bf16.mxu0 %vm3912_vm0, %v5129_v35  ;;  %v2163_v2 = vadd.f32 %v2162_v36, %v1850_v24  ;;  %v1548_v43 = vadd.f32 %v4735_v16, %v4525_v22  ;;  %v3896_v22 = vld [vmem:[%s5100_s0 + $0x508] ss:$20 sps:$4 sm:$0xff]  }
 0x1bb   :  { %v1859_v56 = vpop.f32.mrf.mxu1  ;;  %v3471_v14 = vpop.f32.mrf.mxu0  ;;  %v1858_v10 = vadd.f32 %v1857_v20, %v1545_v7  ;;  %v3899_v20 = vld [vmem:[%s5100_s0 + $0x4e8] ss:$20 sps:$4 sm:$0xff]  }
 0x1bc   :  { %3359 = vst [vmem:[%s5102_s3 + $0x20] sm:$0xff] %v3204_v28   ;;  %v2411_v63 = vmax.f32 %v2163_v2, 0.0  ;;  %v3902_v28 = vld [vmem:[%s5100_s0 + $0x534] ss:$20 sps:$4 sm:$0xff]  }
 0x1bd   :  { %v1860_v18 = vpop.f32.mrf.mxu1  ;;  %v2165_v52 = vpop.f32.mrf.mxu0 }
 0x1be   :  { %v2166_v31 = vadd.f32 %v2165_v52, %v1853_v0  ;;  %v1861_v25 = vadd.f32 %v1860_v18, %v1548_v43  ;;  %v1553_v0 = vadd.f32 %v4735_v16, %v4538_v34  ;;  %v3906_v43 = vld [vmem:[%s5100_s0 + $0x55c] ss:$20 sps:$4 sm:$0xff]  }
 0x1bf   :  { %v1862_v3 = vpop.f32.mrf.mxu1  ;;  %v3472_v54 = vpop.f32.mrf.mxu0 }
 0x1c0   :  { %v2412_v58 = vmax.f32 %v2166_v31, 0.0 }
 0x1c1   :  { %v1865_v41 = vpop.f32.mrf.mxu1  ;;  %2056 = vmatmul.mubr.bf16.gmra.mxu1 %v3892_v6  ;;  %v2170_v23 = vpop.f32.mrf.mxu0  ;;  %3570 = vmatmul.mubr.bf16.gmra.mxu0 %v3895_v1  ;;  %v1556_v1 = vadd.f32 %v4735_v16, %v4544_v40  ;;  %v3900_v40 = vld [vmem:[%s5100_s0 + $0x530] ss:$20 sps:$4 sm:$0xff]  }
 0x1c2   :  { %v3209_v32 = vpack.c.bf16 %v2412_v58, %v2411_v63  ;;  %2063 = vmatprep.mubr.bf16.mxu1 %v3898_v12  ;;  %3573 = vmatprep.mubr.msk.bf16.mxu0 %vm3912_vm0, %v5129_v35  ;;  %v2171_v17 = vadd.f32 %v2170_v23, %v1858_v10  ;;  %v1866_v31 = vadd.f32 %v1865_v41, %v1553_v0  ;;  %v3903_v41 = vld [vmem:[%s5100_s0 + $0x510] ss:$20 sps:$4 sm:$0xff]  }
 0x1c3   :  { %v1867_v47 = vpop.f32.mrf.mxu1  ;;  %v3475_v53 = vpop.f32.mrf.mxu0 }
 0x1c4   :  { %3360 = vst [vmem:[%s5102_s3 + $0x28] sm:$0xff] %v3209_v32   ;;  %v2413_v2 = vmax.f32 %v2171_v17, 0.0  ;;  %v1561_v47 = vadd.f32 %v4735_v16, %v4557_v51 }
 0x1c5   :  { %v1868_v36 = vpop.f32.mrf.mxu1  ;;  %v2173_v60 = vpop.f32.mrf.mxu0 }
 0x1c6   :  { %v2174_v24 = vadd.f32 %v2173_v60, %v1861_v25  ;;  %v1869_v7 = vadd.f32 %v1868_v36, %v1556_v1  ;;  %v1564_v60 = vadd.f32 %v4735_v16, %v4563_v57  ;;  %v3904_v57 = vld [vmem:[%s5100_s0 + $0x558] ss:$20 sps:$4 sm:$0xff]   ;;  %v1569_v1 = vadd.f32 %v4735_v16, %v4576_v5 }
 0x1c7   :  { %v1870_v56 = vpop.f32.mrf.mxu1  ;;  %v3476_v14 = vpop.f32.mrf.mxu0 }
 0x1c8   :  { %v2414_v18 = vmax.f32 %v2174_v24, 0.0 }
 0x1c9   :  { %v1873_v52 = vpop.f32.mrf.mxu1  ;;  %2064 = vmatmul.mubr.bf16.gmra.mxu1 %v3896_v22  ;;  %v2178_v6 = vpop.f32.mrf.mxu0  ;;  %3574 = vmatmul.mubr.bf16.gmra.mxu0 %v3899_v20 }
 0x1ca   :  { %v3214_v12 = vpack.c.bf16 %v2414_v18, %v2413_v2  ;;  %2071 = vmatprep.mubr.bf16.mxu1 %v3902_v28  ;;  %3577 = vmatprep.mubr.msk.bf16.mxu0 %vm3912_vm0, %v5129_v35  ;;  %v2179_v34 = vadd.f32 %v2178_v6, %v1866_v31  ;;  %v1874_v22 = vadd.f32 %v1873_v52, %v1561_v47  ;;  %v3907_v2 = vld [vmem:[%s5100_s0 + $0x538] ss:$20 sps:$4 sm:$0xff]  }
 0x1cb   :  { %v1875_v3 = vpop.f32.mrf.mxu1  ;;  %v3479_v54 = vpop.f32.mrf.mxu0 }
 0x1cc   :  { %3361 = vst [vmem:[%s5102_s3 + $0x30] sm:$0xff] %v3214_v12   ;;  %v2415_v53 = vmax.f32 %v2179_v34, 0.0 }
 0x1cd   :  { %v1876_v63 = vpop.f32.mrf.mxu1  ;;  %v2181_v58 = vpop.f32.mrf.mxu0 }
 0x1ce   :  { %v2182_v23 = vadd.f32 %v2181_v58, %v1869_v7  ;;  %v1877_v56 = vadd.f32 %v1876_v63, %v1564_v60  ;;  %v1572_v7 = vadd.f32 %v4735_v16, %v4582_v13  ;;  %v1580_v60 = vadd.f32 %v4735_v16, %v4601_v42 }
 0x1cf   :  { %v1878_v10 = vpop.f32.mrf.mxu1  ;;  %v3480_v32 = vpop.f32.mrf.mxu0 }
 0x1d0   :  { %v2416_v25 = vmax.f32 %v2182_v23, 0.0  ;;  %v3908_v10 = vld [vmem:[%s5100_s0 + $0x560] ss:$20 sps:$4 sm:$0xff]  }
 0x1d1   :  { %v1881_v17 = vpop.f32.mrf.mxu1  ;;  %2072 = vmatmul.mubr.bf16.gmra.mxu1 %v3900_v40  ;;  %v2186_v36 = vpop.f32.mrf.mxu0  ;;  %3578 = vmatmul.mubr.bf16.gmra.mxu0 %v3903_v41 }
 0x1d2   :  { %v3219_v20 = vpack.c.bf16 %v2416_v25, %v2415_v53  ;;  %2079 = vmatprep.mubr.bf16.mxu1 %v3906_v43  ;;  %3581 = vmatprep.mubr.msk.bf16.mxu0 %vm3912_vm0, %v5129_v35  ;;  %v2187_v51 = vadd.f32 %v2186_v36, %v1874_v22  ;;  %v1882_v34 = vadd.f32 %v1881_v17, %v1569_v1 }
 0x1d3   :  { %v1883_v24 = vpop.f32.mrf.mxu1  ;;  %v3483_v28 = vpop.f32.mrf.mxu0 }
 0x1d4   :  { %3362 = vst [vmem:[%s5102_s3 + $0x38] sm:$0xff] %v3219_v20   ;;  %v2417_v31 = vmax.f32 %v2187_v51, 0.0 }
 0x1d5   :  { %v1884_v14 = vpop.f32.mrf.mxu1  ;;  %v2189_v0 = vpop.f32.mrf.mxu0 }
 0x1d6   :  { %v2190_v18 = vadd.f32 %v2189_v0, %v1877_v56  ;;  %v1885_v41 = vadd.f32 %v1884_v14, %v1572_v7 }
 0x1d7   :  { %v1886_v52 = vpop.f32.mrf.mxu1  ;;  %v3484_v6 = vpop.f32.mrf.mxu0 }
 0x1d8   :  { %v2418_v12 = vmax.f32 %v2190_v18, 0.0  ;;  %v1585_v18 = vadd.f32 %v4735_v16, %v4614_v61 }
 0x1d9   :  { %v1889_v3 = vpop.f32.mrf.mxu1  ;;  %2080 = vmatmul.mubr.bf16.gmra.mxu1 %v3904_v57  ;;  %v2194_v54 = vpop.f32.mrf.mxu0  ;;  %3582 = vmatmul.mubr.bf16.gmra.mxu0 %v3907_v2 }
 0x1da   :  { %v3224_v63 = vpack.c.bf16 %v2418_v12, %v2417_v31  ;;  %3585 = vmatprep.mubr.msk.bf16.mxu0 %vm3912_vm0, %v5129_v35  ;;  %v2195_v5 = vadd.f32 %v2194_v54, %v1882_v34  ;;  %v1577_v35 = vadd.f32 %v4735_v16, %v4595_v30  ;;  %v1588_v31 = vadd.f32 %v4735_v16, %v4620_v4 }
 0x1db   :  { %v1891_v58 = vpop.f32.mrf.mxu1  ;;  %v3487_v40 = vpop.f32.mrf.mxu0 }
 0x1dc   :  { %3363 = vst [vmem:[%s5102_s3 + $0x40] sm:$0xff] %v3224_v63   ;;  %v2419_v53 = vmax.f32 %v2195_v5, 0.0  ;;  %v1890_v22 = vadd.f32 %v1889_v3, %v1577_v35 }
 0x1dd   :  { %v1892_v23 = vpop.f32.mrf.mxu1  ;;  %v2197_v43 = vpop.f32.mrf.mxu0 }
 0x1de   :  { %v2198_v13 = vadd.f32 %v2197_v43, %v1885_v41  ;;  %v1893_v56 = vadd.f32 %v1892_v23, %v1580_v60  ;;  %v1593_v23 = vadd.f32 %v4735_v16, %v4633_v29 }
 0x1df   :  { %v1894_v32 = vpop.f32.mrf.mxu1  ;;  %v3488_v47 = vpop.f32.mrf.mxu0 }
 0x1e0   :  { %v2420_v25 = vmax.f32 %v2198_v13, 0.0  ;;  %v1596_v32 = vadd.f32 %v4735_v16, %v4639_v49 }
 0x1e1   :  { %v1897_v17 = vpop.f32.mrf.mxu1  ;;  %v2202_v36 = vpop.f32.mrf.mxu0  ;;  %3586 = vmatmul.mubr.bf16.gmra.mxu0 %v3908_v10 }
 0x1e2   :  { %v3229_v20 = vpack.c.bf16 %v2420_v25, %v2419_v53  ;;  %v2203_v51 = vadd.f32 %v2202_v36, %v1890_v22  ;;  %v1898_v12 = vadd.f32 %v1897_v17, %v1585_v18 }
 0x1e3   :  { %v1899_v24 = vpop.f32.mrf.mxu1  ;;  %v3491_v28 = vpop.f32.mrf.mxu0 }
 0x1e4   :  { %3364 = vst [vmem:[%s5102_s3 + $0x48] sm:$0xff] %v3229_v20   ;;  %v2421_v52 = vmax.f32 %v2203_v51, 0.0  ;;  %v1601_v28 = vadd.f32 %v4735_v16, %v4652_v19 }
 0x1e5   :  { %v1900_v14 = vpop.f32.mrf.mxu1  ;;  %v2205_v30 = vpop.f32.mrf.mxu0 }
 0x1e6   :  { %v2206_v0 = vadd.f32 %v2205_v30, %v1893_v56  ;;  %v1901_v34 = vadd.f32 %v1900_v14, %v1588_v31  ;;  %v1604_v30 = vadd.f32 %v4735_v16, %v4658_v39 }
 0x1e7   :  { %v1902_v57 = vpop.f32.mrf.mxu1  ;;  %v3492_v2 = vpop.f32.mrf.mxu0 }
 0x1e8   :  { %v2422_v42 = vmax.f32 %v2206_v0, 0.0 }
 0x1e9   :  { %v1905_v6 = vpop.f32.mrf.mxu1  ;;  %v2210_v1 = vpop.f32.mrf.mxu0 }
 0x1ea   :  { %v3234_v3 = vpack.c.bf16 %v2422_v42, %v2421_v52  ;;  %v2211_v63 = vadd.f32 %v2210_v1, %v1898_v12  ;;  %v1906_v47 = vadd.f32 %v1905_v6, %v1593_v23 }
 0x1eb   :  { %v1907_v54 = vpop.f32.mrf.mxu1  ;;  %v3495_v7 = vpop.f32.mrf.mxu0 }
 0x1ec   :  { %3365 = vst [vmem:[%s5102_s3 + $0x50] sm:$0xff] %v3234_v3   ;;  %v2423_v43 = vmax.f32 %v2211_v63, 0.0  ;;  %v1609_v3 = vadd.f32 %v4735_v16, %v4671_v27  ;;  %v1612_v63 = vadd.f32 %v4735_v16, %v4677_v50 }
 0x1ed   :  { %v1908_v58 = vpop.f32.mrf.mxu1  ;;  %v2213_v40 = vpop.f32.mrf.mxu0 }
 0x1ee   :  { %v2214_v61 = vadd.f32 %v2213_v40, %v1901_v34  ;;  %v1909_v17 = vadd.f32 %v1908_v58, %v1596_v32  ;;  %v1617_v32 = vadd.f32 %v4735_v16, %v4690_v46 }
 0x1ef   :  { %v1910_v41 = vpop.f32.mrf.mxu1  ;;  %v3496_v5 = vpop.f32.mrf.mxu0 }
 0x1f0   :  { %v2424_v4 = vmax.f32 %v2214_v61, 0.0 }
 0x1f1   :  { %v1913_v10 = vpop.f32.mrf.mxu1  ;;  %v2218_v13 = vpop.f32.mrf.mxu0 }
 0x1f2   :  { %v3239_v35 = vpack.c.bf16 %v2424_v4, %v2423_v43  ;;  %v2219_v36 = vadd.f32 %v2218_v13, %v1906_v47  ;;  %v1914_v0 = vadd.f32 %v1913_v10, %v1601_v28 }
 0x1f3   :  { %v1915_v53 = vpop.f32.mrf.mxu1  ;;  %v3499_v25 = vpop.f32.mrf.mxu0 }
 0x1f4   :  { %3366 = vst [vmem:[%s5102_s3 + $0x58] sm:$0xff] %v3239_v35   ;;  %v2425_v56 = vmax.f32 %v2219_v36, 0.0  ;;  %v1620_v25 = vadd.f32 %v4735_v16, %v4696_v9 }
 0x1f5   :  { %v1916_v60 = vpop.f32.mrf.mxu1  ;;  %v2221_v22 = vpop.f32.mrf.mxu0 }
 0x1f6   :  { %v2222_v29 = vadd.f32 %v2221_v22, %v1909_v17  ;;  %v1917_v52 = vadd.f32 %v1916_v60, %v1604_v30 }
 0x1f7   :  { %v1918_v20 = vpop.f32.mrf.mxu1  ;;  %v3500_v24 = vpop.f32.mrf.mxu0 }
 0x1f8   :  { %v2426_v49 = vmax.f32 %v2222_v29, 0.0 }
 0x1f9   :  { %v1921_v51 = vpop.f32.mrf.mxu1  ;;  %v2226_v14 = vpop.f32.mrf.mxu0 }
 0x1fa   :  { %v3244_v57 = vpack.c.bf16 %v2426_v49, %v2425_v56  ;;  %v2227_v42 = vadd.f32 %v2226_v14, %v1914_v0  ;;  %v1922_v58 = vadd.f32 %v1921_v51, %v1609_v3  ;;  %v1625_v51 = vadd.f32 %v4735_v16, %v4709_v38 }
 0x1fb   :  { %v1923_v2 = vpop.f32.mrf.mxu1  ;;  %v3503_v18 = vpop.f32.mrf.mxu0 }
 0x1fc   :  { %3367 = vst [vmem:[%s5102_s3 + $0x60] sm:$0xff] %v3244_v57   ;;  %v2427_v54 = vmax.f32 %v2227_v42, 0.0  ;;  %v1628_v57 = vadd.f32 %v4735_v16, %v4715_v45 }
 0x1fd   :  { %v1924_v6 = vpop.f32.mrf.mxu1  ;;  %v2229_v1 = vpop.f32.mrf.mxu0 }
 0x1fe   :  { %v2230_v19 = vadd.f32 %v2229_v1, %v1917_v52  ;;  %v1925_v5 = vadd.f32 %v1924_v6, %v1612_v63  ;;  %v1636_v63 = vadd.f32 %v4735_v16, %v4737_v8 }
 0x1ff   :  { %v1926_v31 = vpop.f32.mrf.mxu1  ;;  %v3504_v12 = vpop.f32.mrf.mxu0 }
 0x200   :  { %v2428_v39 = vmax.f32 %v2230_v19, 0.0 }
 0x201   :  { %v1929_v7 = vpop.f32.mrf.mxu1  ;;  %v2234_v34 = vpop.f32.mrf.mxu0 }
 0x202   :  { %v3249_v40 = vpack.c.bf16 %v2428_v39, %v2427_v54  ;;  %v2235_v23 = vadd.f32 %v2234_v34, %v1922_v58  ;;  %v1930_v17 = vadd.f32 %v1929_v7, %v1617_v32  ;;  %v1633_v54 = vadd.f32 %v4735_v16, %v4728_v62 }
 0x203   :  { %v1931_v61 = vpop.f32.mrf.mxu1  ;;  %v3507_v41 = vpop.f32.mrf.mxu0 }
 0x204   :  { %3368 = vst [vmem:[%s5102_s3 + $0x68] sm:$0xff] %v3249_v40   ;;  %v2429_v47 = vmax.f32 %v2235_v23, 0.0 }
 0x205   :  { %v1932_v43 = vpop.f32.mrf.mxu1  ;;  %v2237_v4 = vpop.f32.mrf.mxu0 }
 0x206   :  { %v2238_v27 = vadd.f32 %v2237_v4, %v1925_v5  ;;  %v1933_v29 = vadd.f32 %v1932_v43, %v1620_v25 }
 0x207   :  { %v1934_v10 = vpop.f32.mrf.mxu1  ;;  %v3508_v13 = vpop.f32.mrf.mxu0 }
 0x208   :  { %v2430_v50 = vmax.f32 %v2238_v27, 0.0  ;;  %v1641_v13 = vadd.f32 %v4735_v16, %v4407_v11 }
 0x209   :  { %v1937_v35 = vpop.f32.mrf.mxu1  ;;  %v2242_v53 = vpop.f32.mrf.mxu0 }
 0x20a   :  { %v3254_v36 = vpack.c.bf16 %v2430_v50, %v2429_v47  ;;  %v2243_v20 = vadd.f32 %v2242_v53, %v1930_v17  ;;  %v1938_v2 = vadd.f32 %v1937_v35, %v1625_v51  ;;  %v1644_v35 = vadd.f32 %v4735_v16, %v4413_v15 }
 0x20b   :  { %v1939_v60 = vpop.f32.mrf.mxu1  ;;  %v3511_v22 = vpop.f32.mrf.mxu0 }
 0x20c   :  { %3369 = vst [vmem:[%s5102_s3 + $0x70] sm:$0xff] %v3254_v36   ;;  %v2431_v14 = vmax.f32 %v2243_v20, 0.0 }
 0x20d   :  { %v1940_v24 = vpop.f32.mrf.mxu1  ;;  %v2245_v28 = vpop.f32.mrf.mxu0 }
 0x20e   :  { %v2246_v46 = vadd.f32 %v2245_v28, %v1933_v29  ;;  %v1941_v6 = vadd.f32 %v1940_v24, %v1628_v57 }
 0x20f   :  { %v1942_v56 = vpop.f32.mrf.mxu1  ;;  %v3512_v49 = vpop.f32.mrf.mxu0 }
 0x210   :  { %v2432_v9 = vmax.f32 %v2246_v46, 0.0  ;;  %v1649_v46 = vadd.f32 %v4735_v16, %v4426_v21 }
 0x211   :  { %v1945_v30 = vpop.f32.mrf.mxu1  ;;  %v2250_v0 = vpop.f32.mrf.mxu0 }
 0x212   :  { %v3259_v18 = vpack.c.bf16 %v2432_v9, %v2431_v14  ;;  %v2251_v1 = vadd.f32 %v2250_v0, %v1938_v2  ;;  %v1946_v58 = vadd.f32 %v1945_v30, %v1633_v54  ;;  %v1652_v14 = vadd.f32 %v4735_v16, %v4432_v26 }
 0x213   :  { %v1947_v52 = vpop.f32.mrf.mxu1  ;;  %v3515_v42 = vpop.f32.mrf.mxu0 }
 0x214   :  { %3370 = vst [vmem:[%s5102_s3 + $0x78] sm:$0xff] %v3259_v18   ;;  %v2433_v39 = vmax.f32 %v2251_v1, 0.0 }
 0x215   :  { %v1948_v19 = vpop.f32.mrf.mxu1  ;;  %v2253_v31 = vpop.f32.mrf.mxu0 }
 0x216   :  { %v2254_v38 = vadd.f32 %v2253_v31, %v1941_v6  ;;  %v1949_v5 = vadd.f32 %v1948_v19, %v1636_v63  ;;  %v1657_v19 = vadd.f32 %v4735_v16, %v4445_v33 }
 0x217   :  { %v1950_v12 = vpop.f32.mrf.mxu1  ;;  %v3516_v3 = vpop.f32.mrf.mxu0 }
 0x218   :  { %v2434_v45 = vmax.f32 %v2254_v38, 0.0  ;;  %v1660_v3 = vadd.f32 %v4735_v16, %v4451_v37 }
 0x219   :  { %v1953_v7 = vpop.f32.mrf.mxu1  ;;  %v2258_v34 = vpop.f32.mrf.mxu0 }
 0x21a   :  { %v3264_v40 = vpack.c.bf16 %v2434_v45, %v2433_v39  ;;  %v2259_v23 = vadd.f32 %v2258_v34, %v1946_v58  ;;  %v1954_v53 = vadd.f32 %v1953_v7, %v1641_v13 }
 0x21b   :  { %v1955_v61 = vpop.f32.mrf.mxu1  ;;  %v3519_v41 = vpop.f32.mrf.mxu0 }
 0x21c   :  { %3371 = vst [vmem:[%s5102_s3 + $0x80] sm:$0xff] %v3264_v40   ;;  %v2435_v32 = vmax.f32 %v2259_v23, 0.0 }
 0x21d   :  { %v1956_v43 = vpop.f32.mrf.mxu1  ;;  %v2261_v4 = vpop.f32.mrf.mxu0 }
 0x21e   :  { %v2262_v62 = vadd.f32 %v2261_v4, %v1949_v5  ;;  %v1957_v60 = vadd.f32 %v1956_v43, %v1644_v35  ;;  %v1665_v5 = vadd.f32 %v4735_v16, %v4464_v44 }
 0x21f   :  { %v1958_v27 = vpop.f32.mrf.mxu1  ;;  %v3520_v10 = vpop.f32.mrf.mxu0 }
 0x220   :  { %v2436_v8 = vmax.f32 %v2262_v62, 0.0  ;;  %v1668_v62 = vadd.f32 %v4735_v16, %v4470_v48 }
 0x221   :  { %v1961_v47 = vpop.f32.mrf.mxu1  ;;  %v2266_v50 = vpop.f32.mrf.mxu0 }
 0x222   :  { %v3269_v25 = vpack.c.bf16 %v2436_v8, %v2435_v32  ;;  %v2267_v22 = vadd.f32 %v2266_v50, %v1954_v53  ;;  %v1962_v9 = vadd.f32 %v1961_v47, %v1649_v46 }
 0x223   :  { %v1963_v17 = vpop.f32.mrf.mxu1  ;;  %v3523_v36 = vpop.f32.mrf.mxu0 }
 0x224   :  { %3372 = vst [vmem:[%s5102_s3 + $0x88] sm:$0xff] %v3269_v25   ;;  %v2437_v56 = vmax.f32 %v2267_v22, 0.0  ;;  %v1673_v17 = vadd.f32 %v4735_v16, %v4483_v55 }
 0x225   :  { %v1964_v29 = vpop.f32.mrf.mxu1  ;;  %v2269_v20 = vpop.f32.mrf.mxu0 }
 0x226   :  { %v2270_v11 = vadd.f32 %v2269_v20, %v1957_v60  ;;  %v1965_v2 = vadd.f32 %v1964_v29, %v1652_v14  ;;  %v1676_v29 = vadd.f32 %v4735_v16, %v4489_v59 }
 0x227   :  { %v1966_v24 = vpop.f32.mrf.mxu1  ;;  %v3524_v28 = vpop.f32.mrf.mxu0 }
 0x228   :  { %v2438_v15 = vmax.f32 %v2270_v11, 0.0 }
 0x229   :  { %v1969_v49 = vpop.f32.mrf.mxu1  ;;  %v2274_v51 = vpop.f32.mrf.mxu0 }
 0x22a   :  { %v3274_v30 = vpack.c.bf16 %v2438_v15, %v2437_v56  ;;  %v2275_v18 = vadd.f32 %v2274_v51, %v1962_v9  ;;  %v1970_v54 = vadd.f32 %v1969_v49, %v1657_v19  ;;  %v5130_v9 = vld [vmem:[#allocation2_spill] sm:$0xff] }
 0x22b   :  { %v1971_v0 = vpop.f32.mrf.mxu1  ;;  %v3527_v57 = vpop.f32.mrf.mxu0 }
 0x22c   :  { %3373 = vst [vmem:[%s5102_s3 + $0x90] sm:$0xff] %v3274_v30   ;;  %v2439_v31 = vmax.f32 %v2275_v18, 0.0  ;;  %v1681_v30 = vadd.f32 %v4735_v16, %v5130_v9  ;;  %v5131_v18 = vld [vmem:[#allocation3_spill] sm:$0xff]  ;;  %v5137_v9 = vld [vmem:[#allocation9_spill] sm:$0xff] }
 0x22d   :  { %v1972_v52 = vpop.f32.mrf.mxu1  ;;  %v2277_v42 = vpop.f32.mrf.mxu0 }
 0x22e   :  { %v2278_v21 = vadd.f32 %v2277_v42, %v1965_v2  ;;  %v1973_v34 = vadd.f32 %v1972_v52, %v1660_v3  ;;  %v1684_v52 = vadd.f32 %v4735_v16, %v5131_v18 }
 0x22f   :  { %v1974_v6 = vpop.f32.mrf.mxu1  ;;  %v3528_v1 = vpop.f32.mrf.mxu0 }
 0x230   :  { %v2440_v26 = vmax.f32 %v2278_v21, 0.0 }
 0x231   :  { %v1977_v38 = vpop.f32.mrf.mxu1  ;;  %v2282_v12 = vpop.f32.mrf.mxu0 }
 0x232   :  { %v3279_v39 = vpack.c.bf16 %v2440_v26, %v2439_v31  ;;  %v2283_v63 = vadd.f32 %v2282_v12, %v1970_v54  ;;  %v1978_v27 = vadd.f32 %v1977_v38, %v1665_v5 }
 0x233   :  { %v1979_v45 = vpop.f32.mrf.mxu1  ;;  %v3531_v7 = vpop.f32.mrf.mxu0 }
 0x234   :  { %3374 = vst [vmem:[%s5102_s3 + $0x98] sm:$0xff] %v3279_v39   ;;  %v2441_v23 = vmax.f32 %v2283_v63, 0.0  ;;  %v5132_v39 = vld [vmem:[#allocation4_spill] sm:$0xff] }
 0x235   :  { %v1980_v58 = vpop.f32.mrf.mxu1  ;;  %v2285_v40 = vpop.f32.mrf.mxu0  ;;  %v1689_v45 = vadd.f32 %v4735_v16, %v5132_v39  ;;  %v5139_v39 = vld [vmem:[#allocation11_spill] sm:$0xff] }
 0x236   :  { %v2286_v33 = vadd.f32 %v2285_v40, %v1973_v34  ;;  %v1981_v8 = vadd.f32 %v1980_v58, %v1668_v62  ;;  %v5133_v40 = vld [vmem:[#allocation5_spill] sm:$0xff] }
 0x237   :  { %v1982_v61 = vpop.f32.mrf.mxu1  ;;  %v3532_v41 = vpop.f32.mrf.mxu0 }
 0x238   :  { %v2442_v37 = vmax.f32 %v2286_v33, 0.0  ;;  %v1692_v33 = vadd.f32 %v4735_v16, %v5133_v40  ;;  %v5134_v16 = vld [vmem:[#allocation6_spill] sm:$0xff] }
 0x239   :  { %v1985_v43 = vpop.f32.mrf.mxu1  ;;  %v2290_v4 = vpop.f32.mrf.mxu0 }
 0x23a   :  { %v3284_v10 = vpack.c.bf16 %v2442_v37, %v2441_v23  ;;  %v2291_v47 = vadd.f32 %v2290_v4, %v1978_v27  ;;  %v1986_v20 = vadd.f32 %v1985_v43, %v1673_v17 }
 0x23b   :  { %v1987_v13 = vpop.f32.mrf.mxu1  ;;  %v3535_v32 = vpop.f32.mrf.mxu0 }
 0x23c   :  { %3375 = vst [vmem:[%s5102_s3 + $0xa0] sm:$0xff] %v3284_v10   ;;  %v2443_v36 = vmax.f32 %v2291_v47, 0.0  ;;  %v5024_v32 = vld [vmem:[%s5101_s2] ss:$0 sm:$0xff] }
 0x23d   :  { %v1988_v50 = vpop.f32.mrf.mxu1  ;;  %v2293_v35 = vpop.f32.mrf.mxu0 }
 0x23e   :  { %v2294_v44 = vadd.f32 %v2293_v35, %v1981_v8  ;;  %v1989_v46 = vadd.f32 %v1988_v50, %v1676_v29  ;;  %v1697_v8 = vadd.f32 %v5024_v32, %v5134_v16  ;;  %v5141_v16 = vld [vmem:[#allocation13_spill] sm:$0xff] }
 0x23f   :  { %v1990_v53 = vpop.f32.mrf.mxu1  ;;  %v3536_v25 = vpop.f32.mrf.mxu0 }
 0x240   :  { %v2444_v48 = vmax.f32 %v2294_v44, 0.0  ;;  %v5135_v53 = vld [vmem:[#allocation7_spill] sm:$0xff] }
 0x241   :  { %v1993_v60 = vpop.f32.mrf.mxu1  ;;  %v2298_v22 = vpop.f32.mrf.mxu0  ;;  %v1700_v25 = vadd.f32 %v5024_v32, %v5135_v53 }
 0x242   :  { %v3289_v11 = vpack.c.bf16 %v2444_v48, %v2443_v36  ;;  %v2299_v56 = vadd.f32 %v2298_v22, %v1986_v20  ;;  %v1994_v42 = vadd.f32 %v1993_v60, %v1681_v30  ;;  %v1708_v30 = vadd.f32 %v5024_v32, %v5137_v9 }
 0x243   :  { %v1995_v24 = vpop.f32.mrf.mxu1  ;;  %v3539_v28 = vpop.f32.mrf.mxu0 }
 0x244   :  { %3376 = vst [vmem:[%s5102_s3 + $0xa8] sm:$0xff] %v3289_v11   ;;  %v2445_v0 = vmax.f32 %v2299_v56, 0.0  ;;  %v5136_v56 = vld [vmem:[#allocation8_spill] sm:$0xff] }
 0x245   :  { %v1996_v15 = vpop.f32.mrf.mxu1  ;;  %v2301_v49 = vpop.f32.mrf.mxu0 }
 0x246   :  { %v2302_v55 = vadd.f32 %v2301_v49, %v1989_v46  ;;  %v1997_v19 = vadd.f32 %v1996_v15, %v1684_v52  ;;  %v1705_v15 = vadd.f32 %v5024_v32, %v5136_v56  ;;  %v5143_v56 = vld [vmem:[#allocation15_spill] sm:$0xff] }
 0x247   :  { %v1998_v51 = vpop.f32.mrf.mxu1  ;;  %v3540_v14 = vpop.f32.mrf.mxu0 }
 0x248   :  { %v2446_v59 = vmax.f32 %v2302_v55, 0.0 }
 0x249   :  { %v2001_v57 = vpop.f32.mrf.mxu1  ;;  %v2306_v2 = vpop.f32.mrf.mxu0 }
 0x24a   :  { %v3294_v21 = vpack.c.bf16 %v2446_v59, %v2445_v0  ;;  %v2307_v31 = vadd.f32 %v2306_v2, %v1994_v42  ;;  %v2002_v61 = vadd.f32 %v2001_v57, %v1689_v45  ;;  %v1716_v45 = vadd.f32 %v5024_v32, %v5139_v39 }
 0x24b   :  { %v2003_v6 = vpop.f32.mrf.mxu1  ;;  %v3543_v1 = vpop.f32.mrf.mxu0 }
 0x24c   :  { %3377 = vst [vmem:[%s5102_s3 + $0xb0] sm:$0xff] %v3294_v21   ;;  %v2447_v7 = vmax.f32 %v2307_v31, 0.0  ;;  %v5138_v31 = vld [vmem:[#allocation10_spill] sm:$0xff] }
 0x24d   :  { %v2004_v26 = vpop.f32.mrf.mxu1  ;;  %v2309_v38 = vpop.f32.mrf.mxu0 }
 0x24e   :  { %v2310_v12 = vadd.f32 %v2309_v38, %v1997_v19  ;;  %v2005_v37 = vadd.f32 %v2004_v26, %v1692_v33  ;;  %v1713_v26 = vadd.f32 %v5024_v32, %v5138_v31  ;;  %v5145_v31 = vld [vmem:[#allocation17_spill] sm:$0xff] }
 0x24f   :  { %v2006_v3 = vpop.f32.mrf.mxu1  ;;  %v3544_v54 = vpop.f32.mrf.mxu0 }
 0x250   :  { %v2448_v34 = vmax.f32 %v2310_v12, 0.0 }
 0x251   :  { %v2009_v63 = vpop.f32.mrf.mxu1  ;;  %v2314_v58 = vpop.f32.mrf.mxu0 }
 0x252   :  { %v3299_v41 = vpack.c.bf16 %v2448_v34, %v2447_v7  ;;  %v2315_v43 = vadd.f32 %v2314_v58, %v2002_v61  ;;  %v2010_v17 = vadd.f32 %v2009_v63, %v1697_v8  ;;  %v1724_v8 = vadd.f32 %v5024_v32, %v5141_v16 }
 0x253   :  { %v2011_v5 = vpop.f32.mrf.mxu1  ;;  %v3547_v23 = vpop.f32.mrf.mxu0 }
 0x254   :  { %3378 = vst [vmem:[%s5102_s3 + $0xb8] sm:$0xff] %v3299_v41   ;;  %v2449_v47 = vmax.f32 %v2315_v43, 0.0  ;;  %v5140_v43 = vld [vmem:[#allocation12_spill] sm:$0xff] }
 0x255   :  { %v2012_v4 = vpop.f32.mrf.mxu1  ;;  %v2317_v62 = vpop.f32.mrf.mxu0 }
 0x256   :  { %v2318_v27 = vadd.f32 %v2317_v62, %v2005_v37  ;;  %v2013_v22 = vadd.f32 %v2012_v4, %v1700_v25  ;;  %v1721_v4 = vadd.f32 %v5024_v32, %v5140_v43  ;;  %v5147_v43 = vld [vmem:[#allocation19_spill] sm:$0xff] }
 0x257   :  { %v2014_v10 = vpop.f32.mrf.mxu1  ;;  %v3548_v13 = vpop.f32.mrf.mxu0 }
 0x258   :  { %v2450_v50 = vmax.f32 %v2318_v27, 0.0 }
 0x259   :  { %v2017_v35 = vpop.f32.mrf.mxu1  ;;  %v2322_v44 = vpop.f32.mrf.mxu0 }
 0x25a   :  { %v3304_v36 = vpack.c.bf16 %v2450_v50, %v2449_v47  ;;  %v2323_v29 = vadd.f32 %v2322_v44, %v2010_v17  ;;  %v2018_v0 = vadd.f32 %v2017_v35, %v1705_v15  ;;  %v1732_v15 = vadd.f32 %v5024_v32, %v5143_v56 }
 0x25b   :  { %v2019_v48 = vpop.f32.mrf.mxu1  ;;  %v3551_v60 = vpop.f32.mrf.mxu0 }
 0x25c   :  { %3379 = vst [vmem:[%s5102_s3 + $0xc0] sm:$0xff] %v3304_v36   ;;  %v2451_v49 = vmax.f32 %v2323_v29, 0.0  ;;  %v5142_v29 = vld [vmem:[#allocation14_spill] sm:$0xff] }
 0x25d   :  { %v2020_v20 = vpop.f32.mrf.mxu1  ;;  %v2325_v11 = vpop.f32.mrf.mxu0 }
 0x25e   :  { %v2326_v24 = vadd.f32 %v2325_v11, %v2013_v22  ;;  %v2021_v18 = vadd.f32 %v2020_v20, %v1708_v30  ;;  %v1729_v20 = vadd.f32 %v5024_v32, %v5142_v29  ;;  %v5149_v29 = vld [vmem:[#allocation21_spill] sm:$0xff] }
 0x25f   :  { %v2022_v28 = vpop.f32.mrf.mxu1  ;;  %v3552_v46 = vpop.f32.mrf.mxu0 }
 0x260   :  { %v2452_v55 = vmax.f32 %v2326_v24, 0.0 }
 0x261   :  { %v2025_v51 = vpop.f32.mrf.mxu1  ;;  %v2330_v14 = vpop.f32.mrf.mxu0 }
 0x262   :  { %v3309_v59 = vpack.c.bf16 %v2452_v55, %v2451_v49  ;;  %v2331_v52 = vadd.f32 %v2330_v14, %v2018_v0  ;;  %v2026_v7 = vadd.f32 %v2025_v51, %v1713_v26  ;;  %v1740_v26 = vadd.f32 %v5024_v32, %v5145_v31 }
 0x263   :  { %v2027_v57 = vpop.f32.mrf.mxu1  ;;  %v3555_v2 = vpop.f32.mrf.mxu0 }
 0x264   :  { %3380 = vst [vmem:[%s5102_s3 + $0xc8] sm:$0xff] %v3309_v59   ;;  %v2453_v38 = vmax.f32 %v2331_v52, 0.0  ;;  %v5144_v52 = vld [vmem:[#allocation16_spill] sm:$0xff] }
 0x265   :  { %v2028_v42 = vpop.f32.mrf.mxu1  ;;  %v2333_v21 = vpop.f32.mrf.mxu0 }
 0x266   :  { %v2334_v6 = vadd.f32 %v2333_v21, %v2021_v18  ;;  %v2029_v40 = vadd.f32 %v2028_v42, %v1716_v45  ;;  %v1737_v42 = vadd.f32 %v5024_v32, %v5144_v52  ;;  %v5151_v52 = vld [vmem:[#allocation23_spill] sm:$0xff] }
 0x267   :  { %v2030_v1 = vpop.f32.mrf.mxu1  ;;  %v3556_v19 = vpop.f32.mrf.mxu0 }
 0x268   :  { %v2454_v12 = vmax.f32 %v2334_v6, 0.0 }
 0x269   :  { %v2033_v3 = vpop.f32.mrf.mxu1  ;;  %v2338_v54 = vpop.f32.mrf.mxu0 }
 0x26a   :  { %v3314_v34 = vpack.c.bf16 %v2454_v12, %v2453_v38  ;;  %v2339_v33 = vadd.f32 %v2338_v54, %v2026_v7  ;;  %v2034_v47 = vadd.f32 %v2033_v3, %v1721_v4  ;;  %v1748_v4 = vadd.f32 %v5024_v32, %v5147_v43 }
 0x26b   :  { %v2035_v63 = vpop.f32.mrf.mxu1  ;;  %v3559_v58 = vpop.f32.mrf.mxu0 }
 0x26c   :  { %3381 = vst [vmem:[%s5102_s3 + $0xd0] sm:$0xff] %v3314_v34   ;;  %v2455_v62 = vmax.f32 %v2339_v33, 0.0  ;;  %v5146_v33 = vld [vmem:[#allocation18_spill] sm:$0xff] }
 0x26d   :  { %v2036_v61 = vpop.f32.mrf.mxu1  ;;  %v2341_v41 = vpop.f32.mrf.mxu0 }
 0x26e   :  { %v2342_v5 = vadd.f32 %v2341_v41, %v2029_v40  ;;  %v2037_v53 = vadd.f32 %v2036_v61, %v1724_v8  ;;  %v1745_v61 = vadd.f32 %v5024_v32, %v5146_v33 }
 0x26f   :  { %v2038_v23 = vpop.f32.mrf.mxu1  ;;  %v3560_v37 = vpop.f32.mrf.mxu0 }
 0x270   :  { %v2456_v27 = vmax.f32 %v2342_v5, 0.0 }
 0x271   :  { %v2041_v10 = vpop.f32.mrf.mxu1  ;;  %v2346_v13 = vpop.f32.mrf.mxu0 }
 0x272   :  { %v3319_v50 = vpack.c.bf16 %v2456_v27, %v2455_v62  ;;  %v2347_v25 = vadd.f32 %v2346_v13, %v2034_v47  ;;  %v2042_v49 = vadd.f32 %v2041_v10, %v1729_v20  ;;  %v1756_v20 = vadd.f32 %v5024_v32, %v5149_v29 }
 0x273   :  { %v2043_v35 = vpop.f32.mrf.mxu1  ;;  %v3563_v44 = vpop.f32.mrf.mxu0 }
 0x274   :  { %3382 = vst [vmem:[%s5102_s3 + $0xd8] sm:$0xff] %v3319_v50   ;;  %v2457_v11 = vmax.f32 %v2347_v25, 0.0  ;;  %v5148_v25 = vld [vmem:[#allocation20_spill] sm:$0xff] }
 0x275   :  { %v2044_v17 = vpop.f32.mrf.mxu1  ;;  %v2349_v36 = vpop.f32.mrf.mxu0 }
 0x276   :  { %v2350_v48 = vadd.f32 %v2349_v36, %v2037_v53  ;;  %v2045_v9 = vadd.f32 %v2044_v17, %v1732_v15  ;;  %v1753_v17 = vadd.f32 %v5024_v32, %v5148_v25 }
 0x277   :  { %v2046_v60 = vpop.f32.mrf.mxu1  ;;  %v3564_v22 = vpop.f32.mrf.mxu0 }
 0x278   :  { %v2458_v24 = vmax.f32 %v2350_v48, 0.0 }
 0x279   :  { %v2049_v28 = vpop.f32.mrf.mxu1  ;;  %v2354_v46 = vpop.f32.mrf.mxu0 }
 0x27a   :  { %v3324_v55 = vpack.c.bf16 %v2458_v24, %v2457_v11  ;;  %v2355_v30 = vadd.f32 %v2354_v46, %v2042_v49  ;;  %v2050_v38 = vadd.f32 %v2049_v28, %v1737_v42  ;;  %v1764_v42 = vadd.f32 %v5024_v32, %v5151_v52 }
 0x27b   :  { %v2051_v51 = vpop.f32.mrf.mxu1  ;;  %v3567_v14 = vpop.f32.mrf.mxu0 }
 0x27c   :  { %3383 = vst [vmem:[%s5102_s3 + $0xe0] sm:$0xff] %v3324_v55   ;;  %v2459_v21 = vmax.f32 %v2355_v30, 0.0  ;;  %v5150_v30 = vld [vmem:[#allocation22_spill] sm:$0xff] }
 0x27d   :  { %v2052_v0 = vpop.f32.mrf.mxu1  ;;  %v2357_v59 = vpop.f32.mrf.mxu0 }
 0x27e   :  { %v2358_v57 = vadd.f32 %v2357_v59, %v2045_v9  ;;  %v2053_v39 = vadd.f32 %v2052_v0, %v1740_v26  ;;  %v1761_v0 = vadd.f32 %v5024_v32, %v5150_v30 }
 0x27f   :  { %v2054_v2 = vpop.f32.mrf.mxu1  ;;  %v3568_v18 = vpop.f32.mrf.mxu0 }
 0x280   :  { %v2460_v6 = vmax.f32 %v2358_v57, 0.0 }
 0x281   :  { %v2057_v1 = vpop.f32.mrf.mxu1  ;;  %v2362_v19 = vpop.f32.mrf.mxu0 }
 0x282   :  { %v3329_v12 = vpack.c.bf16 %v2460_v6, %v2459_v21  ;;  %v2363_v45 = vadd.f32 %v2362_v19, %v2050_v38  ;;  %v2058_v62 = vadd.f32 %v2057_v1, %v1745_v61 }
 0x283   :  { %v2059_v3 = vpop.f32.mrf.mxu1  ;;  %v3571_v54 = vpop.f32.mrf.mxu0 }
 0x284   :  { %3384 = vst [vmem:[%s5102_s3 + $0xe8] sm:$0xff] %v3329_v12   ;;  %v2461_v41 = vmax.f32 %v2363_v45, 0.0  ;;  %v5152_v45 = vld [vmem:[#allocation24_spill] sm:$0xff] }
 0x285   :  { %v2060_v7 = vpop.f32.mrf.mxu1  ;;  %v2365_v34 = vpop.f32.mrf.mxu0 }
 0x286   :  { %v2366_v63 = vadd.f32 %v2365_v34, %v2053_v39  ;;  %v2061_v16 = vadd.f32 %v2060_v7, %v1748_v4  ;;  %v1769_v7 = vadd.f32 %v5024_v32, %v5152_v45 }
 0x287   :  { %v2062_v58 = vpop.f32.mrf.mxu1  ;;  %v3572_v40 = vpop.f32.mrf.mxu0 }
 0x288   :  { %v2462_v5 = vmax.f32 %v2366_v63, 0.0  ;;  %v5153_v40 = vld [vmem:[#allocation25_spill] sm:$0xff] }
 0x289   :  { %v2065_v23 = vpop.f32.mrf.mxu1  ;;  %v2370_v37 = vpop.f32.mrf.mxu0  ;;  %v1772_v33 = vadd.f32 %v5024_v32, %v5153_v40 }
 0x28a   :  { %v3334_v27 = vpack.c.bf16 %v2462_v5, %v2461_v41  ;;  %v2371_v8 = vadd.f32 %v2370_v37, %v2058_v62  ;;  %v2066_v11 = vadd.f32 %v2065_v23, %v1753_v17 }
 0x28b   :  { %v2067_v10 = vpop.f32.mrf.mxu1  ;;  %v3575_v13 = vpop.f32.mrf.mxu0 }
 0x28c   :  { %3385 = vst [vmem:[%s5102_s3 + $0xf0] sm:$0xff] %v3334_v27   ;;  %v2463_v36 = vmax.f32 %v2371_v8, 0.0 }
 0x28d   :  { %v2068_v47 = vpop.f32.mrf.mxu1  ;;  %v2373_v50 = vpop.f32.mrf.mxu0 }
 0x28e   :  { %v2374_v35 = vadd.f32 %v2373_v50, %v2061_v16  ;;  %v2069_v56 = vadd.f32 %v2068_v47, %v1756_v20 }
 0x28f   :  { %v2070_v44 = vpop.f32.mrf.mxu1  ;;  %v3576_v53 = vpop.f32.mrf.mxu0 }
 0x290   :  { %v2464_v48 = vmax.f32 %v2374_v35, 0.0 }
 0x291   :  { %v2073_v60 = vpop.f32.mrf.mxu1  ;;  %v2378_v22 = vpop.f32.mrf.mxu0 }
 0x292   :  { %v3339_v24 = vpack.c.bf16 %v2464_v48, %v2463_v36  ;;  %v2379_v15 = vadd.f32 %v2378_v22, %v2066_v11  ;;  %v2074_v21 = vadd.f32 %v2073_v60, %v1761_v0 }
 0x293   :  { %v2075_v28 = vpop.f32.mrf.mxu1  ;;  %v3579_v46 = vpop.f32.mrf.mxu0 }
 0x294   :  { %3386 = vst [vmem:[%s5102_s3 + $0xf8] sm:$0xff] %v3339_v24   ;;  %v2465_v59 = vmax.f32 %v2379_v15, 0.0 }
 0x295   :  { %v2076_v49 = vpop.f32.mrf.mxu1  ;;  %v2381_v55 = vpop.f32.mrf.mxu0 }
 0x296   :  { %v2382_v51 = vadd.f32 %v2381_v55, %v2069_v56  ;;  %v2077_v31 = vadd.f32 %v2076_v49, %v1764_v42 }
 0x297   :  { %v2078_v14 = vpop.f32.mrf.mxu1  ;;  %v3580_v9 = vpop.f32.mrf.mxu0 }
 0x298   :  { %v2466_v57 = vmax.f32 %v2382_v51, 0.0 }
 0x299   :  { %v2081_v2 = vpop.f32.mrf.mxu1  ;;  %v2386_v18 = vpop.f32.mrf.mxu0 }
 0x29a   :  { %v3344_v6 = vpack.c.bf16 %v2466_v57, %v2465_v59  ;;  %v2387_v26 = vadd.f32 %v2386_v18, %v2074_v21  ;;  %v2082_v61 = vadd.f32 %v2081_v2, %v1769_v7 }
 0x29b   :  { %v2083_v1 = vpop.f32.mrf.mxu1  ;;  %v3583_v19 = vpop.f32.mrf.mxu0 }
 0x29c   :  { %3387 = vst [vmem:[%s5102_s3 + $0x100] sm:$0xff] %v3344_v6   ;;  %v2467_v34 = vmax.f32 %v2387_v26, 0.0 }
 0x29d   :  { %v2084_v38 = vpop.f32.mrf.mxu1  ;;  %v2389_v12 = vpop.f32.mrf.mxu0 }
 0x29e   :  { %v2390_v3 = vadd.f32 %v2389_v12, %v2077_v31  ;;  %v2085_v23 = vadd.f32 %v2084_v38, %v1772_v33 }
 0x29f   :  { %v3584_v54 = vpop.f32.mrf.mxu0  ;;  %v2086_v39 = vpop.f32.mrf.mxu1 }
 0x2a0   :  { %v2468_v63 = vmax.f32 %v2390_v3, 0.0 }
 0x2a1   :  { %v2394_v58 = vpop.f32.mrf.mxu0 }
 0x2a2   :  { %v3349_v41 = vpack.c.bf16 %v2468_v63, %v2467_v34  ;;  %v2395_v37 = vadd.f32 %v2394_v58, %v2082_v61 }
 0x2a3   :  { %v3587_v5 = vpop.f32.mrf.mxu0 }
 0x2a4   :  { %3388 = vst [vmem:[%s5102_s3 + $0x108] sm:$0xff] %v3349_v41   ;;  %v2469_v27 = vmax.f32 %v2395_v37, 0.0 }
 0x2a5   :  { %v2397_v43 = vpop.f32.mrf.mxu0 }
 0x2a6   :  { %v2398_v4 = vadd.f32 %v2397_v43, %v2085_v23 }
 0x2a7   :  { %v3588_v62 = vpop.f32.mrf.mxu0 }
 0x2a8   :  { %v2470_v10 = vmax.f32 %v2398_v4, 0.0 }
 0x2aa   :  { %v3354_v13 = vpack.c.bf16 %v2470_v10, %v2469_v27 }
 0x2ac   :  { %3389 = vst [vmem:[%s5102_s3 + $0x110] sm:$0xff] %v3354_v13  }

// kernel: _lambda_.9
= control target key start
LH: loop header
LB: loop body
LE: loop exit
PB: predicated region body
PF: predicated region fallthrough
CT: control target
= control target key end

     0   :  { %s2297_s12 = smov 0   ;;  %s2299_s13 = smov 0   ;;  %s2572_s0 = inlined_call_operand.vmem [shape: bf16[4,560,256], index: 0, kind: input, shape index: {}]   ;;  %s2573_s1 = inlined_call_operand.vmem [shape: bf16[4,256,128], index: 1, kind: input, shape index: {}]   ;;  %s2574_s2 = inlined_call_operand.vmem [shape: f32[1,128], index: 2, kind: input, shape index: {}]   ;;  %s2575_s3 = inlined_call_operand.vmem [shape: bf16[4,560,128], index: 3, kind: output, shape index: {}]  }
   0x1   :  { %s2301_s14 = smov 0  }
   0x2 LB: > { %s25_s15 = sadd.s32 1, %s2270_s13  ;;  %p1628_p0 = scmp.ge.s32.totalorder %s2274_s14, 1  ;;  %s2274_s14 = sphi %s2301_s14, %s13_s14   ;;  %s2270_s13 = sphi %s2299_s13, %s2577_s13   ;;  %s2266_s12 = sphi %s2297_s12, %s2576_s12  }
   0x3   : > { %p27_p1 = scmp.ge.s32.totalorder %s25_s15, 4  ;;  %p169_p2 = scmp.lt.s32.totalorder %s2274_s14, 5 }
   0x5   : > { %s2579_s15 = smov (%p27_p1, %s25_s15), 0  ;;  %p170_p3 = pnand %p1628_p0, %p169_p2 }
   0x6   : > { %p208_p4 = scmp.lt.s32.totalorder (!%p170_p3), %s2266_s12, 3 }
   0x7   : > { %173 = sbr.rel (%p170_p3) target bundleno = 419 (0x1a3), region = 32 }
   0xc   : > { %v2276_v0 = vmov 0   ;;  %s2581_s12 = smov (!%p208_p4, %s2266_s12), 3 }
   0xd   : > { %789 = vmatprep.subr.bf16.mxu0 %v2276_v0  ;;  %2072 = vmatprep.subr.bf16.mxu1 %v2276_v0  ;;  %s1792_s16 = sshll.u32 %s2581_s12, 7  ;;  %s2104_s20 = smul.u32 560, %s2581_s12 }
   0xe   : > { %s2323_s19 = scalar_lea.vmem %s2573_s1, %s1792_s16  ;;  %s2105_s26 = smul.u32 280, %s2581_s12 }
   0xf   : > { %v2131_v1 = vld [vmem:[%s2323_s19 + $0x38] sm:$0xff]   ;;  %v2132_v2 = vld [vmem:[%s2323_s19 + $0x30] sm:$0xff]   ;;  %v2133_v3 = vld [vmem:[%s2323_s19 + $0x28] sm:$0xff]   ;;  %s2339_s23 = scalar_lea.vmem %s2572_s0, %s2104_s20 }
  0x10   : > { %790 = vmatpush1.bf16.msra.mxu0 %v2131_v1  ;;  %2088 = vmatpush1.bf16.msra.mxu1 %v2131_v1  ;;  %v2134_v4 = vld [vmem:[%s2323_s19 + $0x20] sm:$0xff]   ;;  %v2135_v5 = vld [vmem:[%s2323_s19 + $0x18] sm:$0xff]   ;;  %v2136_v7 = vld [vmem:[%s2323_s19 + $0x10] sm:$0xff]   ;;  %s2460_s29 = scalar_lea.vmem %s2575_s3, %s2105_s26 }
  0x11   : > { %791 = vmatprep.subr.bf16.mxu0 %v2276_v0  ;;  %2073 = vmatprep.subr.bf16.mxu1 %v2276_v0  ;;  %v2149_v6 = vld [vmem:[%s2339_s23 + $0x4] ss:$8 sps:$4 sm:$0xff]   ;;  %v2139_v11 = vld [vmem:[%s2323_s19 + $0x78] sm:$0xff]   ;;  %v2140_v12 = vld [vmem:[%s2323_s19 + $0x70] sm:$0xff]  }
  0x12   : > { %v2152_v8 = vld [vmem:[%s2339_s23 + $0x124] ss:$8 sps:$4 sm:$0xff]   ;;  %821 = vmatprep.mubr.bf16.mxu0 %v2149_v6  ;;  %v2143_v15 = vld [vmem:[%s2323_s19 + $0x58] sm:$0xff]   ;;  %v2144_v16 = vld [vmem:[%s2323_s19 + $0x50] sm:$0xff]  }
  0x13   : > { %965 = vmatprep.mubr.bf16.mxu1 %v2152_v8  ;;  %v2137_v9 = vld [vmem:[%s2323_s19 + $0x8] sm:$0xff]   ;;  %v2138_v10 = vld [vmem:[%s2323_s19] sm:$0xff]   ;;  %v2153_v21 = vld [vmem:[%s2339_s23 + $0x14] ss:$8 sps:$4 sm:$0xff]  }
  0x14   : > { %792 = vmatpush1.bf16.msra.mxu0 %v2132_v2  ;;  %2089 = vmatpush1.bf16.msra.mxu1 %v2132_v2  ;;  %v2141_v13 = vld [vmem:[%s2323_s19 + $0x68] sm:$0xff]   ;;  %v2142_v14 = vld [vmem:[%s2323_s19 + $0x60] sm:$0xff]   ;;  %v2156_v22 = vld [vmem:[%s2339_s23 + $0x134] ss:$8 sps:$4 sm:$0xff]  }
  0x15   : > { %793 = vmatprep.subr.bf16.mxu0 %v2276_v0  ;;  %2074 = vmatprep.subr.bf16.mxu1 %v2276_v0  ;;  %v2145_v17 = vld [vmem:[%s2323_s19 + $0x48] sm:$0xff]   ;;  %v2146_v18 = vld [vmem:[%s2323_s19 + $0x40] sm:$0xff]   ;;  %v2155_v23 = vld [vmem:[%s2339_s23 + $0x10] ss:$8 sps:$4 sm:$0xff]  }
  0x16   : > { %v2147_v19 = vld [vmem:[%s2339_s23] ss:$8 sps:$4 sm:$0xff]   ;;  %v2158_v24 = vld [vmem:[%s2339_s23 + $0x130] ss:$8 sps:$4 sm:$0xff]   ;;  %v2159_v25 = vld [vmem:[%s2339_s23 + $0x24] ss:$8 sps:$4 sm:$0xff]  }
  0x17   : > { %v2150_v20 = vld [vmem:[%s2339_s23 + $0x120] ss:$8 sps:$4 sm:$0xff]   ;;  %v2162_v26 = vld [vmem:[%s2339_s23 + $0x144] ss:$8 sps:$4 sm:$0xff]   ;;  %v2165_v29 = vld [vmem:[%s2339_s23 + $0x34] ss:$8 sps:$4 sm:$0xff]  }
  0x18   : > { %794 = vmatpush1.bf16.msra.mxu0 %v2133_v3  ;;  %2090 = vmatpush1.bf16.msra.mxu1 %v2133_v3  ;;  %v2161_v27 = vld [vmem:[%s2339_s23 + $0x20] ss:$8 sps:$4 sm:$0xff]   ;;  %v2168_v30 = vld [vmem:[%s2339_s23 + $0x154] ss:$8 sps:$4 sm:$0xff]   ;;  %v2167_v31 = vld [vmem:[%s2339_s23 + $0x30] ss:$8 sps:$4 sm:$0xff]  }
  0x19   : > { %795 = vmatprep.subr.bf16.mxu0 %v2276_v0  ;;  %2075 = vmatprep.subr.bf16.mxu1 %v2276_v0  ;;  %v2164_v28 = vld [vmem:[%s2339_s23 + $0x140] ss:$8 sps:$4 sm:$0xff]   ;;  %v2170_v32 = vld [vmem:[%s2339_s23 + $0x150] ss:$8 sps:$4 sm:$0xff]   ;;  %v2171_v33 = vld [vmem:[%s2339_s23 + $0x44] ss:$8 sps:$4 sm:$0xff]  }
  0x1a   : > { %v2174_v34 = vld [vmem:[%s2339_s23 + $0x164] ss:$8 sps:$4 sm:$0xff]   ;;  %v2173_v35 = vld [vmem:[%s2339_s23 + $0x40] ss:$8 sps:$4 sm:$0xff]   ;;  %v2177_v37 = vld [vmem:[%s2339_s23 + $0x54] ss:$8 sps:$4 sm:$0xff]  }
  0x1b   : > { %v2176_v36 = vld [vmem:[%s2339_s23 + $0x160] ss:$8 sps:$4 sm:$0xff]   ;;  %v2180_v38 = vld [vmem:[%s2339_s23 + $0x174] ss:$8 sps:$4 sm:$0xff]   ;;  %v2179_v39 = vld [vmem:[%s2339_s23 + $0x50] ss:$8 sps:$4 sm:$0xff]  }
  0x1c   : > { %796 = vmatpush1.bf16.msra.mxu0 %v2134_v4  ;;  %2091 = vmatpush1.bf16.msra.mxu1 %v2134_v4  ;;  %v2182_v40 = vld [vmem:[%s2339_s23 + $0x170] ss:$8 sps:$4 sm:$0xff]   ;;  %v2183_v41 = vld [vmem:[%s2339_s23 + $0x64] ss:$8 sps:$4 sm:$0xff]   ;;  %v2185_v43 = vld [vmem:[%s2339_s23 + $0x60] ss:$8 sps:$4 sm:$0xff]  }
  0x1d   : > { %797 = vmatprep.subr.bf16.mxu0 %v2276_v0  ;;  %2076 = vmatprep.subr.bf16.mxu1 %v2276_v0  ;;  %v2186_v42 = vld [vmem:[%s2339_s23 + $0x184] ss:$8 sps:$4 sm:$0xff]   ;;  %v2188_v44 = vld [vmem:[%s2339_s23 + $0x180] ss:$8 sps:$4 sm:$0xff]   ;;  %v2189_v45 = vld [vmem:[%s2339_s23 + $0x74] ss:$8 sps:$4 sm:$0xff]  }
  0x1e   : > { %v2192_v46 = vld [vmem:[%s2339_s23 + $0x194] ss:$8 sps:$4 sm:$0xff]   ;;  %v2191_v47 = vld [vmem:[%s2339_s23 + $0x70] ss:$8 sps:$4 sm:$0xff]   ;;  %v2195_v49 = vld [vmem:[%s2339_s23 + $0x84] ss:$8 sps:$4 sm:$0xff]  }
  0x1f   : > { %v2194_v48 = vld [vmem:[%s2339_s23 + $0x190] ss:$8 sps:$4 sm:$0xff]   ;;  %v2198_v50 = vld [vmem:[%s2339_s23 + $0x1a4] ss:$8 sps:$4 sm:$0xff]   ;;  %v2197_v51 = vld [vmem:[%s2339_s23 + $0x80] ss:$8 sps:$4 sm:$0xff]  }
  0x20   : > { %798 = vmatpush1.bf16.msra.mxu0 %v2135_v5  ;;  %2092 = vmatpush1.bf16.msra.mxu1 %v2135_v5  ;;  %v2200_v52 = vld [vmem:[%s2339_s23 + $0x1a0] ss:$8 sps:$4 sm:$0xff]   ;;  %v2201_v53 = vld [vmem:[%s2339_s23 + $0x94] ss:$8 sps:$4 sm:$0xff]   ;;  %v2203_v55 = vld [vmem:[%s2339_s23 + $0x90] ss:$8 sps:$4 sm:$0xff]  }
  0x21   : > { %799 = vmatprep.subr.bf16.mxu0 %v2276_v0  ;;  %2077 = vmatprep.subr.bf16.mxu1 %v2276_v0  ;;  %v2204_v54 = vld [vmem:[%s2339_s23 + $0x1b4] ss:$8 sps:$4 sm:$0xff]   ;;  %v2206_v56 = vld [vmem:[%s2339_s23 + $0x1b0] ss:$8 sps:$4 sm:$0xff]   ;;  %v2207_v57 = vld [vmem:[%s2339_s23 + $0xa4] ss:$8 sps:$4 sm:$0xff]  }
  0x22   : > { %v2210_v58 = vld [vmem:[%s2339_s23 + $0x1c4] ss:$8 sps:$4 sm:$0xff]   ;;  %v2209_v59 = vld [vmem:[%s2339_s23 + $0xa0] ss:$8 sps:$4 sm:$0xff]   ;;  %v2213_v61 = vld [vmem:[%s2339_s23 + $0xb4] ss:$8 sps:$4 sm:$0xff]  }
  0x23   : > { %v2212_v60 = vld [vmem:[%s2339_s23 + $0x1c0] ss:$8 sps:$4 sm:$0xff]   ;;  %v2216_v62 = vld [vmem:[%s2339_s23 + $0x1d4] ss:$8 sps:$4 sm:$0xff]   ;;  %v2215_v63 = vld [vmem:[%s2339_s23 + $0xb0] ss:$8 sps:$4 sm:$0xff]  }
  0x24   : > { %800 = vmatpush1.bf16.msra.mxu0 %v2136_v7  ;;  %2093 = vmatpush1.bf16.msra.mxu1 %v2136_v7  ;;  %v2219_v1 = vld [vmem:[%s2339_s23 + $0xc4] ss:$8 sps:$4 sm:$0xff]   ;;  %v2221_v3 = vld [vmem:[%s2339_s23 + $0xc0] ss:$8 sps:$4 sm:$0xff]   ;;  %v2225_v5 = vld [vmem:[%s2339_s23 + $0xd4] ss:$8 sps:$4 sm:$0xff]  }
  0x25   : > { %801 = vmatprep.subr.bf16.mxu0 %v2276_v0  ;;  %2078 = vmatprep.subr.bf16.mxu1 %v2276_v0  ;;  %v2222_v2 = vld [vmem:[%s2339_s23 + $0x1e4] ss:$8 sps:$4 sm:$0xff]   ;;  %v2224_v4 = vld [vmem:[%s2339_s23 + $0x1e0] ss:$8 sps:$4 sm:$0xff]   ;;  %v2228_v6 = vld [vmem:[%s2339_s23 + $0x1f4] ss:$8 sps:$4 sm:$0xff]  }
  0x26   : > { %v2227_v7 = vld [vmem:[%s2339_s23 + $0xd0] ss:$8 sps:$4 sm:$0xff]  }
  0x27   : > { %v2230_v8 = vld [vmem:[%s2339_s23 + $0x1f0] ss:$8 sps:$4 sm:$0xff]  }
  0x28   : > { %802 = vmatpush1.bf16.msra.mxu0 %v2137_v9  ;;  %2094 = vmatpush1.bf16.msra.mxu1 %v2137_v9  ;;  %v2231_v9 = vld [vmem:[%s2339_s23 + $0xe4] ss:$8 sps:$4 sm:$0xff]  }
  0x29   : > { %803 = vmatprep.subr.bf16.mxu0 %v2276_v0  ;;  %2079 = vmatprep.subr.bf16.mxu1 %v2276_v0 }
  0x2c   : > { %804 = vmatpush1.bf16.msra.mxu0 %v2138_v10  ;;  %2095 = vmatpush1.bf16.msra.mxu1 %v2138_v10  ;;  %v2234_v10 = vld [vmem:[%s2339_s23 + $0x204] ss:$8 sps:$4 sm:$0xff]  }
  0x2d   : > { %805 = vmatprep.subr.bf16.mxu0 %v2276_v0  ;;  %2080 = vmatprep.subr.bf16.mxu1 %v2276_v0 }
  0x30   : > { %806 = vmatpush2.bf16.msra.mxu0 %v2139_v11  ;;  %2096 = vmatpush2.bf16.msra.mxu1 %v2139_v11  ;;  %v2233_v11 = vld [vmem:[%s2339_s23 + $0xe0] ss:$8 sps:$4 sm:$0xff]  }
  0x31   : > { %807 = vmatprep.subr.bf16.mxu0 %v2276_v0  ;;  %2081 = vmatprep.subr.bf16.mxu1 %v2276_v0 }
  0x34   : > { %808 = vmatpush2.bf16.msra.mxu0 %v2140_v12  ;;  %2097 = vmatpush2.bf16.msra.mxu1 %v2140_v12  ;;  %v2236_v12 = vld [vmem:[%s2339_s23 + $0x200] ss:$8 sps:$4 sm:$0xff]  }
  0x35   : > { %809 = vmatprep.subr.bf16.mxu0 %v2276_v0  ;;  %2082 = vmatprep.subr.bf16.mxu1 %v2276_v0 }
  0x38   : > { %810 = vmatpush2.bf16.msra.mxu0 %v2141_v13  ;;  %2098 = vmatpush2.bf16.msra.mxu1 %v2141_v13  ;;  %v2237_v13 = vld [vmem:[%s2339_s23 + $0xf4] ss:$8 sps:$4 sm:$0xff]  }
  0x39   : > { %811 = vmatprep.subr.bf16.mxu0 %v2276_v0  ;;  %2083 = vmatprep.subr.bf16.mxu1 %v2276_v0 }
  0x3c   : > { %812 = vmatpush2.bf16.msra.mxu0 %v2142_v14  ;;  %2099 = vmatpush2.bf16.msra.mxu1 %v2142_v14  ;;  %v2240_v14 = vld [vmem:[%s2339_s23 + $0x214] ss:$8 sps:$4 sm:$0xff]  }
  0x3d   : > { %813 = vmatprep.subr.bf16.mxu0 %v2276_v0  ;;  %2084 = vmatprep.subr.bf16.mxu1 %v2276_v0 }
  0x40   : > { %814 = vmatpush2.bf16.msra.mxu0 %v2143_v15  ;;  %2100 = vmatpush2.bf16.msra.mxu1 %v2143_v15  ;;  %v2239_v15 = vld [vmem:[%s2339_s23 + $0xf0] ss:$8 sps:$4 sm:$0xff]  }
  0x41   : > { %815 = vmatprep.subr.bf16.mxu0 %v2276_v0  ;;  %2085 = vmatprep.subr.bf16.mxu1 %v2276_v0 }
  0x44   : > { %816 = vmatpush2.bf16.msra.mxu0 %v2144_v16  ;;  %2101 = vmatpush2.bf16.msra.mxu1 %v2144_v16  ;;  %v2242_v16 = vld [vmem:[%s2339_s23 + $0x210] ss:$8 sps:$4 sm:$0xff]  }
  0x45   : > { %817 = vmatprep.subr.bf16.mxu0 %v2276_v0  ;;  %2086 = vmatprep.subr.bf16.mxu1 %v2276_v0 }
  0x48   : > { %818 = vmatpush2.bf16.msra.mxu0 %v2145_v17  ;;  %2102 = vmatpush2.bf16.msra.mxu1 %v2145_v17  ;;  %v2243_v17 = vld [vmem:[%s2339_s23 + $0x104] ss:$8 sps:$4 sm:$0xff]  }
  0x49   : > { %819 = vmatprep.subr.bf16.mxu0 %v2276_v0  ;;  %2087 = vmatprep.subr.bf16.mxu1 %v2276_v0  ;;  %v2218_v0 = vld [vmem:[%s2339_s23 + $0x1d0] ss:$8 sps:$4 sm:$0xff]  }
  0x4c   : > { %820 = vmatpush2.bf16.msra.mxu0 %v2146_v18  ;;  %2103 = vmatpush2.bf16.msra.mxu1 %v2146_v18  ;;  %v2246_v18 = vld [vmem:[%s2339_s23 + $0x224] ss:$8 sps:$4 sm:$0xff]  }
  0x4f   : > { %822 = vmatmul.mubr.bf16.vlgmr.msra.gmra.mxu0 %v2147_v19  ;;  %966 = vmatmul.mubr.bf16.vlgmr.msra.gmra.mxu1 %v2150_v20  ;;  %v2245_v19 = vld [vmem:[%s2339_s23 + $0x100] ss:$8 sps:$4 sm:$0xff]  }
  0x50   : > { %829 = vmatprep.mubr.bf16.mxu0 %v2153_v21  ;;  %973 = vmatprep.mubr.bf16.mxu1 %v2156_v22  ;;  %v2248_v20 = vld [vmem:[%s2339_s23 + $0x220] ss:$8 sps:$4 sm:$0xff]   ;;  %v2249_v21 = vld [vmem:[%s2339_s23 + $0x114] ss:$8 sps:$4 sm:$0xff]   ;;  %v2251_v22 = vld [vmem:[%s2339_s23 + $0x110] ss:$8 sps:$4 sm:$0xff]  }
  0x57   : > { %830 = vmatmul.mubr.bf16.gmra.mxu0 %v2155_v23  ;;  %974 = vmatmul.mubr.bf16.gmra.mxu1 %v2158_v24  ;;  %v2450_v23 = vld [vmem:[%s2574_s2] ss:$0 sm:$0xff] }
  0x58   : > { %837 = vmatprep.mubr.bf16.mxu0 %v2159_v25  ;;  %981 = vmatprep.mubr.bf16.mxu1 %v2162_v26 }
  0x5f   : > { %838 = vmatmul.mubr.bf16.gmra.mxu0 %v2161_v27  ;;  %982 = vmatmul.mubr.bf16.gmra.mxu1 %v2164_v28 }
  0x60   : > { %845 = vmatprep.mubr.bf16.mxu0 %v2165_v29  ;;  %989 = vmatprep.mubr.bf16.mxu1 %v2168_v30 }
  0x67   : > { %846 = vmatmul.mubr.bf16.gmra.mxu0 %v2167_v31  ;;  %990 = vmatmul.mubr.bf16.gmra.mxu1 %v2170_v32 }
  0x68   : > { %853 = vmatprep.mubr.bf16.mxu0 %v2171_v33  ;;  %997 = vmatprep.mubr.bf16.mxu1 %v2174_v34 }
  0x6f   : > { %854 = vmatmul.mubr.bf16.gmra.mxu0 %v2173_v35  ;;  %998 = vmatmul.mubr.bf16.gmra.mxu1 %v2176_v36 }
  0x70   : > { %861 = vmatprep.mubr.bf16.mxu0 %v2177_v37  ;;  %1005 = vmatprep.mubr.bf16.mxu1 %v2180_v38 }
  0x77   : > { %862 = vmatmul.mubr.bf16.gmra.mxu0 %v2179_v39  ;;  %1006 = vmatmul.mubr.bf16.gmra.mxu1 %v2182_v40 }
  0x78   : > { %869 = vmatprep.mubr.bf16.mxu0 %v2183_v41  ;;  %1013 = vmatprep.mubr.bf16.mxu1 %v2186_v42 }
  0x7f   : > { %870 = vmatmul.mubr.bf16.gmra.mxu0 %v2185_v43  ;;  %1014 = vmatmul.mubr.bf16.gmra.mxu1 %v2188_v44 }
  0x80   : > { %877 = vmatprep.mubr.bf16.mxu0 %v2189_v45  ;;  %1021 = vmatprep.mubr.bf16.mxu1 %v2192_v46 }
  0x87   : > { %878 = vmatmul.mubr.bf16.gmra.mxu0 %v2191_v47  ;;  %1022 = vmatmul.mubr.bf16.gmra.mxu1 %v2194_v48 }
  0x88   : > { %885 = vmatprep.mubr.bf16.mxu0 %v2195_v49  ;;  %1029 = vmatprep.mubr.bf16.mxu1 %v2198_v50 }
  0x8f   : > { %886 = vmatmul.mubr.bf16.gmra.mxu0 %v2197_v51  ;;  %1030 = vmatmul.mubr.bf16.gmra.mxu1 %v2200_v52 }
  0x90   : > { %893 = vmatprep.mubr.bf16.mxu0 %v2201_v53  ;;  %1037 = vmatprep.mubr.bf16.mxu1 %v2204_v54 }
  0x97   : > { %894 = vmatmul.mubr.bf16.gmra.mxu0 %v2203_v55  ;;  %1038 = vmatmul.mubr.bf16.gmra.mxu1 %v2206_v56 }
  0x98   : > { %901 = vmatprep.mubr.bf16.mxu0 %v2207_v57  ;;  %1045 = vmatprep.mubr.bf16.mxu1 %v2210_v58 }
  0x9f   : > { %902 = vmatmul.mubr.bf16.gmra.mxu0 %v2209_v59  ;;  %1046 = vmatmul.mubr.bf16.gmra.mxu1 %v2212_v60 }
  0xa0   : > { %909 = vmatprep.mubr.bf16.mxu0 %v2213_v61  ;;  %1053 = vmatprep.mubr.bf16.mxu1 %v2216_v62 }
  0xa7   : > { %910 = vmatmul.mubr.bf16.gmra.mxu0 %v2215_v63  ;;  %1054 = vmatmul.mubr.bf16.gmra.mxu1 %v2218_v0 }
  0xa8   : > { %917 = vmatprep.mubr.bf16.mxu0 %v2219_v1  ;;  %1061 = vmatprep.mubr.bf16.mxu1 %v2222_v2 }
  0xaf   : > { %918 = vmatmul.mubr.bf16.gmra.mxu0 %v2221_v3  ;;  %1062 = vmatmul.mubr.bf16.gmra.mxu1 %v2224_v4 }
  0xb0   : > { %925 = vmatprep.mubr.bf16.mxu0 %v2225_v5  ;;  %1069 = vmatprep.mubr.bf16.mxu1 %v2228_v6 }
  0xb7   : > { %926 = vmatmul.mubr.bf16.gmra.mxu0 %v2227_v7  ;;  %1070 = vmatmul.mubr.bf16.gmra.mxu1 %v2230_v8 }
  0xb8   : > { %933 = vmatprep.mubr.bf16.mxu0 %v2231_v9  ;;  %1077 = vmatprep.mubr.bf16.mxu1 %v2234_v10 }
  0xbf   : > { %934 = vmatmul.mubr.bf16.gmra.mxu0 %v2233_v11  ;;  %1078 = vmatmul.mubr.bf16.gmra.mxu1 %v2236_v12 }
  0xc0   : > { %941 = vmatprep.mubr.bf16.mxu0 %v2237_v13  ;;  %1085 = vmatprep.mubr.bf16.mxu1 %v2240_v14 }
  0xc7   : > { %942 = vmatmul.mubr.bf16.gmra.mxu0 %v2239_v15  ;;  %1086 = vmatmul.mubr.bf16.gmra.mxu1 %v2242_v16 }
  0xc8   : > { %949 = vmatprep.mubr.bf16.mxu0 %v2243_v17  ;;  %1093 = vmatprep.mubr.bf16.mxu1 %v2246_v18 }
  0xcf   : > { %950 = vmatmul.mubr.bf16.gmra.mxu0 %v2245_v19  ;;  %1094 = vmatmul.mubr.bf16.gmra.mxu1 %v2248_v20 }
  0xd0   : > { %957 = vmatprep.mubr.bf16.mxu0 %v2249_v21 }
  0xd7   : > { %958 = vmatmul.mubr.bf16.gmra.mxu0 %v2251_v22 }
 0x10f   : > { %v823_v24 = vpop.f32.mrf.mxu0  ;;  %v967_v25 = vpop.f32.mrf.mxu1 }
 0x110   : > { %v968_v26 = vadd.f32 %v2450_v23, %v967_v25  ;;  %v824_v29 = vadd.f32 %v2450_v23, %v823_v24 }
 0x111   : > { %v825_v27 = vpop.f32.mrf.mxu0  ;;  %v969_v28 = vpop.f32.mrf.mxu1 }
 0x112   : > { %v1138_v32 = vmax.f32 %v968_v26, 0.0  ;;  %v1102_v37 = vmax.f32 %v824_v29, 0.0 }
 0x113   : > { %v826_v30 = vpop.f32.mrf.mxu0  ;;  %v970_v31 = vpop.f32.mrf.mxu1 }
 0x114   : > { %v827_v33 = vadd.f32 %v2450_v23, %v826_v30  ;;  %v971_v34 = vadd.f32 %v2450_v23, %v970_v31 }
 0x115   : > { %v828_v35 = vpop.f32.mrf.mxu0  ;;  %v972_v36 = vpop.f32.mrf.mxu1 }
 0x116   : > { %v1103_v38 = vmax.f32 %v827_v33, 0.0  ;;  %v1139_v39 = vmax.f32 %v971_v34, 0.0 }
 0x117   : > { %v831_v40 = vpop.f32.mrf.mxu0  ;;  %v975_v41 = vpop.f32.mrf.mxu1 }
 0x118   : > { %v1866_v42 = vpack.c.bf16 %v1103_v38, %v1102_v37  ;;  %v1956_v43 = vpack.c.bf16 %v1139_v39, %v1138_v32  ;;  %v976_v44 = vadd.f32 %v2450_v23, %v975_v41  ;;  %v832_v47 = vadd.f32 %v2450_v23, %v831_v40 }
 0x119   : > { %v833_v45 = vpop.f32.mrf.mxu0  ;;  %v977_v46 = vpop.f32.mrf.mxu1 }
 0x11a   : > { %1867 = vst [vmem:[%s2460_s29] sm:$0xff] %v1866_v42   ;;  %2055 = vst [vmem:[%s2460_s29 + $0x90] sm:$0xff] %v1956_v43   ;;  %v1140_v50 = vmax.f32 %v976_v44, 0.0  ;;  %v1104_v55 = vmax.f32 %v832_v47, 0.0 }
 0x11b   : > { %v834_v48 = vpop.f32.mrf.mxu0  ;;  %v978_v49 = vpop.f32.mrf.mxu1 }
 0x11c   : > { %v835_v51 = vadd.f32 %v2450_v23, %v834_v48  ;;  %v979_v52 = vadd.f32 %v2450_v23, %v978_v49 }
 0x11d   : > { %v836_v53 = vpop.f32.mrf.mxu0  ;;  %v980_v54 = vpop.f32.mrf.mxu1 }
 0x11e   : > { %v1105_v56 = vmax.f32 %v835_v51, 0.0  ;;  %v1141_v57 = vmax.f32 %v979_v52, 0.0 }
 0x11f   : > { %v839_v58 = vpop.f32.mrf.mxu0  ;;  %v983_v59 = vpop.f32.mrf.mxu1 }
 0x120   : > { %v1871_v60 = vpack.c.bf16 %v1105_v56, %v1104_v55  ;;  %v1961_v61 = vpack.c.bf16 %v1141_v57, %v1140_v50  ;;  %v984_v62 = vadd.f32 %v2450_v23, %v983_v59  ;;  %v840_v1 = vadd.f32 %v2450_v23, %v839_v58 }
 0x121   : > { %v841_v63 = vpop.f32.mrf.mxu0  ;;  %v985_v0 = vpop.f32.mrf.mxu1 }
 0x122   : > { %2038 = vst [vmem:[%s2460_s29 + $0x8] sm:$0xff] %v1871_v60   ;;  %2056 = vst [vmem:[%s2460_s29 + $0x98] sm:$0xff] %v1961_v61   ;;  %v1142_v4 = vmax.f32 %v984_v62, 0.0  ;;  %v1106_v9 = vmax.f32 %v840_v1, 0.0 }
 0x123   : > { %v842_v2 = vpop.f32.mrf.mxu0  ;;  %v986_v3 = vpop.f32.mrf.mxu1 }
 0x124   : > { %v843_v5 = vadd.f32 %v2450_v23, %v842_v2  ;;  %v987_v6 = vadd.f32 %v2450_v23, %v986_v3 }
 0x125   : > { %v844_v7 = vpop.f32.mrf.mxu0  ;;  %v988_v8 = vpop.f32.mrf.mxu1 }
 0x126   : > { %v1107_v10 = vmax.f32 %v843_v5, 0.0  ;;  %v1143_v11 = vmax.f32 %v987_v6, 0.0 }
 0x127   : > { %v847_v12 = vpop.f32.mrf.mxu0  ;;  %v991_v13 = vpop.f32.mrf.mxu1 }
 0x128   : > { %v1876_v14 = vpack.c.bf16 %v1107_v10, %v1106_v9  ;;  %v1966_v15 = vpack.c.bf16 %v1143_v11, %v1142_v4  ;;  %v992_v16 = vadd.f32 %v2450_v23, %v991_v13  ;;  %v848_v19 = vadd.f32 %v2450_v23, %v847_v12 }
 0x129   : > { %v849_v17 = vpop.f32.mrf.mxu0  ;;  %v993_v18 = vpop.f32.mrf.mxu1 }
 0x12a   : > { %2039 = vst [vmem:[%s2460_s29 + $0x10] sm:$0xff] %v1876_v14   ;;  %2057 = vst [vmem:[%s2460_s29 + $0xa0] sm:$0xff] %v1966_v15   ;;  %v1144_v22 = vmax.f32 %v992_v16, 0.0  ;;  %v1108_v28 = vmax.f32 %v848_v19, 0.0 }
 0x12b   : > { %v850_v20 = vpop.f32.mrf.mxu0  ;;  %v994_v21 = vpop.f32.mrf.mxu1 }
 0x12c   : > { %v851_v24 = vadd.f32 %v2450_v23, %v850_v20  ;;  %v995_v25 = vadd.f32 %v2450_v23, %v994_v21 }
 0x12d   : > { %v852_v26 = vpop.f32.mrf.mxu0  ;;  %v996_v27 = vpop.f32.mrf.mxu1 }
 0x12e   : > { %v1109_v29 = vmax.f32 %v851_v24, 0.0  ;;  %v1145_v30 = vmax.f32 %v995_v25, 0.0 }
 0x12f   : > { %v855_v31 = vpop.f32.mrf.mxu0  ;;  %v999_v32 = vpop.f32.mrf.mxu1 }
 0x130   : > { %v1881_v33 = vpack.c.bf16 %v1109_v29, %v1108_v28  ;;  %v1971_v34 = vpack.c.bf16 %v1145_v30, %v1144_v22  ;;  %v1000_v35 = vadd.f32 %v2450_v23, %v999_v32  ;;  %v856_v38 = vadd.f32 %v2450_v23, %v855_v31 }
 0x131   : > { %v857_v36 = vpop.f32.mrf.mxu0  ;;  %v1001_v37 = vpop.f32.mrf.mxu1 }
 0x132   : > { %2040 = vst [vmem:[%s2460_s29 + $0x18] sm:$0xff] %v1881_v33   ;;  %2058 = vst [vmem:[%s2460_s29 + $0xa8] sm:$0xff] %v1971_v34   ;;  %v1146_v41 = vmax.f32 %v1000_v35, 0.0  ;;  %v1110_v46 = vmax.f32 %v856_v38, 0.0 }
 0x133   : > { %v858_v39 = vpop.f32.mrf.mxu0  ;;  %v1002_v40 = vpop.f32.mrf.mxu1 }
 0x134   : > { %v859_v42 = vadd.f32 %v2450_v23, %v858_v39  ;;  %v1003_v43 = vadd.f32 %v2450_v23, %v1002_v40 }
 0x135   : > { %v860_v44 = vpop.f32.mrf.mxu0  ;;  %v1004_v45 = vpop.f32.mrf.mxu1 }
 0x136   : > { %v1111_v47 = vmax.f32 %v859_v42, 0.0  ;;  %v1147_v48 = vmax.f32 %v1003_v43, 0.0 }
 0x137   : > { %v863_v49 = vpop.f32.mrf.mxu0  ;;  %v1007_v50 = vpop.f32.mrf.mxu1 }
 0x138   : > { %v1886_v51 = vpack.c.bf16 %v1111_v47, %v1110_v46  ;;  %v1976_v52 = vpack.c.bf16 %v1147_v48, %v1146_v41  ;;  %v1008_v53 = vadd.f32 %v2450_v23, %v1007_v50  ;;  %v864_v56 = vadd.f32 %v2450_v23, %v863_v49 }
 0x139   : > { %v865_v54 = vpop.f32.mrf.mxu0  ;;  %v1009_v55 = vpop.f32.mrf.mxu1 }
 0x13a   : > { %2041 = vst [vmem:[%s2460_s29 + $0x20] sm:$0xff] %v1886_v51   ;;  %2059 = vst [vmem:[%s2460_s29 + $0xb0] sm:$0xff] %v1976_v52   ;;  %v1148_v59 = vmax.f32 %v1008_v53, 0.0  ;;  %v1112_v0 = vmax.f32 %v864_v56, 0.0 }
 0x13b   : > { %v866_v57 = vpop.f32.mrf.mxu0  ;;  %v1010_v58 = vpop.f32.mrf.mxu1 }
 0x13c   : > { %v867_v60 = vadd.f32 %v2450_v23, %v866_v57  ;;  %v1011_v61 = vadd.f32 %v2450_v23, %v1010_v58 }
 0x13d   : > { %v868_v62 = vpop.f32.mrf.mxu0  ;;  %v1012_v63 = vpop.f32.mrf.mxu1 }
 0x13e   : > { %v1113_v1 = vmax.f32 %v867_v60, 0.0  ;;  %v1149_v2 = vmax.f32 %v1011_v61, 0.0 }
 0x13f   : > { %v871_v3 = vpop.f32.mrf.mxu0  ;;  %v1015_v4 = vpop.f32.mrf.mxu1 }
 0x140   : > { %v1891_v5 = vpack.c.bf16 %v1113_v1, %v1112_v0  ;;  %v1981_v6 = vpack.c.bf16 %v1149_v2, %v1148_v59  ;;  %v1016_v7 = vadd.f32 %v2450_v23, %v1015_v4  ;;  %v872_v10 = vadd.f32 %v2450_v23, %v871_v3 }
 0x141   : > { %v873_v8 = vpop.f32.mrf.mxu0  ;;  %v1017_v9 = vpop.f32.mrf.mxu1 }
 0x142   : > { %2042 = vst [vmem:[%s2460_s29 + $0x28] sm:$0xff] %v1891_v5   ;;  %2060 = vst [vmem:[%s2460_s29 + $0xb8] sm:$0xff] %v1981_v6   ;;  %v1150_v13 = vmax.f32 %v1016_v7, 0.0  ;;  %v1114_v18 = vmax.f32 %v872_v10, 0.0 }
 0x143   : > { %v874_v11 = vpop.f32.mrf.mxu0  ;;  %v1018_v12 = vpop.f32.mrf.mxu1 }
 0x144   : > { %v875_v14 = vadd.f32 %v2450_v23, %v874_v11  ;;  %v1019_v15 = vadd.f32 %v2450_v23, %v1018_v12 }
 0x145   : > { %v876_v16 = vpop.f32.mrf.mxu0  ;;  %v1020_v17 = vpop.f32.mrf.mxu1 }
 0x146   : > { %v1115_v19 = vmax.f32 %v875_v14, 0.0  ;;  %v1151_v20 = vmax.f32 %v1019_v15, 0.0 }
 0x147   : > { %v879_v21 = vpop.f32.mrf.mxu0  ;;  %v1023_v22 = vpop.f32.mrf.mxu1 }
 0x148   : > { %v1896_v24 = vpack.c.bf16 %v1115_v19, %v1114_v18  ;;  %v1986_v25 = vpack.c.bf16 %v1151_v20, %v1150_v13  ;;  %v1024_v26 = vadd.f32 %v2450_v23, %v1023_v22  ;;  %v880_v29 = vadd.f32 %v2450_v23, %v879_v21 }
 0x149   : > { %v881_v27 = vpop.f32.mrf.mxu0  ;;  %v1025_v28 = vpop.f32.mrf.mxu1 }
 0x14a   : > { %2043 = vst [vmem:[%s2460_s29 + $0x30] sm:$0xff] %v1896_v24   ;;  %2061 = vst [vmem:[%s2460_s29 + $0xc0] sm:$0xff] %v1986_v25   ;;  %v1152_v32 = vmax.f32 %v1024_v26, 0.0  ;;  %v1116_v37 = vmax.f32 %v880_v29, 0.0 }
 0x14b   : > { %v882_v30 = vpop.f32.mrf.mxu0  ;;  %v1026_v31 = vpop.f32.mrf.mxu1 }
 0x14c   : > { %v883_v33 = vadd.f32 %v2450_v23, %v882_v30  ;;  %v1027_v34 = vadd.f32 %v2450_v23, %v1026_v31 }
 0x14d   : > { %v884_v35 = vpop.f32.mrf.mxu0  ;;  %v1028_v36 = vpop.f32.mrf.mxu1 }
 0x14e   : > { %v1117_v38 = vmax.f32 %v883_v33, 0.0  ;;  %v1153_v39 = vmax.f32 %v1027_v34, 0.0 }
 0x14f   : > { %v887_v40 = vpop.f32.mrf.mxu0  ;;  %v1031_v41 = vpop.f32.mrf.mxu1 }
 0x150   : > { %v1901_v42 = vpack.c.bf16 %v1117_v38, %v1116_v37  ;;  %v1991_v43 = vpack.c.bf16 %v1153_v39, %v1152_v32  ;;  %v1032_v44 = vadd.f32 %v2450_v23, %v1031_v41  ;;  %v888_v47 = vadd.f32 %v2450_v23, %v887_v40 }
 0x151   : > { %v889_v45 = vpop.f32.mrf.mxu0  ;;  %v1033_v46 = vpop.f32.mrf.mxu1 }
 0x152   : > { %2044 = vst [vmem:[%s2460_s29 + $0x38] sm:$0xff] %v1901_v42   ;;  %2062 = vst [vmem:[%s2460_s29 + $0xc8] sm:$0xff] %v1991_v43   ;;  %v1154_v50 = vmax.f32 %v1032_v44, 0.0  ;;  %v1118_v55 = vmax.f32 %v888_v47, 0.0 }
 0x153   : > { %v890_v48 = vpop.f32.mrf.mxu0  ;;  %v1034_v49 = vpop.f32.mrf.mxu1 }
 0x154   : > { %v891_v51 = vadd.f32 %v2450_v23, %v890_v48  ;;  %v1035_v52 = vadd.f32 %v2450_v23, %v1034_v49 }
 0x155   : > { %v892_v53 = vpop.f32.mrf.mxu0  ;;  %v1036_v54 = vpop.f32.mrf.mxu1 }
 0x156   : > { %v1119_v56 = vmax.f32 %v891_v51, 0.0  ;;  %v1155_v57 = vmax.f32 %v1035_v52, 0.0 }
 0x157   : > { %v895_v58 = vpop.f32.mrf.mxu0  ;;  %v1039_v59 = vpop.f32.mrf.mxu1 }
 0x158   : > { %v1906_v60 = vpack.c.bf16 %v1119_v56, %v1118_v55  ;;  %v1996_v61 = vpack.c.bf16 %v1155_v57, %v1154_v50  ;;  %v1040_v62 = vadd.f32 %v2450_v23, %v1039_v59  ;;  %v896_v1 = vadd.f32 %v2450_v23, %v895_v58 }
 0x159   : > { %v897_v63 = vpop.f32.mrf.mxu0  ;;  %v1041_v0 = vpop.f32.mrf.mxu1 }
 0x15a   : > { %2045 = vst [vmem:[%s2460_s29 + $0x40] sm:$0xff] %v1906_v60   ;;  %2063 = vst [vmem:[%s2460_s29 + $0xd0] sm:$0xff] %v1996_v61   ;;  %v1156_v4 = vmax.f32 %v1040_v62, 0.0  ;;  %v1120_v9 = vmax.f32 %v896_v1, 0.0 }
 0x15b   : > { %v898_v2 = vpop.f32.mrf.mxu0  ;;  %v1042_v3 = vpop.f32.mrf.mxu1 }
 0x15c   : > { %v899_v5 = vadd.f32 %v2450_v23, %v898_v2  ;;  %v1043_v6 = vadd.f32 %v2450_v23, %v1042_v3 }
 0x15d   : > { %v900_v7 = vpop.f32.mrf.mxu0  ;;  %v1044_v8 = vpop.f32.mrf.mxu1 }
 0x15e   : > { %v1121_v10 = vmax.f32 %v899_v5, 0.0  ;;  %v1157_v11 = vmax.f32 %v1043_v6, 0.0 }
 0x15f   : > { %v903_v12 = vpop.f32.mrf.mxu0  ;;  %v1047_v13 = vpop.f32.mrf.mxu1 }
 0x160   : > { %v1911_v14 = vpack.c.bf16 %v1121_v10, %v1120_v9  ;;  %v2001_v15 = vpack.c.bf16 %v1157_v11, %v1156_v4  ;;  %v1048_v16 = vadd.f32 %v2450_v23, %v1047_v13  ;;  %v904_v19 = vadd.f32 %v2450_v23, %v903_v12 }
 0x161   : > { %v905_v17 = vpop.f32.mrf.mxu0  ;;  %v1049_v18 = vpop.f32.mrf.mxu1 }
 0x162   : > { %2046 = vst [vmem:[%s2460_s29 + $0x48] sm:$0xff] %v1911_v14   ;;  %2064 = vst [vmem:[%s2460_s29 + $0xd8] sm:$0xff] %v2001_v15   ;;  %v1158_v22 = vmax.f32 %v1048_v16, 0.0  ;;  %v1122_v28 = vmax.f32 %v904_v19, 0.0 }
 0x163   : > { %v906_v20 = vpop.f32.mrf.mxu0  ;;  %v1050_v21 = vpop.f32.mrf.mxu1 }
 0x164   : > { %v907_v24 = vadd.f32 %v2450_v23, %v906_v20  ;;  %v1051_v25 = vadd.f32 %v2450_v23, %v1050_v21 }
 0x165   : > { %v908_v26 = vpop.f32.mrf.mxu0  ;;  %v1052_v27 = vpop.f32.mrf.mxu1 }
 0x166   : > { %v1123_v29 = vmax.f32 %v907_v24, 0.0  ;;  %v1159_v30 = vmax.f32 %v1051_v25, 0.0 }
 0x167   : > { %v911_v31 = vpop.f32.mrf.mxu0  ;;  %v1055_v32 = vpop.f32.mrf.mxu1 }
 0x168   : > { %v1916_v33 = vpack.c.bf16 %v1123_v29, %v1122_v28  ;;  %v2006_v34 = vpack.c.bf16 %v1159_v30, %v1158_v22  ;;  %v1056_v35 = vadd.f32 %v2450_v23, %v1055_v32  ;;  %v912_v38 = vadd.f32 %v2450_v23, %v911_v31 }
 0x169   : > { %v913_v36 = vpop.f32.mrf.mxu0  ;;  %v1057_v37 = vpop.f32.mrf.mxu1 }
 0x16a   : > { %2047 = vst [vmem:[%s2460_s29 + $0x50] sm:$0xff] %v1916_v33   ;;  %2065 = vst [vmem:[%s2460_s29 + $0xe0] sm:$0xff] %v2006_v34   ;;  %v1160_v41 = vmax.f32 %v1056_v35, 0.0  ;;  %v1124_v46 = vmax.f32 %v912_v38, 0.0 }
 0x16b   : > { %v914_v39 = vpop.f32.mrf.mxu0  ;;  %v1058_v40 = vpop.f32.mrf.mxu1 }
 0x16c   : > { %v915_v42 = vadd.f32 %v2450_v23, %v914_v39  ;;  %v1059_v43 = vadd.f32 %v2450_v23, %v1058_v40 }
 0x16d   : > { %v916_v44 = vpop.f32.mrf.mxu0  ;;  %v1060_v45 = vpop.f32.mrf.mxu1 }
 0x16e   : > { %v1125_v47 = vmax.f32 %v915_v42, 0.0  ;;  %v1161_v48 = vmax.f32 %v1059_v43, 0.0 }
 0x16f   : > { %v919_v49 = vpop.f32.mrf.mxu0  ;;  %v1063_v50 = vpop.f32.mrf.mxu1 }
 0x170   : > { %v1921_v51 = vpack.c.bf16 %v1125_v47, %v1124_v46  ;;  %v2011_v52 = vpack.c.bf16 %v1161_v48, %v1160_v41  ;;  %v1064_v53 = vadd.f32 %v2450_v23, %v1063_v50  ;;  %v920_v56 = vadd.f32 %v2450_v23, %v919_v49 }
 0x171   : > { %v921_v54 = vpop.f32.mrf.mxu0  ;;  %v1065_v55 = vpop.f32.mrf.mxu1 }
 0x172   : > { %2048 = vst [vmem:[%s2460_s29 + $0x58] sm:$0xff] %v1921_v51   ;;  %2066 = vst [vmem:[%s2460_s29 + $0xe8] sm:$0xff] %v2011_v52   ;;  %v1162_v59 = vmax.f32 %v1064_v53, 0.0  ;;  %v1126_v0 = vmax.f32 %v920_v56, 0.0 }
 0x173   : > { %v922_v57 = vpop.f32.mrf.mxu0  ;;  %v1066_v58 = vpop.f32.mrf.mxu1 }
 0x174   : > { %v923_v60 = vadd.f32 %v2450_v23, %v922_v57  ;;  %v1067_v61 = vadd.f32 %v2450_v23, %v1066_v58 }
 0x175   : > { %v924_v62 = vpop.f32.mrf.mxu0  ;;  %v1068_v63 = vpop.f32.mrf.mxu1 }
 0x176   : > { %v1127_v1 = vmax.f32 %v923_v60, 0.0  ;;  %v1163_v2 = vmax.f32 %v1067_v61, 0.0 }
 0x177   : > { %v927_v3 = vpop.f32.mrf.mxu0  ;;  %v1071_v4 = vpop.f32.mrf.mxu1 }
 0x178   : > { %v1926_v5 = vpack.c.bf16 %v1127_v1, %v1126_v0  ;;  %v2016_v6 = vpack.c.bf16 %v1163_v2, %v1162_v59  ;;  %v1072_v7 = vadd.f32 %v2450_v23, %v1071_v4  ;;  %v928_v10 = vadd.f32 %v2450_v23, %v927_v3 }
 0x179   : > { %v929_v8 = vpop.f32.mrf.mxu0  ;;  %v1073_v9 = vpop.f32.mrf.mxu1 }
 0x17a   : > { %2049 = vst [vmem:[%s2460_s29 + $0x60] sm:$0xff] %v1926_v5   ;;  %2067 = vst [vmem:[%s2460_s29 + $0xf0] sm:$0xff] %v2016_v6   ;;  %v1164_v13 = vmax.f32 %v1072_v7, 0.0  ;;  %v1128_v18 = vmax.f32 %v928_v10, 0.0 }
 0x17b   : > { %v930_v11 = vpop.f32.mrf.mxu0  ;;  %v1074_v12 = vpop.f32.mrf.mxu1 }
 0x17c   : > { %v931_v14 = vadd.f32 %v2450_v23, %v930_v11  ;;  %v1075_v15 = vadd.f32 %v2450_v23, %v1074_v12 }
 0x17d   : > { %v932_v16 = vpop.f32.mrf.mxu0  ;;  %v1076_v17 = vpop.f32.mrf.mxu1 }
 0x17e   : > { %v1129_v19 = vmax.f32 %v931_v14, 0.0  ;;  %v1165_v20 = vmax.f32 %v1075_v15, 0.0 }
 0x17f   : > { %v935_v21 = vpop.f32.mrf.mxu0  ;;  %v1079_v22 = vpop.f32.mrf.mxu1 }
 0x180   : > { %v1931_v24 = vpack.c.bf16 %v1129_v19, %v1128_v18  ;;  %v2021_v25 = vpack.c.bf16 %v1165_v20, %v1164_v13  ;;  %v1080_v26 = vadd.f32 %v2450_v23, %v1079_v22  ;;  %v936_v29 = vadd.f32 %v2450_v23, %v935_v21 }
 0x181   : > { %v937_v27 = vpop.f32.mrf.mxu0  ;;  %v1081_v28 = vpop.f32.mrf.mxu1 }
 0x182   : > { %2050 = vst [vmem:[%s2460_s29 + $0x68] sm:$0xff] %v1931_v24   ;;  %2068 = vst [vmem:[%s2460_s29 + $0xf8] sm:$0xff] %v2021_v25   ;;  %v1166_v32 = vmax.f32 %v1080_v26, 0.0  ;;  %v1130_v37 = vmax.f32 %v936_v29, 0.0 }
 0x183   : > { %v938_v30 = vpop.f32.mrf.mxu0  ;;  %v1082_v31 = vpop.f32.mrf.mxu1 }
 0x184   : > { %v939_v33 = vadd.f32 %v2450_v23, %v938_v30  ;;  %v1083_v34 = vadd.f32 %v2450_v23, %v1082_v31 }
 0x185   : > { %v940_v35 = vpop.f32.mrf.mxu0  ;;  %v1084_v36 = vpop.f32.mrf.mxu1 }
 0x186   : > { %v1131_v38 = vmax.f32 %v939_v33, 0.0  ;;  %v1167_v39 = vmax.f32 %v1083_v34, 0.0 }
 0x187   : > { %v943_v40 = vpop.f32.mrf.mxu0  ;;  %v1087_v41 = vpop.f32.mrf.mxu1 }
 0x188   : > { %v1936_v42 = vpack.c.bf16 %v1131_v38, %v1130_v37  ;;  %v2026_v43 = vpack.c.bf16 %v1167_v39, %v1166_v32  ;;  %v1088_v44 = vadd.f32 %v2450_v23, %v1087_v41  ;;  %v944_v47 = vadd.f32 %v2450_v23, %v943_v40 }
 0x189   : > { %v945_v45 = vpop.f32.mrf.mxu0  ;;  %v1089_v46 = vpop.f32.mrf.mxu1 }
 0x18a   : > { %2051 = vst [vmem:[%s2460_s29 + $0x70] sm:$0xff] %v1936_v42   ;;  %2069 = vst [vmem:[%s2460_s29 + $0x100] sm:$0xff] %v2026_v43   ;;  %v1168_v50 = vmax.f32 %v1088_v44, 0.0  ;;  %v1132_v55 = vmax.f32 %v944_v47, 0.0 }
 0x18b   : > { %v946_v48 = vpop.f32.mrf.mxu0  ;;  %v1090_v49 = vpop.f32.mrf.mxu1 }
 0x18c   : > { %v947_v51 = vadd.f32 %v2450_v23, %v946_v48  ;;  %v1091_v52 = vadd.f32 %v2450_v23, %v1090_v49 }
 0x18d   : > { %v948_v53 = vpop.f32.mrf.mxu0  ;;  %v1092_v54 = vpop.f32.mrf.mxu1 }
 0x18e   : > { %v1133_v56 = vmax.f32 %v947_v51, 0.0  ;;  %v1169_v57 = vmax.f32 %v1091_v52, 0.0 }
 0x18f   : > { %v951_v58 = vpop.f32.mrf.mxu0  ;;  %v1095_v59 = vpop.f32.mrf.mxu1 }
 0x190   : > { %v1941_v60 = vpack.c.bf16 %v1133_v56, %v1132_v55  ;;  %v2031_v61 = vpack.c.bf16 %v1169_v57, %v1168_v50  ;;  %v1096_v62 = vadd.f32 %v2450_v23, %v1095_v59  ;;  %v952_v1 = vadd.f32 %v2450_v23, %v951_v58 }
 0x191   : > { %v953_v63 = vpop.f32.mrf.mxu0  ;;  %v1097_v0 = vpop.f32.mrf.mxu1 }
 0x192   : > { %2052 = vst [vmem:[%s2460_s29 + $0x78] sm:$0xff] %v1941_v60   ;;  %2070 = vst [vmem:[%s2460_s29 + $0x108] sm:$0xff] %v2031_v61   ;;  %v1170_v4 = vmax.f32 %v1096_v62, 0.0  ;;  %v1134_v9 = vmax.f32 %v952_v1, 0.0 }
 0x193   : > { %v954_v2 = vpop.f32.mrf.mxu0  ;;  %v1098_v3 = vpop.f32.mrf.mxu1 }
 0x194   : > { %v955_v5 = vadd.f32 %v2450_v23, %v954_v2  ;;  %v1099_v6 = vadd.f32 %v2450_v23, %v1098_v3 }
 0x195   : > { %v956_v7 = vpop.f32.mrf.mxu0  ;;  %v1100_v8 = vpop.f32.mrf.mxu1 }
 0x196   : > { %v1135_v10 = vmax.f32 %v955_v5, 0.0  ;;  %v1171_v11 = vmax.f32 %v1099_v6, 0.0 }
 0x197   : > { %v959_v12 = vpop.f32.mrf.mxu0 }
 0x198   : > { %v1946_v13 = vpack.c.bf16 %v1135_v10, %v1134_v9  ;;  %v2036_v14 = vpack.c.bf16 %v1171_v11, %v1170_v4  ;;  %v960_v16 = vadd.f32 %v2450_v23, %v959_v12 }
 0x199   : > { %v961_v15 = vpop.f32.mrf.mxu0 }
 0x19a   : > { %2053 = vst [vmem:[%s2460_s29 + $0x80] sm:$0xff] %v1946_v13   ;;  %2071 = vst [vmem:[%s2460_s29 + $0x110] sm:$0xff] %v2036_v14   ;;  %v1136_v20 = vmax.f32 %v960_v16, 0.0 }
 0x19b   : > { %v962_v17 = vpop.f32.mrf.mxu0 }
 0x19c   : > { %v963_v18 = vadd.f32 %v2450_v23, %v962_v17 }
 0x19d   : > { %v964_v19 = vpop.f32.mrf.mxu0 }
 0x19e   : > { %v1137_v21 = vmax.f32 %v963_v18, 0.0 }
 0x1a0   : > { %v1951_v22 = vpack.c.bf16 %v1137_v21, %v1136_v20 }
 0x1a2   : > { %2054 = vst [vmem:[%s2460_s29 + $0x88] sm:$0xff] %v1951_v22  }
 0x1a3 PF: > { %s13_s14 = sadd.s32 1, %s2274_s14   ;;  %s2576_s12 = smov %s2270_s13 }
 0x1a4   : > { %p10_p5 = scmp.ge.s32.totalorder %s13_s14, 6   ;;  %s2577_s13 = smov %s2579_s15 }
 0x1a6   :  { %12 = sbr.rel (!%p10_p5) target bundleno = 2 (0x2), region = 65 }

// kernel: _lambda_.10
= control target key start
LH: loop header
LB: loop body
LE: loop exit
PB: predicated region body
PF: predicated region fallthrough
CT: control target
= control target key end

     0   :  { %s3806_s12 = smov 0   ;;  %s4271_s0 = inlined_call_operand.vmem [shape: bf16[2240,256], index: 0, kind: input, shape index: {}]   ;;  %s4272_s1 = inlined_call_operand.vmem [shape: bf16[256,128], index: 1, kind: input, shape index: {}]   ;;  %s4273_s2 = inlined_call_operand.vmem [shape: f32[1,128], index: 2, kind: input, shape index: {}]   ;;  %s4274_s3 = inlined_call_operand.vmem [shape: bf16[2240,128], index: 3, kind: output, shape index: {}]  }
   0x1 LB: > { %s2642_s13 = sadd.s32 4294967295, %s3783_s12   ;;  %p2646_p0 = scmp.ge.s32.totalorder %s3783_s12, 1  ;;  %s3783_s12 = sphi %s3806_s12, %s13_s12  }
   0x2   : > { %p139_p1 = scmp.lt.s32.totalorder %s3783_s12, 3 }
   0x4   : > { %p140_p2 = pnand %p2646_p0, %p139_p1 }
   0x5   : > { %s164_s16 = smul.u32 (!%p140_p2), 140, %s2642_s13 }
   0x6   : > { %143 = sbr.rel (%p140_p2) target bundleno = 552 (0x228), region = 32 }
   0x7   : > { %p165_p3 = scmp.lt.s32.totalorder (!%p140_p2), %s164_s16, 279 }
   0xb   : > { %v3550_v0 = vld [vmem:[%s4272_s1 + $0x38] sm:$0xff]   ;;  %v3785_v1 = vmov 0   ;;  %v3551_v2 = vld [vmem:[%s4272_s1 + $0x30] sm:$0xff]   ;;  %v3552_v3 = vld [vmem:[%s4272_s1 + $0x28] sm:$0xff]   ;;  %s4276_s16 = smov (!%p165_p3, %s164_s16), 279 }
   0xc   : > { %1153 = vmatprep.subr.bf16.mxu0 %v3785_v1  ;;  %3509 = vmatprep.subr.bf16.mxu1 %v3785_v1  ;;  %v3553_v4 = vld [vmem:[%s4272_s1 + $0x20] sm:$0xff]   ;;  %s2949_s23 = sshll.u32 %s4276_s16, 3  ;;  %v3554_v5 = vld [vmem:[%s4272_s1 + $0x18] sm:$0xff]   ;;  %v3555_v7 = vld [vmem:[%s4272_s1 + $0x10] sm:$0xff]   ;;  %s2649_s29 = sshll.u32 %s4276_s16, 2 }
   0xd   : > { %1154 = vmatpush1.bf16.msra.mxu0 %v3550_v0  ;;  %3525 = vmatpush1.bf16.msra.mxu1 %v3550_v0  ;;  %s3843_s28 = scalar_lea.vmem %s4271_s0, %s2949_s23  ;;  %v3556_v9 = vld [vmem:[%s4272_s1 + $0x8] sm:$0xff]   ;;  %v3557_v10 = vld [vmem:[%s4272_s1] sm:$0xff]   ;;  %v3558_v11 = vld [vmem:[%s4272_s1 + $0x78] sm:$0xff]   ;;  %s4021_s5 = scalar_lea.vmem %s4274_s3, %s2649_s29 }
   0xe   : > { %1155 = vmatprep.subr.bf16.mxu0 %v3785_v1  ;;  %3510 = vmatprep.subr.bf16.mxu1 %v3785_v1  ;;  %v3568_v6 = vld [vmem:[%s3843_s28 + $0x4] ss:$8 sps:$4 sm:$0xff]   ;;  %v3571_v8 = vld [vmem:[%s3843_s28 + $0x234] ss:$8 sps:$4 sm:$0xff]   ;;  %v3566_v19 = vld [vmem:[%s3843_s28] ss:$8 sps:$4 sm:$0xff]  }
   0xf   : > { %1185 = vmatprep.mubr.bf16.mxu0 %v3568_v6  ;;  %1465 = vmatprep.mubr.bf16.mxu1 %v3571_v8  ;;  %v3559_v12 = vld [vmem:[%s4272_s1 + $0x70] sm:$0xff]   ;;  %v3560_v13 = vld [vmem:[%s4272_s1 + $0x68] sm:$0xff]   ;;  %v3561_v14 = vld [vmem:[%s4272_s1 + $0x60] sm:$0xff]  }
  0x10   : > { %v3562_v15 = vld [vmem:[%s4272_s1 + $0x58] sm:$0xff]   ;;  %v3563_v16 = vld [vmem:[%s4272_s1 + $0x50] sm:$0xff]   ;;  %v3564_v17 = vld [vmem:[%s4272_s1 + $0x48] sm:$0xff]  }
  0x11   : > { %1156 = vmatpush1.bf16.msra.mxu0 %v3551_v2  ;;  %3526 = vmatpush1.bf16.msra.mxu1 %v3551_v2  ;;  %v3565_v18 = vld [vmem:[%s4272_s1 + $0x40] sm:$0xff]   ;;  %v3569_v20 = vld [vmem:[%s3843_s28 + $0x230] ss:$8 sps:$4 sm:$0xff]   ;;  %v3572_v21 = vld [vmem:[%s3843_s28 + $0x14] ss:$8 sps:$4 sm:$0xff]  }
  0x12   : > { %1157 = vmatprep.subr.bf16.mxu0 %v3785_v1  ;;  %3511 = vmatprep.subr.bf16.mxu1 %v3785_v1  ;;  %v3574_v22 = vld [vmem:[%s3843_s28 + $0x244] ss:$8 sps:$4 sm:$0xff]   ;;  %v3576_v23 = vld [vmem:[%s3843_s28 + $0x10] ss:$8 sps:$4 sm:$0xff]   ;;  %v3577_v24 = vld [vmem:[%s3843_s28 + $0x240] ss:$8 sps:$4 sm:$0xff]  }
  0x13   : > { %v3578_v25 = vld [vmem:[%s3843_s28 + $0x24] ss:$8 sps:$4 sm:$0xff]   ;;  %v3580_v26 = vld [vmem:[%s3843_s28 + $0x254] ss:$8 sps:$4 sm:$0xff]   ;;  %v3582_v27 = vld [vmem:[%s3843_s28 + $0x20] ss:$8 sps:$4 sm:$0xff]  }
  0x14   : > { %v3583_v28 = vld [vmem:[%s3843_s28 + $0x250] ss:$8 sps:$4 sm:$0xff]   ;;  %v3584_v29 = vld [vmem:[%s3843_s28 + $0x34] ss:$8 sps:$4 sm:$0xff]   ;;  %v3586_v30 = vld [vmem:[%s3843_s28 + $0x264] ss:$8 sps:$4 sm:$0xff]  }
  0x15   : > { %1158 = vmatpush1.bf16.msra.mxu0 %v3552_v3  ;;  %3527 = vmatpush1.bf16.msra.mxu1 %v3552_v3  ;;  %v3588_v31 = vld [vmem:[%s3843_s28 + $0x30] ss:$8 sps:$4 sm:$0xff]   ;;  %v3589_v32 = vld [vmem:[%s3843_s28 + $0x260] ss:$8 sps:$4 sm:$0xff]   ;;  %v3590_v33 = vld [vmem:[%s3843_s28 + $0x44] ss:$8 sps:$4 sm:$0xff]  }
  0x16   : > { %1159 = vmatprep.subr.bf16.mxu0 %v3785_v1  ;;  %3512 = vmatprep.subr.bf16.mxu1 %v3785_v1  ;;  %v3592_v34 = vld [vmem:[%s3843_s28 + $0x274] ss:$8 sps:$4 sm:$0xff]   ;;  %v3594_v35 = vld [vmem:[%s3843_s28 + $0x40] ss:$8 sps:$4 sm:$0xff]   ;;  %v3595_v36 = vld [vmem:[%s3843_s28 + $0x270] ss:$8 sps:$4 sm:$0xff]  }
  0x17   : > { %v3596_v37 = vld [vmem:[%s3843_s28 + $0x54] ss:$8 sps:$4 sm:$0xff]   ;;  %v3598_v38 = vld [vmem:[%s3843_s28 + $0x284] ss:$8 sps:$4 sm:$0xff]   ;;  %v3600_v39 = vld [vmem:[%s3843_s28 + $0x50] ss:$8 sps:$4 sm:$0xff]  }
  0x18   : > { %v3601_v40 = vld [vmem:[%s3843_s28 + $0x280] ss:$8 sps:$4 sm:$0xff]   ;;  %v3602_v41 = vld [vmem:[%s3843_s28 + $0x64] ss:$8 sps:$4 sm:$0xff]   ;;  %v3604_v42 = vld [vmem:[%s3843_s28 + $0x294] ss:$8 sps:$4 sm:$0xff]  }
  0x19   : > { %1160 = vmatpush1.bf16.msra.mxu0 %v3553_v4  ;;  %3528 = vmatpush1.bf16.msra.mxu1 %v3553_v4  ;;  %v3606_v43 = vld [vmem:[%s3843_s28 + $0x60] ss:$8 sps:$4 sm:$0xff]   ;;  %v3607_v44 = vld [vmem:[%s3843_s28 + $0x290] ss:$8 sps:$4 sm:$0xff]   ;;  %v3608_v45 = vld [vmem:[%s3843_s28 + $0x74] ss:$8 sps:$4 sm:$0xff]  }
  0x1a   : > { %1161 = vmatprep.subr.bf16.mxu0 %v3785_v1  ;;  %3513 = vmatprep.subr.bf16.mxu1 %v3785_v1  ;;  %v3610_v46 = vld [vmem:[%s3843_s28 + $0x2a4] ss:$8 sps:$4 sm:$0xff]   ;;  %v3612_v47 = vld [vmem:[%s3843_s28 + $0x70] ss:$8 sps:$4 sm:$0xff]   ;;  %v3613_v48 = vld [vmem:[%s3843_s28 + $0x2a0] ss:$8 sps:$4 sm:$0xff]  }
  0x1b   : > { %v3614_v49 = vld [vmem:[%s3843_s28 + $0x84] ss:$8 sps:$4 sm:$0xff]   ;;  %v3616_v50 = vld [vmem:[%s3843_s28 + $0x2b4] ss:$8 sps:$4 sm:$0xff]   ;;  %v3618_v51 = vld [vmem:[%s3843_s28 + $0x80] ss:$8 sps:$4 sm:$0xff]  }
  0x1c   : > { %v3619_v52 = vld [vmem:[%s3843_s28 + $0x2b0] ss:$8 sps:$4 sm:$0xff]   ;;  %v3620_v53 = vld [vmem:[%s3843_s28 + $0x94] ss:$8 sps:$4 sm:$0xff]   ;;  %v3622_v54 = vld [vmem:[%s3843_s28 + $0x2c4] ss:$8 sps:$4 sm:$0xff]  }
  0x1d   : > { %1162 = vmatpush1.bf16.msra.mxu0 %v3554_v5  ;;  %3529 = vmatpush1.bf16.msra.mxu1 %v3554_v5  ;;  %v3624_v55 = vld [vmem:[%s3843_s28 + $0x90] ss:$8 sps:$4 sm:$0xff]   ;;  %v3625_v56 = vld [vmem:[%s3843_s28 + $0x2c0] ss:$8 sps:$4 sm:$0xff]   ;;  %v3626_v57 = vld [vmem:[%s3843_s28 + $0xa4] ss:$8 sps:$4 sm:$0xff]  }
  0x1e   : > { %1163 = vmatprep.subr.bf16.mxu0 %v3785_v1  ;;  %3514 = vmatprep.subr.bf16.mxu1 %v3785_v1  ;;  %v3628_v58 = vld [vmem:[%s3843_s28 + $0x2d4] ss:$8 sps:$4 sm:$0xff]   ;;  %v3630_v59 = vld [vmem:[%s3843_s28 + $0xa0] ss:$8 sps:$4 sm:$0xff]   ;;  %v3631_v60 = vld [vmem:[%s3843_s28 + $0x2d0] ss:$8 sps:$4 sm:$0xff]  }
  0x1f   : > { %v3632_v61 = vld [vmem:[%s3843_s28 + $0xb4] ss:$8 sps:$4 sm:$0xff]   ;;  %v3634_v62 = vld [vmem:[%s3843_s28 + $0x2e4] ss:$8 sps:$4 sm:$0xff]   ;;  %v3636_v63 = vld [vmem:[%s3843_s28 + $0xb0] ss:$8 sps:$4 sm:$0xff]  }
  0x20   : > { %v3637_v0 = vld [vmem:[%s3843_s28 + $0x2e0] ss:$8 sps:$4 sm:$0xff]   ;;  %v3640_v2 = vld [vmem:[%s3843_s28 + $0x2f4] ss:$8 sps:$4 sm:$0xff]   ;;  %v3643_v4 = vld [vmem:[%s3843_s28 + $0x2f0] ss:$8 sps:$4 sm:$0xff]  }
  0x21   : > { %1164 = vmatpush1.bf16.msra.mxu0 %v3555_v7  ;;  %3530 = vmatpush1.bf16.msra.mxu1 %v3555_v7  ;;  %v3642_v3 = vld [vmem:[%s3843_s28 + $0xc0] ss:$8 sps:$4 sm:$0xff]   ;;  %v3644_v5 = vld [vmem:[%s3843_s28 + $0xd4] ss:$8 sps:$4 sm:$0xff]   ;;  %v3646_v6 = vld [vmem:[%s3843_s28 + $0x304] ss:$8 sps:$4 sm:$0xff]  }
  0x22   : > { %1165 = vmatprep.subr.bf16.mxu0 %v3785_v1  ;;  %3515 = vmatprep.subr.bf16.mxu1 %v3785_v1  ;;  %v3648_v7 = vld [vmem:[%s3843_s28 + $0xd0] ss:$8 sps:$4 sm:$0xff]   ;;  %v3649_v8 = vld [vmem:[%s3843_s28 + $0x300] ss:$8 sps:$4 sm:$0xff]  }
  0x25   : > { %1166 = vmatpush1.bf16.msra.mxu0 %v3556_v9  ;;  %3531 = vmatpush1.bf16.msra.mxu1 %v3556_v9  ;;  %v3650_v9 = vld [vmem:[%s3843_s28 + $0xe4] ss:$8 sps:$4 sm:$0xff]  }
  0x26   : > { %1167 = vmatprep.subr.bf16.mxu0 %v3785_v1  ;;  %3516 = vmatprep.subr.bf16.mxu1 %v3785_v1 }
  0x29   : > { %1168 = vmatpush1.bf16.msra.mxu0 %v3557_v10  ;;  %3532 = vmatpush1.bf16.msra.mxu1 %v3557_v10  ;;  %v3652_v10 = vld [vmem:[%s3843_s28 + $0x314] ss:$8 sps:$4 sm:$0xff]  }
  0x2a   : > { %1169 = vmatprep.subr.bf16.mxu0 %v3785_v1  ;;  %3517 = vmatprep.subr.bf16.mxu1 %v3785_v1 }
  0x2d   : > { %1170 = vmatpush2.bf16.msra.mxu0 %v3558_v11  ;;  %3533 = vmatpush2.bf16.msra.mxu1 %v3558_v11  ;;  %v3654_v11 = vld [vmem:[%s3843_s28 + $0xe0] ss:$8 sps:$4 sm:$0xff]  }
  0x2e   : > { %1171 = vmatprep.subr.bf16.mxu0 %v3785_v1  ;;  %3518 = vmatprep.subr.bf16.mxu1 %v3785_v1 }
  0x31   : > { %1172 = vmatpush2.bf16.msra.mxu0 %v3559_v12  ;;  %3534 = vmatpush2.bf16.msra.mxu1 %v3559_v12  ;;  %v3655_v12 = vld [vmem:[%s3843_s28 + $0x310] ss:$8 sps:$4 sm:$0xff]  }
  0x32   : > { %1173 = vmatprep.subr.bf16.mxu0 %v3785_v1  ;;  %3519 = vmatprep.subr.bf16.mxu1 %v3785_v1 }
  0x35   : > { %1174 = vmatpush2.bf16.msra.mxu0 %v3560_v13  ;;  %3535 = vmatpush2.bf16.msra.mxu1 %v3560_v13  ;;  %v3656_v13 = vld [vmem:[%s3843_s28 + $0xf4] ss:$8 sps:$4 sm:$0xff]  }
  0x36   : > { %1175 = vmatprep.subr.bf16.mxu0 %v3785_v1  ;;  %3520 = vmatprep.subr.bf16.mxu1 %v3785_v1 }
  0x39   : > { %1176 = vmatpush2.bf16.msra.mxu0 %v3561_v14  ;;  %3536 = vmatpush2.bf16.msra.mxu1 %v3561_v14  ;;  %v3658_v14 = vld [vmem:[%s3843_s28 + $0x324] ss:$8 sps:$4 sm:$0xff]  }
  0x3a   : > { %1177 = vmatprep.subr.bf16.mxu0 %v3785_v1  ;;  %3521 = vmatprep.subr.bf16.mxu1 %v3785_v1 }
  0x3d   : > { %1178 = vmatpush2.bf16.msra.mxu0 %v3562_v15  ;;  %3537 = vmatpush2.bf16.msra.mxu1 %v3562_v15  ;;  %v3660_v15 = vld [vmem:[%s3843_s28 + $0xf0] ss:$8 sps:$4 sm:$0xff]  }
  0x3e   : > { %1179 = vmatprep.subr.bf16.mxu0 %v3785_v1  ;;  %3522 = vmatprep.subr.bf16.mxu1 %v3785_v1 }
  0x41   : > { %1180 = vmatpush2.bf16.msra.mxu0 %v3563_v16  ;;  %3538 = vmatpush2.bf16.msra.mxu1 %v3563_v16  ;;  %v3661_v16 = vld [vmem:[%s3843_s28 + $0x320] ss:$8 sps:$4 sm:$0xff]  }
  0x42   : > { %1181 = vmatprep.subr.bf16.mxu0 %v3785_v1  ;;  %3523 = vmatprep.subr.bf16.mxu1 %v3785_v1 }
  0x45   : > { %1182 = vmatpush2.bf16.msra.mxu0 %v3564_v17  ;;  %3539 = vmatpush2.bf16.msra.mxu1 %v3564_v17  ;;  %v3662_v17 = vld [vmem:[%s3843_s28 + $0x104] ss:$8 sps:$4 sm:$0xff]  }
  0x46   : > { %1183 = vmatprep.subr.bf16.mxu0 %v3785_v1  ;;  %3524 = vmatprep.subr.bf16.mxu1 %v3785_v1  ;;  %v3638_v1 = vld [vmem:[%s3843_s28 + $0xc4] ss:$8 sps:$4 sm:$0xff]  }
  0x49   : > { %1184 = vmatpush2.bf16.msra.mxu0 %v3565_v18  ;;  %3540 = vmatpush2.bf16.msra.mxu1 %v3565_v18  ;;  %v3664_v18 = vld [vmem:[%s3843_s28 + $0x334] ss:$8 sps:$4 sm:$0xff]  }
  0x4c   : > { %1186 = vmatmul.mubr.bf16.vlgmr.msra.gmra.mxu0 %v3566_v19  ;;  %1466 = vmatmul.mubr.bf16.vlgmr.msra.gmra.mxu1 %v3569_v20  ;;  %v3666_v19 = vld [vmem:[%s3843_s28 + $0x100] ss:$8 sps:$4 sm:$0xff]   ;;  %v3667_v20 = vld [vmem:[%s3843_s28 + $0x330] ss:$8 sps:$4 sm:$0xff]  }
  0x4d   : > { %1193 = vmatprep.mubr.bf16.mxu0 %v3572_v21  ;;  %1473 = vmatprep.mubr.bf16.mxu1 %v3574_v22  ;;  %v3668_v21 = vld [vmem:[%s3843_s28 + $0x114] ss:$8 sps:$4 sm:$0xff]   ;;  %v3670_v22 = vld [vmem:[%s3843_s28 + $0x344] ss:$8 sps:$4 sm:$0xff]  }
  0x54   : > { %1194 = vmatmul.mubr.bf16.gmra.mxu0 %v3576_v23  ;;  %1474 = vmatmul.mubr.bf16.gmra.mxu1 %v3577_v24  ;;  %v3672_v23 = vld [vmem:[%s3843_s28 + $0x110] ss:$8 sps:$4 sm:$0xff]   ;;  %v3673_v24 = vld [vmem:[%s3843_s28 + $0x340] ss:$8 sps:$4 sm:$0xff]  }
  0x55   : > { %1201 = vmatprep.mubr.bf16.mxu0 %v3578_v25  ;;  %1481 = vmatprep.mubr.bf16.mxu1 %v3580_v26  ;;  %v3674_v25 = vld [vmem:[%s3843_s28 + $0x124] ss:$8 sps:$4 sm:$0xff]   ;;  %v3676_v26 = vld [vmem:[%s3843_s28 + $0x354] ss:$8 sps:$4 sm:$0xff]  }
  0x5c   : > { %1202 = vmatmul.mubr.bf16.gmra.mxu0 %v3582_v27  ;;  %1482 = vmatmul.mubr.bf16.gmra.mxu1 %v3583_v28  ;;  %v3678_v27 = vld [vmem:[%s3843_s28 + $0x120] ss:$8 sps:$4 sm:$0xff]   ;;  %v3679_v28 = vld [vmem:[%s3843_s28 + $0x350] ss:$8 sps:$4 sm:$0xff]  }
  0x5d   : > { %1209 = vmatprep.mubr.bf16.mxu0 %v3584_v29  ;;  %1489 = vmatprep.mubr.bf16.mxu1 %v3586_v30  ;;  %v3680_v29 = vld [vmem:[%s3843_s28 + $0x134] ss:$8 sps:$4 sm:$0xff]   ;;  %v3682_v30 = vld [vmem:[%s3843_s28 + $0x364] ss:$8 sps:$4 sm:$0xff]  }
  0x64   : > { %1210 = vmatmul.mubr.bf16.gmra.mxu0 %v3588_v31  ;;  %1490 = vmatmul.mubr.bf16.gmra.mxu1 %v3589_v32  ;;  %v3684_v31 = vld [vmem:[%s3843_s28 + $0x130] ss:$8 sps:$4 sm:$0xff]   ;;  %v3685_v32 = vld [vmem:[%s3843_s28 + $0x360] ss:$8 sps:$4 sm:$0xff]  }
  0x65   : > { %1217 = vmatprep.mubr.bf16.mxu0 %v3590_v33  ;;  %1497 = vmatprep.mubr.bf16.mxu1 %v3592_v34  ;;  %v3686_v33 = vld [vmem:[%s3843_s28 + $0x144] ss:$8 sps:$4 sm:$0xff]   ;;  %v3688_v34 = vld [vmem:[%s3843_s28 + $0x374] ss:$8 sps:$4 sm:$0xff]  }
  0x6c   : > { %1218 = vmatmul.mubr.bf16.gmra.mxu0 %v3594_v35  ;;  %1498 = vmatmul.mubr.bf16.gmra.mxu1 %v3595_v36  ;;  %v3690_v35 = vld [vmem:[%s3843_s28 + $0x140] ss:$8 sps:$4 sm:$0xff]   ;;  %v3691_v36 = vld [vmem:[%s3843_s28 + $0x370] ss:$8 sps:$4 sm:$0xff]  }
  0x6d   : > { %1225 = vmatprep.mubr.bf16.mxu0 %v3596_v37  ;;  %1505 = vmatprep.mubr.bf16.mxu1 %v3598_v38  ;;  %v3692_v37 = vld [vmem:[%s3843_s28 + $0x154] ss:$8 sps:$4 sm:$0xff]   ;;  %v3694_v38 = vld [vmem:[%s3843_s28 + $0x384] ss:$8 sps:$4 sm:$0xff]  }
  0x74   : > { %1226 = vmatmul.mubr.bf16.gmra.mxu0 %v3600_v39  ;;  %1506 = vmatmul.mubr.bf16.gmra.mxu1 %v3601_v40  ;;  %v3696_v39 = vld [vmem:[%s3843_s28 + $0x150] ss:$8 sps:$4 sm:$0xff]   ;;  %v3697_v40 = vld [vmem:[%s3843_s28 + $0x380] ss:$8 sps:$4 sm:$0xff]  }
  0x75   : > { %1233 = vmatprep.mubr.bf16.mxu0 %v3602_v41  ;;  %1513 = vmatprep.mubr.bf16.mxu1 %v3604_v42  ;;  %v3698_v41 = vld [vmem:[%s3843_s28 + $0x164] ss:$8 sps:$4 sm:$0xff]   ;;  %v3700_v42 = vld [vmem:[%s3843_s28 + $0x394] ss:$8 sps:$4 sm:$0xff]  }
  0x7c   : > { %1234 = vmatmul.mubr.bf16.gmra.mxu0 %v3606_v43  ;;  %1514 = vmatmul.mubr.bf16.gmra.mxu1 %v3607_v44  ;;  %v3702_v43 = vld [vmem:[%s3843_s28 + $0x160] ss:$8 sps:$4 sm:$0xff]   ;;  %v3703_v44 = vld [vmem:[%s3843_s28 + $0x390] ss:$8 sps:$4 sm:$0xff]  }
  0x7d   : > { %1241 = vmatprep.mubr.bf16.mxu0 %v3608_v45  ;;  %1521 = vmatprep.mubr.bf16.mxu1 %v3610_v46  ;;  %v3704_v45 = vld [vmem:[%s3843_s28 + $0x174] ss:$8 sps:$4 sm:$0xff]   ;;  %v3706_v46 = vld [vmem:[%s3843_s28 + $0x3a4] ss:$8 sps:$4 sm:$0xff]  }
  0x84   : > { %1242 = vmatmul.mubr.bf16.gmra.mxu0 %v3612_v47  ;;  %1522 = vmatmul.mubr.bf16.gmra.mxu1 %v3613_v48  ;;  %v3708_v47 = vld [vmem:[%s3843_s28 + $0x170] ss:$8 sps:$4 sm:$0xff]   ;;  %v3709_v48 = vld [vmem:[%s3843_s28 + $0x3a0] ss:$8 sps:$4 sm:$0xff]  }
  0x85   : > { %1249 = vmatprep.mubr.bf16.mxu0 %v3614_v49  ;;  %1529 = vmatprep.mubr.bf16.mxu1 %v3616_v50  ;;  %v3710_v49 = vld [vmem:[%s3843_s28 + $0x184] ss:$8 sps:$4 sm:$0xff]   ;;  %v3712_v50 = vld [vmem:[%s3843_s28 + $0x3b4] ss:$8 sps:$4 sm:$0xff]  }
  0x8c   : > { %1250 = vmatmul.mubr.bf16.gmra.mxu0 %v3618_v51  ;;  %1530 = vmatmul.mubr.bf16.gmra.mxu1 %v3619_v52  ;;  %v3714_v51 = vld [vmem:[%s3843_s28 + $0x180] ss:$8 sps:$4 sm:$0xff]   ;;  %v3715_v52 = vld [vmem:[%s3843_s28 + $0x3b0] ss:$8 sps:$4 sm:$0xff]  }
  0x8d   : > { %1257 = vmatprep.mubr.bf16.mxu0 %v3620_v53  ;;  %1537 = vmatprep.mubr.bf16.mxu1 %v3622_v54  ;;  %v3716_v53 = vld [vmem:[%s3843_s28 + $0x194] ss:$8 sps:$4 sm:$0xff]   ;;  %v3718_v54 = vld [vmem:[%s3843_s28 + $0x3c4] ss:$8 sps:$4 sm:$0xff]  }
  0x94   : > { %1258 = vmatmul.mubr.bf16.gmra.mxu0 %v3624_v55  ;;  %1538 = vmatmul.mubr.bf16.gmra.mxu1 %v3625_v56  ;;  %v4007_v55 = vld [vmem:[%s4273_s2] ss:$0 sm:$0xff] }
  0x95   : > { %1265 = vmatprep.mubr.bf16.mxu0 %v3626_v57  ;;  %1545 = vmatprep.mubr.bf16.mxu1 %v3628_v58 }
  0x9c   : > { %1266 = vmatmul.mubr.bf16.gmra.mxu0 %v3630_v59  ;;  %1546 = vmatmul.mubr.bf16.gmra.mxu1 %v3631_v60 }
  0x9d   : > { %1273 = vmatprep.mubr.bf16.mxu0 %v3632_v61  ;;  %1553 = vmatprep.mubr.bf16.mxu1 %v3634_v62 }
  0xa4   : > { %1274 = vmatmul.mubr.bf16.gmra.mxu0 %v3636_v63  ;;  %1554 = vmatmul.mubr.bf16.gmra.mxu1 %v3637_v0  ;;  %v3720_v0 = vld [vmem:[%s3843_s28 + $0x190] ss:$8 sps:$4 sm:$0xff]  }
  0xa5   : > { %1281 = vmatprep.mubr.bf16.mxu0 %v3638_v1  ;;  %1561 = vmatprep.mubr.bf16.mxu1 %v3640_v2  ;;  %v3721_v1 = vld [vmem:[%s3843_s28 + $0x3c0] ss:$8 sps:$4 sm:$0xff]  }
  0xac   : > { %1282 = vmatmul.mubr.bf16.gmra.mxu0 %v3642_v3  ;;  %1562 = vmatmul.mubr.bf16.gmra.mxu1 %v3643_v4  ;;  %v3722_v4 = vld [vmem:[%s3843_s28 + $0x1a4] ss:$8 sps:$4 sm:$0xff]  }
  0xad   : > { %1289 = vmatprep.mubr.bf16.mxu0 %v3644_v5  ;;  %1569 = vmatprep.mubr.bf16.mxu1 %v3646_v6 }
  0xb4   : > { %1290 = vmatmul.mubr.bf16.gmra.mxu0 %v3648_v7  ;;  %1570 = vmatmul.mubr.bf16.gmra.mxu1 %v3649_v8  ;;  %v3724_v7 = vld [vmem:[%s3843_s28 + $0x3d4] ss:$8 sps:$4 sm:$0xff]  }
  0xb5   : > { %1297 = vmatprep.mubr.bf16.mxu0 %v3650_v9  ;;  %1577 = vmatprep.mubr.bf16.mxu1 %v3652_v10 }
  0xbc   : > { %1298 = vmatmul.mubr.bf16.gmra.mxu0 %v3654_v11  ;;  %1578 = vmatmul.mubr.bf16.gmra.mxu1 %v3655_v12 }
  0xbd   : > { %1305 = vmatprep.mubr.bf16.mxu0 %v3656_v13  ;;  %1585 = vmatprep.mubr.bf16.mxu1 %v3658_v14 }
  0xc4   : > { %1306 = vmatmul.mubr.bf16.gmra.mxu0 %v3660_v15  ;;  %1586 = vmatmul.mubr.bf16.gmra.mxu1 %v3661_v16 }
  0xc5   : > { %1313 = vmatprep.mubr.bf16.mxu0 %v3662_v17  ;;  %1593 = vmatprep.mubr.bf16.mxu1 %v3664_v18 }
  0xcc   : > { %1314 = vmatmul.mubr.bf16.gmra.mxu0 %v3666_v19  ;;  %1594 = vmatmul.mubr.bf16.gmra.mxu1 %v3667_v20 }
  0xcd   : > { %1321 = vmatprep.mubr.bf16.mxu0 %v3668_v21  ;;  %1601 = vmatprep.mubr.bf16.mxu1 %v3670_v22  ;;  %v3726_v22 = vld [vmem:[%s3843_s28 + $0x1a0] ss:$8 sps:$4 sm:$0xff]  }
  0xd4   : > { %1322 = vmatmul.mubr.bf16.gmra.mxu0 %v3672_v23  ;;  %1602 = vmatmul.mubr.bf16.gmra.mxu1 %v3673_v24  ;;  %v3727_v23 = vld [vmem:[%s3843_s28 + $0x3d0] ss:$8 sps:$4 sm:$0xff]  }
  0xd5   : > { %1329 = vmatprep.mubr.bf16.mxu0 %v3674_v25  ;;  %1609 = vmatprep.mubr.bf16.mxu1 %v3676_v26  ;;  %v3728_v26 = vld [vmem:[%s3843_s28 + $0x1b4] ss:$8 sps:$4 sm:$0xff]  }
  0xdc   : > { %1330 = vmatmul.mubr.bf16.gmra.mxu0 %v3678_v27  ;;  %1610 = vmatmul.mubr.bf16.gmra.mxu1 %v3679_v28 }
  0xdd   : > { %1337 = vmatprep.mubr.bf16.mxu0 %v3680_v29  ;;  %1617 = vmatprep.mubr.bf16.mxu1 %v3682_v30  ;;  %v3730_v29 = vld [vmem:[%s3843_s28 + $0x3e4] ss:$8 sps:$4 sm:$0xff]  }
  0xe4   : > { %1338 = vmatmul.mubr.bf16.gmra.mxu0 %v3684_v31  ;;  %1618 = vmatmul.mubr.bf16.gmra.mxu1 %v3685_v32 }
  0xe5   : > { %1345 = vmatprep.mubr.bf16.mxu0 %v3686_v33  ;;  %1625 = vmatprep.mubr.bf16.mxu1 %v3688_v34 }
  0xec   : > { %1346 = vmatmul.mubr.bf16.gmra.mxu0 %v3690_v35  ;;  %1626 = vmatmul.mubr.bf16.gmra.mxu1 %v3691_v36 }
  0xed   : > { %1353 = vmatprep.mubr.bf16.mxu0 %v3692_v37  ;;  %1633 = vmatprep.mubr.bf16.mxu1 %v3694_v38 }
  0xf4   : > { %1354 = vmatmul.mubr.bf16.gmra.mxu0 %v3696_v39  ;;  %1634 = vmatmul.mubr.bf16.gmra.mxu1 %v3697_v40 }
  0xf5   : > { %1361 = vmatprep.mubr.bf16.mxu0 %v3698_v41  ;;  %1641 = vmatprep.mubr.bf16.mxu1 %v3700_v42 }
  0xfc   : > { %1362 = vmatmul.mubr.bf16.gmra.mxu0 %v3702_v43  ;;  %1642 = vmatmul.mubr.bf16.gmra.mxu1 %v3703_v44  ;;  %v3732_v44 = vld [vmem:[%s3843_s28 + $0x1b0] ss:$8 sps:$4 sm:$0xff]  }
  0xfd   : > { %1369 = vmatprep.mubr.bf16.mxu0 %v3704_v45  ;;  %1649 = vmatprep.mubr.bf16.mxu1 %v3706_v46  ;;  %v3733_v45 = vld [vmem:[%s3843_s28 + $0x3e0] ss:$8 sps:$4 sm:$0xff]  }
 0x104   : > { %1370 = vmatmul.mubr.bf16.gmra.mxu0 %v3708_v47  ;;  %1650 = vmatmul.mubr.bf16.gmra.mxu1 %v3709_v48  ;;  %v3736_v48 = vld [vmem:[%s3843_s28 + $0x1c4] ss:$8 sps:$4 sm:$0xff]  }
 0x105   : > { %1377 = vmatprep.mubr.bf16.mxu0 %v3710_v49  ;;  %1657 = vmatprep.mubr.bf16.mxu1 %v3712_v50 }
 0x10c   : > { %v1187_v56 = vpop.f32.mrf.mxu0  ;;  %1378 = vmatmul.mubr.bf16.gmra.mxu0 %v3714_v51  ;;  %v1467_v57 = vpop.f32.mrf.mxu1  ;;  %1658 = vmatmul.mubr.bf16.gmra.mxu1 %v3715_v52  ;;  %v3739_v51 = vld [vmem:[%s3843_s28 + $0x3f4] ss:$8 sps:$4 sm:$0xff]  }
 0x10d   : > { %1385 = vmatprep.mubr.bf16.mxu0 %v3716_v53  ;;  %1665 = vmatprep.mubr.bf16.mxu1 %v3718_v54  ;;  %v1188_v60 = vadd.f32 %v4007_v55, %v1187_v56  ;;  %v1468_v61 = vadd.f32 %v4007_v55, %v1467_v57 }
 0x10e   : > { %v1189_v58 = vpop.f32.mrf.mxu0  ;;  %v1469_v59 = vpop.f32.mrf.mxu1 }
 0x10f   : > { %v1746_v8 = vmax.f32 %v1188_v60, 0.0  ;;  %v1816_v9 = vmax.f32 %v1468_v61, 0.0 }
 0x110   : > { %v1190_v62 = vpop.f32.mrf.mxu0  ;;  %v1470_v63 = vpop.f32.mrf.mxu1 }
 0x111   : > { %v1191_v2 = vadd.f32 %v4007_v55, %v1190_v62  ;;  %v1471_v3 = vadd.f32 %v4007_v55, %v1470_v63 }
 0x112   : > { %v1192_v5 = vpop.f32.mrf.mxu0  ;;  %v1472_v6 = vpop.f32.mrf.mxu1 }
 0x113   : > { %v1747_v10 = vmax.f32 %v1191_v2, 0.0  ;;  %v1817_v11 = vmax.f32 %v1471_v3, 0.0  ;;  %v3734_v3 = vld [vmem:[%s3843_s28 + $0x1c0] ss:$8 sps:$4 sm:$0xff]  }
 0x114   : > { %v1195_v12 = vpop.f32.mrf.mxu0  ;;  %1386 = vmatmul.mubr.bf16.gmra.mxu0 %v3720_v0  ;;  %v1475_v13 = vpop.f32.mrf.mxu1  ;;  %1666 = vmatmul.mubr.bf16.gmra.mxu1 %v3721_v1 }
 0x115   : > { %v3093_v14 = vpack.c.bf16 %v1747_v10, %v1746_v8  ;;  %v3268_v15 = vpack.c.bf16 %v1817_v11, %v1816_v9  ;;  %1393 = vmatprep.mubr.bf16.mxu0 %v3722_v4  ;;  %1673 = vmatprep.mubr.bf16.mxu1 %v3724_v7  ;;  %v1196_v18 = vadd.f32 %v4007_v55, %v1195_v12  ;;  %v3737_v4 = vld [vmem:[%s3843_s28 + $0x3f0] ss:$8 sps:$4 sm:$0xff]   ;;  %v3742_v7 = vld [vmem:[%s3843_s28 + $0x1d4] ss:$8 sps:$4 sm:$0xff]   ;;  %v3745_v10 = vld [vmem:[%s3843_s28 + $0x404] ss:$8 sps:$4 sm:$0xff]  }
 0x116   : > { %v1197_v16 = vpop.f32.mrf.mxu0  ;;  %v1477_v17 = vpop.f32.mrf.mxu1  ;;  %v1476_v19 = vadd.f32 %v4007_v55, %v1475_v13 }
 0x117   : > { %3094 = vst [vmem:[%s4021_s5] sm:$0xff] %v3093_v14   ;;  %3474 = vst [vmem:[%s4021_s5 + $0x118] sm:$0xff] %v3268_v15   ;;  %v1748_v30 = vmax.f32 %v1196_v18, 0.0 }
 0x118   : > { %v1198_v20 = vpop.f32.mrf.mxu0  ;;  %v1478_v21 = vpop.f32.mrf.mxu1  ;;  %v1818_v31 = vmax.f32 %v1476_v19, 0.0 }
 0x119   : > { %v1199_v24 = vadd.f32 %v4007_v55, %v1198_v20  ;;  %v1479_v25 = vadd.f32 %v4007_v55, %v1478_v21 }
 0x11a   : > { %v1200_v27 = vpop.f32.mrf.mxu0  ;;  %v1480_v28 = vpop.f32.mrf.mxu1 }
 0x11b   : > { %v1749_v32 = vmax.f32 %v1199_v24, 0.0  ;;  %v1819_v33 = vmax.f32 %v1479_v25, 0.0  ;;  %v3740_v25 = vld [vmem:[%s3843_s28 + $0x1d0] ss:$8 sps:$4 sm:$0xff]  }
 0x11c   : > { %v1203_v34 = vpop.f32.mrf.mxu0  ;;  %1394 = vmatmul.mubr.bf16.gmra.mxu0 %v3726_v22  ;;  %v1483_v35 = vpop.f32.mrf.mxu1  ;;  %1674 = vmatmul.mubr.bf16.gmra.mxu1 %v3727_v23 }
 0x11d   : > { %v3098_v36 = vpack.c.bf16 %v1749_v32, %v1748_v30  ;;  %v3273_v37 = vpack.c.bf16 %v1819_v33, %v1818_v31  ;;  %1401 = vmatprep.mubr.bf16.mxu0 %v3728_v26  ;;  %1681 = vmatprep.mubr.bf16.mxu1 %v3730_v29  ;;  %v1204_v40 = vadd.f32 %v4007_v55, %v1203_v34  ;;  %v3743_v26 = vld [vmem:[%s3843_s28 + $0x400] ss:$8 sps:$4 sm:$0xff]   ;;  %v3748_v29 = vld [vmem:[%s3843_s28 + $0x1e4] ss:$8 sps:$4 sm:$0xff]   ;;  %v3751_v32 = vld [vmem:[%s3843_s28 + $0x414] ss:$8 sps:$4 sm:$0xff]  }
 0x11e   : > { %v1205_v38 = vpop.f32.mrf.mxu0  ;;  %v1485_v39 = vpop.f32.mrf.mxu1  ;;  %v1484_v41 = vadd.f32 %v4007_v55, %v1483_v35 }
 0x11f   : > { %3440 = vst [vmem:[%s4021_s5 + $0x8] sm:$0xff] %v3098_v36   ;;  %3475 = vst [vmem:[%s4021_s5 + $0x120] sm:$0xff] %v3273_v37   ;;  %v1750_v52 = vmax.f32 %v1204_v40, 0.0 }
 0x120   : > { %v1206_v42 = vpop.f32.mrf.mxu0  ;;  %v1486_v43 = vpop.f32.mrf.mxu1  ;;  %v1820_v53 = vmax.f32 %v1484_v41, 0.0 }
 0x121   : > { %v1207_v46 = vadd.f32 %v4007_v55, %v1206_v42  ;;  %v1487_v47 = vadd.f32 %v4007_v55, %v1486_v43 }
 0x122   : > { %v1208_v49 = vpop.f32.mrf.mxu0  ;;  %v1488_v50 = vpop.f32.mrf.mxu1 }
 0x123   : > { %v1751_v54 = vmax.f32 %v1207_v46, 0.0  ;;  %v1821_v56 = vmax.f32 %v1487_v47, 0.0  ;;  %v3746_v47 = vld [vmem:[%s3843_s28 + $0x1e0] ss:$8 sps:$4 sm:$0xff]  }
 0x124   : > { %v1211_v57 = vpop.f32.mrf.mxu0  ;;  %1402 = vmatmul.mubr.bf16.gmra.mxu0 %v3732_v44  ;;  %v1491_v58 = vpop.f32.mrf.mxu1  ;;  %1682 = vmatmul.mubr.bf16.gmra.mxu1 %v3733_v45 }
 0x125   : > { %v3103_v59 = vpack.c.bf16 %v1751_v54, %v1750_v52  ;;  %v3278_v60 = vpack.c.bf16 %v1821_v56, %v1820_v53  ;;  %1409 = vmatprep.mubr.bf16.mxu0 %v3736_v48  ;;  %1689 = vmatprep.mubr.bf16.mxu1 %v3739_v51  ;;  %v1212_v63 = vadd.f32 %v4007_v55, %v1211_v57  ;;  %v3749_v48 = vld [vmem:[%s3843_s28 + $0x410] ss:$8 sps:$4 sm:$0xff]   ;;  %v3754_v51 = vld [vmem:[%s3843_s28 + $0x1f4] ss:$8 sps:$4 sm:$0xff]   ;;  %v3757_v54 = vld [vmem:[%s3843_s28 + $0x424] ss:$8 sps:$4 sm:$0xff]  }
 0x126   : > { %v1213_v61 = vpop.f32.mrf.mxu0  ;;  %v1493_v62 = vpop.f32.mrf.mxu1  ;;  %v1492_v0 = vadd.f32 %v4007_v55, %v1491_v58 }
 0x127   : > { %3441 = vst [vmem:[%s4021_s5 + $0x10] sm:$0xff] %v3103_v59   ;;  %3476 = vst [vmem:[%s4021_s5 + $0x128] sm:$0xff] %v3278_v60   ;;  %v1752_v11 = vmax.f32 %v1212_v63, 0.0 }
 0x128   : > { %v1214_v1 = vpop.f32.mrf.mxu0  ;;  %v1494_v2 = vpop.f32.mrf.mxu1  ;;  %v1822_v12 = vmax.f32 %v1492_v0, 0.0 }
 0x129   : > { %v1215_v5 = vadd.f32 %v4007_v55, %v1214_v1  ;;  %v1495_v6 = vadd.f32 %v4007_v55, %v1494_v2 }
 0x12a   : > { %v1216_v8 = vpop.f32.mrf.mxu0  ;;  %v1496_v9 = vpop.f32.mrf.mxu1 }
 0x12b   : > { %v1753_v13 = vmax.f32 %v1215_v5, 0.0  ;;  %v1823_v14 = vmax.f32 %v1495_v6, 0.0  ;;  %v3752_v6 = vld [vmem:[%s3843_s28 + $0x1f0] ss:$8 sps:$4 sm:$0xff]  }
 0x12c   : > { %v1219_v15 = vpop.f32.mrf.mxu0  ;;  %1410 = vmatmul.mubr.bf16.gmra.mxu0 %v3734_v3  ;;  %v1499_v16 = vpop.f32.mrf.mxu1  ;;  %1690 = vmatmul.mubr.bf16.gmra.mxu1 %v3737_v4 }
 0x12d   : > { %v3108_v17 = vpack.c.bf16 %v1753_v13, %v1752_v11  ;;  %v3283_v18 = vpack.c.bf16 %v1823_v14, %v1822_v12  ;;  %1417 = vmatprep.mubr.bf16.mxu0 %v3742_v7  ;;  %1697 = vmatprep.mubr.bf16.mxu1 %v3745_v10  ;;  %v1220_v21 = vadd.f32 %v4007_v55, %v1219_v15  ;;  %v3755_v7 = vld [vmem:[%s3843_s28 + $0x420] ss:$8 sps:$4 sm:$0xff]   ;;  %v3760_v10 = vld [vmem:[%s3843_s28 + $0x204] ss:$8 sps:$4 sm:$0xff]   ;;  %v3763_v13 = vld [vmem:[%s3843_s28 + $0x434] ss:$8 sps:$4 sm:$0xff]  }
 0x12e   : > { %v1221_v19 = vpop.f32.mrf.mxu0  ;;  %v1501_v20 = vpop.f32.mrf.mxu1  ;;  %v1500_v22 = vadd.f32 %v4007_v55, %v1499_v16 }
 0x12f   : > { %3442 = vst [vmem:[%s4021_s5 + $0x18] sm:$0xff] %v3108_v17   ;;  %3477 = vst [vmem:[%s4021_s5 + $0x130] sm:$0xff] %v3283_v18   ;;  %v1754_v33 = vmax.f32 %v1220_v21, 0.0 }
 0x130   : > { %v1222_v23 = vpop.f32.mrf.mxu0  ;;  %v1502_v24 = vpop.f32.mrf.mxu1  ;;  %v1824_v34 = vmax.f32 %v1500_v22, 0.0 }
 0x131   : > { %v1223_v27 = vadd.f32 %v4007_v55, %v1222_v23  ;;  %v1503_v28 = vadd.f32 %v4007_v55, %v1502_v24 }
 0x132   : > { %v1224_v30 = vpop.f32.mrf.mxu0  ;;  %v1504_v31 = vpop.f32.mrf.mxu1 }
 0x133   : > { %v1755_v35 = vmax.f32 %v1223_v27, 0.0  ;;  %v1825_v36 = vmax.f32 %v1503_v28, 0.0  ;;  %v3758_v28 = vld [vmem:[%s3843_s28 + $0x200] ss:$8 sps:$4 sm:$0xff]  }
 0x134   : > { %v1227_v37 = vpop.f32.mrf.mxu0  ;;  %1418 = vmatmul.mubr.bf16.gmra.mxu0 %v3740_v25  ;;  %v1507_v38 = vpop.f32.mrf.mxu1  ;;  %1698 = vmatmul.mubr.bf16.gmra.mxu1 %v3743_v26 }
 0x135   : > { %v3113_v39 = vpack.c.bf16 %v1755_v35, %v1754_v33  ;;  %v3288_v40 = vpack.c.bf16 %v1825_v36, %v1824_v34  ;;  %1425 = vmatprep.mubr.bf16.mxu0 %v3748_v29  ;;  %1705 = vmatprep.mubr.bf16.mxu1 %v3751_v32  ;;  %v1228_v43 = vadd.f32 %v4007_v55, %v1227_v37  ;;  %v3761_v29 = vld [vmem:[%s3843_s28 + $0x430] ss:$8 sps:$4 sm:$0xff]   ;;  %v3766_v32 = vld [vmem:[%s3843_s28 + $0x214] ss:$8 sps:$4 sm:$0xff]   ;;  %v3769_v35 = vld [vmem:[%s3843_s28 + $0x444] ss:$8 sps:$4 sm:$0xff]  }
 0x136   : > { %v1229_v41 = vpop.f32.mrf.mxu0  ;;  %v1509_v42 = vpop.f32.mrf.mxu1  ;;  %v1508_v44 = vadd.f32 %v4007_v55, %v1507_v38 }
 0x137   : > { %3443 = vst [vmem:[%s4021_s5 + $0x20] sm:$0xff] %v3113_v39   ;;  %3478 = vst [vmem:[%s4021_s5 + $0x138] sm:$0xff] %v3288_v40   ;;  %v1756_v56 = vmax.f32 %v1228_v43, 0.0 }
 0x138   : > { %v1230_v45 = vpop.f32.mrf.mxu0  ;;  %v1510_v46 = vpop.f32.mrf.mxu1  ;;  %v1826_v57 = vmax.f32 %v1508_v44, 0.0 }
 0x139   : > { %v1231_v49 = vadd.f32 %v4007_v55, %v1230_v45  ;;  %v1511_v50 = vadd.f32 %v4007_v55, %v1510_v46 }
 0x13a   : > { %v1232_v52 = vpop.f32.mrf.mxu0  ;;  %v1512_v53 = vpop.f32.mrf.mxu1 }
 0x13b   : > { %v1757_v58 = vmax.f32 %v1231_v49, 0.0  ;;  %v1827_v59 = vmax.f32 %v1511_v50, 0.0  ;;  %v3764_v50 = vld [vmem:[%s3843_s28 + $0x210] ss:$8 sps:$4 sm:$0xff]  }
 0x13c   : > { %v1235_v60 = vpop.f32.mrf.mxu0  ;;  %1426 = vmatmul.mubr.bf16.gmra.mxu0 %v3746_v47  ;;  %v1515_v61 = vpop.f32.mrf.mxu1  ;;  %1706 = vmatmul.mubr.bf16.gmra.mxu1 %v3749_v48 }
 0x13d   : > { %v3118_v62 = vpack.c.bf16 %v1757_v58, %v1756_v56  ;;  %v3293_v63 = vpack.c.bf16 %v1827_v59, %v1826_v57  ;;  %1433 = vmatprep.mubr.bf16.mxu0 %v3754_v51  ;;  %1713 = vmatprep.mubr.bf16.mxu1 %v3757_v54  ;;  %v1236_v2 = vadd.f32 %v4007_v55, %v1235_v60  ;;  %v3767_v51 = vld [vmem:[%s3843_s28 + $0x440] ss:$8 sps:$4 sm:$0xff]   ;;  %v3772_v54 = vld [vmem:[%s3843_s28 + $0x224] ss:$8 sps:$4 sm:$0xff]   ;;  %v3775_v58 = vld [vmem:[%s3843_s28 + $0x454] ss:$8 sps:$4 sm:$0xff]  }
 0x13e   : > { %v1237_v0 = vpop.f32.mrf.mxu0  ;;  %v1517_v1 = vpop.f32.mrf.mxu1  ;;  %v1516_v3 = vadd.f32 %v4007_v55, %v1515_v61 }
 0x13f   : > { %3444 = vst [vmem:[%s4021_s5 + $0x28] sm:$0xff] %v3118_v62   ;;  %3479 = vst [vmem:[%s4021_s5 + $0x140] sm:$0xff] %v3293_v63   ;;  %v1758_v14 = vmax.f32 %v1236_v2, 0.0 }
 0x140   : > { %v1238_v4 = vpop.f32.mrf.mxu0  ;;  %v1518_v5 = vpop.f32.mrf.mxu1  ;;  %v1828_v15 = vmax.f32 %v1516_v3, 0.0 }
 0x141   : > { %v1239_v8 = vadd.f32 %v4007_v55, %v1238_v4  ;;  %v1519_v9 = vadd.f32 %v4007_v55, %v1518_v5 }
 0x142   : > { %v1240_v11 = vpop.f32.mrf.mxu0  ;;  %v1520_v12 = vpop.f32.mrf.mxu1 }
 0x143   : > { %v1759_v16 = vmax.f32 %v1239_v8, 0.0  ;;  %v1829_v17 = vmax.f32 %v1519_v9, 0.0  ;;  %v3770_v9 = vld [vmem:[%s3843_s28 + $0x220] ss:$8 sps:$4 sm:$0xff]  }
 0x144   : > { %v1243_v18 = vpop.f32.mrf.mxu0  ;;  %1434 = vmatmul.mubr.bf16.gmra.mxu0 %v3752_v6  ;;  %v1523_v19 = vpop.f32.mrf.mxu1  ;;  %1714 = vmatmul.mubr.bf16.gmra.mxu1 %v3755_v7 }
 0x145   : > { %v3123_v20 = vpack.c.bf16 %v1759_v16, %v1758_v14  ;;  %v3298_v21 = vpack.c.bf16 %v1829_v17, %v1828_v15  ;;  %1441 = vmatprep.mubr.bf16.mxu0 %v3760_v10  ;;  %1721 = vmatprep.mubr.bf16.mxu1 %v3763_v13  ;;  %v1244_v24 = vadd.f32 %v4007_v55, %v1243_v18  ;;  %v3773_v10 = vld [vmem:[%s3843_s28 + $0x450] ss:$8 sps:$4 sm:$0xff]  }
 0x146   : > { %v1245_v22 = vpop.f32.mrf.mxu0  ;;  %v1525_v23 = vpop.f32.mrf.mxu1  ;;  %v1524_v25 = vadd.f32 %v4007_v55, %v1523_v19 }
 0x147   : > { %3445 = vst [vmem:[%s4021_s5 + $0x30] sm:$0xff] %v3123_v20   ;;  %3480 = vst [vmem:[%s4021_s5 + $0x148] sm:$0xff] %v3298_v21   ;;  %v1760_v36 = vmax.f32 %v1244_v24, 0.0 }
 0x148   : > { %v1246_v26 = vpop.f32.mrf.mxu0  ;;  %v1526_v27 = vpop.f32.mrf.mxu1  ;;  %v1830_v37 = vmax.f32 %v1524_v25, 0.0 }
 0x149   : > { %v1247_v30 = vadd.f32 %v4007_v55, %v1246_v26  ;;  %v1527_v31 = vadd.f32 %v4007_v55, %v1526_v27 }
 0x14a   : > { %v1248_v33 = vpop.f32.mrf.mxu0  ;;  %v1528_v34 = vpop.f32.mrf.mxu1 }
 0x14b   : > { %v1761_v38 = vmax.f32 %v1247_v30, 0.0  ;;  %v1831_v39 = vmax.f32 %v1527_v31, 0.0 }
 0x14c   : > { %v1251_v40 = vpop.f32.mrf.mxu0  ;;  %1442 = vmatmul.mubr.bf16.gmra.mxu0 %v3758_v28  ;;  %v1531_v41 = vpop.f32.mrf.mxu1  ;;  %1722 = vmatmul.mubr.bf16.gmra.mxu1 %v3761_v29 }
 0x14d   : > { %v3128_v42 = vpack.c.bf16 %v1761_v38, %v1760_v36  ;;  %v3303_v43 = vpack.c.bf16 %v1831_v39, %v1830_v37  ;;  %1449 = vmatprep.mubr.bf16.mxu0 %v3766_v32  ;;  %1729 = vmatprep.mubr.bf16.mxu1 %v3769_v35  ;;  %v1252_v46 = vadd.f32 %v4007_v55, %v1251_v40 }
 0x14e   : > { %v1253_v44 = vpop.f32.mrf.mxu0  ;;  %v1533_v45 = vpop.f32.mrf.mxu1  ;;  %v1532_v47 = vadd.f32 %v4007_v55, %v1531_v41 }
 0x14f   : > { %3446 = vst [vmem:[%s4021_s5 + $0x38] sm:$0xff] %v3128_v42   ;;  %3481 = vst [vmem:[%s4021_s5 + $0x150] sm:$0xff] %v3303_v43   ;;  %v1762_v59 = vmax.f32 %v1252_v46, 0.0 }
 0x150   : > { %v1254_v48 = vpop.f32.mrf.mxu0  ;;  %v1534_v49 = vpop.f32.mrf.mxu1  ;;  %v1832_v60 = vmax.f32 %v1532_v47, 0.0 }
 0x151   : > { %v1255_v52 = vadd.f32 %v4007_v55, %v1254_v48  ;;  %v1535_v53 = vadd.f32 %v4007_v55, %v1534_v49 }
 0x152   : > { %v1256_v56 = vpop.f32.mrf.mxu0  ;;  %v1536_v57 = vpop.f32.mrf.mxu1 }
 0x153   : > { %v1763_v61 = vmax.f32 %v1255_v52, 0.0  ;;  %v1833_v62 = vmax.f32 %v1535_v53, 0.0 }
 0x154   : > { %v1259_v63 = vpop.f32.mrf.mxu0  ;;  %1450 = vmatmul.mubr.bf16.gmra.mxu0 %v3764_v50  ;;  %v1539_v0 = vpop.f32.mrf.mxu1  ;;  %1730 = vmatmul.mubr.bf16.gmra.mxu1 %v3767_v51 }
 0x155   : > { %v3133_v1 = vpack.c.bf16 %v1763_v61, %v1762_v59  ;;  %v3308_v2 = vpack.c.bf16 %v1833_v62, %v1832_v60  ;;  %1457 = vmatprep.mubr.bf16.mxu0 %v3772_v54  ;;  %1737 = vmatprep.mubr.bf16.mxu1 %v3775_v58  ;;  %v1260_v5 = vadd.f32 %v4007_v55, %v1259_v63 }
 0x156   : > { %v1261_v3 = vpop.f32.mrf.mxu0  ;;  %v1541_v4 = vpop.f32.mrf.mxu1  ;;  %v1540_v6 = vadd.f32 %v4007_v55, %v1539_v0 }
 0x157   : > { %3447 = vst [vmem:[%s4021_s5 + $0x40] sm:$0xff] %v3133_v1   ;;  %3482 = vst [vmem:[%s4021_s5 + $0x158] sm:$0xff] %v3308_v2   ;;  %v1764_v15 = vmax.f32 %v1260_v5, 0.0 }
 0x158   : > { %v1262_v7 = vpop.f32.mrf.mxu0  ;;  %v1542_v8 = vpop.f32.mrf.mxu1  ;;  %v1834_v16 = vmax.f32 %v1540_v6, 0.0 }
 0x159   : > { %v1263_v11 = vadd.f32 %v4007_v55, %v1262_v7  ;;  %v1543_v12 = vadd.f32 %v4007_v55, %v1542_v8 }
 0x15a   : > { %v1264_v13 = vpop.f32.mrf.mxu0  ;;  %v1544_v14 = vpop.f32.mrf.mxu1 }
 0x15b   : > { %v1765_v17 = vmax.f32 %v1263_v11, 0.0  ;;  %v1835_v18 = vmax.f32 %v1543_v12, 0.0 }
 0x15c   : > { %v1267_v19 = vpop.f32.mrf.mxu0  ;;  %1458 = vmatmul.mubr.bf16.gmra.mxu0 %v3770_v9  ;;  %v1547_v20 = vpop.f32.mrf.mxu1  ;;  %1738 = vmatmul.mubr.bf16.gmra.mxu1 %v3773_v10 }
 0x15d   : > { %v3138_v21 = vpack.c.bf16 %v1765_v17, %v1764_v15  ;;  %v3313_v22 = vpack.c.bf16 %v1835_v18, %v1834_v16  ;;  %v1268_v25 = vadd.f32 %v4007_v55, %v1267_v19  ;;  %v1548_v26 = vadd.f32 %v4007_v55, %v1547_v20 }
 0x15e   : > { %v1269_v23 = vpop.f32.mrf.mxu0  ;;  %v1549_v24 = vpop.f32.mrf.mxu1 }
 0x15f   : > { %3448 = vst [vmem:[%s4021_s5 + $0x48] sm:$0xff] %v3138_v21   ;;  %3483 = vst [vmem:[%s4021_s5 + $0x160] sm:$0xff] %v3313_v22   ;;  %v1766_v33 = vmax.f32 %v1268_v25, 0.0  ;;  %v1836_v34 = vmax.f32 %v1548_v26, 0.0 }
 0x160   : > { %v1270_v27 = vpop.f32.mrf.mxu0  ;;  %v1550_v28 = vpop.f32.mrf.mxu1 }
 0x161   : > { %v1271_v29 = vadd.f32 %v4007_v55, %v1270_v27  ;;  %v1551_v30 = vadd.f32 %v4007_v55, %v1550_v28 }
 0x162   : > { %v1272_v31 = vpop.f32.mrf.mxu0  ;;  %v1552_v32 = vpop.f32.mrf.mxu1 }
 0x163   : > { %v1767_v35 = vmax.f32 %v1271_v29, 0.0  ;;  %v1837_v36 = vmax.f32 %v1551_v30, 0.0 }
 0x164   : > { %v1275_v37 = vpop.f32.mrf.mxu0  ;;  %v1555_v38 = vpop.f32.mrf.mxu1 }
 0x165   : > { %v3143_v39 = vpack.c.bf16 %v1767_v35, %v1766_v33  ;;  %v3318_v40 = vpack.c.bf16 %v1837_v36, %v1836_v34  ;;  %v1276_v43 = vadd.f32 %v4007_v55, %v1275_v37  ;;  %v1556_v44 = vadd.f32 %v4007_v55, %v1555_v38 }
 0x166   : > { %v1277_v41 = vpop.f32.mrf.mxu0  ;;  %v1557_v42 = vpop.f32.mrf.mxu1 }
 0x167   : > { %3449 = vst [vmem:[%s4021_s5 + $0x50] sm:$0xff] %v3143_v39   ;;  %3484 = vst [vmem:[%s4021_s5 + $0x168] sm:$0xff] %v3318_v40   ;;  %v1768_v51 = vmax.f32 %v1276_v43, 0.0  ;;  %v1838_v52 = vmax.f32 %v1556_v44, 0.0 }
 0x168   : > { %v1278_v45 = vpop.f32.mrf.mxu0  ;;  %v1558_v46 = vpop.f32.mrf.mxu1 }
 0x169   : > { %v1279_v47 = vadd.f32 %v4007_v55, %v1278_v45  ;;  %v1559_v48 = vadd.f32 %v4007_v55, %v1558_v46 }
 0x16a   : > { %v1280_v49 = vpop.f32.mrf.mxu0  ;;  %v1560_v50 = vpop.f32.mrf.mxu1 }
 0x16b   : > { %v1769_v53 = vmax.f32 %v1279_v47, 0.0  ;;  %v1839_v54 = vmax.f32 %v1559_v48, 0.0 }
 0x16c   : > { %v1283_v56 = vpop.f32.mrf.mxu0  ;;  %v1563_v57 = vpop.f32.mrf.mxu1 }
 0x16d   : > { %v3148_v58 = vpack.c.bf16 %v1769_v53, %v1768_v51  ;;  %v3323_v59 = vpack.c.bf16 %v1839_v54, %v1838_v52  ;;  %v1284_v62 = vadd.f32 %v4007_v55, %v1283_v56  ;;  %v1564_v63 = vadd.f32 %v4007_v55, %v1563_v57 }
 0x16e   : > { %v1285_v60 = vpop.f32.mrf.mxu0  ;;  %v1565_v61 = vpop.f32.mrf.mxu1 }
 0x16f   : > { %3450 = vst [vmem:[%s4021_s5 + $0x58] sm:$0xff] %v3148_v58   ;;  %3485 = vst [vmem:[%s4021_s5 + $0x170] sm:$0xff] %v3323_v59   ;;  %v1770_v6 = vmax.f32 %v1284_v62, 0.0  ;;  %v1840_v7 = vmax.f32 %v1564_v63, 0.0 }
 0x170   : > { %v1286_v0 = vpop.f32.mrf.mxu0  ;;  %v1566_v1 = vpop.f32.mrf.mxu1 }
 0x171   : > { %v1287_v2 = vadd.f32 %v4007_v55, %v1286_v0  ;;  %v1567_v3 = vadd.f32 %v4007_v55, %v1566_v1 }
 0x172   : > { %v1288_v4 = vpop.f32.mrf.mxu0  ;;  %v1568_v5 = vpop.f32.mrf.mxu1 }
 0x173   : > { %v1771_v8 = vmax.f32 %v1287_v2, 0.0  ;;  %v1841_v9 = vmax.f32 %v1567_v3, 0.0 }
 0x174   : > { %v1291_v10 = vpop.f32.mrf.mxu0  ;;  %v1571_v11 = vpop.f32.mrf.mxu1 }
 0x175   : > { %v3153_v12 = vpack.c.bf16 %v1771_v8, %v1770_v6  ;;  %v3328_v13 = vpack.c.bf16 %v1841_v9, %v1840_v7  ;;  %v1292_v16 = vadd.f32 %v4007_v55, %v1291_v10  ;;  %v1572_v17 = vadd.f32 %v4007_v55, %v1571_v11 }
 0x176   : > { %v1293_v14 = vpop.f32.mrf.mxu0  ;;  %v1573_v15 = vpop.f32.mrf.mxu1 }
 0x177   : > { %3451 = vst [vmem:[%s4021_s5 + $0x60] sm:$0xff] %v3153_v12   ;;  %3486 = vst [vmem:[%s4021_s5 + $0x178] sm:$0xff] %v3328_v13   ;;  %v1772_v24 = vmax.f32 %v1292_v16, 0.0  ;;  %v1842_v25 = vmax.f32 %v1572_v17, 0.0 }
 0x178   : > { %v1294_v18 = vpop.f32.mrf.mxu0  ;;  %v1574_v19 = vpop.f32.mrf.mxu1 }
 0x179   : > { %v1295_v20 = vadd.f32 %v4007_v55, %v1294_v18  ;;  %v1575_v21 = vadd.f32 %v4007_v55, %v1574_v19 }
 0x17a   : > { %v1296_v22 = vpop.f32.mrf.mxu0  ;;  %v1576_v23 = vpop.f32.mrf.mxu1 }
 0x17b   : > { %v1773_v26 = vmax.f32 %v1295_v20, 0.0  ;;  %v1843_v27 = vmax.f32 %v1575_v21, 0.0 }
 0x17c   : > { %v1299_v28 = vpop.f32.mrf.mxu0  ;;  %v1579_v29 = vpop.f32.mrf.mxu1 }
 0x17d   : > { %v3158_v30 = vpack.c.bf16 %v1773_v26, %v1772_v24  ;;  %v3333_v31 = vpack.c.bf16 %v1843_v27, %v1842_v25  ;;  %v1300_v34 = vadd.f32 %v4007_v55, %v1299_v28  ;;  %v1580_v35 = vadd.f32 %v4007_v55, %v1579_v29 }
 0x17e   : > { %v1301_v32 = vpop.f32.mrf.mxu0  ;;  %v1581_v33 = vpop.f32.mrf.mxu1 }
 0x17f   : > { %3452 = vst [vmem:[%s4021_s5 + $0x68] sm:$0xff] %v3158_v30   ;;  %3487 = vst [vmem:[%s4021_s5 + $0x180] sm:$0xff] %v3333_v31   ;;  %v1774_v42 = vmax.f32 %v1300_v34, 0.0  ;;  %v1844_v43 = vmax.f32 %v1580_v35, 0.0 }
 0x180   : > { %v1302_v36 = vpop.f32.mrf.mxu0  ;;  %v1582_v37 = vpop.f32.mrf.mxu1 }
 0x181   : > { %v1303_v38 = vadd.f32 %v4007_v55, %v1302_v36  ;;  %v1583_v39 = vadd.f32 %v4007_v55, %v1582_v37 }
 0x182   : > { %v1304_v40 = vpop.f32.mrf.mxu0  ;;  %v1584_v41 = vpop.f32.mrf.mxu1 }
 0x183   : > { %v1775_v44 = vmax.f32 %v1303_v38, 0.0  ;;  %v1845_v45 = vmax.f32 %v1583_v39, 0.0 }
 0x184   : > { %v1307_v46 = vpop.f32.mrf.mxu0  ;;  %v1587_v47 = vpop.f32.mrf.mxu1 }
 0x185   : > { %v3163_v48 = vpack.c.bf16 %v1775_v44, %v1774_v42  ;;  %v3338_v49 = vpack.c.bf16 %v1845_v45, %v1844_v43  ;;  %v1308_v52 = vadd.f32 %v4007_v55, %v1307_v46  ;;  %v1588_v53 = vadd.f32 %v4007_v55, %v1587_v47 }
 0x186   : > { %v1309_v50 = vpop.f32.mrf.mxu0  ;;  %v1589_v51 = vpop.f32.mrf.mxu1 }
 0x187   : > { %3453 = vst [vmem:[%s4021_s5 + $0x70] sm:$0xff] %v3163_v48   ;;  %3488 = vst [vmem:[%s4021_s5 + $0x188] sm:$0xff] %v3338_v49   ;;  %v1776_v61 = vmax.f32 %v1308_v52, 0.0  ;;  %v1846_v62 = vmax.f32 %v1588_v53, 0.0 }
 0x188   : > { %v1310_v54 = vpop.f32.mrf.mxu0  ;;  %v1590_v56 = vpop.f32.mrf.mxu1 }
 0x189   : > { %v1311_v57 = vadd.f32 %v4007_v55, %v1310_v54  ;;  %v1591_v58 = vadd.f32 %v4007_v55, %v1590_v56 }
 0x18a   : > { %v1312_v59 = vpop.f32.mrf.mxu0  ;;  %v1592_v60 = vpop.f32.mrf.mxu1 }
 0x18b   : > { %v1777_v63 = vmax.f32 %v1311_v57, 0.0  ;;  %v1847_v0 = vmax.f32 %v1591_v58, 0.0 }
 0x18c   : > { %v1315_v1 = vpop.f32.mrf.mxu0  ;;  %v1595_v2 = vpop.f32.mrf.mxu1 }
 0x18d   : > { %v3168_v3 = vpack.c.bf16 %v1777_v63, %v1776_v61  ;;  %v3343_v4 = vpack.c.bf16 %v1847_v0, %v1846_v62  ;;  %v1316_v7 = vadd.f32 %v4007_v55, %v1315_v1  ;;  %v1596_v8 = vadd.f32 %v4007_v55, %v1595_v2 }
 0x18e   : > { %v1317_v5 = vpop.f32.mrf.mxu0  ;;  %v1597_v6 = vpop.f32.mrf.mxu1 }
 0x18f   : > { %3454 = vst [vmem:[%s4021_s5 + $0x78] sm:$0xff] %v3168_v3   ;;  %3489 = vst [vmem:[%s4021_s5 + $0x190] sm:$0xff] %v3343_v4   ;;  %v1778_v15 = vmax.f32 %v1316_v7, 0.0  ;;  %v1848_v16 = vmax.f32 %v1596_v8, 0.0 }
 0x190   : > { %v1318_v9 = vpop.f32.mrf.mxu0  ;;  %v1598_v10 = vpop.f32.mrf.mxu1 }
 0x191   : > { %v1319_v11 = vadd.f32 %v4007_v55, %v1318_v9  ;;  %v1599_v12 = vadd.f32 %v4007_v55, %v1598_v10 }
 0x192   : > { %v1320_v13 = vpop.f32.mrf.mxu0  ;;  %v1600_v14 = vpop.f32.mrf.mxu1 }
 0x193   : > { %v1779_v17 = vmax.f32 %v1319_v11, 0.0  ;;  %v1849_v18 = vmax.f32 %v1599_v12, 0.0 }
 0x194   : > { %v1323_v19 = vpop.f32.mrf.mxu0  ;;  %v1603_v20 = vpop.f32.mrf.mxu1 }
 0x195   : > { %v3173_v21 = vpack.c.bf16 %v1779_v17, %v1778_v15  ;;  %v3348_v22 = vpack.c.bf16 %v1849_v18, %v1848_v16  ;;  %v1324_v25 = vadd.f32 %v4007_v55, %v1323_v19  ;;  %v1604_v26 = vadd.f32 %v4007_v55, %v1603_v20 }
 0x196   : > { %v1325_v23 = vpop.f32.mrf.mxu0  ;;  %v1605_v24 = vpop.f32.mrf.mxu1 }
 0x197   : > { %3455 = vst [vmem:[%s4021_s5 + $0x80] sm:$0xff] %v3173_v21   ;;  %3490 = vst [vmem:[%s4021_s5 + $0x198] sm:$0xff] %v3348_v22   ;;  %v1780_v33 = vmax.f32 %v1324_v25, 0.0  ;;  %v1850_v34 = vmax.f32 %v1604_v26, 0.0 }
 0x198   : > { %v1326_v27 = vpop.f32.mrf.mxu0  ;;  %v1606_v28 = vpop.f32.mrf.mxu1 }
 0x199   : > { %v1327_v29 = vadd.f32 %v4007_v55, %v1326_v27  ;;  %v1607_v30 = vadd.f32 %v4007_v55, %v1606_v28 }
 0x19a   : > { %v1328_v31 = vpop.f32.mrf.mxu0  ;;  %v1608_v32 = vpop.f32.mrf.mxu1 }
 0x19b   : > { %v1781_v35 = vmax.f32 %v1327_v29, 0.0  ;;  %v1851_v36 = vmax.f32 %v1607_v30, 0.0 }
 0x19c   : > { %v1331_v37 = vpop.f32.mrf.mxu0  ;;  %v1611_v38 = vpop.f32.mrf.mxu1 }
 0x19d   : > { %v3178_v39 = vpack.c.bf16 %v1781_v35, %v1780_v33  ;;  %v3353_v40 = vpack.c.bf16 %v1851_v36, %v1850_v34  ;;  %v1332_v43 = vadd.f32 %v4007_v55, %v1331_v37  ;;  %v1612_v44 = vadd.f32 %v4007_v55, %v1611_v38 }
 0x19e   : > { %v1333_v41 = vpop.f32.mrf.mxu0  ;;  %v1613_v42 = vpop.f32.mrf.mxu1 }
 0x19f   : > { %3456 = vst [vmem:[%s4021_s5 + $0x88] sm:$0xff] %v3178_v39   ;;  %3491 = vst [vmem:[%s4021_s5 + $0x1a0] sm:$0xff] %v3353_v40   ;;  %v1782_v51 = vmax.f32 %v1332_v43, 0.0  ;;  %v1852_v52 = vmax.f32 %v1612_v44, 0.0  ;;  %v4185_v39 = vld [vmem:[%s4273_s2] ss:$0 sm:$0xff] }
 0x1a0   : > { %v1334_v45 = vpop.f32.mrf.mxu0  ;;  %v1614_v46 = vpop.f32.mrf.mxu1 }
 0x1a1   : > { %v1335_v47 = vadd.f32 %v4007_v55, %v1334_v45  ;;  %v1615_v48 = vadd.f32 %v4007_v55, %v1614_v46 }
 0x1a2   : > { %v1336_v49 = vpop.f32.mrf.mxu0  ;;  %v1616_v50 = vpop.f32.mrf.mxu1 }
 0x1a3   : > { %v1783_v53 = vmax.f32 %v1335_v47, 0.0  ;;  %v1853_v54 = vmax.f32 %v1615_v48, 0.0 }
 0x1a4   : > { %v1339_v56 = vpop.f32.mrf.mxu0  ;;  %v1619_v57 = vpop.f32.mrf.mxu1 }
 0x1a5   : > { %v3183_v58 = vpack.c.bf16 %v1783_v53, %v1782_v51  ;;  %v3358_v59 = vpack.c.bf16 %v1853_v54, %v1852_v52  ;;  %v1340_v62 = vadd.f32 %v4007_v55, %v1339_v56  ;;  %v1620_v63 = vadd.f32 %v4007_v55, %v1619_v57 }
 0x1a6   : > { %v1341_v60 = vpop.f32.mrf.mxu0  ;;  %v1621_v61 = vpop.f32.mrf.mxu1 }
 0x1a7   : > { %3457 = vst [vmem:[%s4021_s5 + $0x90] sm:$0xff] %v3183_v58   ;;  %3492 = vst [vmem:[%s4021_s5 + $0x1a8] sm:$0xff] %v3358_v59   ;;  %v1784_v6 = vmax.f32 %v1340_v62, 0.0  ;;  %v1854_v7 = vmax.f32 %v1620_v63, 0.0 }
 0x1a8   : > { %v1342_v0 = vpop.f32.mrf.mxu0  ;;  %v1622_v1 = vpop.f32.mrf.mxu1 }
 0x1a9   : > { %v1343_v2 = vadd.f32 %v4007_v55, %v1342_v0  ;;  %v1623_v3 = vadd.f32 %v4007_v55, %v1622_v1 }
 0x1aa   : > { %v1344_v4 = vpop.f32.mrf.mxu0  ;;  %v1624_v5 = vpop.f32.mrf.mxu1 }
 0x1ab   : > { %v1785_v8 = vmax.f32 %v1343_v2, 0.0  ;;  %v1855_v9 = vmax.f32 %v1623_v3, 0.0 }
 0x1ac   : > { %v1347_v10 = vpop.f32.mrf.mxu0  ;;  %v1627_v11 = vpop.f32.mrf.mxu1 }
 0x1ad   : > { %v3188_v12 = vpack.c.bf16 %v1785_v8, %v1784_v6  ;;  %v3363_v13 = vpack.c.bf16 %v1855_v9, %v1854_v7  ;;  %v1348_v16 = vadd.f32 %v4007_v55, %v1347_v10  ;;  %v1628_v17 = vadd.f32 %v4007_v55, %v1627_v11 }
 0x1ae   : > { %v1349_v14 = vpop.f32.mrf.mxu0  ;;  %v1629_v15 = vpop.f32.mrf.mxu1 }
 0x1af   : > { %3458 = vst [vmem:[%s4021_s5 + $0x98] sm:$0xff] %v3188_v12   ;;  %3493 = vst [vmem:[%s4021_s5 + $0x1b0] sm:$0xff] %v3363_v13   ;;  %v1786_v24 = vmax.f32 %v1348_v16, 0.0  ;;  %v1856_v25 = vmax.f32 %v1628_v17, 0.0 }
 0x1b0   : > { %v1350_v18 = vpop.f32.mrf.mxu0  ;;  %v1630_v19 = vpop.f32.mrf.mxu1 }
 0x1b1   : > { %v1351_v20 = vadd.f32 %v4007_v55, %v1350_v18  ;;  %v1631_v21 = vadd.f32 %v4007_v55, %v1630_v19 }
 0x1b2   : > { %v1352_v22 = vpop.f32.mrf.mxu0  ;;  %v1632_v23 = vpop.f32.mrf.mxu1 }
 0x1b3   : > { %v1787_v26 = vmax.f32 %v1351_v20, 0.0  ;;  %v1857_v27 = vmax.f32 %v1631_v21, 0.0 }
 0x1b4   : > { %v1355_v28 = vpop.f32.mrf.mxu0  ;;  %v1635_v29 = vpop.f32.mrf.mxu1 }
 0x1b5   : > { %v3193_v30 = vpack.c.bf16 %v1787_v26, %v1786_v24  ;;  %v3368_v31 = vpack.c.bf16 %v1857_v27, %v1856_v25  ;;  %v1356_v34 = vadd.f32 %v4007_v55, %v1355_v28  ;;  %v1636_v35 = vadd.f32 %v4007_v55, %v1635_v29 }
 0x1b6   : > { %v1357_v32 = vpop.f32.mrf.mxu0  ;;  %v1637_v33 = vpop.f32.mrf.mxu1 }
 0x1b7   : > { %3459 = vst [vmem:[%s4021_s5 + $0xa0] sm:$0xff] %v3193_v30   ;;  %3494 = vst [vmem:[%s4021_s5 + $0x1b8] sm:$0xff] %v3368_v31   ;;  %v1788_v43 = vmax.f32 %v1356_v34, 0.0  ;;  %v1858_v44 = vmax.f32 %v1636_v35, 0.0 }
 0x1b8   : > { %v1358_v36 = vpop.f32.mrf.mxu0  ;;  %v1638_v37 = vpop.f32.mrf.mxu1 }
 0x1b9   : > { %v1359_v38 = vadd.f32 %v4007_v55, %v1358_v36  ;;  %v1639_v40 = vadd.f32 %v4185_v39, %v1638_v37 }
 0x1ba   : > { %v1360_v41 = vpop.f32.mrf.mxu0  ;;  %v1640_v42 = vpop.f32.mrf.mxu1 }
 0x1bb   : > { %v1789_v45 = vmax.f32 %v1359_v38, 0.0  ;;  %v1859_v46 = vmax.f32 %v1639_v40, 0.0 }
 0x1bc   : > { %v1363_v47 = vpop.f32.mrf.mxu0  ;;  %v1643_v48 = vpop.f32.mrf.mxu1 }
 0x1bd   : > { %v3198_v49 = vpack.c.bf16 %v1789_v45, %v1788_v43  ;;  %v3373_v50 = vpack.c.bf16 %v1859_v46, %v1858_v44  ;;  %v1364_v52 = vadd.f32 %v4185_v39, %v1363_v47  ;;  %v1644_v53 = vadd.f32 %v4185_v39, %v1643_v48 }
 0x1be   : > { %v1365_v51 = vpop.f32.mrf.mxu0  ;;  %v1645_v55 = vpop.f32.mrf.mxu1 }
 0x1bf   : > { %3460 = vst [vmem:[%s4021_s5 + $0xa8] sm:$0xff] %v3198_v49   ;;  %3495 = vst [vmem:[%s4021_s5 + $0x1c0] sm:$0xff] %v3373_v50   ;;  %v1790_v61 = vmax.f32 %v1364_v52, 0.0  ;;  %v1860_v62 = vmax.f32 %v1644_v53, 0.0 }
 0x1c0   : > { %v1366_v54 = vpop.f32.mrf.mxu0  ;;  %v1646_v56 = vpop.f32.mrf.mxu1 }
 0x1c1   : > { %v1367_v57 = vadd.f32 %v4185_v39, %v1366_v54  ;;  %v1647_v58 = vadd.f32 %v4185_v39, %v1646_v56 }
 0x1c2   : > { %v1368_v59 = vpop.f32.mrf.mxu0  ;;  %v1648_v60 = vpop.f32.mrf.mxu1 }
 0x1c3   : > { %v1791_v63 = vmax.f32 %v1367_v57, 0.0  ;;  %v1861_v0 = vmax.f32 %v1647_v58, 0.0 }
 0x1c4   : > { %v1371_v1 = vpop.f32.mrf.mxu0  ;;  %v1651_v2 = vpop.f32.mrf.mxu1 }
 0x1c5   : > { %v3203_v3 = vpack.c.bf16 %v1791_v63, %v1790_v61  ;;  %v3378_v4 = vpack.c.bf16 %v1861_v0, %v1860_v62  ;;  %v1372_v7 = vadd.f32 %v4185_v39, %v1371_v1  ;;  %v1652_v8 = vadd.f32 %v4185_v39, %v1651_v2 }
 0x1c6   : > { %v1373_v5 = vpop.f32.mrf.mxu0  ;;  %v1653_v6 = vpop.f32.mrf.mxu1 }
 0x1c7   : > { %3461 = vst [vmem:[%s4021_s5 + $0xb0] sm:$0xff] %v3203_v3   ;;  %3496 = vst [vmem:[%s4021_s5 + $0x1c8] sm:$0xff] %v3378_v4   ;;  %v1792_v15 = vmax.f32 %v1372_v7, 0.0  ;;  %v1862_v16 = vmax.f32 %v1652_v8, 0.0 }
 0x1c8   : > { %v1374_v9 = vpop.f32.mrf.mxu0  ;;  %v1654_v10 = vpop.f32.mrf.mxu1 }
 0x1c9   : > { %v1375_v11 = vadd.f32 %v4185_v39, %v1374_v9  ;;  %v1655_v12 = vadd.f32 %v4185_v39, %v1654_v10 }
 0x1ca   : > { %v1376_v13 = vpop.f32.mrf.mxu0  ;;  %v1656_v14 = vpop.f32.mrf.mxu1 }
 0x1cb   : > { %v1793_v17 = vmax.f32 %v1375_v11, 0.0  ;;  %v1863_v18 = vmax.f32 %v1655_v12, 0.0 }
 0x1cc   : > { %v1379_v19 = vpop.f32.mrf.mxu0  ;;  %v1659_v20 = vpop.f32.mrf.mxu1 }
 0x1cd   : > { %v3208_v21 = vpack.c.bf16 %v1793_v17, %v1792_v15  ;;  %v3383_v22 = vpack.c.bf16 %v1863_v18, %v1862_v16  ;;  %v1380_v25 = vadd.f32 %v4185_v39, %v1379_v19  ;;  %v1660_v26 = vadd.f32 %v4185_v39, %v1659_v20 }
 0x1ce   : > { %v1381_v23 = vpop.f32.mrf.mxu0  ;;  %v1661_v24 = vpop.f32.mrf.mxu1 }
 0x1cf   : > { %3462 = vst [vmem:[%s4021_s5 + $0xb8] sm:$0xff] %v3208_v21   ;;  %3497 = vst [vmem:[%s4021_s5 + $0x1d0] sm:$0xff] %v3383_v22   ;;  %v1794_v33 = vmax.f32 %v1380_v25, 0.0  ;;  %v1864_v34 = vmax.f32 %v1660_v26, 0.0 }
 0x1d0   : > { %v1382_v27 = vpop.f32.mrf.mxu0  ;;  %v1662_v28 = vpop.f32.mrf.mxu1 }
 0x1d1   : > { %v1383_v29 = vadd.f32 %v4185_v39, %v1382_v27  ;;  %v1663_v30 = vadd.f32 %v4185_v39, %v1662_v28 }
 0x1d2   : > { %v1384_v31 = vpop.f32.mrf.mxu0  ;;  %v1664_v32 = vpop.f32.mrf.mxu1 }
 0x1d3   : > { %v1795_v35 = vmax.f32 %v1383_v29, 0.0  ;;  %v1865_v36 = vmax.f32 %v1663_v30, 0.0 }
 0x1d4   : > { %v1387_v37 = vpop.f32.mrf.mxu0  ;;  %v1667_v38 = vpop.f32.mrf.mxu1 }
 0x1d5   : > { %v3213_v40 = vpack.c.bf16 %v1795_v35, %v1794_v33  ;;  %v3388_v41 = vpack.c.bf16 %v1865_v36, %v1864_v34  ;;  %v1388_v44 = vadd.f32 %v4185_v39, %v1387_v37  ;;  %v1668_v45 = vadd.f32 %v4185_v39, %v1667_v38 }
 0x1d6   : > { %v1389_v42 = vpop.f32.mrf.mxu0  ;;  %v1669_v43 = vpop.f32.mrf.mxu1 }
 0x1d7   : > { %3463 = vst [vmem:[%s4021_s5 + $0xc0] sm:$0xff] %v3213_v40   ;;  %3498 = vst [vmem:[%s4021_s5 + $0x1d8] sm:$0xff] %v3388_v41   ;;  %v1796_v55 = vmax.f32 %v1388_v44, 0.0  ;;  %v1866_v52 = vmax.f32 %v1668_v45, 0.0 }
 0x1d8   : > { %v1390_v46 = vpop.f32.mrf.mxu0  ;;  %v1670_v47 = vpop.f32.mrf.mxu1 }
 0x1d9   : > { %v1391_v48 = vadd.f32 %v4185_v39, %v1390_v46  ;;  %v1671_v49 = vadd.f32 %v4185_v39, %v1670_v47 }
 0x1da   : > { %v1392_v50 = vpop.f32.mrf.mxu0  ;;  %v1672_v51 = vpop.f32.mrf.mxu1 }
 0x1db   : > { %v1797_v53 = vmax.f32 %v1391_v48, 0.0  ;;  %v1867_v54 = vmax.f32 %v1671_v49, 0.0 }
 0x1dc   : > { %v1395_v56 = vpop.f32.mrf.mxu0  ;;  %v1675_v57 = vpop.f32.mrf.mxu1 }
 0x1dd   : > { %v3218_v58 = vpack.c.bf16 %v1797_v53, %v1796_v55  ;;  %v3393_v59 = vpack.c.bf16 %v1867_v54, %v1866_v52  ;;  %v1396_v62 = vadd.f32 %v4185_v39, %v1395_v56  ;;  %v1676_v63 = vadd.f32 %v4185_v39, %v1675_v57 }
 0x1de   : > { %v1397_v60 = vpop.f32.mrf.mxu0  ;;  %v1677_v61 = vpop.f32.mrf.mxu1 }
 0x1df   : > { %3464 = vst [vmem:[%s4021_s5 + $0xc8] sm:$0xff] %v3218_v58   ;;  %3499 = vst [vmem:[%s4021_s5 + $0x1e0] sm:$0xff] %v3393_v59   ;;  %v1798_v6 = vmax.f32 %v1396_v62, 0.0  ;;  %v1868_v7 = vmax.f32 %v1676_v63, 0.0 }
 0x1e0   : > { %v1398_v0 = vpop.f32.mrf.mxu0  ;;  %v1678_v1 = vpop.f32.mrf.mxu1 }
 0x1e1   : > { %v1399_v2 = vadd.f32 %v4185_v39, %v1398_v0  ;;  %v1679_v3 = vadd.f32 %v4185_v39, %v1678_v1 }
 0x1e2   : > { %v1400_v4 = vpop.f32.mrf.mxu0  ;;  %v1680_v5 = vpop.f32.mrf.mxu1 }
 0x1e3   : > { %v1799_v8 = vmax.f32 %v1399_v2, 0.0  ;;  %v1869_v9 = vmax.f32 %v1679_v3, 0.0 }
 0x1e4   : > { %v1403_v10 = vpop.f32.mrf.mxu0  ;;  %v1683_v11 = vpop.f32.mrf.mxu1 }
 0x1e5   : > { %v3223_v12 = vpack.c.bf16 %v1799_v8, %v1798_v6  ;;  %v3398_v13 = vpack.c.bf16 %v1869_v9, %v1868_v7  ;;  %v1404_v16 = vadd.f32 %v4185_v39, %v1403_v10  ;;  %v1684_v17 = vadd.f32 %v4185_v39, %v1683_v11 }
 0x1e6   : > { %v1405_v14 = vpop.f32.mrf.mxu0  ;;  %v1685_v15 = vpop.f32.mrf.mxu1 }
 0x1e7   : > { %3465 = vst [vmem:[%s4021_s5 + $0xd0] sm:$0xff] %v3223_v12   ;;  %3500 = vst [vmem:[%s4021_s5 + $0x1e8] sm:$0xff] %v3398_v13   ;;  %v1800_v24 = vmax.f32 %v1404_v16, 0.0  ;;  %v1870_v25 = vmax.f32 %v1684_v17, 0.0 }
 0x1e8   : > { %v1406_v18 = vpop.f32.mrf.mxu0  ;;  %v1686_v19 = vpop.f32.mrf.mxu1 }
 0x1e9   : > { %v1407_v20 = vadd.f32 %v4185_v39, %v1406_v18  ;;  %v1687_v21 = vadd.f32 %v4185_v39, %v1686_v19 }
 0x1ea   : > { %v1408_v22 = vpop.f32.mrf.mxu0  ;;  %v1688_v23 = vpop.f32.mrf.mxu1 }
 0x1eb   : > { %v1801_v26 = vmax.f32 %v1407_v20, 0.0  ;;  %v1871_v27 = vmax.f32 %v1687_v21, 0.0 }
 0x1ec   : > { %v1411_v28 = vpop.f32.mrf.mxu0  ;;  %v1691_v29 = vpop.f32.mrf.mxu1 }
 0x1ed   : > { %v3228_v30 = vpack.c.bf16 %v1801_v26, %v1800_v24  ;;  %v3403_v31 = vpack.c.bf16 %v1871_v27, %v1870_v25  ;;  %v1412_v34 = vadd.f32 %v4185_v39, %v1411_v28  ;;  %v1692_v35 = vadd.f32 %v4185_v39, %v1691_v29 }
 0x1ee   : > { %v1413_v32 = vpop.f32.mrf.mxu0  ;;  %v1693_v33 = vpop.f32.mrf.mxu1 }
 0x1ef   : > { %3466 = vst [vmem:[%s4021_s5 + $0xd8] sm:$0xff] %v3228_v30   ;;  %3501 = vst [vmem:[%s4021_s5 + $0x1f0] sm:$0xff] %v3403_v31   ;;  %v1802_v43 = vmax.f32 %v1412_v34, 0.0  ;;  %v1872_v44 = vmax.f32 %v1692_v35, 0.0 }
 0x1f0   : > { %v1414_v36 = vpop.f32.mrf.mxu0  ;;  %v1694_v37 = vpop.f32.mrf.mxu1 }
 0x1f1   : > { %v1415_v38 = vadd.f32 %v4185_v39, %v1414_v36  ;;  %v1695_v40 = vadd.f32 %v4185_v39, %v1694_v37 }
 0x1f2   : > { %v1416_v41 = vpop.f32.mrf.mxu0  ;;  %v1696_v42 = vpop.f32.mrf.mxu1 }
 0x1f3   : > { %v1803_v45 = vmax.f32 %v1415_v38, 0.0  ;;  %v1873_v46 = vmax.f32 %v1695_v40, 0.0 }
 0x1f4   : > { %v1419_v47 = vpop.f32.mrf.mxu0  ;;  %v1699_v48 = vpop.f32.mrf.mxu1 }
 0x1f5   : > { %v3233_v49 = vpack.c.bf16 %v1803_v45, %v1802_v43  ;;  %v3408_v50 = vpack.c.bf16 %v1873_v46, %v1872_v44  ;;  %v1420_v52 = vadd.f32 %v4185_v39, %v1419_v47  ;;  %v1700_v53 = vadd.f32 %v4185_v39, %v1699_v48 }
 0x1f6   : > { %v1421_v51 = vpop.f32.mrf.mxu0  ;;  %v1701_v55 = vpop.f32.mrf.mxu1 }
 0x1f7   : > { %3467 = vst [vmem:[%s4021_s5 + $0xe0] sm:$0xff] %v3233_v49   ;;  %3502 = vst [vmem:[%s4021_s5 + $0x1f8] sm:$0xff] %v3408_v50   ;;  %v1804_v61 = vmax.f32 %v1420_v52, 0.0  ;;  %v1874_v62 = vmax.f32 %v1700_v53, 0.0 }
 0x1f8   : > { %v1422_v54 = vpop.f32.mrf.mxu0  ;;  %v1702_v56 = vpop.f32.mrf.mxu1 }
 0x1f9   : > { %v1423_v57 = vadd.f32 %v4185_v39, %v1422_v54  ;;  %v1703_v58 = vadd.f32 %v4185_v39, %v1702_v56 }
 0x1fa   : > { %v1424_v59 = vpop.f32.mrf.mxu0  ;;  %v1704_v60 = vpop.f32.mrf.mxu1 }
 0x1fb   : > { %v1805_v63 = vmax.f32 %v1423_v57, 0.0  ;;  %v1875_v0 = vmax.f32 %v1703_v58, 0.0 }
 0x1fc   : > { %v1427_v1 = vpop.f32.mrf.mxu0  ;;  %v1707_v2 = vpop.f32.mrf.mxu1 }
 0x1fd   : > { %v3238_v3 = vpack.c.bf16 %v1805_v63, %v1804_v61  ;;  %v3413_v4 = vpack.c.bf16 %v1875_v0, %v1874_v62  ;;  %v1428_v7 = vadd.f32 %v4185_v39, %v1427_v1  ;;  %v1708_v8 = vadd.f32 %v4185_v39, %v1707_v2 }
 0x1fe   : > { %v1429_v5 = vpop.f32.mrf.mxu0  ;;  %v1709_v6 = vpop.f32.mrf.mxu1 }
 0x1ff   : > { %3468 = vst [vmem:[%s4021_s5 + $0xe8] sm:$0xff] %v3238_v3   ;;  %3503 = vst [vmem:[%s4021_s5 + $0x200] sm:$0xff] %v3413_v4   ;;  %v1806_v15 = vmax.f32 %v1428_v7, 0.0  ;;  %v1876_v16 = vmax.f32 %v1708_v8, 0.0 }
 0x200   : > { %v1430_v9 = vpop.f32.mrf.mxu0  ;;  %v1710_v10 = vpop.f32.mrf.mxu1 }
 0x201   : > { %v1431_v11 = vadd.f32 %v4185_v39, %v1430_v9  ;;  %v1711_v12 = vadd.f32 %v4185_v39, %v1710_v10 }
 0x202   : > { %v1432_v13 = vpop.f32.mrf.mxu0  ;;  %v1712_v14 = vpop.f32.mrf.mxu1 }
 0x203   : > { %v1807_v17 = vmax.f32 %v1431_v11, 0.0  ;;  %v1877_v18 = vmax.f32 %v1711_v12, 0.0 }
 0x204   : > { %v1435_v19 = vpop.f32.mrf.mxu0  ;;  %v1715_v20 = vpop.f32.mrf.mxu1 }
 0x205   : > { %v3243_v21 = vpack.c.bf16 %v1807_v17, %v1806_v15  ;;  %v3418_v22 = vpack.c.bf16 %v1877_v18, %v1876_v16  ;;  %v1436_v25 = vadd.f32 %v4185_v39, %v1435_v19  ;;  %v1716_v26 = vadd.f32 %v4185_v39, %v1715_v20 }
 0x206   : > { %v1437_v23 = vpop.f32.mrf.mxu0  ;;  %v1717_v24 = vpop.f32.mrf.mxu1 }
 0x207   : > { %3469 = vst [vmem:[%s4021_s5 + $0xf0] sm:$0xff] %v3243_v21   ;;  %3504 = vst [vmem:[%s4021_s5 + $0x208] sm:$0xff] %v3418_v22   ;;  %v1808_v33 = vmax.f32 %v1436_v25, 0.0  ;;  %v1878_v34 = vmax.f32 %v1716_v26, 0.0 }
 0x208   : > { %v1438_v27 = vpop.f32.mrf.mxu0  ;;  %v1718_v28 = vpop.f32.mrf.mxu1 }
 0x209   : > { %v1439_v29 = vadd.f32 %v4185_v39, %v1438_v27  ;;  %v1719_v30 = vadd.f32 %v4185_v39, %v1718_v28 }
 0x20a   : > { %v1440_v31 = vpop.f32.mrf.mxu0  ;;  %v1720_v32 = vpop.f32.mrf.mxu1 }
 0x20b   : > { %v1809_v35 = vmax.f32 %v1439_v29, 0.0  ;;  %v1879_v36 = vmax.f32 %v1719_v30, 0.0 }
 0x20c   : > { %v1443_v37 = vpop.f32.mrf.mxu0  ;;  %v1723_v38 = vpop.f32.mrf.mxu1 }
 0x20d   : > { %v3248_v40 = vpack.c.bf16 %v1809_v35, %v1808_v33  ;;  %v3423_v41 = vpack.c.bf16 %v1879_v36, %v1878_v34  ;;  %v1444_v44 = vadd.f32 %v4185_v39, %v1443_v37  ;;  %v1724_v45 = vadd.f32 %v4185_v39, %v1723_v38 }
 0x20e   : > { %v1445_v42 = vpop.f32.mrf.mxu0  ;;  %v1725_v43 = vpop.f32.mrf.mxu1 }
 0x20f   : > { %3470 = vst [vmem:[%s4021_s5 + $0xf8] sm:$0xff] %v3248_v40   ;;  %3505 = vst [vmem:[%s4021_s5 + $0x210] sm:$0xff] %v3423_v41   ;;  %v1810_v55 = vmax.f32 %v1444_v44, 0.0  ;;  %v1880_v52 = vmax.f32 %v1724_v45, 0.0 }
 0x210   : > { %v1446_v46 = vpop.f32.mrf.mxu0  ;;  %v1726_v47 = vpop.f32.mrf.mxu1 }
 0x211   : > { %v1447_v48 = vadd.f32 %v4185_v39, %v1446_v46  ;;  %v1727_v49 = vadd.f32 %v4185_v39, %v1726_v47 }
 0x212   : > { %v1448_v50 = vpop.f32.mrf.mxu0  ;;  %v1728_v51 = vpop.f32.mrf.mxu1 }
 0x213   : > { %v1811_v53 = vmax.f32 %v1447_v48, 0.0  ;;  %v1881_v54 = vmax.f32 %v1727_v49, 0.0 }
 0x214   : > { %v1451_v56 = vpop.f32.mrf.mxu0  ;;  %v1731_v57 = vpop.f32.mrf.mxu1 }
 0x215   : > { %v3253_v58 = vpack.c.bf16 %v1811_v53, %v1810_v55  ;;  %v3428_v59 = vpack.c.bf16 %v1881_v54, %v1880_v52  ;;  %v1452_v62 = vadd.f32 %v4185_v39, %v1451_v56  ;;  %v1732_v63 = vadd.f32 %v4185_v39, %v1731_v57 }
 0x216   : > { %v1453_v60 = vpop.f32.mrf.mxu0  ;;  %v1733_v61 = vpop.f32.mrf.mxu1 }
 0x217   : > { %3471 = vst [vmem:[%s4021_s5 + $0x100] sm:$0xff] %v3253_v58   ;;  %3506 = vst [vmem:[%s4021_s5 + $0x218] sm:$0xff] %v3428_v59   ;;  %v1812_v6 = vmax.f32 %v1452_v62, 0.0  ;;  %v1882_v7 = vmax.f32 %v1732_v63, 0.0 }
 0x218   : > { %v1454_v0 = vpop.f32.mrf.mxu0  ;;  %v1734_v1 = vpop.f32.mrf.mxu1 }
 0x219   : > { %v1455_v2 = vadd.f32 %v4185_v39, %v1454_v0  ;;  %v1735_v3 = vadd.f32 %v4185_v39, %v1734_v1 }
 0x21a   : > { %v1456_v4 = vpop.f32.mrf.mxu0  ;;  %v1736_v5 = vpop.f32.mrf.mxu1 }
 0x21b   : > { %v1813_v8 = vmax.f32 %v1455_v2, 0.0  ;;  %v1883_v9 = vmax.f32 %v1735_v3, 0.0 }
 0x21c   : > { %v1459_v10 = vpop.f32.mrf.mxu0  ;;  %v1739_v11 = vpop.f32.mrf.mxu1 }
 0x21d   : > { %v3258_v12 = vpack.c.bf16 %v1813_v8, %v1812_v6  ;;  %v3433_v13 = vpack.c.bf16 %v1883_v9, %v1882_v7  ;;  %v1460_v16 = vadd.f32 %v4185_v39, %v1459_v10  ;;  %v1740_v17 = vadd.f32 %v4185_v39, %v1739_v11 }
 0x21e   : > { %v1461_v14 = vpop.f32.mrf.mxu0  ;;  %v1741_v15 = vpop.f32.mrf.mxu1 }
 0x21f   : > { %3472 = vst [vmem:[%s4021_s5 + $0x108] sm:$0xff] %v3258_v12   ;;  %3507 = vst [vmem:[%s4021_s5 + $0x220] sm:$0xff] %v3433_v13   ;;  %v1814_v24 = vmax.f32 %v1460_v16, 0.0  ;;  %v1884_v25 = vmax.f32 %v1740_v17, 0.0 }
 0x220   : > { %v1462_v18 = vpop.f32.mrf.mxu0  ;;  %v1742_v19 = vpop.f32.mrf.mxu1 }
 0x221   : > { %v1463_v20 = vadd.f32 %v4185_v39, %v1462_v18  ;;  %v1743_v21 = vadd.f32 %v4185_v39, %v1742_v19 }
 0x222   : > { %v1464_v22 = vpop.f32.mrf.mxu0  ;;  %v1744_v23 = vpop.f32.mrf.mxu1 }
 0x223   : > { %v1815_v26 = vmax.f32 %v1463_v20, 0.0  ;;  %v1885_v27 = vmax.f32 %v1743_v21, 0.0 }
 0x225   : > { %v3263_v28 = vpack.c.bf16 %v1815_v26, %v1814_v24  ;;  %v3438_v29 = vpack.c.bf16 %v1885_v27, %v1884_v25 }
 0x227   : > { %3473 = vst [vmem:[%s4021_s5 + $0x110] sm:$0xff] %v3263_v28   ;;  %3508 = vst [vmem:[%s4021_s5 + $0x228] sm:$0xff] %v3438_v29  }
 0x228 PF: > { %s13_s12 = sadd.s32 1, %s3783_s12  }
 0x229   : > { %p10_p4 = scmp.ge.s32.totalorder %s13_s12, 4  }
 0x22b   :  { %12 = sbr.rel (!%p10_p4) target bundleno = 1 (0x1), region = 62 }

// kernel: _lambda_.11
= control target key start
LH: loop header
LB: loop body
LE: loop exit
PB: predicated region body
PF: predicated region fallthrough
CT: control target
= control target key end

     0   :  { %s3759_s12 = smov 0   ;;  %s3761_s13 = smov 0   ;;  %s4217_s0 = inlined_call_operand.vmem [shape: bf16[4,2240,128], index: 0, kind: input, shape index: {}]   ;;  %s4218_s1 = inlined_call_operand.vmem [shape: bf16[4,128,128], index: 1, kind: input, shape index: {}]   ;;  %s4219_s2 = inlined_call_operand.vmem [shape: f32[1,128], index: 2, kind: input, shape index: {}]   ;;  %s4220_s3 = inlined_call_operand.vmem [shape: f32[4,2240,128], index: 3, kind: output, shape index: {}]  }
   0x1   :  { %s3763_s14 = smov 0   ;;  %s3765_s15 = smov 0  }
   0x2   :  { %s3767_s16 = smov 0  }
   0x3 LB: > { %s22_s17 = sadd.s32 1, %s3729_s14  ;;  %s25_s18 = sadd.s32 1, %s3733_s15  ;;  %s3737_s16 = sphi %s3767_s16, %s13_s16   ;;  %s3733_s15 = sphi %s3765_s15, %s4224_s15   ;;  %s3729_s14 = sphi %s3763_s14, %s4223_s14   ;;  %s3725_s13 = sphi %s3761_s13, %s4222_s13   ;;  %s3721_s12 = sphi %s3759_s12, %s4221_s12  }
   0x4   : > { %p23_p0 = scmp.ge.s32.totalorder %s22_s17, 2  ;;  %p2541_p1 = scmp.ge.s32.totalorder %s3737_s16, 1 }
   0x5   : > { %p168_p2 = scmp.lt.s32.totalorder %s3737_s16, 9 }
   0x6   : > { %s4226_s17 = smov (%p23_p0, %s22_s17), 0  ;;  %s4228_s18 = smov (!%p23_p0, %s25_s18), %s3733_s15 }
   0x7   : > { %p169_p3 = pnand %p2541_p1, %p168_p2  ;;  %p27_p4 = scmp.ge.s32.totalorder %s4228_s18, 4 }
   0x8   : > { %s205_s19 = smul.u32 (!%p169_p3), 140, %s3721_s12  ;;  %p206_p5 = scmp.lt.s32.totalorder (!%p169_p3), %s3725_s13, 3 }
   0x9   : > { %s4230_s18 = smov (%p27_p4, %s4228_s18), 0  ;;  %172 = sbr.rel (%p169_p3) target bundleno = 545 (0x221), region = 32 }
   0xa   : > { %p208_p6 = scmp.lt.s32.totalorder (!%p169_p3), %s205_s19, 279 }
   0xe   : > { %s4232_s13 = smov (!%p206_p5, %s3725_s13), 3  ;;  %s4234_s19 = smov (!%p208_p6, %s205_s19), 279 }
   0xf   : > { %s3018_s20 = smul.u32 280, %s4232_s13  ;;  %s2767_s21 = sshll.u32 %s4232_s13, 6 }
  0x10   : > { %s3792_s24 = scalar_lea.vmem %s4218_s1, %s2767_s21 }
  0x11   : > { %s3794_s25 = sadd.s32 %s3018_s20, %s4234_s19  ;;  %v3059_v0 = vld [vmem:[%s3792_s24 + $0x38] sm:$0xff]   ;;  %v3060_v1 = vld [vmem:[%s3792_s24 + $0x30] sm:$0xff]   ;;  %v3061_v2 = vld [vmem:[%s3792_s24 + $0x28] sm:$0xff]  }
  0x12   : > { %2846 = vmatprep.subr.bf16.mxu0 %v3059_v0  ;;  %3002 = vmatprep.subr.bf16.mxu1 %v3059_v0  ;;  %s2542_s26 = sshll.u32 %s3794_s25, 2  ;;  %v3062_v3 = vld [vmem:[%s3792_s24 + $0x20] sm:$0xff]   ;;  %v3063_v6 = vld [vmem:[%s3792_s24 + $0x18] sm:$0xff]   ;;  %v3064_v7 = vld [vmem:[%s3792_s24 + $0x10] sm:$0xff]   ;;  %s2545_s5 = sshll.u32 %s3794_s25, 3 }
  0x13   : > { %2847 = vmatpush3.bf16.msra.mxu0 %v3059_v0  ;;  %3010 = vmatpush3.bf16.msra.mxu1 %v3059_v0  ;;  %s3803_s29 = scalar_lea.vmem %s4217_s0, %s2542_s26  ;;  %v3065_v8 = vld [vmem:[%s3792_s24 + $0x8] sm:$0xff]   ;;  %v3066_v9 = vld [vmem:[%s3792_s24] sm:$0xff]   ;;  %s3908_s8 = scalar_lea.vmem %s4220_s3, %s2545_s5 }
  0x14   : > { %2848 = vmatprep.subr.bf16.mxu0 %v3060_v1  ;;  %3003 = vmatprep.subr.bf16.mxu1 %v3060_v1  ;;  %v3067_v4 = vld [vmem:[%s3803_s29] sm:$0xff]   ;;  %v3068_v10 = vld [vmem:[%s3803_s29 + $0x8] sm:$0xff]   ;;  %v3071_v12 = vld [vmem:[%s3803_s29 + $0x10] sm:$0xff]  }
  0x15   : > { %v3069_v5 = vld [vmem:[%s3803_s29 + $0x120] sm:$0xff]   ;;  %2862 = vmatprep.mubr.bf16.mxu0 %v3067_v4  ;;  %v3070_v11 = vld [vmem:[%s3803_s29 + $0x128] sm:$0xff]   ;;  %v3073_v13 = vld [vmem:[%s3803_s29 + $0x130] sm:$0xff]  }
  0x16   : > { %2934 = vmatprep.mubr.bf16.mxu1 %v3069_v5  ;;  %v3072_v14 = vld [vmem:[%s3803_s29 + $0x18] sm:$0xff]   ;;  %v3075_v16 = vld [vmem:[%s3803_s29 + $0x20] sm:$0xff]   ;;  %v3076_v18 = vld [vmem:[%s3803_s29 + $0x28] sm:$0xff]  }
  0x17   : > { %2849 = vmatpush3.bf16.msra.mxu0 %v3060_v1  ;;  %3011 = vmatpush3.bf16.msra.mxu1 %v3060_v1  ;;  %v3074_v15 = vld [vmem:[%s3803_s29 + $0x138] sm:$0xff]   ;;  %v3077_v17 = vld [vmem:[%s3803_s29 + $0x140] sm:$0xff]   ;;  %v3078_v19 = vld [vmem:[%s3803_s29 + $0x148] sm:$0xff]  }
  0x18   : > { %2850 = vmatprep.subr.bf16.mxu0 %v3061_v2  ;;  %3004 = vmatprep.subr.bf16.mxu1 %v3061_v2  ;;  %v3079_v20 = vld [vmem:[%s3803_s29 + $0x30] sm:$0xff]   ;;  %v3080_v22 = vld [vmem:[%s3803_s29 + $0x38] sm:$0xff]   ;;  %v3083_v24 = vld [vmem:[%s3803_s29 + $0x40] sm:$0xff]  }
  0x19   : > { %v3081_v21 = vld [vmem:[%s3803_s29 + $0x150] sm:$0xff]   ;;  %v3082_v23 = vld [vmem:[%s3803_s29 + $0x158] sm:$0xff]   ;;  %v3085_v25 = vld [vmem:[%s3803_s29 + $0x160] sm:$0xff]  }
  0x1a   : > { %v3084_v26 = vld [vmem:[%s3803_s29 + $0x48] sm:$0xff]   ;;  %v3087_v28 = vld [vmem:[%s3803_s29 + $0x50] sm:$0xff]   ;;  %v3088_v30 = vld [vmem:[%s3803_s29 + $0x58] sm:$0xff]  }
  0x1b   : > { %2851 = vmatpush3.bf16.msra.mxu0 %v3061_v2  ;;  %3012 = vmatpush3.bf16.msra.mxu1 %v3061_v2  ;;  %v3086_v27 = vld [vmem:[%s3803_s29 + $0x168] sm:$0xff]   ;;  %v3089_v29 = vld [vmem:[%s3803_s29 + $0x170] sm:$0xff]   ;;  %v3090_v31 = vld [vmem:[%s3803_s29 + $0x178] sm:$0xff]  }
  0x1c   : > { %2852 = vmatprep.subr.bf16.mxu0 %v3062_v3  ;;  %3005 = vmatprep.subr.bf16.mxu1 %v3062_v3  ;;  %v3091_v32 = vld [vmem:[%s3803_s29 + $0x60] sm:$0xff]   ;;  %v3092_v34 = vld [vmem:[%s3803_s29 + $0x68] sm:$0xff]   ;;  %v3095_v36 = vld [vmem:[%s3803_s29 + $0x70] sm:$0xff]  }
  0x1d   : > { %v3093_v33 = vld [vmem:[%s3803_s29 + $0x180] sm:$0xff]   ;;  %v3094_v35 = vld [vmem:[%s3803_s29 + $0x188] sm:$0xff]   ;;  %v3097_v37 = vld [vmem:[%s3803_s29 + $0x190] sm:$0xff]  }
  0x1e   : > { %v3096_v38 = vld [vmem:[%s3803_s29 + $0x78] sm:$0xff]   ;;  %v3099_v40 = vld [vmem:[%s3803_s29 + $0x80] sm:$0xff]   ;;  %v3100_v42 = vld [vmem:[%s3803_s29 + $0x88] sm:$0xff]  }
  0x1f   : > { %2853 = vmatpush3.bf16.msra.mxu0 %v3062_v3  ;;  %3013 = vmatpush3.bf16.msra.mxu1 %v3062_v3  ;;  %v3098_v39 = vld [vmem:[%s3803_s29 + $0x198] sm:$0xff]   ;;  %v3101_v41 = vld [vmem:[%s3803_s29 + $0x1a0] sm:$0xff]   ;;  %v3102_v43 = vld [vmem:[%s3803_s29 + $0x1a8] sm:$0xff]  }
  0x20   : > { %2854 = vmatprep.subr.bf16.mxu0 %v3063_v6  ;;  %3006 = vmatprep.subr.bf16.mxu1 %v3063_v6  ;;  %v3103_v44 = vld [vmem:[%s3803_s29 + $0x90] sm:$0xff]   ;;  %v3104_v46 = vld [vmem:[%s3803_s29 + $0x98] sm:$0xff]   ;;  %v3107_v48 = vld [vmem:[%s3803_s29 + $0xa0] sm:$0xff]  }
  0x21   : > { %v3105_v45 = vld [vmem:[%s3803_s29 + $0x1b0] sm:$0xff]   ;;  %v3106_v47 = vld [vmem:[%s3803_s29 + $0x1b8] sm:$0xff]   ;;  %v3109_v49 = vld [vmem:[%s3803_s29 + $0x1c0] sm:$0xff]  }
  0x22   : > { %v3108_v50 = vld [vmem:[%s3803_s29 + $0xa8] sm:$0xff]   ;;  %v3111_v52 = vld [vmem:[%s3803_s29 + $0xb0] sm:$0xff]   ;;  %v3112_v54 = vld [vmem:[%s3803_s29 + $0xb8] sm:$0xff]  }
  0x23   : > { %2855 = vmatpush3.bf16.msra.mxu0 %v3063_v6  ;;  %3014 = vmatpush3.bf16.msra.mxu1 %v3063_v6  ;;  %v3110_v51 = vld [vmem:[%s3803_s29 + $0x1c8] sm:$0xff]   ;;  %v3113_v53 = vld [vmem:[%s3803_s29 + $0x1d0] sm:$0xff]   ;;  %v3114_v55 = vld [vmem:[%s3803_s29 + $0x1d8] sm:$0xff]  }
  0x24   : > { %2856 = vmatprep.subr.bf16.mxu0 %v3064_v7  ;;  %3007 = vmatprep.subr.bf16.mxu1 %v3064_v7  ;;  %v3115_v56 = vld [vmem:[%s3803_s29 + $0xc0] sm:$0xff]   ;;  %v3116_v58 = vld [vmem:[%s3803_s29 + $0xc8] sm:$0xff]   ;;  %v3119_v60 = vld [vmem:[%s3803_s29 + $0xd0] sm:$0xff]  }
  0x25   : > { %v3117_v57 = vld [vmem:[%s3803_s29 + $0x1e0] sm:$0xff]   ;;  %v3118_v59 = vld [vmem:[%s3803_s29 + $0x1e8] sm:$0xff]   ;;  %v3121_v61 = vld [vmem:[%s3803_s29 + $0x1f0] sm:$0xff]  }
  0x26   : > { %v3120_v62 = vld [vmem:[%s3803_s29 + $0xd8] sm:$0xff]   ;;  %v3123_v0 = vld [vmem:[%s3803_s29 + $0xe0] sm:$0xff]   ;;  %v3124_v2 = vld [vmem:[%s3803_s29 + $0xe8] sm:$0xff]  }
  0x27   : > { %2857 = vmatpush3.bf16.msra.mxu0 %v3064_v7  ;;  %3015 = vmatpush3.bf16.msra.mxu1 %v3064_v7  ;;  %v3122_v63 = vld [vmem:[%s3803_s29 + $0x1f8] sm:$0xff]   ;;  %v3125_v1 = vld [vmem:[%s3803_s29 + $0x200] sm:$0xff]   ;;  %v3126_v3 = vld [vmem:[%s3803_s29 + $0x208] sm:$0xff]  }
  0x28   : > { %2858 = vmatprep.subr.bf16.mxu0 %v3065_v8  ;;  %3008 = vmatprep.subr.bf16.mxu1 %v3065_v8  ;;  %v3127_v4 = vld [vmem:[%s3803_s29 + $0xf0] sm:$0xff]   ;;  %v3128_v6 = vld [vmem:[%s3803_s29 + $0xf8] sm:$0xff]  }
  0x29   : > { %v3129_v5 = vld [vmem:[%s3803_s29 + $0x210] sm:$0xff]   ;;  %v3130_v7 = vld [vmem:[%s3803_s29 + $0x218] sm:$0xff]  }
  0x2b   : > { %2859 = vmatpush3.bf16.msra.mxu0 %v3065_v8  ;;  %3016 = vmatpush3.bf16.msra.mxu1 %v3065_v8  ;;  %v3131_v8 = vld [vmem:[%s3803_s29 + $0x100] sm:$0xff]  }
  0x2c   : > { %2860 = vmatprep.subr.bf16.mxu0 %v3066_v9  ;;  %3009 = vmatprep.subr.bf16.mxu1 %v3066_v9 }
  0x2f   : > { %2861 = vmatpush3.bf16.msra.mxu0 %v3066_v9  ;;  %3017 = vmatpush3.bf16.msra.mxu1 %v3066_v9  ;;  %v3133_v9 = vld [vmem:[%s3803_s29 + $0x220] sm:$0xff]  }
  0x32   : > { %2863 = vmatmul.mubr.bf16.vlgmr.msra.gmra.mxu0 %v3068_v10  ;;  %2935 = vmatmul.mubr.bf16.vlgmr.msra.gmra.mxu1 %v3070_v11  ;;  %v3132_v10 = vld [vmem:[%s3803_s29 + $0x108] sm:$0xff]  }
  0x33   : > { %2866 = vmatprep.mubr.bf16.mxu0 %v3071_v12  ;;  %2938 = vmatprep.mubr.bf16.mxu1 %v3073_v13  ;;  %v3134_v11 = vld [vmem:[%s3803_s29 + $0x228] sm:$0xff]   ;;  %v3135_v12 = vld [vmem:[%s3803_s29 + $0x110] sm:$0xff]   ;;  %v3136_v13 = vld [vmem:[%s3803_s29 + $0x118] sm:$0xff]  }
  0x3a   : > { %2867 = vmatmul.mubr.bf16.gmra.mxu0 %v3072_v14  ;;  %2939 = vmatmul.mubr.bf16.gmra.mxu1 %v3074_v15  ;;  %v3883_v14 = vld [vmem:[%s4219_s2] ss:$0 sm:$0xff] }
  0x3b   : > { %2870 = vmatprep.mubr.bf16.mxu0 %v3075_v16  ;;  %2942 = vmatprep.mubr.bf16.mxu1 %v3077_v17 }
  0x42   : > { %2871 = vmatmul.mubr.bf16.gmra.mxu0 %v3076_v18  ;;  %2943 = vmatmul.mubr.bf16.gmra.mxu1 %v3078_v19 }
  0x43   : > { %2874 = vmatprep.mubr.bf16.mxu0 %v3079_v20  ;;  %2946 = vmatprep.mubr.bf16.mxu1 %v3081_v21 }
  0x4a   : > { %2875 = vmatmul.mubr.bf16.gmra.mxu0 %v3080_v22  ;;  %2947 = vmatmul.mubr.bf16.gmra.mxu1 %v3082_v23 }
  0x4b   : > { %2878 = vmatprep.mubr.bf16.mxu0 %v3083_v24  ;;  %2950 = vmatprep.mubr.bf16.mxu1 %v3085_v25 }
  0x52   : > { %2879 = vmatmul.mubr.bf16.gmra.mxu0 %v3084_v26  ;;  %2951 = vmatmul.mubr.bf16.gmra.mxu1 %v3086_v27 }
  0x53   : > { %2882 = vmatprep.mubr.bf16.mxu0 %v3087_v28  ;;  %2954 = vmatprep.mubr.bf16.mxu1 %v3089_v29 }
  0x5a   : > { %2883 = vmatmul.mubr.bf16.gmra.mxu0 %v3088_v30  ;;  %2955 = vmatmul.mubr.bf16.gmra.mxu1 %v3090_v31 }
  0x5b   : > { %2886 = vmatprep.mubr.bf16.mxu0 %v3091_v32  ;;  %2958 = vmatprep.mubr.bf16.mxu1 %v3093_v33 }
  0x62   : > { %2887 = vmatmul.mubr.bf16.gmra.mxu0 %v3092_v34  ;;  %2959 = vmatmul.mubr.bf16.gmra.mxu1 %v3094_v35 }
  0x63   : > { %2890 = vmatprep.mubr.bf16.mxu0 %v3095_v36  ;;  %2962 = vmatprep.mubr.bf16.mxu1 %v3097_v37 }
  0x6a   : > { %2891 = vmatmul.mubr.bf16.gmra.mxu0 %v3096_v38  ;;  %2963 = vmatmul.mubr.bf16.gmra.mxu1 %v3098_v39 }
  0x6b   : > { %2894 = vmatprep.mubr.bf16.mxu0 %v3099_v40  ;;  %2966 = vmatprep.mubr.bf16.mxu1 %v3101_v41 }
  0x72   : > { %2895 = vmatmul.mubr.bf16.gmra.mxu0 %v3100_v42  ;;  %2967 = vmatmul.mubr.bf16.gmra.mxu1 %v3102_v43 }
  0x73   : > { %2898 = vmatprep.mubr.bf16.mxu0 %v3103_v44  ;;  %2970 = vmatprep.mubr.bf16.mxu1 %v3105_v45 }
  0x7a   : > { %2899 = vmatmul.mubr.bf16.gmra.mxu0 %v3104_v46  ;;  %2971 = vmatmul.mubr.bf16.gmra.mxu1 %v3106_v47 }
  0x7b   : > { %2902 = vmatprep.mubr.bf16.mxu0 %v3107_v48  ;;  %2974 = vmatprep.mubr.bf16.mxu1 %v3109_v49 }
  0x82   : > { %2903 = vmatmul.mubr.bf16.gmra.mxu0 %v3108_v50  ;;  %2975 = vmatmul.mubr.bf16.gmra.mxu1 %v3110_v51 }
  0x83   : > { %2906 = vmatprep.mubr.bf16.mxu0 %v3111_v52  ;;  %2978 = vmatprep.mubr.bf16.mxu1 %v3113_v53 }
  0x8a   : > { %2907 = vmatmul.mubr.bf16.gmra.mxu0 %v3112_v54  ;;  %2979 = vmatmul.mubr.bf16.gmra.mxu1 %v3114_v55 }
  0x8b   : > { %2910 = vmatprep.mubr.bf16.mxu0 %v3115_v56  ;;  %2982 = vmatprep.mubr.bf16.mxu1 %v3117_v57 }
  0x92   : > { %2911 = vmatmul.mubr.bf16.gmra.mxu0 %v3116_v58  ;;  %2983 = vmatmul.mubr.bf16.gmra.mxu1 %v3118_v59 }
  0x93   : > { %2914 = vmatprep.mubr.bf16.mxu0 %v3119_v60  ;;  %2986 = vmatprep.mubr.bf16.mxu1 %v3121_v61 }
  0x9a   : > { %2915 = vmatmul.mubr.bf16.gmra.mxu0 %v3120_v62  ;;  %2987 = vmatmul.mubr.bf16.gmra.mxu1 %v3122_v63 }
  0x9b   : > { %2918 = vmatprep.mubr.bf16.mxu0 %v3123_v0  ;;  %2990 = vmatprep.mubr.bf16.mxu1 %v3125_v1 }
  0xa2   : > { %2919 = vmatmul.mubr.bf16.gmra.mxu0 %v3124_v2  ;;  %2991 = vmatmul.mubr.bf16.gmra.mxu1 %v3126_v3 }
  0xa3   : > { %2922 = vmatprep.mubr.bf16.mxu0 %v3127_v4  ;;  %2994 = vmatprep.mubr.bf16.mxu1 %v3129_v5 }
  0xaa   : > { %2923 = vmatmul.mubr.bf16.gmra.mxu0 %v3128_v6  ;;  %2995 = vmatmul.mubr.bf16.gmra.mxu1 %v3130_v7 }
  0xab   : > { %2926 = vmatprep.mubr.bf16.mxu0 %v3131_v8  ;;  %2998 = vmatprep.mubr.bf16.mxu1 %v3133_v9 }
  0xb2   : > { %2927 = vmatmul.mubr.bf16.gmra.mxu0 %v3132_v10  ;;  %2999 = vmatmul.mubr.bf16.gmra.mxu1 %v3134_v11 }
  0xb3   : > { %2930 = vmatprep.mubr.bf16.mxu0 %v3135_v12 }
  0xba   : > { %2931 = vmatmul.mubr.bf16.gmra.mxu0 %v3136_v13 }
  0xf2   : > { %v2864_v15 = vpop.f32.mrf.mxu0  ;;  %v2936_v16 = vpop.f32.mrf.mxu1 }
  0xf3   : > { %v905_v17 = vadd.f32 %v2864_v15, %v3883_v14  ;;  %v1193_v18 = vadd.f32 %v2936_v16, %v3883_v14 }
  0xf4   : > { %v896_v19 = vpop.f32.mrf.mxu0  ;;  %v1184_v20 = vpop.f32.mrf.mxu1 }
  0xf5   : > { %v2627_v21 = vmul.f32 -1.442695, %v905_v17  ;;  %v897_v22 = vadd.f32 %v3883_v14, %v896_v19  ;;  %v2699_v23 = vmul.f32 -1.442695, %v1193_v18  ;;  %v1185_v24 = vadd.f32 %v3883_v14, %v1184_v20 }
  0xf6   : > { %v2865_v25 = vpop.f32.mrf.mxu0  ;;  %v2937_v26 = vpop.f32.mrf.mxu1 }
  0xf7   : > { %3137 = vpow2.f32 %v2627_v21  ;;  %v2625_v27 = vmul.f32 -1.442695, %v897_v22  ;;  %v908_v28 = vadd.f32 %v2865_v25, %v3883_v14  ;;  %v2697_v29 = vmul.f32 -1.442695, %v1185_v24 }
  0xf8   : > { %3139 = vpow2.f32 %v2699_v23  ;;  %v899_v30 = vpop.f32.mrf.mxu0  ;;  %v1196_v31 = vadd.f32 %v2937_v26, %v3883_v14  ;;  %v1187_v32 = vpop.f32.mrf.mxu1 }
  0xf9   : > { %3141 = vpow2.f32 %v2625_v27  ;;  %v2628_v33 = vmul.f32 -1.442695, %v908_v28  ;;  %v900_v34 = vadd.f32 %v3883_v14, %v899_v30  ;;  %v1188_v35 = vadd.f32 %v3883_v14, %v1187_v32 }
  0xfa   : > { %3143 = vpow2.f32 %v2697_v29  ;;  %v2700_v36 = vmul.f32 -1.442695, %v1196_v31  ;;  %v2868_v37 = vpop.f32.mrf.mxu0  ;;  %v2940_v38 = vpop.f32.mrf.mxu1 }
  0xfb   : > { %3145 = vpow2.f32 %v2628_v33  ;;  %v2626_v39 = vmul.f32 -1.442695, %v900_v34  ;;  %v921_v40 = vadd.f32 %v2868_v37, %v3883_v14  ;;  %v2698_v41 = vmul.f32 -1.442695, %v1188_v35 }
  0xfc   : > { %3147 = vpow2.f32 %v2700_v36  ;;  %v912_v42 = vpop.f32.mrf.mxu0  ;;  %v1209_v43 = vadd.f32 %v2940_v38, %v3883_v14  ;;  %v1200_v44 = vpop.f32.mrf.mxu1 }
  0xfd   : > { %3149 = vpow2.f32 %v2626_v39  ;;  %v2631_v45 = vmul.f32 -1.442695, %v921_v40  ;;  %v913_v46 = vadd.f32 %v3883_v14, %v912_v42  ;;  %v1201_v47 = vadd.f32 %v3883_v14, %v1200_v44 }
  0xfe   : > { %3151 = vpow2.f32 %v2698_v41  ;;  %v2703_v48 = vmul.f32 -1.442695, %v1209_v43  ;;  %v2869_v49 = vpop.f32.mrf.mxu0  ;;  %v2941_v50 = vpop.f32.mrf.mxu1 }
  0xff   : > { %3153 = vpow2.f32 %v2631_v45  ;;  %v2629_v51 = vmul.f32 -1.442695, %v913_v46  ;;  %v924_v52 = vadd.f32 %v2869_v49, %v3883_v14  ;;  %v2701_v53 = vmul.f32 -1.442695, %v1201_v47 }
 0x100   : > { %3155 = vpow2.f32 %v2703_v48  ;;  %v915_v54 = vpop.f32.mrf.mxu0  ;;  %v1212_v55 = vadd.f32 %v2941_v50, %v3883_v14  ;;  %v1203_v56 = vpop.f32.mrf.mxu1 }
 0x101   : > { %3157 = vpow2.f32 %v2629_v51  ;;  %v2632_v57 = vmul.f32 -1.442695, %v924_v52  ;;  %v916_v58 = vadd.f32 %v3883_v14, %v915_v54  ;;  %v1204_v59 = vadd.f32 %v3883_v14, %v1203_v56 }
 0x102   : > { %3159 = vpow2.f32 %v2701_v53  ;;  %v2704_v60 = vmul.f32 -1.442695, %v1212_v55  ;;  %v2872_v61 = vpop.f32.mrf.mxu0  ;;  %v2944_v2 = vpop.f32.mrf.mxu1 }
 0x103   : > { %3161 = vpow2.f32 %v2632_v57  ;;  %v2630_v62 = vmul.f32 -1.442695, %v916_v58  ;;  %v2702_v63 = vmul.f32 -1.442695, %v1204_v59  ;;  %v937_v29 = vadd.f32 %v2872_v61, %v3883_v14 }
 0x104   : > { %v3138_v0 = vpop.eup %3137  ;;  %3163 = vpow2.f32 %v2704_v60  ;;  %v928_v1 = vpop.f32.mrf.mxu0  ;;  %v1225_v39 = vadd.f32 %v2944_v2, %v3883_v14 }
 0x105   : > { %v3140_v3 = vpop.eup %3139  ;;  %v1877_v4 = vadd.f32 1.0, %v3138_v0  ;;  %3165 = vpow2.f32 %v2630_v62  ;;  %v1216_v12 = vpop.f32.mrf.mxu1  ;;  %v929_v35 = vadd.f32 %v3883_v14, %v928_v1  ;;  %v2635_v42 = vmul.f32 -1.442695, %v937_v29 }
 0x106   : > { %v3142_v5 = vpop.eup %3141  ;;  %v1949_v6 = vadd.f32 1.0, %v3140_v3  ;;  %3167 = vpow2.f32 %v2702_v63  ;;  %v2873_v7 = vpop.f32.mrf.mxu0  ;;  %v1217_v46 = vadd.f32 %v3883_v14, %v1216_v12  ;;  %v2707_v54 = vmul.f32 -1.442695, %v1225_v39 }
 0x107   : > { %v3144_v8 = vpop.eup %3143  ;;  %3169 = vrcp.f32 %v1877_v4  ;;  %v1875_v9 = vadd.f32 1.0, %v3142_v5  ;;  %v2945_v24 = vpop.f32.mrf.mxu1  ;;  %v940_v43 = vadd.f32 %v2873_v7, %v3883_v14  ;;  %v2633_v50 = vmul.f32 -1.442695, %v929_v35 }
 0x108   : > { %v3146_v10 = vpop.eup %3145  ;;  %3171 = vrcp.f32 %v1949_v6  ;;  %v1947_v11 = vadd.f32 1.0, %v3144_v8  ;;  %v931_v13 = vpop.f32.mrf.mxu0  ;;  %v1228_v55 = vadd.f32 %v2945_v24, %v3883_v14  ;;  %v2705_v60 = vmul.f32 -1.442695, %v1217_v46 }
 0x109   : > { %v3148_v15 = vpop.eup %3147  ;;  %3173 = vrcp.f32 %v1875_v9  ;;  %v1878_v16 = vadd.f32 1.0, %v3146_v10  ;;  %v1219_v36 = vpop.f32.mrf.mxu1  ;;  %v932_v51 = vadd.f32 %v3883_v14, %v931_v13  ;;  %v2636_v57 = vmul.f32 -1.442695, %v940_v43 }
 0x10a   : > { %v3150_v17 = vpop.eup %3149  ;;  %3175 = vrcp.f32 %v1947_v11  ;;  %v1950_v18 = vadd.f32 1.0, %v3148_v15  ;;  %v2876_v21 = vpop.f32.mrf.mxu0  ;;  %v1220_v61 = vadd.f32 %v3883_v14, %v1219_v36  ;;  %v2708_v4 = vmul.f32 -1.442695, %v1228_v55 }
 0x10b   : > { %v3152_v19 = vpop.eup %3151  ;;  %3177 = vrcp.f32 %v1878_v16  ;;  %v1876_v20 = vadd.f32 1.0, %v3150_v17  ;;  %v2948_v52 = vpop.f32.mrf.mxu1  ;;  %v953_v58 = vadd.f32 %v2876_v21, %v3883_v14  ;;  %v2634_v0 = vmul.f32 -1.442695, %v932_v51 }
 0x10c   : > { %v3154_v22 = vpop.eup %3153  ;;  %3179 = vrcp.f32 %v1950_v18  ;;  %v1948_v23 = vadd.f32 1.0, %v3152_v19  ;;  %v944_v32 = vpop.f32.mrf.mxu0  ;;  %v1241_v5 = vadd.f32 %v2948_v52, %v3883_v14  ;;  %v2706_v10 = vmul.f32 -1.442695, %v1220_v61 }
 0x10d   : > { %v3156_v25 = vpop.eup %3155  ;;  %3181 = vrcp.f32 %v1876_v20  ;;  %v1881_v26 = vadd.f32 1.0, %v3154_v22  ;;  %v945_v1 = vadd.f32 %v3883_v14, %v944_v32  ;;  %v1232_v2 = vpop.f32.mrf.mxu1  ;;  %v2639_v7 = vmul.f32 -1.442695, %v953_v58 }
 0x10e   : > { %v3158_v27 = vpop.eup %3157  ;;  %3183 = vrcp.f32 %v1948_v23  ;;  %v1953_v28 = vadd.f32 1.0, %v3156_v25  ;;  %v2877_v47 = vpop.f32.mrf.mxu0  ;;  %v1233_v11 = vadd.f32 %v3883_v14, %v1232_v2  ;;  %v2711_v19 = vmul.f32 -1.442695, %v1241_v5 }
 0x10f   : > { %v3160_v30 = vpop.eup %3159  ;;  %3185 = vrcp.f32 %v1881_v26  ;;  %v1879_v31 = vadd.f32 1.0, %v3158_v27  ;;  %v956_v8 = vadd.f32 %v2877_v47, %v3883_v14  ;;  %v2637_v15 = vmul.f32 -1.442695, %v945_v1  ;;  %v2949_v17 = vpop.f32.mrf.mxu1 }
 0x110   : > { %v3162_v33 = vpop.eup %3161  ;;  %3187 = vrcp.f32 %v1953_v28  ;;  %v1951_v34 = vadd.f32 1.0, %v3160_v30  ;;  %v947_v62 = vpop.f32.mrf.mxu0  ;;  %v1244_v20 = vadd.f32 %v2949_v17, %v3883_v14  ;;  %v2709_v24 = vmul.f32 -1.442695, %v1233_v11 }
 0x111   : > { %v3164_v37 = vpop.eup %3163  ;;  %3189 = vrcp.f32 %v1879_v31  ;;  %v1882_v38 = vadd.f32 1.0, %v3162_v33  ;;  %v948_v16 = vadd.f32 %v3883_v14, %v947_v62  ;;  %v2640_v22 = vmul.f32 -1.442695, %v956_v8  ;;  %v1235_v29 = vpop.f32.mrf.mxu1 }
 0x112   : > { %v3166_v40 = vpop.eup %3165  ;;  %3191 = vrcp.f32 %v1951_v34  ;;  %v1954_v41 = vadd.f32 1.0, %v3164_v37  ;;  %v2880_v12 = vpop.f32.mrf.mxu0  ;;  %v2712_v31 = vmul.f32 -1.442695, %v1244_v20  ;;  %v1236_v62 = vadd.f32 %v3883_v14, %v1235_v29 }
 0x113   : > { %v3168_v44 = vpop.eup %3167  ;;  %3193 = vrcp.f32 %v1882_v38  ;;  %v1880_v45 = vadd.f32 1.0, %v3166_v40  ;;  %v969_v25 = vadd.f32 %v2880_v12, %v3883_v14  ;;  %v2638_v28 = vmul.f32 -1.442695, %v948_v16  ;;  %v2952_v38 = vpop.f32.mrf.mxu1 }
 0x114   : > { %v3170_v48 = vpop.eup %3169  ;;  %3195 = vrcp.f32 %v1954_v41  ;;  %v1952_v49 = vadd.f32 1.0, %v3168_v44  ;;  %v3934_v26 = vpop.f32.mrf.mxu0  ;;  %v1257_v8 = vadd.f32 %v2952_v38, %v3883_v14  ;;  %v2710_v11 = vmul.f32 -1.442695, %v1236_v62 }
 0x115   : > { %v3172_v53 = vpop.eup %3171  ;;  %2297 = vst [vmem:[%s3908_s8 + $0x10] sm:$0xff] %v3170_v48  ;;  %3197 = vrcp.f32 %v1880_v45  ;;  %v2643_v34 = vmul.f32 -1.442695, %v969_v25  ;;  %v1248_v47 = vpop.f32.mrf.mxu1 }
 0x116   : > { %v3174_v56 = vpop.eup %3173  ;;  %2369 = vst [vmem:[%s3908_s8 + $0x250] sm:$0xff] %v3172_v53  ;;  %3199 = vpow2.f32 %v2635_v42  ;;  %v2881_v35 = vpop.f32.mrf.mxu0  ;;  %v1249_v16 = vadd.f32 %v3883_v14, %v1248_v47 }
 0x117   : > { %v3176_v59 = vpop.eup %3175  ;;  %2295 = vst [vmem:[%s3908_s8] sm:$0xff] %v3174_v56  ;;  %3201 = vrcp.f32 %v1952_v49  ;;  %v972_v12 = vadd.f32 %v2881_v35, %v3883_v14 }
 0x118   : > { %v3178_v63 = vpop.eup %3177  ;;  %2367 = vst [vmem:[%s3908_s8 + $0x240] sm:$0xff] %v3176_v59  ;;  %3203 = vpow2.f32 %v2633_v50  ;;  %v963_v44 = vpop.f32.mrf.mxu0 }
 0x119   : > { %v3180_v3 = vpop.eup %3179  ;;  %2298 = vst [vmem:[%s3908_s8 + $0x18] sm:$0xff] %v3178_v63  ;;  %3205 = vpow2.f32 %v2707_v54  ;;  %v964_v20 = vadd.f32 %v3883_v14, %v963_v44 }
 0x11a   : > { %v3182_v6 = vpop.eup %3181  ;;  %2370 = vst [vmem:[%s3908_s8 + $0x258] sm:$0xff] %v3180_v3  ;;  %3207 = vpow2.f32 %v2636_v57  ;;  %v2884_v54 = vpop.f32.mrf.mxu0 }
 0x11b   : > { %v3184_v9 = vpop.eup %3183  ;;  %2296 = vst [vmem:[%s3908_s8 + $0x8] sm:$0xff] %v3182_v6  ;;  %3209 = vpow2.f32 %v2705_v60  ;;  %v2953_v57 = vpop.f32.mrf.mxu1 }
 0x11c   : > { %v3186_v13 = vpop.eup %3185  ;;  %2368 = vst [vmem:[%s3908_s8 + $0x248] sm:$0xff] %v3184_v9  ;;  %3211 = vpow2.f32 %v2634_v0  ;;  %v976_v1 = vpop.f32.mrf.mxu0  ;;  %v1260_v25 = vadd.f32 %v2953_v57, %v3883_v14 }
 0x11d   : > { %v3188_v18 = vpop.eup %3187  ;;  %2301 = vst [vmem:[%s3908_s8 + $0x30] sm:$0xff] %v3186_v13  ;;  %3213 = vpow2.f32 %v2708_v4  ;;  %v961_v4 = vadd.f32 %v3883_v14, %v3934_v26  ;;  %v1251_v5 = vpop.f32.mrf.mxu1  ;;  %v977_v35 = vadd.f32 %v3883_v14, %v976_v1 }
 0x11e   : > { %v3190_v21 = vpop.eup %3189  ;;  %2373 = vst [vmem:[%s3908_s8 + $0x270] sm:$0xff] %v3188_v18  ;;  %3215 = vpow2.f32 %v2639_v7  ;;  %v2885_v17 = vpop.f32.mrf.mxu0  ;;  %v2716_v38 = vmul.f32 -1.442695, %v1260_v25 }
 0x11f   : > { %v3192_v23 = vpop.eup %3191  ;;  %2299 = vst [vmem:[%s3908_s8 + $0x20] sm:$0xff] %v3190_v21  ;;  %3217 = vpow2.f32 %v2706_v10  ;;  %v2956_v21 = vpop.f32.mrf.mxu1 }
 0x120   : > { %v3194_v27 = vpop.eup %3193  ;;  %2371 = vst [vmem:[%s3908_s8 + $0x260] sm:$0xff] %v3192_v23  ;;  %3219 = vpow2.f32 %v2637_v15 }
 0x121   : > { %v3196_v30 = vpop.eup %3195  ;;  %2302 = vst [vmem:[%s3908_s8 + $0x38] sm:$0xff] %v3194_v27  ;;  %3221 = vpow2.f32 %v2711_v19  ;;  %v2641_v19 = vmul.f32 -1.442695, %v961_v4  ;;  %v2644_v27 = vmul.f32 -1.442695, %v972_v12 }
 0x122   : > { %v3198_v32 = vpop.eup %3197  ;;  %2374 = vst [vmem:[%s3908_s8 + $0x278] sm:$0xff] %v3196_v30  ;;  %3223 = vpow2.f32 %v2640_v22  ;;  %v2713_v30 = vmul.f32 -1.442695, %v1249_v16 }
 0x123   : > { %v3200_v33 = vpop.eup %3199  ;;  %2300 = vst [vmem:[%s3908_s8 + $0x28] sm:$0xff] %v3198_v32  ;;  %3225 = vpow2.f32 %v2709_v24  ;;  %v2715_v24 = vmul.f32 -1.442695, %v1257_v8  ;;  %v979_v32 = vpop.f32.mrf.mxu0 }
 0x124   : > { %v3202_v36 = vpop.eup %3201  ;;  %v1885_v37 = vadd.f32 1.0, %v3200_v33  ;;  %3227 = vpow2.f32 %v2638_v28  ;;  %v985_v28 = vadd.f32 %v2884_v54, %v3883_v14 }
 0x125   : > { %v3204_v39 = vpop.eup %3203  ;;  %2372 = vst [vmem:[%s3908_s8 + $0x268] sm:$0xff] %v3202_v36  ;;  %3229 = vpow2.f32 %v2712_v31  ;;  %v1252_v31 = vadd.f32 %v3883_v14, %v1251_v5  ;;  %v1264_v36 = vpop.f32.mrf.mxu1 }
 0x126   : > { %v3206_v40 = vpop.eup %3205  ;;  %3231 = vrcp.f32 %v1885_v37  ;;  %v1883_v41 = vadd.f32 1.0, %v3204_v39  ;;  %v1273_v39 = vadd.f32 %v2956_v21, %v3883_v14 }
 0x127   : > { %v3208_v42 = vpop.eup %3207  ;;  %v1957_v43 = vadd.f32 1.0, %v3206_v40  ;;  %3233 = vpow2.f32 %v2643_v34  ;;  %v2642_v34 = vmul.f32 -1.442695, %v964_v20  ;;  %v2714_v44 = vmul.f32 -1.442695, %v1252_v31 }
 0x128   : > { %v3210_v45 = vpop.eup %3209  ;;  %3235 = vrcp.f32 %v1883_v41  ;;  %v1886_v46 = vadd.f32 1.0, %v3208_v42  ;;  %v2647_v41 = vmul.f32 -1.442695, %v985_v28  ;;  %v988_v42 = vadd.f32 %v2885_v17, %v3883_v14 }
 0x129   : > { %v3212_v48 = vpop.eup %3211  ;;  %3237 = vrcp.f32 %v1957_v43  ;;  %v1955_v49 = vadd.f32 1.0, %v3210_v45  ;;  %v1265_v45 = vadd.f32 %v3883_v14, %v1264_v36 }
 0x12a   : > { %v3214_v50 = vpop.eup %3213  ;;  %3239 = vrcp.f32 %v1886_v46  ;;  %v1884_v51 = vadd.f32 1.0, %v3212_v48  ;;  %v2888_v46 = vpop.f32.mrf.mxu0  ;;  %v2645_v48 = vmul.f32 -1.442695, %v977_v35 }
 0x12b   : > { %v3216_v52 = vpop.eup %3215  ;;  %3241 = vrcp.f32 %v1955_v49  ;;  %v1958_v53 = vadd.f32 1.0, %v3214_v50  ;;  %v980_v49 = vadd.f32 %v3883_v14, %v979_v32  ;;  %v2957_v50 = vpop.f32.mrf.mxu1  ;;  %v2717_v57 = vmul.f32 -1.442695, %v1265_v45 }
 0x12c   : > { %v3218_v55 = vpop.eup %3217  ;;  %3243 = vrcp.f32 %v1884_v51  ;;  %v1889_v56 = vadd.f32 1.0, %v3216_v52  ;;  %v2719_v52 = vmul.f32 -1.442695, %v1273_v39 }
 0x12d   : > { %v3220_v58 = vpop.eup %3219  ;;  %3245 = vrcp.f32 %v1958_v53  ;;  %v1956_v59 = vadd.f32 1.0, %v3218_v55  ;;  %v1276_v53 = vadd.f32 %v2957_v50, %v3883_v14  ;;  %v2648_v55 = vmul.f32 -1.442695, %v988_v42  ;;  %v1267_v62 = vpop.f32.mrf.mxu1 }
 0x12e   : > { %v3222_v60 = vpop.eup %3221  ;;  %3247 = vrcp.f32 %v1889_v56  ;;  %v1887_v61 = vadd.f32 1.0, %v3220_v58  ;;  %v1001_v58 = vadd.f32 %v2888_v46, %v3883_v14  ;;  %v1268_v32 = vadd.f32 %v3883_v14, %v1267_v62 }
 0x12f   : > { %v3224_v63 = vpop.eup %3223  ;;  %3249 = vrcp.f32 %v1956_v59  ;;  %v1961_v0 = vadd.f32 1.0, %v3222_v60  ;;  %v3969_v59 = vpop.f32.mrf.mxu0 }
 0x130   : > { %v3226_v2 = vpop.eup %3225  ;;  %3251 = vrcp.f32 %v1887_v61  ;;  %v1890_v3 = vadd.f32 1.0, %v3224_v63  ;;  %v2646_v61 = vmul.f32 -1.442695, %v980_v49  ;;  %v2718_v45 = vmul.f32 -1.442695, %v1268_v32 }
 0x131   : > { %v3228_v6 = vpop.eup %3227  ;;  %3253 = vrcp.f32 %v1961_v0  ;;  %v1959_v7 = vadd.f32 1.0, %v3226_v2  ;;  %v2720_v0 = vmul.f32 -1.442695, %v1276_v53  ;;  %v2889_v4 = vpop.f32.mrf.mxu0 }
 0x132   : > { %v3230_v9 = vpop.eup %3229  ;;  %3255 = vrcp.f32 %v1890_v3  ;;  %v1888_v10 = vadd.f32 1.0, %v3228_v6  ;;  %v2651_v3 = vmul.f32 -1.442695, %v1001_v58  ;;  %v1004_v46 = vadd.f32 %v2889_v4, %v3883_v14 }
 0x133   : > { %v3232_v13 = vpop.eup %3231  ;;  %3257 = vrcp.f32 %v1959_v7  ;;  %v1962_v15 = vadd.f32 1.0, %v3230_v9  ;;  %v2960_v7 = vpop.f32.mrf.mxu1 }
 0x134   : > { %v3234_v18 = vpop.eup %3233  ;;  %2305 = vst [vmem:[%s3908_s8 + $0x50] sm:$0xff] %v3232_v13  ;;  %3259 = vrcp.f32 %v1888_v10  ;;  %v995_v13 = vpop.f32.mrf.mxu0  ;;  %v1289_v42 = vadd.f32 %v2960_v7, %v3883_v14 }
 0x135   : > { %v3236_v22 = vpop.eup %3235  ;;  %3261 = vrcp.f32 %v1962_v15  ;;  %v1893_v23 = vadd.f32 1.0, %v3234_v18  ;;  %v1280_v17 = vpop.f32.mrf.mxu1  ;;  %v996_v53 = vadd.f32 %v3883_v14, %v995_v13 }
 0x136   : > { %v3238_v26 = vpop.eup %3237  ;;  %2303 = vst [vmem:[%s3908_s8 + $0x40] sm:$0xff] %v3236_v22  ;;  %3263 = vpow2.f32 %v2710_v11  ;;  %v1281_v49 = vadd.f32 %v3883_v14, %v1280_v17 }
 0x137   : > { %v3240_v29 = vpop.eup %3239  ;;  %2377 = vst [vmem:[%s3908_s8 + $0x290] sm:$0xff] %v3238_v26  ;;  %3265 = vrcp.f32 %v1893_v23 }
 0x138   : > { %v3242_v33 = vpop.eup %3241  ;;  %2306 = vst [vmem:[%s3908_s8 + $0x58] sm:$0xff] %v3240_v29  ;;  %3267 = vpow2.f32 %v2641_v19 }
 0x139   : > { %v3244_v37 = vpop.eup %3243  ;;  %2375 = vst [vmem:[%s3908_s8 + $0x280] sm:$0xff] %v3242_v33  ;;  %3269 = vpow2.f32 %v2715_v24  ;;  %v2892_v24 = vpop.f32.mrf.mxu0 }
 0x13a   : > { %v3246_v40 = vpop.eup %3245  ;;  %2304 = vst [vmem:[%s3908_s8 + $0x48] sm:$0xff] %v3244_v37  ;;  %3271 = vpow2.f32 %v2644_v27  ;;  %v2961_v27 = vpop.f32.mrf.mxu1 }
 0x13b   : > { %v3248_v43 = vpop.eup %3247  ;;  %2378 = vst [vmem:[%s3908_s8 + $0x298] sm:$0xff] %v3246_v40  ;;  %3273 = vpow2.f32 %v2713_v30  ;;  %v1008_v35 = vpop.f32.mrf.mxu0  ;;  %v1292_v58 = vadd.f32 %v2961_v27, %v3883_v14 }
 0x13c   : > { %v3250_v47 = vpop.eup %3249  ;;  %2309 = vst [vmem:[%s3908_s8 + $0x70] sm:$0xff] %v3248_v43  ;;  %3275 = vpow2.f32 %v2642_v34  ;;  %v1283_v39 = vpop.f32.mrf.mxu1  ;;  %v1009_v4 = vadd.f32 %v3883_v14, %v1008_v35 }
 0x13d   : > { %v3252_v51 = vpop.eup %3251  ;;  %2376 = vst [vmem:[%s3908_s8 + $0x288] sm:$0xff] %v3250_v47  ;;  %3277 = vpow2.f32 %v2716_v38  ;;  %v993_v38 = vadd.f32 %v3883_v14, %v3969_v59  ;;  %v2893_v50 = vpop.f32.mrf.mxu0  ;;  %v2724_v7 = vmul.f32 -1.442695, %v1292_v58 }
 0x13e   : > { %v3254_v54 = vpop.eup %3253  ;;  %2307 = vst [vmem:[%s3908_s8 + $0x60] sm:$0xff] %v3252_v51  ;;  %3279 = vpow2.f32 %v2647_v41 }
 0x13f   : > { %v3256_v56 = vpop.eup %3255  ;;  %2381 = vst [vmem:[%s3908_s8 + $0x2b0] sm:$0xff] %v3254_v54  ;;  %3281 = vpow2.f32 %v2714_v44  ;;  %v2964_v54 = vpop.f32.mrf.mxu1 }
 0x140   : > { %v3258_v60 = vpop.eup %3257  ;;  %2310 = vst [vmem:[%s3908_s8 + $0x78] sm:$0xff] %v3256_v56  ;;  %3283 = vpow2.f32 %v2645_v48 }
 0x141   : > { %v3260_v63 = vpop.eup %3259  ;;  %2379 = vst [vmem:[%s3908_s8 + $0x2a0] sm:$0xff] %v3258_v60  ;;  %3285 = vpow2.f32 %v2719_v52  ;;  %v2649_v52 = vmul.f32 -1.442695, %v993_v38  ;;  %v2652_v60 = vmul.f32 -1.442695, %v1004_v46 }
 0x142   : > { %v3262_v1 = vpop.eup %3261  ;;  %2308 = vst [vmem:[%s3908_s8 + $0x68] sm:$0xff] %v3260_v63  ;;  %3287 = vpow2.f32 %v2648_v55  ;;  %v2721_v63 = vmul.f32 -1.442695, %v1281_v49 }
 0x143   : > { %v3264_v2 = vpop.eup %3263  ;;  %2382 = vst [vmem:[%s3908_s8 + $0x2b8] sm:$0xff] %v3262_v1  ;;  %3289 = vpow2.f32 %v2717_v57  ;;  %v2723_v57 = vmul.f32 -1.442695, %v1289_v42  ;;  %v1011_v1 = vpop.f32.mrf.mxu0 }
 0x144   : > { %v3266_v5 = vpop.eup %3265  ;;  %v1960_v6 = vadd.f32 1.0, %v3264_v2  ;;  %3291 = vpow2.f32 %v2646_v61  ;;  %v1017_v61 = vadd.f32 %v2892_v24, %v3883_v14 }
 0x145   : > { %v3268_v8 = vpop.eup %3267  ;;  %2313 = vst [vmem:[%s3908_s8 + $0x90] sm:$0xff] %v3266_v5  ;;  %3293 = vpow2.f32 %v2720_v0  ;;  %v1284_v0 = vadd.f32 %v3883_v14, %v1283_v39  ;;  %v1296_v5 = vpop.f32.mrf.mxu1 }
 0x146   : > { %v3270_v9 = vpop.eup %3269  ;;  %3295 = vrcp.f32 %v1960_v6  ;;  %v1891_v10 = vadd.f32 1.0, %v3268_v8  ;;  %v1305_v8 = vadd.f32 %v2964_v54, %v3883_v14 }
 0x147   : > { %v3272_v11 = vpop.eup %3271  ;;  %v1965_v12 = vadd.f32 1.0, %v3270_v9  ;;  %3297 = vpow2.f32 %v2651_v3  ;;  %v2650_v3 = vmul.f32 -1.442695, %v996_v53  ;;  %v2722_v13 = vmul.f32 -1.442695, %v1284_v0 }
 0x148   : > { %v3274_v15 = vpop.eup %3273  ;;  %3299 = vrcp.f32 %v1891_v10  ;;  %v1894_v16 = vadd.f32 1.0, %v3272_v11  ;;  %v2655_v10 = vmul.f32 -1.442695, %v1017_v61  ;;  %v1020_v11 = vadd.f32 %v2893_v50, %v3883_v14  ;;  %v4014_v0 = vld [vmem:[%s4219_s2] ss:$0 sm:$0xff] }
 0x149   : > { %v3276_v18 = vpop.eup %3275  ;;  %3301 = vrcp.f32 %v1965_v12  ;;  %v1963_v19 = vadd.f32 1.0, %v3274_v15  ;;  %v1297_v15 = vadd.f32 %v3883_v14, %v1296_v5 }
 0x14a   : > { %v3278_v20 = vpop.eup %3277  ;;  %3303 = vrcp.f32 %v1894_v16  ;;  %v1892_v21 = vadd.f32 1.0, %v3276_v18  ;;  %v2896_v16 = vpop.f32.mrf.mxu0  ;;  %v2653_v18 = vmul.f32 -1.442695, %v1009_v4 }
 0x14b   : > { %v3280_v22 = vpop.eup %3279  ;;  %3305 = vrcp.f32 %v1963_v19  ;;  %v1966_v23 = vadd.f32 1.0, %v3278_v20  ;;  %v1012_v19 = vadd.f32 %v3883_v14, %v1011_v1  ;;  %v2965_v20 = vpop.f32.mrf.mxu1  ;;  %v2725_v27 = vmul.f32 -1.442695, %v1297_v15 }
 0x14c   : > { %v3282_v25 = vpop.eup %3281  ;;  %3307 = vrcp.f32 %v1892_v21  ;;  %v1897_v26 = vadd.f32 1.0, %v3280_v22  ;;  %v2727_v22 = vmul.f32 -1.442695, %v1305_v8 }
 0x14d   : > { %v3284_v28 = vpop.eup %3283  ;;  %3309 = vrcp.f32 %v1966_v23  ;;  %v1964_v29 = vadd.f32 1.0, %v3282_v25  ;;  %v1308_v23 = vadd.f32 %v2965_v20, %v3883_v14  ;;  %v2656_v25 = vmul.f32 -1.442695, %v1020_v11  ;;  %v1299_v32 = vpop.f32.mrf.mxu1 }
 0x14e   : > { %v3286_v30 = vpop.eup %3285  ;;  %3311 = vrcp.f32 %v1897_v26  ;;  %v1895_v31 = vadd.f32 1.0, %v3284_v28  ;;  %v1033_v28 = vadd.f32 %v2896_v16, %v3883_v14  ;;  %v1300_v1 = vadd.f32 %v4014_v0, %v1299_v32 }
 0x14f   : > { %v3288_v33 = vpop.eup %3287  ;;  %3313 = vrcp.f32 %v1964_v29  ;;  %v1969_v34 = vadd.f32 1.0, %v3286_v30  ;;  %v4004_v29 = vpop.f32.mrf.mxu0 }
 0x150   : > { %v3290_v36 = vpop.eup %3289  ;;  %3315 = vrcp.f32 %v1895_v31  ;;  %v1898_v37 = vadd.f32 1.0, %v3288_v33  ;;  %v2654_v31 = vmul.f32 -1.442695, %v1012_v19  ;;  %v2726_v15 = vmul.f32 -1.442695, %v1300_v1 }
 0x151   : > { %v3292_v40 = vpop.eup %3291  ;;  %3317 = vrcp.f32 %v1969_v34  ;;  %v1967_v41 = vadd.f32 1.0, %v3290_v36  ;;  %v2728_v34 = vmul.f32 -1.442695, %v1308_v23  ;;  %v2897_v14 = vpop.f32.mrf.mxu0 }
 0x152   : > { %v3294_v43 = vpop.eup %3293  ;;  %3319 = vrcp.f32 %v1898_v37  ;;  %v1896_v44 = vadd.f32 1.0, %v3292_v40  ;;  %v2659_v37 = vmul.f32 -1.442695, %v1033_v28  ;;  %v2968_v40 = vpop.f32.mrf.mxu1  ;;  %v1036_v16 = vadd.f32 %v4014_v0, %v2897_v14 }
 0x153   : > { %v3296_v47 = vpop.eup %3295  ;;  %3321 = vrcp.f32 %v1967_v41  ;;  %v1970_v48 = vadd.f32 1.0, %v3294_v43  ;;  %v1027_v46 = vpop.f32.mrf.mxu0  ;;  %v1321_v11 = vadd.f32 %v4014_v0, %v2968_v40 }
 0x154   : > { %v3298_v51 = vpop.eup %3297  ;;  %2380 = vst [vmem:[%s3908_s8 + $0x2a8] sm:$0xff] %v3296_v47  ;;  %3323 = vrcp.f32 %v1896_v44  ;;  %v1312_v49 = vpop.f32.mrf.mxu1  ;;  %v1028_v23 = vadd.f32 %v4014_v0, %v1027_v46 }
 0x155   : > { %v3300_v55 = vpop.eup %3299  ;;  %3325 = vrcp.f32 %v1970_v48  ;;  %v1901_v56 = vadd.f32 1.0, %v3298_v51  ;;  %v1313_v19 = vadd.f32 %v4014_v0, %v1312_v49 }
 0x156   : > { %v3302_v59 = vpop.eup %3301  ;;  %2311 = vst [vmem:[%s3908_s8 + $0x80] sm:$0xff] %v3300_v55  ;;  %3327 = vpow2.f32 %v2718_v45 }
 0x157   : > { %v3304_v62 = vpop.eup %3303  ;;  %2385 = vst [vmem:[%s3908_s8 + $0x2d0] sm:$0xff] %v3302_v59  ;;  %3329 = vrcp.f32 %v1901_v56  ;;  %v2900_v56 = vpop.f32.mrf.mxu0 }
 0x158   : > { %v3306_v2 = vpop.eup %3305  ;;  %2314 = vst [vmem:[%s3908_s8 + $0x98] sm:$0xff] %v3304_v62  ;;  %3331 = vpow2.f32 %v2649_v52  ;;  %v2969_v59 = vpop.f32.mrf.mxu1 }
 0x159   : > { %v3308_v6 = vpop.eup %3307  ;;  %2383 = vst [vmem:[%s3908_s8 + $0x2c0] sm:$0xff] %v3306_v2  ;;  %3333 = vpow2.f32 %v2723_v57  ;;  %v1040_v4 = vpop.f32.mrf.mxu0  ;;  %v1324_v28 = vadd.f32 %v4014_v0, %v2969_v59 }
 0x15a   : > { %v3310_v9 = vpop.eup %3309  ;;  %2312 = vst [vmem:[%s3908_s8 + $0x88] sm:$0xff] %v3308_v6  ;;  %3335 = vpow2.f32 %v2652_v60  ;;  %v1315_v8 = vpop.f32.mrf.mxu1  ;;  %v1041_v14 = vadd.f32 %v4014_v0, %v1040_v4 }
 0x15b   : > { %v3312_v12 = vpop.eup %3311  ;;  %2386 = vst [vmem:[%s3908_s8 + $0x2d8] sm:$0xff] %v3310_v9  ;;  %3337 = vpow2.f32 %v2721_v63  ;;  %v2901_v20 = vpop.f32.mrf.mxu0  ;;  %v2732_v40 = vmul.f32 -1.442695, %v1324_v28 }
 0x15c   : > { %v3314_v17 = vpop.eup %3313  ;;  %2317 = vst [vmem:[%s3908_s8 + $0xb0] sm:$0xff] %v3312_v12  ;;  %3339 = vpow2.f32 %v2650_v3 }
 0x15d   : > { %v3316_v21 = vpop.eup %3315  ;;  %2384 = vst [vmem:[%s3908_s8 + $0x2c8] sm:$0xff] %v3314_v17  ;;  %3341 = vpow2.f32 %v2724_v7  ;;  %v1025_v7 = vadd.f32 %v4014_v0, %v4004_v29 }
 0x15e   : > { %v3318_v24 = vpop.eup %3317  ;;  %2315 = vst [vmem:[%s3908_s8 + $0xa0] sm:$0xff] %v3316_v21  ;;  %3343 = vpow2.f32 %v2655_v10 }
 0x15f   : > { %v3320_v26 = vpop.eup %3319  ;;  %2389 = vst [vmem:[%s3908_s8 + $0x2f0] sm:$0xff] %v3318_v24  ;;  %3345 = vpow2.f32 %v2722_v13  ;;  %v2972_v24 = vpop.f32.mrf.mxu1 }
 0x160   : > { %v3322_v30 = vpop.eup %3321  ;;  %2318 = vst [vmem:[%s3908_s8 + $0xb8] sm:$0xff] %v3320_v26  ;;  %3347 = vpow2.f32 %v2653_v18 }
 0x161   : > { %v3324_v33 = vpop.eup %3323  ;;  %2387 = vst [vmem:[%s3908_s8 + $0x2e0] sm:$0xff] %v3322_v30  ;;  %3349 = vpow2.f32 %v2727_v22  ;;  %v2657_v22 = vmul.f32 -1.442695, %v1025_v7  ;;  %v2660_v30 = vmul.f32 -1.442695, %v1036_v16 }
 0x162   : > { %v3326_v35 = vpop.eup %3325  ;;  %2316 = vst [vmem:[%s3908_s8 + $0xa8] sm:$0xff] %v3324_v33  ;;  %3351 = vpow2.f32 %v2656_v25  ;;  %v2729_v33 = vmul.f32 -1.442695, %v1313_v19 }
 0x163   : > { %v3328_v36 = vpop.eup %3327  ;;  %2390 = vst [vmem:[%s3908_s8 + $0x2f8] sm:$0xff] %v3326_v35  ;;  %3353 = vpow2.f32 %v2725_v27  ;;  %v2731_v27 = vmul.f32 -1.442695, %v1321_v11  ;;  %v1043_v35 = vpop.f32.mrf.mxu0 }
 0x164   : > { %v3330_v38 = vpop.eup %3329  ;;  %v1968_v39 = vadd.f32 1.0, %v3328_v36  ;;  %3355 = vpow2.f32 %v2654_v31  ;;  %v1049_v31 = vadd.f32 %v4014_v0, %v2900_v56 }
 0x165   : > { %v3332_v41 = vpop.eup %3331  ;;  %2321 = vst [vmem:[%s3908_s8 + $0xd0] sm:$0xff] %v3330_v38  ;;  %3357 = vpow2.f32 %v2728_v34  ;;  %v1316_v34 = vadd.f32 %v4014_v0, %v1315_v8  ;;  %v1328_v38 = vpop.f32.mrf.mxu1 }
 0x166   : > { %v3334_v42 = vpop.eup %3333  ;;  %3359 = vrcp.f32 %v1968_v39  ;;  %v1899_v43 = vadd.f32 1.0, %v3332_v41  ;;  %v1337_v41 = vadd.f32 %v4014_v0, %v2972_v24 }
 0x167   : > { %v3336_v44 = vpop.eup %3335  ;;  %v1973_v45 = vadd.f32 1.0, %v3334_v42  ;;  %3361 = vpow2.f32 %v2659_v37  ;;  %v2658_v37 = vmul.f32 -1.442695, %v1028_v23  ;;  %v2730_v46 = vmul.f32 -1.442695, %v1316_v34 }
 0x168   : > { %v3338_v47 = vpop.eup %3337  ;;  %3363 = vrcp.f32 %v1899_v43  ;;  %v1902_v48 = vadd.f32 1.0, %v3336_v44  ;;  %v2663_v43 = vmul.f32 -1.442695, %v1049_v31  ;;  %v1052_v44 = vadd.f32 %v4014_v0, %v2901_v20 }
 0x169   : > { %v3340_v50 = vpop.eup %3339  ;;  %3365 = vrcp.f32 %v1973_v45  ;;  %v1971_v51 = vadd.f32 1.0, %v3338_v47  ;;  %v1329_v47 = vadd.f32 %v4014_v0, %v1328_v38 }
 0x16a   : > { %v3342_v52 = vpop.eup %3341  ;;  %3367 = vrcp.f32 %v1902_v48  ;;  %v1900_v53 = vadd.f32 1.0, %v3340_v50  ;;  %v2904_v48 = vpop.f32.mrf.mxu0  ;;  %v2661_v50 = vmul.f32 -1.442695, %v1041_v14 }
 0x16b   : > { %v3344_v54 = vpop.eup %3343  ;;  %3369 = vrcp.f32 %v1971_v51  ;;  %v1974_v55 = vadd.f32 1.0, %v3342_v52  ;;  %v1044_v51 = vadd.f32 %v4014_v0, %v1043_v35  ;;  %v2973_v52 = vpop.f32.mrf.mxu1  ;;  %v2733_v59 = vmul.f32 -1.442695, %v1329_v47 }
 0x16c   : > { %v3346_v57 = vpop.eup %3345  ;;  %3371 = vrcp.f32 %v1900_v53  ;;  %v1905_v58 = vadd.f32 1.0, %v3344_v54  ;;  %v2735_v54 = vmul.f32 -1.442695, %v1337_v41 }
 0x16d   : > { %v3348_v60 = vpop.eup %3347  ;;  %3373 = vrcp.f32 %v1974_v55  ;;  %v1972_v61 = vadd.f32 1.0, %v3346_v57  ;;  %v1340_v55 = vadd.f32 %v4014_v0, %v2973_v52  ;;  %v2664_v57 = vmul.f32 -1.442695, %v1052_v44  ;;  %v1331_v1 = vpop.f32.mrf.mxu1 }
 0x16e   : > { %v3350_v62 = vpop.eup %3349  ;;  %3375 = vrcp.f32 %v1905_v58  ;;  %v1903_v63 = vadd.f32 1.0, %v3348_v60  ;;  %v1065_v60 = vadd.f32 %v4014_v0, %v2904_v48  ;;  %v1332_v35 = vadd.f32 %v4014_v0, %v1331_v1 }
 0x16f   : > { %v3352_v2 = vpop.eup %3351  ;;  %3377 = vrcp.f32 %v1972_v61  ;;  %v1977_v3 = vadd.f32 1.0, %v3350_v62  ;;  %v4044_v61 = vpop.f32.mrf.mxu0 }
 0x170   : > { %v3354_v5 = vpop.eup %3353  ;;  %3379 = vrcp.f32 %v1903_v63  ;;  %v1906_v6 = vadd.f32 1.0, %v3352_v2  ;;  %v2662_v63 = vmul.f32 -1.442695, %v1044_v51  ;;  %v2734_v47 = vmul.f32 -1.442695, %v1332_v35 }
 0x171   : > { %v3356_v9 = vpop.eup %3355  ;;  %3381 = vrcp.f32 %v1977_v3  ;;  %v1975_v10 = vadd.f32 1.0, %v3354_v5  ;;  %v2736_v3 = vmul.f32 -1.442695, %v1340_v55  ;;  %v2905_v7 = vpop.f32.mrf.mxu0 }
 0x172   : > { %v3358_v12 = vpop.eup %3357  ;;  %3383 = vrcp.f32 %v1906_v6  ;;  %v1904_v13 = vadd.f32 1.0, %v3356_v9  ;;  %v2667_v6 = vmul.f32 -1.442695, %v1065_v60  ;;  %v1068_v48 = vadd.f32 %v4014_v0, %v2905_v7 }
 0x173   : > { %v3360_v17 = vpop.eup %3359  ;;  %3385 = vrcp.f32 %v1975_v10  ;;  %v1978_v18 = vadd.f32 1.0, %v3358_v12  ;;  %v2976_v10 = vpop.f32.mrf.mxu1 }
 0x174   : > { %v3362_v21 = vpop.eup %3361  ;;  %2388 = vst [vmem:[%s3908_s8 + $0x2e8] sm:$0xff] %v3360_v17  ;;  %3387 = vrcp.f32 %v1904_v13  ;;  %v1059_v17 = vpop.f32.mrf.mxu0  ;;  %v1353_v44 = vadd.f32 %v4014_v0, %v2976_v10 }
 0x175   : > { %v3364_v25 = vpop.eup %3363  ;;  %3389 = vrcp.f32 %v1978_v18  ;;  %v1909_v26 = vadd.f32 1.0, %v3362_v21  ;;  %v1344_v20 = vpop.f32.mrf.mxu1  ;;  %v1060_v55 = vadd.f32 %v4014_v0, %v1059_v17 }
 0x176   : > { %v3366_v29 = vpop.eup %3365  ;;  %2319 = vst [vmem:[%s3908_s8 + $0xc0] sm:$0xff] %v3364_v25  ;;  %3391 = vpow2.f32 %v2726_v15  ;;  %v1345_v51 = vadd.f32 %v4014_v0, %v1344_v20 }
 0x177   : > { %v3368_v32 = vpop.eup %3367  ;;  %2393 = vst [vmem:[%s3908_s8 + $0x310] sm:$0xff] %v3366_v29  ;;  %3393 = vrcp.f32 %v1909_v26 }
 0x178   : > { %v3370_v36 = vpop.eup %3369  ;;  %2322 = vst [vmem:[%s3908_s8 + $0xd8] sm:$0xff] %v3368_v32  ;;  %3395 = vpow2.f32 %v2657_v22 }
 0x179   : > { %v3372_v39 = vpop.eup %3371  ;;  %2391 = vst [vmem:[%s3908_s8 + $0x300] sm:$0xff] %v3370_v36  ;;  %3397 = vpow2.f32 %v2731_v27  ;;  %v2908_v27 = vpop.f32.mrf.mxu0 }
 0x17a   : > { %v3374_v42 = vpop.eup %3373  ;;  %2320 = vst [vmem:[%s3908_s8 + $0xc8] sm:$0xff] %v3372_v39  ;;  %3399 = vpow2.f32 %v2660_v30  ;;  %v2977_v30 = vpop.f32.mrf.mxu1 }
 0x17b   : > { %v3376_v45 = vpop.eup %3375  ;;  %2394 = vst [vmem:[%s3908_s8 + $0x318] sm:$0xff] %v3374_v42  ;;  %3401 = vpow2.f32 %v2729_v33  ;;  %v1072_v14 = vpop.f32.mrf.mxu0  ;;  %v1356_v60 = vadd.f32 %v4014_v0, %v2977_v30 }
 0x17c   : > { %v3378_v49 = vpop.eup %3377  ;;  %2325 = vst [vmem:[%s3908_s8 + $0xf0] sm:$0xff] %v3376_v45  ;;  %3403 = vpow2.f32 %v2658_v37  ;;  %v1347_v41 = vpop.f32.mrf.mxu1  ;;  %v1073_v7 = vadd.f32 %v4014_v0, %v1072_v14 }
 0x17d   : > { %v3380_v53 = vpop.eup %3379  ;;  %2392 = vst [vmem:[%s3908_s8 + $0x308] sm:$0xff] %v3378_v49  ;;  %3405 = vpow2.f32 %v2732_v40  ;;  %v1057_v40 = vadd.f32 %v4014_v0, %v4044_v61  ;;  %v2909_v52 = vpop.f32.mrf.mxu0  ;;  %v2740_v10 = vmul.f32 -1.442695, %v1356_v60 }
 0x17e   : > { %v3382_v56 = vpop.eup %3381  ;;  %2323 = vst [vmem:[%s3908_s8 + $0xe0] sm:$0xff] %v3380_v53  ;;  %3407 = vpow2.f32 %v2663_v43 }
 0x17f   : > { %v3384_v58 = vpop.eup %3383  ;;  %2397 = vst [vmem:[%s3908_s8 + $0x330] sm:$0xff] %v3382_v56  ;;  %3409 = vpow2.f32 %v2730_v46  ;;  %v2980_v56 = vpop.f32.mrf.mxu1 }
 0x180   : > { %v3386_v62 = vpop.eup %3385  ;;  %2326 = vst [vmem:[%s3908_s8 + $0xf8] sm:$0xff] %v3384_v58  ;;  %3411 = vpow2.f32 %v2661_v50 }
 0x181   : > { %v3388_v2 = vpop.eup %3387  ;;  %2395 = vst [vmem:[%s3908_s8 + $0x320] sm:$0xff] %v3386_v62  ;;  %3413 = vpow2.f32 %v2735_v54  ;;  %v2665_v54 = vmul.f32 -1.442695, %v1057_v40  ;;  %v2668_v62 = vmul.f32 -1.442695, %v1068_v48 }
 0x182   : > { %v3390_v4 = vpop.eup %3389  ;;  %2324 = vst [vmem:[%s3908_s8 + $0xe8] sm:$0xff] %v3388_v2  ;;  %3415 = vpow2.f32 %v2664_v57  ;;  %v2737_v2 = vmul.f32 -1.442695, %v1345_v51 }
 0x183   : > { %v3392_v5 = vpop.eup %3391  ;;  %2398 = vst [vmem:[%s3908_s8 + $0x338] sm:$0xff] %v3390_v4  ;;  %3417 = vpow2.f32 %v2733_v59  ;;  %v2739_v59 = vmul.f32 -1.442695, %v1353_v44  ;;  %v1075_v4 = vpop.f32.mrf.mxu0 }
 0x184   : > { %v3394_v8 = vpop.eup %3393  ;;  %v1976_v9 = vadd.f32 1.0, %v3392_v5  ;;  %3419 = vpow2.f32 %v2662_v63  ;;  %v1081_v63 = vadd.f32 %v4014_v0, %v2908_v27 }
 0x185   : > { %v3396_v11 = vpop.eup %3395  ;;  %2329 = vst [vmem:[%s3908_s8 + $0x110] sm:$0xff] %v3394_v8  ;;  %3421 = vpow2.f32 %v2736_v3  ;;  %v1348_v3 = vadd.f32 %v4014_v0, %v1347_v41  ;;  %v1360_v8 = vpop.f32.mrf.mxu1 }
 0x186   : > { %v3398_v12 = vpop.eup %3397  ;;  %3423 = vrcp.f32 %v1976_v9  ;;  %v1907_v13 = vadd.f32 1.0, %v3396_v11  ;;  %v1369_v11 = vadd.f32 %v4014_v0, %v2980_v56 }
 0x187   : > { %v3400_v15 = vpop.eup %3399  ;;  %v1981_v16 = vadd.f32 1.0, %v3398_v12  ;;  %3425 = vpow2.f32 %v2667_v6  ;;  %v2666_v6 = vmul.f32 -1.442695, %v1060_v55  ;;  %v2738_v17 = vmul.f32 -1.442695, %v1348_v3 }
 0x188   : > { %v3402_v18 = vpop.eup %3401  ;;  %3427 = vrcp.f32 %v1907_v13  ;;  %v1910_v19 = vadd.f32 1.0, %v3400_v15  ;;  %v2671_v13 = vmul.f32 -1.442695, %v1081_v63  ;;  %v1084_v15 = vadd.f32 %v4014_v0, %v2909_v52 }
 0x189   : > { %v3404_v21 = vpop.eup %3403  ;;  %3429 = vrcp.f32 %v1981_v16  ;;  %v1979_v22 = vadd.f32 1.0, %v3402_v18  ;;  %v1361_v18 = vadd.f32 %v4014_v0, %v1360_v8 }
 0x18a   : > { %v3406_v23 = vpop.eup %3405  ;;  %3431 = vrcp.f32 %v1910_v19  ;;  %v1908_v24 = vadd.f32 1.0, %v3404_v21  ;;  %v2912_v19 = vpop.f32.mrf.mxu0  ;;  %v2669_v21 = vmul.f32 -1.442695, %v1073_v7 }
 0x18b   : > { %v3408_v25 = vpop.eup %3407  ;;  %3433 = vrcp.f32 %v1979_v22  ;;  %v1982_v26 = vadd.f32 1.0, %v3406_v23  ;;  %v1076_v22 = vadd.f32 %v4014_v0, %v1075_v4  ;;  %v2981_v23 = vpop.f32.mrf.mxu1  ;;  %v2741_v30 = vmul.f32 -1.442695, %v1361_v18 }
 0x18c   : > { %v3410_v28 = vpop.eup %3409  ;;  %3435 = vrcp.f32 %v1908_v24  ;;  %v1913_v29 = vadd.f32 1.0, %v3408_v25  ;;  %v2743_v25 = vmul.f32 -1.442695, %v1369_v11 }
 0x18d   : > { %v3412_v31 = vpop.eup %3411  ;;  %3437 = vrcp.f32 %v1982_v26  ;;  %v1980_v32 = vadd.f32 1.0, %v3410_v28  ;;  %v1372_v26 = vadd.f32 %v4014_v0, %v2981_v23  ;;  %v2672_v28 = vmul.f32 -1.442695, %v1084_v15  ;;  %v1363_v35 = vpop.f32.mrf.mxu1 }
 0x18e   : > { %v3414_v33 = vpop.eup %3413  ;;  %3439 = vrcp.f32 %v1913_v29  ;;  %v1911_v34 = vadd.f32 1.0, %v3412_v31  ;;  %v1097_v31 = vadd.f32 %v4014_v0, %v2912_v19  ;;  %v1364_v4 = vadd.f32 %v4014_v0, %v1363_v35 }
 0x18f   : > { %v3416_v36 = vpop.eup %3415  ;;  %3441 = vrcp.f32 %v1980_v32  ;;  %v1985_v37 = vadd.f32 1.0, %v3414_v33  ;;  %v4079_v32 = vpop.f32.mrf.mxu0 }
 0x190   : > { %v3418_v38 = vpop.eup %3417  ;;  %3443 = vrcp.f32 %v1911_v34  ;;  %v1914_v39 = vadd.f32 1.0, %v3416_v36  ;;  %v2670_v34 = vmul.f32 -1.442695, %v1076_v22  ;;  %v2742_v18 = vmul.f32 -1.442695, %v1364_v4 }
 0x191   : > { %v3420_v42 = vpop.eup %3419  ;;  %3445 = vrcp.f32 %v1985_v37  ;;  %v1983_v43 = vadd.f32 1.0, %v3418_v38  ;;  %v2744_v37 = vmul.f32 -1.442695, %v1372_v26  ;;  %v2913_v40 = vpop.f32.mrf.mxu0 }
 0x192   : > { %v3422_v45 = vpop.eup %3421  ;;  %3447 = vrcp.f32 %v1914_v39  ;;  %v1912_v46 = vadd.f32 1.0, %v3420_v42  ;;  %v2675_v39 = vmul.f32 -1.442695, %v1097_v31  ;;  %v1100_v19 = vadd.f32 %v4014_v0, %v2913_v40 }
 0x193   : > { %v3424_v49 = vpop.eup %3423  ;;  %3449 = vrcp.f32 %v1983_v43  ;;  %v1986_v50 = vadd.f32 1.0, %v3422_v45  ;;  %v2984_v43 = vpop.f32.mrf.mxu1 }
 0x194   : > { %v3426_v53 = vpop.eup %3425  ;;  %2396 = vst [vmem:[%s3908_s8 + $0x328] sm:$0xff] %v3424_v49  ;;  %3451 = vrcp.f32 %v1912_v46  ;;  %v1091_v49 = vpop.f32.mrf.mxu0  ;;  %v1385_v15 = vadd.f32 %v4014_v0, %v2984_v43 }
 0x195   : > { %v3428_v57 = vpop.eup %3427  ;;  %3453 = vrcp.f32 %v1986_v50  ;;  %v1917_v58 = vadd.f32 1.0, %v3426_v53  ;;  %v1376_v52 = vpop.f32.mrf.mxu1  ;;  %v1092_v26 = vadd.f32 %v4014_v0, %v1091_v49 }
 0x196   : > { %v3430_v61 = vpop.eup %3429  ;;  %2327 = vst [vmem:[%s3908_s8 + $0x100] sm:$0xff] %v3428_v57  ;;  %3455 = vpow2.f32 %v2734_v47  ;;  %v1377_v22 = vadd.f32 %v4014_v0, %v1376_v52 }
 0x197   : > { %v3432_v1 = vpop.eup %3431  ;;  %2401 = vst [vmem:[%s3908_s8 + $0x350] sm:$0xff] %v3430_v61  ;;  %3457 = vrcp.f32 %v1917_v58 }
 0x198   : > { %v3434_v5 = vpop.eup %3433  ;;  %2330 = vst [vmem:[%s3908_s8 + $0x118] sm:$0xff] %v3432_v1  ;;  %3459 = vpow2.f32 %v2665_v54 }
 0x199   : > { %v3436_v9 = vpop.eup %3435  ;;  %2399 = vst [vmem:[%s3908_s8 + $0x340] sm:$0xff] %v3434_v5  ;;  %3461 = vpow2.f32 %v2739_v59  ;;  %v2916_v59 = vpop.f32.mrf.mxu0 }
 0x19a   : > { %v3438_v12 = vpop.eup %3437  ;;  %2328 = vst [vmem:[%s3908_s8 + $0x108] sm:$0xff] %v3436_v9  ;;  %3463 = vpow2.f32 %v2668_v62  ;;  %v2985_v62 = vpop.f32.mrf.mxu1 }
 0x19b   : > { %v3440_v16 = vpop.eup %3439  ;;  %2402 = vst [vmem:[%s3908_s8 + $0x358] sm:$0xff] %v3438_v12  ;;  %3465 = vpow2.f32 %v2737_v2  ;;  %v1104_v7 = vpop.f32.mrf.mxu0  ;;  %v1388_v31 = vadd.f32 %v4014_v0, %v2985_v62 }
 0x19c   : > { %v3442_v20 = vpop.eup %3441  ;;  %2333 = vst [vmem:[%s3908_s8 + $0x130] sm:$0xff] %v3440_v16  ;;  %3467 = vpow2.f32 %v2666_v6  ;;  %v1379_v11 = vpop.f32.mrf.mxu1  ;;  %v1105_v40 = vadd.f32 %v4014_v0, %v1104_v7 }
 0x19d   : > { %v3444_v24 = vpop.eup %3443  ;;  %2400 = vst [vmem:[%s3908_s8 + $0x348] sm:$0xff] %v3442_v20  ;;  %3469 = vpow2.f32 %v2740_v10  ;;  %v1089_v10 = vadd.f32 %v4014_v0, %v4079_v32  ;;  %v2917_v23 = vpop.f32.mrf.mxu0  ;;  %v2748_v43 = vmul.f32 -1.442695, %v1388_v31 }
 0x19e   : > { %v3446_v27 = vpop.eup %3445  ;;  %2331 = vst [vmem:[%s3908_s8 + $0x120] sm:$0xff] %v3444_v24  ;;  %3471 = vpow2.f32 %v2671_v13 }
 0x19f   : > { %v3448_v29 = vpop.eup %3447  ;;  %2405 = vst [vmem:[%s3908_s8 + $0x370] sm:$0xff] %v3446_v27  ;;  %3473 = vpow2.f32 %v2738_v17  ;;  %v2988_v27 = vpop.f32.mrf.mxu1 }
 0x1a0   : > { %v3450_v33 = vpop.eup %3449  ;;  %2334 = vst [vmem:[%s3908_s8 + $0x138] sm:$0xff] %v3448_v29  ;;  %3475 = vpow2.f32 %v2669_v21 }
 0x1a1   : > { %v3452_v36 = vpop.eup %3451  ;;  %2403 = vst [vmem:[%s3908_s8 + $0x360] sm:$0xff] %v3450_v33  ;;  %3477 = vpow2.f32 %v2743_v25  ;;  %v2673_v25 = vmul.f32 -1.442695, %v1089_v10  ;;  %v2676_v33 = vmul.f32 -1.442695, %v1100_v19 }
 0x1a2   : > { %v3454_v14 = vpop.eup %3453  ;;  %2332 = vst [vmem:[%s3908_s8 + $0x128] sm:$0xff] %v3452_v36  ;;  %3479 = vpow2.f32 %v2672_v28  ;;  %v2745_v36 = vmul.f32 -1.442695, %v1377_v22 }
 0x1a3   : > { %v3456_v38 = vpop.eup %3455  ;;  %2406 = vst [vmem:[%s3908_s8 + $0x378] sm:$0xff] %v3454_v14  ;;  %3481 = vpow2.f32 %v2741_v30  ;;  %v2747_v30 = vmul.f32 -1.442695, %v1385_v15  ;;  %v1107_v14 = vpop.f32.mrf.mxu0 }
 0x1a4   : > { %v3458_v41 = vpop.eup %3457  ;;  %v1984_v42 = vadd.f32 1.0, %v3456_v38  ;;  %3483 = vpow2.f32 %v2670_v34  ;;  %v1113_v34 = vadd.f32 %v4014_v0, %v2916_v59 }
 0x1a5   : > { %v3460_v44 = vpop.eup %3459  ;;  %2337 = vst [vmem:[%s3908_s8 + $0x150] sm:$0xff] %v3458_v41  ;;  %3485 = vpow2.f32 %v2744_v37  ;;  %v1380_v37 = vadd.f32 %v4014_v0, %v1379_v11  ;;  %v1392_v41 = vpop.f32.mrf.mxu1 }
 0x1a6   : > { %v3462_v45 = vpop.eup %3461  ;;  %3487 = vrcp.f32 %v1984_v42  ;;  %v1915_v46 = vadd.f32 1.0, %v3460_v44  ;;  %v1401_v44 = vadd.f32 %v4014_v0, %v2988_v27 }
 0x1a7   : > { %v3464_v47 = vpop.eup %3463  ;;  %v1989_v48 = vadd.f32 1.0, %v3462_v45  ;;  %3489 = vpow2.f32 %v2675_v39  ;;  %v2674_v39 = vmul.f32 -1.442695, %v1092_v26  ;;  %v2746_v49 = vmul.f32 -1.442695, %v1380_v37 }
 0x1a8   : > { %v3466_v50 = vpop.eup %3465  ;;  %3491 = vrcp.f32 %v1915_v46  ;;  %v1918_v51 = vadd.f32 1.0, %v3464_v47  ;;  %v2679_v46 = vmul.f32 -1.442695, %v1113_v34  ;;  %v1116_v47 = vadd.f32 %v4014_v0, %v2917_v23 }
 0x1a9   : > { %v3468_v53 = vpop.eup %3467  ;;  %3493 = vrcp.f32 %v1989_v48  ;;  %v1987_v54 = vadd.f32 1.0, %v3466_v50  ;;  %v1393_v50 = vadd.f32 %v4014_v0, %v1392_v41 }
 0x1aa   : > { %v3470_v55 = vpop.eup %3469  ;;  %3495 = vrcp.f32 %v1918_v51  ;;  %v1916_v56 = vadd.f32 1.0, %v3468_v53  ;;  %v2920_v51 = vpop.f32.mrf.mxu0  ;;  %v2677_v53 = vmul.f32 -1.442695, %v1105_v40 }
 0x1ab   : > { %v3472_v57 = vpop.eup %3471  ;;  %3497 = vrcp.f32 %v1987_v54  ;;  %v1990_v58 = vadd.f32 1.0, %v3470_v55  ;;  %v1108_v54 = vadd.f32 %v4014_v0, %v1107_v14  ;;  %v2989_v55 = vpop.f32.mrf.mxu1  ;;  %v2749_v62 = vmul.f32 -1.442695, %v1393_v50 }
 0x1ac   : > { %v3474_v60 = vpop.eup %3473  ;;  %3499 = vrcp.f32 %v1916_v56  ;;  %v1921_v61 = vadd.f32 1.0, %v3472_v57  ;;  %v2751_v57 = vmul.f32 -1.442695, %v1401_v44 }
 0x1ad   : > { %v3476_v63 = vpop.eup %3475  ;;  %3501 = vrcp.f32 %v1990_v58  ;;  %v1988_v1 = vadd.f32 1.0, %v3474_v60  ;;  %v1404_v58 = vadd.f32 %v4014_v0, %v2989_v55  ;;  %v2680_v60 = vmul.f32 -1.442695, %v1116_v47  ;;  %v1395_v4 = vpop.f32.mrf.mxu1 }
 0x1ae   : > { %v3478_v2 = vpop.eup %3477  ;;  %3503 = vrcp.f32 %v1921_v61  ;;  %v1919_v3 = vadd.f32 1.0, %v3476_v63  ;;  %v1129_v63 = vadd.f32 %v4014_v0, %v2920_v51  ;;  %v1396_v14 = vadd.f32 %v4014_v0, %v1395_v4 }
 0x1af   : > { %v3480_v5 = vpop.eup %3479  ;;  %3505 = vrcp.f32 %v1988_v1  ;;  %v1993_v6 = vadd.f32 1.0, %v3478_v2  ;;  %v4114_v1 = vpop.f32.mrf.mxu0 }
 0x1b0   : > { %v3482_v8 = vpop.eup %3481  ;;  %3507 = vrcp.f32 %v1919_v3  ;;  %v1922_v9 = vadd.f32 1.0, %v3480_v5  ;;  %v2678_v3 = vmul.f32 -1.442695, %v1108_v54  ;;  %v2750_v50 = vmul.f32 -1.442695, %v1396_v14 }
 0x1b1   : > { %v3484_v12 = vpop.eup %3483  ;;  %3509 = vrcp.f32 %v1993_v6  ;;  %v1991_v13 = vadd.f32 1.0, %v3482_v8  ;;  %v2752_v6 = vmul.f32 -1.442695, %v1404_v58  ;;  %v2921_v10 = vpop.f32.mrf.mxu0 }
 0x1b2   : > { %v3486_v16 = vpop.eup %3485  ;;  %3511 = vrcp.f32 %v1922_v9  ;;  %v1920_v17 = vadd.f32 1.0, %v3484_v12  ;;  %v2683_v9 = vmul.f32 -1.442695, %v1129_v63  ;;  %v1132_v51 = vadd.f32 %v4014_v0, %v2921_v10 }
 0x1b3   : > { %v3488_v20 = vpop.eup %3487  ;;  %3513 = vrcp.f32 %v1991_v13  ;;  %v1994_v21 = vadd.f32 1.0, %v3486_v16  ;;  %v2992_v13 = vpop.f32.mrf.mxu1 }
 0x1b4   : > { %v3490_v24 = vpop.eup %3489  ;;  %2404 = vst [vmem:[%s3908_s8 + $0x368] sm:$0xff] %v3488_v20  ;;  %3515 = vrcp.f32 %v1920_v17  ;;  %v1123_v20 = vpop.f32.mrf.mxu0  ;;  %v1417_v47 = vadd.f32 %v4014_v0, %v2992_v13 }
 0x1b5   : > { %v3492_v28 = vpop.eup %3491  ;;  %3517 = vrcp.f32 %v1994_v21  ;;  %v1925_v29 = vadd.f32 1.0, %v3490_v24  ;;  %v1408_v23 = vpop.f32.mrf.mxu1  ;;  %v1124_v58 = vadd.f32 %v4014_v0, %v1123_v20 }
 0x1b6   : > { %v3494_v32 = vpop.eup %3493  ;;  %2335 = vst [vmem:[%s3908_s8 + $0x140] sm:$0xff] %v3492_v28  ;;  %3519 = vpow2.f32 %v2742_v18  ;;  %v1409_v54 = vadd.f32 %v4014_v0, %v1408_v23 }
 0x1b7   : > { %v3496_v35 = vpop.eup %3495  ;;  %2409 = vst [vmem:[%s3908_s8 + $0x390] sm:$0xff] %v3494_v32  ;;  %3521 = vrcp.f32 %v1925_v29 }
 0x1b8   : > { %v3498_v38 = vpop.eup %3497  ;;  %2338 = vst [vmem:[%s3908_s8 + $0x158] sm:$0xff] %v3496_v35  ;;  %3523 = vpow2.f32 %v2673_v25 }
 0x1b9   : > { %v3500_v42 = vpop.eup %3499  ;;  %2407 = vst [vmem:[%s3908_s8 + $0x380] sm:$0xff] %v3498_v38  ;;  %3525 = vpow2.f32 %v2747_v30  ;;  %v2924_v30 = vpop.f32.mrf.mxu0 }
 0x1ba   : > { %v3502_v45 = vpop.eup %3501  ;;  %2336 = vst [vmem:[%s3908_s8 + $0x148] sm:$0xff] %v3500_v42  ;;  %3527 = vpow2.f32 %v2676_v33  ;;  %v2993_v33 = vpop.f32.mrf.mxu1 }
 0x1bb   : > { %v3504_v48 = vpop.eup %3503  ;;  %2410 = vst [vmem:[%s3908_s8 + $0x398] sm:$0xff] %v3502_v45  ;;  %3529 = vpow2.f32 %v2745_v36  ;;  %v1136_v40 = vpop.f32.mrf.mxu0  ;;  %v1420_v63 = vadd.f32 %v4014_v0, %v2993_v33 }
 0x1bc   : > { %v3506_v52 = vpop.eup %3505  ;;  %2341 = vst [vmem:[%s3908_s8 + $0x170] sm:$0xff] %v3504_v48  ;;  %3531 = vpow2.f32 %v2674_v39  ;;  %v1411_v44 = vpop.f32.mrf.mxu1  ;;  %v1137_v10 = vadd.f32 %v4014_v0, %v1136_v40 }
 0x1bd   : > { %v3508_v56 = vpop.eup %3507  ;;  %2408 = vst [vmem:[%s3908_s8 + $0x388] sm:$0xff] %v3506_v52  ;;  %3533 = vpow2.f32 %v2748_v43  ;;  %v1121_v43 = vadd.f32 %v4014_v0, %v4114_v1  ;;  %v2925_v55 = vpop.f32.mrf.mxu0  ;;  %v2756_v13 = vmul.f32 -1.442695, %v1420_v63 }
 0x1be   : > { %v3510_v59 = vpop.eup %3509  ;;  %2339 = vst [vmem:[%s3908_s8 + $0x160] sm:$0xff] %v3508_v56  ;;  %3535 = vpow2.f32 %v2679_v46 }
 0x1bf   : > { %v3512_v61 = vpop.eup %3511  ;;  %2413 = vst [vmem:[%s3908_s8 + $0x3b0] sm:$0xff] %v3510_v59  ;;  %3537 = vpow2.f32 %v2746_v49  ;;  %v2996_v59 = vpop.f32.mrf.mxu1 }
 0x1c0   : > { %v3514_v2 = vpop.eup %3513  ;;  %2342 = vst [vmem:[%s3908_s8 + $0x178] sm:$0xff] %v3512_v61  ;;  %3539 = vpow2.f32 %v2677_v53 }
 0x1c1   : > { %v3516_v5 = vpop.eup %3515  ;;  %2411 = vst [vmem:[%s3908_s8 + $0x3a0] sm:$0xff] %v3514_v2  ;;  %3541 = vpow2.f32 %v2751_v57  ;;  %v2681_v57 = vmul.f32 -1.442695, %v1121_v43  ;;  %v2684_v2 = vmul.f32 -1.442695, %v1132_v51 }
 0x1c2   : > { %v3518_v7 = vpop.eup %3517  ;;  %2340 = vst [vmem:[%s3908_s8 + $0x168] sm:$0xff] %v3516_v5  ;;  %3543 = vpow2.f32 %v2680_v60  ;;  %v2753_v5 = vmul.f32 -1.442695, %v1409_v54 }
 0x1c3   : > { %v3520_v8 = vpop.eup %3519  ;;  %2414 = vst [vmem:[%s3908_s8 + $0x3b8] sm:$0xff] %v3518_v7  ;;  %3545 = vpow2.f32 %v2749_v62  ;;  %v2755_v62 = vmul.f32 -1.442695, %v1417_v47  ;;  %v1139_v7 = vpop.f32.mrf.mxu0 }
 0x1c4   : > { %v3522_v11 = vpop.eup %3521  ;;  %v1992_v12 = vadd.f32 1.0, %v3520_v8  ;;  %3547 = vpow2.f32 %v2678_v3  ;;  %v1145_v3 = vadd.f32 %v4014_v0, %v2924_v30 }
 0x1c5   : > { %v3524_v15 = vpop.eup %3523  ;;  %2345 = vst [vmem:[%s3908_s8 + $0x190] sm:$0xff] %v3522_v11  ;;  %3549 = vpow2.f32 %v2752_v6  ;;  %v1412_v6 = vadd.f32 %v4014_v0, %v1411_v44  ;;  %v1424_v11 = vpop.f32.mrf.mxu1 }
 0x1c6   : > { %v3526_v16 = vpop.eup %3525  ;;  %3551 = vrcp.f32 %v1992_v12  ;;  %v1923_v17 = vadd.f32 1.0, %v3524_v15  ;;  %v1433_v15 = vadd.f32 %v4014_v0, %v2996_v59 }
 0x1c7   : > { %v3528_v18 = vpop.eup %3527  ;;  %v1997_v19 = vadd.f32 1.0, %v3526_v16  ;;  %3553 = vpow2.f32 %v2683_v9  ;;  %v2682_v9 = vmul.f32 -1.442695, %v1124_v58  ;;  %v2754_v20 = vmul.f32 -1.442695, %v1412_v6 }
 0x1c8   : > { %v3530_v21 = vpop.eup %3529  ;;  %3555 = vrcp.f32 %v1923_v17  ;;  %v1926_v22 = vadd.f32 1.0, %v3528_v18  ;;  %v2687_v17 = vmul.f32 -1.442695, %v1145_v3  ;;  %v1148_v18 = vadd.f32 %v4014_v0, %v2925_v55 }
 0x1c9   : > { %v3532_v24 = vpop.eup %3531  ;;  %3557 = vrcp.f32 %v1997_v19  ;;  %v1995_v25 = vadd.f32 1.0, %v3530_v21  ;;  %v1425_v21 = vadd.f32 %v4014_v0, %v1424_v11 }
 0x1ca   : > { %v3534_v26 = vpop.eup %3533  ;;  %3559 = vrcp.f32 %v1926_v22  ;;  %v1924_v27 = vadd.f32 1.0, %v3532_v24  ;;  %v2928_v22 = vpop.f32.mrf.mxu0  ;;  %v2685_v24 = vmul.f32 -1.442695, %v1137_v10 }
 0x1cb   : > { %v3536_v28 = vpop.eup %3535  ;;  %3561 = vrcp.f32 %v1995_v25  ;;  %v1998_v29 = vadd.f32 1.0, %v3534_v26  ;;  %v1140_v25 = vadd.f32 %v4014_v0, %v1139_v7  ;;  %v2997_v26 = vpop.f32.mrf.mxu1  ;;  %v2757_v33 = vmul.f32 -1.442695, %v1425_v21 }
 0x1cc   : > { %v3538_v31 = vpop.eup %3537  ;;  %3563 = vrcp.f32 %v1924_v27  ;;  %v1929_v32 = vadd.f32 1.0, %v3536_v28  ;;  %v2759_v28 = vmul.f32 -1.442695, %v1433_v15 }
 0x1cd   : > { %v3540_v34 = vpop.eup %3539  ;;  %3565 = vrcp.f32 %v1998_v29  ;;  %v1996_v35 = vadd.f32 1.0, %v3538_v31  ;;  %v1436_v29 = vadd.f32 %v4014_v0, %v2997_v26  ;;  %v2688_v31 = vmul.f32 -1.442695, %v1148_v18 }
 0x1ce   : > { %v3542_v36 = vpop.eup %3541  ;;  %3567 = vrcp.f32 %v1929_v32  ;;  %v1927_v37 = vadd.f32 1.0, %v3540_v34  ;;  %v4151_v34 = vld [vmem:[%s4219_s2] ss:$0 sm:$0xff] }
 0x1cf   : > { %v3544_v38 = vpop.eup %3543  ;;  %3569 = vrcp.f32 %v1996_v35  ;;  %v2001_v39 = vadd.f32 1.0, %v3542_v36  ;;  %v1161_v35 = vadd.f32 %v4151_v34, %v2928_v22  ;;  %v4154_v36 = vpop.f32.mrf.mxu0 }
 0x1d0   : > { %v3546_v41 = vpop.eup %3545  ;;  %3571 = vrcp.f32 %v1927_v37  ;;  %v1930_v42 = vadd.f32 1.0, %v3544_v38  ;;  %v2686_v37 = vmul.f32 -1.442695, %v1140_v25  ;;  %v2760_v38 = vmul.f32 -1.442695, %v1436_v29 }
 0x1d1   : > { %v3548_v45 = vpop.eup %3547  ;;  %3573 = vrcp.f32 %v2001_v39  ;;  %v1999_v46 = vadd.f32 1.0, %v3546_v41  ;;  %v2691_v41 = vmul.f32 -1.442695, %v1161_v35 }
 0x1d2   : > { %v3550_v48 = vpop.eup %3549  ;;  %3575 = vrcp.f32 %v1930_v42  ;;  %v1928_v49 = vadd.f32 1.0, %v3548_v45  ;;  %v2929_v42 = vpop.f32.mrf.mxu0 }
 0x1d3   : > { %v3552_v52 = vpop.eup %3551  ;;  %3577 = vrcp.f32 %v1999_v46  ;;  %v2002_v53 = vadd.f32 1.0, %v3550_v48  ;;  %v1427_v45 = vpop.f32.mrf.mxu1  ;;  %v1164_v21 = vadd.f32 %v4151_v34, %v2929_v42 }
 0x1d4   : > { %v3554_v56 = vpop.eup %3553  ;;  %2412 = vst [vmem:[%s3908_s8 + $0x3a8] sm:$0xff] %v3552_v52  ;;  %3579 = vrcp.f32 %v1928_v49  ;;  %v1155_v51 = vpop.f32.mrf.mxu0  ;;  %v1428_v6 = vadd.f32 %v4151_v34, %v1427_v45 }
 0x1d5   : > { %v3556_v60 = vpop.eup %3555  ;;  %3581 = vrcp.f32 %v2002_v53  ;;  %v1933_v61 = vadd.f32 1.0, %v3554_v56  ;;  %v3000_v54 = vpop.f32.mrf.mxu1 }
 0x1d6   : > { %v3558_v1 = vpop.eup %3557  ;;  %2343 = vst [vmem:[%s3908_s8 + $0x180] sm:$0xff] %v3556_v60  ;;  %3583 = vpow2.f32 %v2750_v50 }
 0x1d7   : > { %v3560_v4 = vpop.eup %3559  ;;  %2417 = vst [vmem:[%s3908_s8 + $0x3d0] sm:$0xff] %v3558_v1  ;;  %3585 = vrcp.f32 %v1933_v61  ;;  %v2932_v61 = vpop.f32.mrf.mxu0 }
 0x1d8   : > { %v3562_v8 = vpop.eup %3561  ;;  %2346 = vst [vmem:[%s3908_s8 + $0x198] sm:$0xff] %v3560_v4  ;;  %3587 = vpow2.f32 %v2681_v57  ;;  %v1440_v1 = vpop.f32.mrf.mxu1 }
 0x1d9   : > { %v3564_v12 = vpop.eup %3563  ;;  %2415 = vst [vmem:[%s3908_s8 + $0x3c0] sm:$0xff] %v3562_v8  ;;  %3589 = vpow2.f32 %v2755_v62 }
 0x1da   : > { %v3566_v16 = vpop.eup %3565  ;;  %2344 = vst [vmem:[%s3908_s8 + $0x188] sm:$0xff] %v3564_v12  ;;  %3591 = vpow2.f32 %v2684_v2  ;;  %v1153_v12 = vadd.f32 %v4151_v34, %v4154_v36  ;;  %v2692_v36 = vmul.f32 -1.442695, %v1164_v21 }
 0x1db   : > { %v3568_v19 = vpop.eup %3567  ;;  %2418 = vst [vmem:[%s3908_s8 + $0x3d8] sm:$0xff] %v3566_v16  ;;  %3593 = vpow2.f32 %v2753_v5 }
 0x1dc   : > { %v3570_v23 = vpop.eup %3569  ;;  %2349 = vst [vmem:[%s3908_s8 + $0x1b0] sm:$0xff] %v3568_v19  ;;  %3595 = vpow2.f32 %v2682_v9  ;;  %v1168_v9 = vpop.f32.mrf.mxu0 }
 0x1dd   : > { %v3572_v27 = vpop.eup %3571  ;;  %2416 = vst [vmem:[%s3908_s8 + $0x3c8] sm:$0xff] %v3570_v23  ;;  %3597 = vpow2.f32 %v2756_v13  ;;  %v3001_v13 = vpop.f32.mrf.mxu1  ;;  %v1169_v42 = vadd.f32 %v4151_v34, %v1168_v9 }
 0x1de   : > { %v3574_v30 = vpop.eup %3573  ;;  %2347 = vst [vmem:[%s3908_s8 + $0x1a0] sm:$0xff] %v3572_v27  ;;  %3599 = vpow2.f32 %v2687_v17  ;;  %v1449_v17 = vadd.f32 %v4151_v34, %v3000_v54  ;;  %v2933_v25 = vpop.f32.mrf.mxu0  ;;  %v2689_v27 = vmul.f32 -1.442695, %v1153_v12 }
 0x1df   : > { %v3576_v32 = vpop.eup %3575  ;;  %2421 = vst [vmem:[%s3908_s8 + $0x3f0] sm:$0xff] %v3574_v30  ;;  %3601 = vpow2.f32 %v2754_v20  ;;  %v2758_v20 = vmul.f32 -1.442695, %v1428_v6  ;;  %v1443_v29 = vpop.f32.mrf.mxu1  ;;  %v1180_v45 = vadd.f32 %v4151_v34, %v2933_v25 }
 0x1e0   : > { %v3578_v0 = vpop.eup %3577  ;;  %2350 = vst [vmem:[%s3908_s8 + $0x1b8] sm:$0xff] %v3576_v32  ;;  %3603 = vpow2.f32 %v2685_v24  ;;  %v1441_v24 = vadd.f32 %v4151_v34, %v1440_v1  ;;  %v2763_v32 = vmul.f32 -1.442695, %v1449_v17 }
 0x1e1   : > { %v3580_v14 = vpop.eup %3579  ;;  %2419 = vst [vmem:[%s3908_s8 + $0x3e0] sm:$0xff] %v3578_v0  ;;  %3605 = vpow2.f32 %v2759_v28  ;;  %v1156_v28 = vadd.f32 %v4151_v34, %v1155_v51  ;;  %v1177_v0 = vadd.f32 %v4151_v34, %v2932_v61  ;;  %v2696_v54 = vmul.f32 -1.442695, %v1180_v45 }
 0x1e2   : > { %v3582_v39 = vpop.eup %3581  ;;  %2348 = vst [vmem:[%s3908_s8 + $0x1a8] sm:$0xff] %v3580_v14  ;;  %3607 = vpow2.f32 %v2688_v31  ;;  %v2761_v14 = vmul.f32 -1.442695, %v1441_v24 }
 0x1e3   : > { %v3584_v40 = vpop.eup %3583  ;;  %2422 = vst [vmem:[%s3908_s8 + $0x3f8] sm:$0xff] %v3582_v39  ;;  %3609 = vpow2.f32 %v2757_v33  ;;  %v1452_v33 = vadd.f32 %v4151_v34, %v3001_v13  ;;  %v1171_v39 = vpop.f32.mrf.mxu0 }
 0x1e4   : > { %v3586_v43 = vpop.eup %3585  ;;  %v2000_v44 = vadd.f32 1.0, %v3584_v40  ;;  %3611 = vpow2.f32 %v2686_v37 }
 0x1e5   : > { %v3588_v46 = vpop.eup %3587  ;;  %2353 = vst [vmem:[%s3908_s8 + $0x1d0] sm:$0xff] %v3586_v43  ;;  %3613 = vpow2.f32 %v2760_v38  ;;  %v1444_v38 = vadd.f32 %v4151_v34, %v1443_v29 }
 0x1e6   : > { %v3590_v47 = vpop.eup %3589  ;;  %3615 = vrcp.f32 %v2000_v44  ;;  %v1931_v48 = vadd.f32 1.0, %v3588_v46  ;;  %v2764_v44 = vmul.f32 -1.442695, %v1452_v33 }
 0x1e7   : > { %v3592_v49 = vpop.eup %3591  ;;  %v2005_v50 = vadd.f32 1.0, %v3590_v47  ;;  %3617 = vpow2.f32 %v2691_v41  ;;  %v2690_v41 = vmul.f32 -1.442695, %v1156_v28  ;;  %v2695_v47 = vmul.f32 -1.442695, %v1177_v0 }
 0x1e8   : > { %v3594_v52 = vpop.eup %3593  ;;  %3619 = vrcp.f32 %v1931_v48  ;;  %v1934_v53 = vadd.f32 1.0, %v3592_v49  ;;  %v1172_v48 = vadd.f32 %v4151_v34, %v1171_v39 }
 0x1e9   : > { %v3596_v55 = vpop.eup %3595  ;;  %3621 = vrcp.f32 %v2005_v50  ;;  %v2003_v56 = vadd.f32 1.0, %v3594_v52  ;;  %v2762_v50 = vmul.f32 -1.442695, %v1444_v38  ;;  %v2693_v52 = vmul.f32 -1.442695, %v1169_v42 }
 0x1ea   : > { %v3598_v57 = vpop.eup %3597  ;;  %3623 = vrcp.f32 %v1934_v53  ;;  %v1932_v58 = vadd.f32 1.0, %v3596_v55  ;;  %v2694_v34 = vmul.f32 -1.442695, %v1172_v48 }
 0x1eb   : > { %v3600_v59 = vpop.eup %3599  ;;  %3625 = vrcp.f32 %v2003_v56  ;;  %v2006_v60 = vadd.f32 1.0, %v3598_v57 }
 0x1ec   : > { %v3602_v62 = vpop.eup %3601  ;;  %3627 = vrcp.f32 %v1932_v58  ;;  %v1937_v63 = vadd.f32 1.0, %v3600_v59 }
 0x1ed   : > { %v3604_v2 = vpop.eup %3603  ;;  %3629 = vrcp.f32 %v2006_v60  ;;  %v2004_v3 = vadd.f32 1.0, %v3602_v62 }
 0x1ee   : > { %v3606_v4 = vpop.eup %3605  ;;  %3631 = vrcp.f32 %v1937_v63  ;;  %v1935_v5 = vadd.f32 1.0, %v3604_v2 }
 0x1ef   : > { %v3608_v7 = vpop.eup %3607  ;;  %3633 = vrcp.f32 %v2004_v3  ;;  %v2009_v8 = vadd.f32 1.0, %v3606_v4 }
 0x1f0   : > { %v3610_v10 = vpop.eup %3609  ;;  %3635 = vrcp.f32 %v1935_v5  ;;  %v1938_v11 = vadd.f32 1.0, %v3608_v7 }
 0x1f1   : > { %v3612_v15 = vpop.eup %3611  ;;  %3637 = vrcp.f32 %v2009_v8  ;;  %v2007_v16 = vadd.f32 1.0, %v3610_v10 }
 0x1f2   : > { %v3614_v18 = vpop.eup %3613  ;;  %3639 = vrcp.f32 %v1938_v11  ;;  %v1936_v19 = vadd.f32 1.0, %v3612_v15 }
 0x1f3   : > { %v3616_v22 = vpop.eup %3615  ;;  %3641 = vrcp.f32 %v2007_v16  ;;  %v2010_v23 = vadd.f32 1.0, %v3614_v18 }
 0x1f4   : > { %v3618_v26 = vpop.eup %3617  ;;  %2420 = vst [vmem:[%s3908_s8 + $0x3e8] sm:$0xff] %v3616_v22  ;;  %3643 = vrcp.f32 %v1936_v19 }
 0x1f5   : > { %v3620_v30 = vpop.eup %3619  ;;  %3645 = vrcp.f32 %v2010_v23  ;;  %v1941_v31 = vadd.f32 1.0, %v3618_v26 }
 0x1f6   : > { %v3622_v35 = vpop.eup %3621  ;;  %2351 = vst [vmem:[%s3908_s8 + $0x1c0] sm:$0xff] %v3620_v30  ;;  %3647 = vpow2.f32 %v2758_v20 }
 0x1f7   : > { %v3624_v37 = vpop.eup %3623  ;;  %2425 = vst [vmem:[%s3908_s8 + $0x410] sm:$0xff] %v3622_v35  ;;  %3649 = vrcp.f32 %v1941_v31 }
 0x1f8   : > { %v3626_v40 = vpop.eup %3625  ;;  %2354 = vst [vmem:[%s3908_s8 + $0x1d8] sm:$0xff] %v3624_v37  ;;  %3651 = vpow2.f32 %v2689_v27 }
 0x1f9   : > { %v3628_v43 = vpop.eup %3627  ;;  %2423 = vst [vmem:[%s3908_s8 + $0x400] sm:$0xff] %v3626_v40  ;;  %3653 = vpow2.f32 %v2763_v32 }
 0x1fa   : > { %v3630_v46 = vpop.eup %3629  ;;  %2352 = vst [vmem:[%s3908_s8 + $0x1c8] sm:$0xff] %v3628_v43  ;;  %3655 = vpow2.f32 %v2692_v36 }
 0x1fb   : > { %v3632_v49 = vpop.eup %3631  ;;  %2426 = vst [vmem:[%s3908_s8 + $0x418] sm:$0xff] %v3630_v46  ;;  %3657 = vpow2.f32 %v2761_v14 }
 0x1fc   : > { %v3634_v51 = vpop.eup %3633  ;;  %2357 = vst [vmem:[%s3908_s8 + $0x1f0] sm:$0xff] %v3632_v49  ;;  %3659 = vpow2.f32 %v2690_v41 }
 0x1fd   : > { %v3636_v53 = vpop.eup %3635  ;;  %2424 = vst [vmem:[%s3908_s8 + $0x408] sm:$0xff] %v3634_v51  ;;  %3661 = vpow2.f32 %v2764_v44 }
 0x1fe   : > { %v3638_v55 = vpop.eup %3637  ;;  %2355 = vst [vmem:[%s3908_s8 + $0x1e0] sm:$0xff] %v3636_v53  ;;  %3663 = vpow2.f32 %v2695_v47 }
 0x1ff   : > { %v3640_v56 = vpop.eup %3639  ;;  %2429 = vst [vmem:[%s3908_s8 + $0x430] sm:$0xff] %v3638_v55  ;;  %3665 = vpow2.f32 %v2762_v50 }
 0x200   : > { %v3642_v57 = vpop.eup %3641  ;;  %2358 = vst [vmem:[%s3908_s8 + $0x1f8] sm:$0xff] %v3640_v56  ;;  %3667 = vpow2.f32 %v2693_v52 }
 0x201   : > { %v3644_v58 = vpop.eup %3643  ;;  %2427 = vst [vmem:[%s3908_s8 + $0x420] sm:$0xff] %v3642_v57  ;;  %3669 = vpow2.f32 %v2696_v54 }
 0x202   : > { %v3646_v59 = vpop.eup %3645  ;;  %2356 = vst [vmem:[%s3908_s8 + $0x1e8] sm:$0xff] %v3644_v58  ;;  %3671 = vpow2.f32 %v2694_v34 }
 0x203   : > { %v3648_v60 = vpop.eup %3647  ;;  %2430 = vst [vmem:[%s3908_s8 + $0x438] sm:$0xff] %v3646_v59 }
 0x204   : > { %v3650_v61 = vpop.eup %3649  ;;  %v2008_v62 = vadd.f32 1.0, %v3648_v60 }
 0x205   : > { %v3652_v63 = vpop.eup %3651  ;;  %2361 = vst [vmem:[%s3908_s8 + $0x210] sm:$0xff] %v3650_v61 }
 0x206   : > { %v3654_v1 = vpop.eup %3653  ;;  %3673 = vrcp.f32 %v2008_v62  ;;  %v1939_v2 = vadd.f32 1.0, %v3652_v63 }
 0x207   : > { %v3656_v3 = vpop.eup %3655  ;;  %v2013_v4 = vadd.f32 1.0, %v3654_v1 }
 0x208   : > { %v3658_v5 = vpop.eup %3657  ;;  %3675 = vrcp.f32 %v1939_v2  ;;  %v1942_v6 = vadd.f32 1.0, %v3656_v3 }
 0x209   : > { %v3660_v7 = vpop.eup %3659  ;;  %3677 = vrcp.f32 %v2013_v4  ;;  %v2011_v8 = vadd.f32 1.0, %v3658_v5 }
 0x20a   : > { %v3662_v9 = vpop.eup %3661  ;;  %3679 = vrcp.f32 %v1942_v6  ;;  %v1940_v10 = vadd.f32 1.0, %v3660_v7 }
 0x20b   : > { %v3664_v11 = vpop.eup %3663  ;;  %3681 = vrcp.f32 %v2011_v8  ;;  %v2014_v12 = vadd.f32 1.0, %v3662_v9 }
 0x20c   : > { %v3666_v13 = vpop.eup %3665  ;;  %3683 = vrcp.f32 %v1940_v10  ;;  %v1945_v15 = vadd.f32 1.0, %v3664_v11 }
 0x20d   : > { %v3668_v16 = vpop.eup %3667  ;;  %3685 = vrcp.f32 %v2014_v12  ;;  %v2012_v17 = vadd.f32 1.0, %v3666_v13 }
 0x20e   : > { %v3670_v18 = vpop.eup %3669  ;;  %3687 = vrcp.f32 %v1945_v15  ;;  %v1943_v19 = vadd.f32 1.0, %v3668_v16 }
 0x20f   : > { %v3672_v20 = vpop.eup %3671  ;;  %3689 = vrcp.f32 %v2012_v17  ;;  %v1946_v21 = vadd.f32 1.0, %v3670_v18 }
 0x210   : > { %3691 = vrcp.f32 %v1943_v19  ;;  %v1944_v22 = vadd.f32 1.0, %v3672_v20 }
 0x211   : > { %3693 = vrcp.f32 %v1946_v21 }
 0x212   : > { %3695 = vrcp.f32 %v1944_v22 }
 0x213   : > { %v3674_v23 = vpop.eup %3673 }
 0x214   : > { %2428 = vst [vmem:[%s3908_s8 + $0x428] sm:$0xff] %v3674_v23 }
 0x215   : > { %v3676_v24 = vpop.eup %3675 }
 0x216   : > { %v3678_v25 = vpop.eup %3677  ;;  %2359 = vst [vmem:[%s3908_s8 + $0x200] sm:$0xff] %v3676_v24 }
 0x217   : > { %v3680_v26 = vpop.eup %3679  ;;  %2433 = vst [vmem:[%s3908_s8 + $0x450] sm:$0xff] %v3678_v25 }
 0x218   : > { %v3682_v27 = vpop.eup %3681  ;;  %2362 = vst [vmem:[%s3908_s8 + $0x218] sm:$0xff] %v3680_v26 }
 0x219   : > { %v3684_v28 = vpop.eup %3683  ;;  %2431 = vst [vmem:[%s3908_s8 + $0x440] sm:$0xff] %v3682_v27 }
 0x21a   : > { %v3686_v29 = vpop.eup %3685  ;;  %2360 = vst [vmem:[%s3908_s8 + $0x208] sm:$0xff] %v3684_v28 }
 0x21b   : > { %v3688_v30 = vpop.eup %3687  ;;  %2434 = vst [vmem:[%s3908_s8 + $0x458] sm:$0xff] %v3686_v29 }
 0x21c   : > { %v3690_v31 = vpop.eup %3689  ;;  %2365 = vst [vmem:[%s3908_s8 + $0x230] sm:$0xff] %v3688_v30 }
 0x21d   : > { %v3692_v32 = vpop.eup %3691  ;;  %2432 = vst [vmem:[%s3908_s8 + $0x448] sm:$0xff] %v3690_v31 }
 0x21e   : > { %v3694_v33 = vpop.eup %3693  ;;  %2363 = vst [vmem:[%s3908_s8 + $0x220] sm:$0xff] %v3692_v32 }
 0x21f   : > { %v3696_v35 = vpop.eup %3695  ;;  %2366 = vst [vmem:[%s3908_s8 + $0x238] sm:$0xff] %v3694_v33 }
 0x220   : > { %2364 = vst [vmem:[%s3908_s8 + $0x228] sm:$0xff] %v3696_v35 }
 0x221 PF: > { %s13_s16 = sadd.s32 1, %s3737_s16   ;;  %s4221_s12 = smov %s3729_s14 }
 0x222   : > { %p10_p7 = scmp.ge.s32.totalorder %s13_s16, 10   ;;  %s4222_s13 = smov %s3733_s15 }
 0x223   : > { %s4223_s14 = smov %s4226_s17  ;;  %s4224_s15 = smov %s4230_s18 }
 0x224   :  { %12 = sbr.rel (!%p10_p7) target bundleno = 3 (0x3), region = 65 }

</bundles_post_ra>
